<compile_context>
chip_gen: v7x
topology: tpu7x:2x2x1
jax: 0.10.0
libtpu: 0.0.40
codegen_flags: <defaults>
</compile_context>

<pallas_src>
import functools

import jax
import jax.numpy as jnp
from jax.experimental import pallas as pl
from jax.experimental.pallas import tpu as pltpu

BN_EPS = 1e-5
_BLOCK_STRIDES = (2, 1, 2, 1)
_VMEM = pl.BlockSpec(memory_space=pltpu.MemorySpace.VMEM)


# ----------------------------- Pallas kernels -----------------------------

def _mm_kernel(*refs, has_scale, has_resid, act):
    """Fused (im2col-)conv / linear:  Y = act((X@W) * scale + bias [+ resid])."""
    x_ref, w_ref = refs[0], refs[1]
    pos = 2
    scale_ref = None
    if has_scale:
        scale_ref = refs[pos]
        pos += 1
    bias_ref = refs[pos]
    pos += 1
    resid_ref = None
    if has_resid:
        resid_ref = refs[pos]
        pos += 1
    o_ref = refs[pos]

    y = jnp.dot(x_ref[...], w_ref[...], preferred_element_type=jnp.float32)
    if has_scale:
        y = y * scale_ref[...]
    y = y + bias_ref[...]
    if has_resid:
        y = y + resid_ref[...]
    if act == "relu":
        y = jnp.maximum(y, 0.0)
    o_ref[...] = y


def matmul_fused(x, w, bias, scale=None, resid=None, act=None, tm=512):
    """x: (M, K) bf16, w: (K, N) bf16, scale/bias: (N,) f32, resid: (M, N) f32.

    Grid-tiled over M only (K, N are small here); rows are independent, so a
    padded final tile is correct (masked write-back).
    """
    m, k = x.shape
    k2, n = w.shape
    assert k == k2
    tm = min(tm, m)
    grid = (pl.cdiv(m, tm),)

    in_specs = [pl.BlockSpec((tm, k), lambda i: (i, 0)),
                pl.BlockSpec((k, n), lambda i: (0, 0))]
    args = [x, w]
    if scale is not None:
        in_specs.append(pl.BlockSpec((1, n), lambda i: (0, 0)))
        args.append(scale.reshape(1, n).astype(jnp.float32))
    in_specs.append(pl.BlockSpec((1, n), lambda i: (0, 0)))
    args.append(bias.reshape(1, n).astype(jnp.float32))
    if resid is not None:
        in_specs.append(pl.BlockSpec((tm, n), lambda i: (i, 0)))
        args.append(resid.astype(jnp.float32))

    kernel = functools.partial(_mm_kernel, has_scale=scale is not None,
                               has_resid=resid is not None, act=act)
    return pl.pallas_call(
        kernel,
        out_shape=jax.ShapeDtypeStruct((m, n), jnp.float32),
        grid=grid,
        in_specs=in_specs,
        out_specs=pl.BlockSpec((tm, n), lambda i: (i, 0)),
        compiler_params=pltpu.CompilerParams(
            dimension_semantics=("parallel",)),
    )(*args)


def _sk_combine_kernel(o0_ref, o1_ref, a0_ref, a1_ref, scale_ref, bias_ref,
                       v_ref):
    """V = relu(bn2(o0*a0 + o1*a1)) — SK select + bn2 + ReLU fused."""
    v = o0_ref[...] * a0_ref[...] + o1_ref[...] * a1_ref[...]
    v_ref[...] = jnp.maximum(v * scale_ref[...] + bias_ref[...], 0.0)


def sk_combine_bn_relu(o0, o1, a0, a1, scale, bias):
    m, c = o0.shape
    return pl.pallas_call(
        _sk_combine_kernel,
        out_shape=jax.ShapeDtypeStruct((m, c), jnp.float32),
        in_specs=[_VMEM] * 6,
        out_specs=_VMEM,
    )(o0, o1, a0, a1, scale.reshape(1, c), bias.reshape(1, c))


# ------------------------------- JAX glue ----------------------------------

def bn_scale_bias(bn):
    scale = bn["gamma"] / jnp.sqrt(bn["var"] + BN_EPS)
    bias = bn["beta"] - bn["mean"] * scale
    return scale, bias


def im2col5(x, stride):
    """5x5, pad=2 im2col.  x: (B, H, W, C) -> (B*Ho*Wo, 25*C) bf16,
    feature ordering (di, dj, C) to match the weight matrix layout."""
    b, h, w, c = x.shape
    xp = jnp.pad(x, ((0, 0), (2, 2), (2, 2), (0, 0)))
    ho = (h - 1) // stride + 1
    wo = (w - 1) // stride + 1
    cols = []
    for di in range(5):
        for dj in range(5):
            cols.append(xp[:, di:di + stride * ho:stride,
                           dj:dj + stride * wo:stride, :])
    patches = jnp.concatenate(cols, axis=-1)
    return patches.reshape(b * ho * wo, 25 * c).astype(jnp.bfloat16), ho, wo


# ------------------------------ model forward -------------------------------

def skblock_forward(x, p, stride):
    b, h, w, cin = x.shape
    mid = p["c1_w"].shape[1]
    cout = p["c3_w"].shape[1]

    # conv1 (1x1) + bn1 + ReLU  -- pure reshape, no im2col.
    h1 = matmul_fused(x.reshape(b * h * w, cin).astype(jnp.bfloat16),
                      p["c1_w"], p["c1_b"], scale=p["c1_s"], act="relu")
    h1 = h1.reshape(b, h, w, mid)

    # SKconv: both branches (3x3 & 5x5) in ONE matmul via 5x5 im2col +
    # zero-padded/concatenated weights.
    patches, ho, wo = im2col5(h1, stride)
    o = matmul_fused(patches, p["br_w"], p["br_b"], scale=p["br_s"],
                     act="relu")                                   # (M, 2*mid)
    o0 = o[:, :mid]
    o1 = o[:, mid:]
    hw = ho * wo

    # SK attention gate (tiny: (3B, mid)) -- plain jnp so XLA fuses it.
    u = (o0 + o1).reshape(b, hw, mid)
    s = jnp.mean(u, axis=1)                                        # avgpool(1)
    logits = (s @ p["attn_w"] + p["attn_b"]).reshape(b, 2, mid)    # fc1∘fc2
    a = jax.nn.softmax(logits, axis=1)                             # over M=2
    a0 = jnp.broadcast_to(a[:, 0, :][:, None, :], (b, hw, mid)).reshape(-1, mid)
    a1 = jnp.broadcast_to(a[:, 1, :][:, None, :], (b, hw, mid)).reshape(-1, mid)

    # V = relu(bn2(o0*a0 + o1*a1))  -- one fused elementwise kernel.
    v = sk_combine_bn_relu(o0, o1, a0, a1, p["bn2_s"], p["bn2_b"])

    # identity path
    if "down_w" in p:
        xd = x[:, ::stride, ::stride, :]
        resid = matmul_fused(xd.reshape(b * hw, cin).astype(jnp.bfloat16),
                             p["down_w"], p["down_b"], scale=p["down_s"],
                             act=None)
    else:
        resid = x.reshape(b * hw, cout)

    # conv3 (1x1) + bn3 + residual add + ReLU in one call.
    y = matmul_fused(v.astype(jnp.bfloat16), p["c3_w"], p["c3_b"],
                     scale=p["c3_s"], resid=resid, act="relu")
    return y.reshape(b, ho, wo, cout)


def basicsknet_forward(x, params):
    # x: (B, 3, 2, H, W) PyTorch layout.  Frames share weights -> fold into batch.
    b = x.shape[0]
    xs = jnp.transpose(x, (1, 0, 3, 4, 2)).reshape(3 * b, x.shape[3],
                                                   x.shape[4], 2)  # NHWC
    h = xs
    # Dropout2d(0.2) layers are identity in inference mode.
    for p, s in zip(params["block"], _BLOCK_STRIDES):
        h = skblock_forward(h, p, s)

    feats = jnp.max(h, axis=(1, 2))                       # AdaptiveMaxPool2d(1)
    feats = feats.reshape(3, b, -1).transpose(1, 0, 2).reshape(b, -1)  # (B,192)
    out = matmul_fused(feats.astype(jnp.bfloat16), params["fc"]["w_mat"],
                       params["fc"]["b"], act=None)
    return jax.nn.sigmoid(out)


# --------------------------- parameter preparation ---------------------------

def _prep_conv_bn(w, bn):
    """PyTorch (Cout,Cin,k,k) conv weight + BN -> (k*k*Cin, Cout) bf16 matrix
    plus folded f32 scale/bias."""
    cout, cin, k, _ = w.shape
    w_mat = jnp.transpose(w, (2, 3, 1, 0)).reshape(k * k * cin,
                                                   cout).astype(jnp.bfloat16)
    scale, bias = bn_scale_bias(bn)
    return w_mat, scale, bias


def prepare_params(raw):
    """Hoisted (outside jit) weight preprocessing: transposes, BN folding,
    branch-merging and fc1∘fc2 folding."""
    blocks = []
    for p in raw["block"]:
        mid = p["conv1_w"].shape[0]
        q = {}
        q["c1_w"], q["c1_s"], q["c1_b"] = _prep_conv_bn(p["conv1_w"], p["bn1"])

        # Merge the 3x3 (pad 1) and 5x5 (pad 2) branch convs into one 5x5 conv
        # with 2*mid output channels (3x3 kernel zero-padded to 5x5).
        w3 = p["sk"]["convs"][0]["w"]
        w5 = p["sk"]["convs"][1]["w"]
        cin = w3.shape[1]
        w3p = jnp.pad(w3, ((0, 0), (0, 0), (1, 1), (1, 1)))
        wcat = jnp.concatenate([w3p, w5], axis=0)          # (2*mid, cin, 5, 5)
        q["br_w"] = jnp.transpose(wcat, (2, 3, 1, 0)).reshape(
            25 * cin, 2 * mid).astype(jnp.bfloat16)
        s3, b3 = bn_scale_bias(p["sk"]["convs"][0]["bn"])
        s5, b5 = bn_scale_bias(p["sk"]["convs"][1]["bn"])
        q["br_s"] = jnp.concatenate([s3, s5])
        q["br_b"] = jnp.concatenate([b3, b5])

        # fc1 -> fc2[0..1] have no nonlinearity between them: fold into one
        # (mid, 2*mid) matrix + bias.
        w1, b1 = p["sk"]["fc1"]["w"], p["sk"]["fc1"]["b"]
        w2 = jnp.concatenate([p["sk"]["fc2"][0]["w"],
                              p["sk"]["fc2"][1]["w"]], axis=0)   # (2*mid, mid//r)
        b2 = jnp.concatenate([p["sk"]["fc2"][0]["b"], p["sk"]["fc2"][1]["b"]])
        q["attn_w"] = w1.T @ w2.T                                # (mid, 2*mid)
        q["attn_b"] = b1 @ w2.T + b2                             # (2*mid,)

        q["bn2_s"], q["bn2_b"] = bn_scale_bias(p["bn2"])
        q["c3_w"], q["c3_s"], q["c3_b"] = _prep_conv_bn(p["conv3_w"], p["bn3"])
        if "down_w" in p:
            q["down_w"], q["down_s"], q["down_b"] = _prep_conv_bn(
                p["down_w"], p["down_bn"])
        blocks.append(q)

    fc_w = raw["fc"]["w"]                                        # (1, 192)
    return dict(block=blocks,
                fc=dict(w_mat=fc_w.T.astype(jnp.bfloat16), b=raw["fc"]["b"]))


# ------------------------------- raw parameters ------------------------------

def init_conv(key, cout, cin, k):
    return 0.1 * jax.random.normal(key, (cout, cin, k, k), jnp.float32)


def init_bn(key, c):
    k1, k2, k3, k4 = jax.random.split(key, 4)
    return dict(gamma=1.0 + 0.1 * jax.random.normal(k1, (c,), jnp.float32),
                beta=0.1 * jax.random.normal(k2, (c,), jnp.float32),
                mean=0.1 * jax.random.normal(k3, (c,), jnp.float32),
                var=0.5 + jax.random.uniform(k4, (c,), jnp.float32))


def init_linear(key, cout, cin):
    k1, k2 = jax.random.split(key)
    return dict(w=0.1 * jax.random.normal(k1, (cout, cin), jnp.float32),
                b=0.1 * jax.random.normal(k2, (cout,), jnp.float32))


def init_skconv(key, inplanes, planes, M=2, r=8):
    keys = jax.random.split(key, 2 * M + 1 + M)
    convs = []
    for i in range(M):
        k = 3 + 2 * i
        convs.append(dict(w=init_conv(keys[2 * i], planes, inplanes, k),
                          bn=init_bn(keys[2 * i + 1], planes)))
    fc1 = init_linear(keys[2 * M], planes // r, planes)
    fc2 = [init_linear(keys[2 * M + 1 + i], planes, planes // r)
           for i in range(M)]
    return dict(convs=convs, fc1=fc1, fc2=fc2)


def init_skblock(key, inplanes, planes, stride):
    mid = planes // 2
    keys = jax.random.split(key, 8)
    p = dict(conv1_w=init_conv(keys[0], mid, inplanes, 1),
             bn1=init_bn(keys[1], mid),
             sk=init_skconv(keys[2], mid, mid),
             bn2=init_bn(keys[3], mid),
             conv3_w=init_conv(keys[4], planes, mid, 1),
             bn3=init_bn(keys[5], planes))
    if stride != 1 or inplanes != planes:
        p["down_w"] = init_conv(keys[6], planes, inplanes, 1)
        p["down_bn"] = init_bn(keys[7], planes)
    return p


def init_params(key):
    keys = jax.random.split(key, 5)
    block = [init_skblock(keys[0], 2, 32, 2),
             init_skblock(keys[1], 32, 32, 1),
             init_skblock(keys[2], 32, 64, 2),
             init_skblock(keys[3], 64, 64, 1)]
    fc = init_linear(keys[4], 1, 192)
    return dict(block=block, fc=fc)


# --------------------------------- main --------------------------------------

if __name__ == "__main__":
    root = jax.random.PRNGKey(0)
    pkey, xkey = jax.random.split(root)
    raw_params = init_params(pkey)
    params = prepare_params(raw_params)          # hoisted weight prep (no jit)
    x = jax.random.normal(xkey, (2, 3, 2, 16, 16), jnp.float32)

    out = jax.jit(basicsknet_forward)(x, params)
    out = jax.block_until_ready(out)
    assert out.shape == (2, 1) and out.dtype == jnp.float32
    print("KERNEL_OK")
</pallas_src>

<mosaic_0001>
module attributes {stable_mosaic.version = 11 : i64} {
  func.func @_mm_kernel(%arg0: i32, %arg1: memref<512x2xbf16, #tpu.memory_space<vmem>>, %arg2: memref<2x16xbf16, #tpu.memory_space<vmem>>, %arg3: memref<1x16xf32, #tpu.memory_space<vmem>>, %arg4: memref<1x16xf32, #tpu.memory_space<vmem>>, %arg5: memref<512x16xf32, #tpu.memory_space<vmem>>) attributes {dimension_semantics = [#tpu.dimension_semantics<parallel>], iteration_bounds = array<i64: 3>, scalar_prefetch = 0 : i64, scratch_operands = 0 : i64, tpu.core_type = #tpu.core_type<tc>, window_params = [{transform_indices = @transform_0, window_bounds = array<i64: 512, 2>}, {pipeline_mode = #tpu.pipeline_mode<synchronous>, transform_indices = @transform_1, window_bounds = array<i64: 2, 16>}, {pipeline_mode = #tpu.pipeline_mode<synchronous>, transform_indices = @transform_2, window_bounds = array<i64: 1, 16>}, {pipeline_mode = #tpu.pipeline_mode<synchronous>, transform_indices = @transform_3, window_bounds = array<i64: 1, 16>}, {transform_indices = @transform_4, window_bounds = array<i64: 512, 16>}]} {
    %c0 = arith.constant 0 : index
    %c0_0 = arith.constant 0 : index
    %0 = vector.load %arg1[%c0, %c0_0] : memref<512x2xbf16, #tpu.memory_space<vmem>>, vector<512x2xbf16>
    %c0_1 = arith.constant 0 : index
    %c0_2 = arith.constant 0 : index
    %1 = vector.load %arg2[%c0_1, %c0_2] : memref<2x16xbf16, #tpu.memory_space<vmem>>, vector<2x16xbf16>
    %cst = arith.constant dense<0.000000e+00> : vector<512x16xf32>
    %2 = tpu.matmul %0, %1, %cst {dimension_numbers = #tpu.dot_dimension_numbers<[1], [0], [0], [1], [0, 0, 1, 1], [], []>} : vector<512x2xbf16>, vector<2x16xbf16>, vector<512x16xf32> -> vector<512x16xf32>
    %c0_3 = arith.constant 0 : index
    %c0_4 = arith.constant 0 : index
    %3 = vector.load %arg3[%c0_3, %c0_4] : memref<1x16xf32, #tpu.memory_space<vmem>>, vector<1x16xf32>
    %4 = vector.broadcast %3 : vector<1x16xf32> to vector<512x16xf32>
    %5 = arith.mulf %2, %4 : vector<512x16xf32>
    %c0_5 = arith.constant 0 : index
    %c0_6 = arith.constant 0 : index
    %6 = vector.load %arg4[%c0_5, %c0_6] : memref<1x16xf32, #tpu.memory_space<vmem>>, vector<1x16xf32>
    %7 = vector.broadcast %6 : vector<1x16xf32> to vector<512x16xf32>
    %8 = arith.addf %5, %7 : vector<512x16xf32>
    %cst_7 = arith.constant 0.000000e+00 : f32
    %9 = vector.broadcast %cst_7 : f32 to vector<512x16xf32>
    %10 = arith.maximumf %8, %9 : vector<512x16xf32>
    %c0_8 = arith.constant 0 : index
    %c0_9 = arith.constant 0 : index
    %11 = vector.load %arg5[%c0_8, %c0_9] : memref<512x16xf32, #tpu.memory_space<vmem>>, vector<512x16xf32>
    tpu.vector_store %arg5[%c0_8, %c0_9], %10 {strides = array<i32>} : memref<512x16xf32, #tpu.memory_space<vmem>>, vector<512x16xf32>,
    return
  }
  func.func @transform_0(%arg0: i32) -> (i32, i32) {
    %c0_i32 = arith.constant 0 : i32
    %c0_i32_0 = arith.constant 0 : i32
    return %arg0, %c0_i32 : i32, i32
  }
  func.func @transform_1(%arg0: i32) -> (i32, i32) {
    %c0_i32 = arith.constant 0 : i32
    %c0_i32_0 = arith.constant 0 : i32
    %c0_i32_1 = arith.constant 0 : i32
    return %c0_i32, %c0_i32_0 : i32, i32
  }
  func.func @transform_2(%arg0: i32) -> (i32, i32) {
    %c0_i32 = arith.constant 0 : i32
    %c0_i32_0 = arith.constant 0 : i32
    %c0_i32_1 = arith.constant 0 : i32
    return %c0_i32, %c0_i32_0 : i32, i32
  }
  func.func @transform_3(%arg0: i32) -> (i32, i32) {
    %c0_i32 = arith.constant 0 : i32
    %c0_i32_0 = arith.constant 0 : i32
    %c0_i32_1 = arith.constant 0 : i32
    return %c0_i32, %c0_i32_0 : i32, i32
  }
  func.func @transform_4(%arg0: i32) -> (i32, i32) {
    %c0_i32 = arith.constant 0 : i32
    %c0_i32_0 = arith.constant 0 : i32
    return %arg0, %c0_i32 : i32, i32
  }
}

module attributes {stable_mosaic.version = 11 : i64} {
  func.func @_mm_kernel(%arg0: i32, %arg1: memref<384x400xbf16, #tpu.memory_space<vmem>>, %arg2: memref<400x32xbf16, #tpu.memory_space<vmem>>, %arg3: memref<1x32xf32, #tpu.memory_space<vmem>>, %arg4: memref<1x32xf32, #tpu.memory_space<vmem>>, %arg5: memref<384x32xf32, #tpu.memory_space<vmem>>) attributes {dimension_semantics = [#tpu.dimension_semantics<parallel>], iteration_bounds = array<i64: 1>, scalar_prefetch = 0 : i64, scratch_operands = 0 : i64, tpu.core_type = #tpu.core_type<tc>, window_params = [{transform_indices = @transform_0, window_bounds = array<i64: 384, 400>}, {pipeline_mode = #tpu.pipeline_mode<synchronous>, transform_indices = @transform_1, window_bounds = array<i64: 400, 32>}, {pipeline_mode = #tpu.pipeline_mode<synchronous>, transform_indices = @transform_2, window_bounds = array<i64: 1, 32>}, {pipeline_mode = #tpu.pipeline_mode<synchronous>, transform_indices = @transform_3, window_bounds = array<i64: 1, 32>}, {transform_indices = @transform_4, window_bounds = array<i64: 384, 32>}]} {
    %c0 = arith.constant 0 : index
    %c0_0 = arith.constant 0 : index
    %0 = vector.load %arg1[%c0, %c0_0] : memref<384x400xbf16, #tpu.memory_space<vmem>>, vector<384x400xbf16>
    %c0_1 = arith.constant 0 : index
    %c0_2 = arith.constant 0 : index
    %1 = vector.load %arg2[%c0_1, %c0_2] : memref<400x32xbf16, #tpu.memory_space<vmem>>, vector<400x32xbf16>
    %cst = arith.constant dense<0.000000e+00> : vector<384x32xf32>
    %2 = tpu.matmul %0, %1, %cst {dimension_numbers = #tpu.dot_dimension_numbers<[1], [0], [0], [1], [0, 0, 1, 1], [], []>} : vector<384x400xbf16>, vector<400x32xbf16>, vector<384x32xf32> -> vector<384x32xf32>
    %c0_3 = arith.constant 0 : index
    %c0_4 = arith.constant 0 : index
    %3 = vector.load %arg3[%c0_3, %c0_4] : memref<1x32xf32, #tpu.memory_space<vmem>>, vector<1x32xf32>
    %4 = vector.broadcast %3 : vector<1x32xf32> to vector<384x32xf32>
    %5 = arith.mulf %2, %4 : vector<384x32xf32>
    %c0_5 = arith.constant 0 : index
    %c0_6 = arith.constant 0 : index
    %6 = vector.load %arg4[%c0_5, %c0_6] : memref<1x32xf32, #tpu.memory_space<vmem>>, vector<1x32xf32>
    %7 = vector.broadcast %6 : vector<1x32xf32> to vector<384x32xf32>
    %8 = arith.addf %5, %7 : vector<384x32xf32>
    %cst_7 = arith.constant 0.000000e+00 : f32
    %9 = vector.broadcast %cst_7 : f32 to vector<384x32xf32>
    %10 = arith.maximumf %8, %9 : vector<384x32xf32>
    %c0_8 = arith.constant 0 : index
    %c0_9 = arith.constant 0 : index
    %11 = vector.load %arg5[%c0_8, %c0_9] : memref<384x32xf32, #tpu.memory_space<vmem>>, vector<384x32xf32>
    tpu.vector_store %arg5[%c0_8, %c0_9], %10 {strides = array<i32>} : memref<384x32xf32, #tpu.memory_space<vmem>>, vector<384x32xf32>,
    return
  }
  func.func @transform_0(%arg0: i32) -> (i32, i32) {
    %c0_i32 = arith.constant 0 : i32
    %c0_i32_0 = arith.constant 0 : i32
    return %arg0, %c0_i32 : i32, i32
  }
  func.func @transform_1(%arg0: i32) -> (i32, i32) {
    %c0_i32 = arith.constant 0 : i32
    %c0_i32_0 = arith.constant 0 : i32
    %c0_i32_1 = arith.constant 0 : i32
    return %c0_i32, %c0_i32_0 : i32, i32
  }
  func.func @transform_2(%arg0: i32) -> (i32, i32) {
    %c0_i32 = arith.constant 0 : i32
    %c0_i32_0 = arith.constant 0 : i32
    %c0_i32_1 = arith.constant 0 : i32
    return %c0_i32, %c0_i32_0 : i32, i32
  }
  func.func @transform_3(%arg0: i32) -> (i32, i32) {
    %c0_i32 = arith.constant 0 : i32
    %c0_i32_0 = arith.constant 0 : i32
    %c0_i32_1 = arith.constant 0 : i32
    return %c0_i32, %c0_i32_0 : i32, i32
  }
  func.func @transform_4(%arg0: i32) -> (i32, i32) {
    %c0_i32 = arith.constant 0 : i32
    %c0_i32_0 = arith.constant 0 : i32
    return %arg0, %c0_i32 : i32, i32
  }
}

module attributes {stable_mosaic.version = 11 : i64} {
  func.func @_sk_combine_kernel(%arg0: memref<384x16xf32, #tpu.memory_space<vmem>>, %arg1: memref<384x16xf32, #tpu.memory_space<vmem>>, %arg2: memref<384x16xf32, #tpu.memory_space<vmem>>, %arg3: memref<384x16xf32, #tpu.memory_space<vmem>>, %arg4: memref<1x16xf32, #tpu.memory_space<vmem>>, %arg5: memref<1x16xf32, #tpu.memory_space<vmem>>, %arg6: memref<384x16xf32, #tpu.memory_space<vmem>>) attributes {dimension_semantics = [], scalar_prefetch = 0 : i64, scratch_operands = 0 : i64, tpu.core_type = #tpu.core_type<tc>} {
    %c0 = arith.constant 0 : index
    %c0_0 = arith.constant 0 : index
    %0 = vector.load %arg0[%c0, %c0_0] : memref<384x16xf32, #tpu.memory_space<vmem>>, vector<384x16xf32>
    %c0_1 = arith.constant 0 : index
    %c0_2 = arith.constant 0 : index
    %1 = vector.load %arg2[%c0_1, %c0_2] : memref<384x16xf32, #tpu.memory_space<vmem>>, vector<384x16xf32>
    %2 = arith.mulf %0, %1 : vector<384x16xf32>
    %c0_3 = arith.constant 0 : index
    %c0_4 = arith.constant 0 : index
    %3 = vector.load %arg1[%c0_3, %c0_4] : memref<384x16xf32, #tpu.memory_space<vmem>>, vector<384x16xf32>
    %c0_5 = arith.constant 0 : index
    %c0_6 = arith.constant 0 : index
    %4 = vector.load %arg3[%c0_5, %c0_6] : memref<384x16xf32, #tpu.memory_space<vmem>>, vector<384x16xf32>
    %5 = arith.mulf %3, %4 : vector<384x16xf32>
    %6 = arith.addf %2, %5 : vector<384x16xf32>
    %c0_7 = arith.constant 0 : index
    %c0_8 = arith.constant 0 : index
    %7 = vector.load %arg4[%c0_7, %c0_8] : memref<1x16xf32, #tpu.memory_space<vmem>>, vector<1x16xf32>
    %8 = vector.broadcast %7 : vector<1x16xf32> to vector<384x16xf32>
    %9 = arith.mulf %6, %8 : vector<384x16xf32>
    %c0_9 = arith.constant 0 : index
    %c0_10 = arith.constant 0 : index
    %10 = vector.load %arg5[%c0_9, %c0_10] : memref<1x16xf32, #tpu.memory_space<vmem>>, vector<1x16xf32>
    %11 = vector.broadcast %10 : vector<1x16xf32> to vector<384x16xf32>
    %12 = arith.addf %9, %11 : vector<384x16xf32>
    %cst = arith.constant 0.000000e+00 : f32
    %13 = vector.broadcast %cst : f32 to vector<384x16xf32>
    %14 = arith.maximumf %12, %13 : vector<384x16xf32>
    %c0_11 = arith.constant 0 : index
    %c0_12 = arith.constant 0 : index
    %15 = vector.load %arg6[%c0_11, %c0_12] : memref<384x16xf32, #tpu.memory_space<vmem>>, vector<384x16xf32>
    tpu.vector_store %arg6[%c0_11, %c0_12], %14 {strides = array<i32>} : memref<384x16xf32, #tpu.memory_space<vmem>>, vector<384x16xf32>,
    return
  }
}

module attributes {stable_mosaic.version = 11 : i64} {
  func.func @_mm_kernel(%arg0: i32, %arg1: memref<384x16xbf16, #tpu.memory_space<vmem>>, %arg2: memref<16x32xbf16, #tpu.memory_space<vmem>>, %arg3: memref<1x32xf32, #tpu.memory_space<vmem>>, %arg4: memref<1x32xf32, #tpu.memory_space<vmem>>, %arg5: memref<384x32xf32, #tpu.memory_space<vmem>>, %arg6: memref<384x32xf32, #tpu.memory_space<vmem>>) attributes {dimension_semantics = [#tpu.dimension_semantics<parallel>], iteration_bounds = array<i64: 1>, scalar_prefetch = 0 : i64, scratch_operands = 0 : i64, tpu.core_type = #tpu.core_type<tc>, window_params = [{transform_indices = @transform_0, window_bounds = array<i64: 384, 16>}, {pipeline_mode = #tpu.pipeline_mode<synchronous>, transform_indices = @transform_1, window_bounds = array<i64: 16, 32>}, {pipeline_mode = #tpu.pipeline_mode<synchronous>, transform_indices = @transform_2, window_bounds = array<i64: 1, 32>}, {pipeline_mode = #tpu.pipeline_mode<synchronous>, transform_indices = @transform_3, window_bounds = array<i64: 1, 32>}, {transform_indices = @transform_4, window_bounds = array<i64: 384, 32>}, {transform_indices = @transform_5, window_bounds = array<i64: 384, 32>}]} {
    %c0 = arith.constant 0 : index
    %c0_0 = arith.constant 0 : index
    %0 = vector.load %arg1[%c0, %c0_0] : memref<384x16xbf16, #tpu.memory_space<vmem>>, vector<384x16xbf16>
    %c0_1 = arith.constant 0 : index
    %c0_2 = arith.constant 0 : index
    %1 = vector.load %arg2[%c0_1, %c0_2] : memref<16x32xbf16, #tpu.memory_space<vmem>>, vector<16x32xbf16>
    %cst = arith.constant dense<0.000000e+00> : vector<384x32xf32>
    %2 = tpu.matmul %0, %1, %cst {dimension_numbers = #tpu.dot_dimension_numbers<[1], [0], [0], [1], [0, 0, 1, 1], [], []>} : vector<384x16xbf16>, vector<16x32xbf16>, vector<384x32xf32> -> vector<384x32xf32>
    %c0_3 = arith.constant 0 : index
    %c0_4 = arith.constant 0 : index
    %3 = vector.load %arg3[%c0_3, %c0_4] : memref<1x32xf32, #tpu.memory_space<vmem>>, vector<1x32xf32>
    %4 = vector.broadcast %3 : vector<1x32xf32> to vector<384x32xf32>
    %5 = arith.mulf %2, %4 : vector<384x32xf32>
    %c0_5 = arith.constant 0 : index
    %c0_6 = arith.constant 0 : index
    %6 = vector.load %arg4[%c0_5, %c0_6] : memref<1x32xf32, #tpu.memory_space<vmem>>, vector<1x32xf32>
    %7 = vector.broadcast %6 : vector<1x32xf32> to vector<384x32xf32>
    %8 = arith.addf %5, %7 : vector<384x32xf32>
    %c0_7 = arith.constant 0 : index
    %c0_8 = arith.constant 0 : index
    %9 = vector.load %arg5[%c0_7, %c0_8] : memref<384x32xf32, #tpu.memory_space<vmem>>, vector<384x32xf32>
    %10 = arith.addf %8, %9 : vector<384x32xf32>
    %cst_9 = arith.constant 0.000000e+00 : f32
    %11 = vector.broadcast %cst_9 : f32 to vector<384x32xf32>
    %12 = arith.maximumf %10, %11 : vector<384x32xf32>
    %c0_10 = arith.constant 0 : index
    %c0_11 = arith.constant 0 : index
    %13 = vector.load %arg6[%c0_10, %c0_11] : memref<384x32xf32, #tpu.memory_space<vmem>>, vector<384x32xf32>
    tpu.vector_store %arg6[%c0_10, %c0_11], %12 {strides = array<i32>} : memref<384x32xf32, #tpu.memory_space<vmem>>, vector<384x32xf32>,
    return
  }
  func.func @transform_0(%arg0: i32) -> (i32, i32) {
    %c0_i32 = arith.constant 0 : i32
    %c0_i32_0 = arith.constant 0 : i32
    return %arg0, %c0_i32 : i32, i32
  }
  func.func @transform_1(%arg0: i32) -> (i32, i32) {
    %c0_i32 = arith.constant 0 : i32
    %c0_i32_0 = arith.constant 0 : i32
    %c0_i32_1 = arith.constant 0 : i32
    return %c0_i32, %c0_i32_0 : i32, i32
  }
  func.func @transform_2(%arg0: i32) -> (i32, i32) {
    %c0_i32 = arith.constant 0 : i32
    %c0_i32_0 = arith.constant 0 : i32
    %c0_i32_1 = arith.constant 0 : i32
    return %c0_i32, %c0_i32_0 : i32, i32
  }
  func.func @transform_3(%arg0: i32) -> (i32, i32) {
    %c0_i32 = arith.constant 0 : i32
    %c0_i32_0 = arith.constant 0 : i32
    %c0_i32_1 = arith.constant 0 : i32
    return %c0_i32, %c0_i32_0 : i32, i32
  }
  func.func @transform_4(%arg0: i32) -> (i32, i32) {
    %c0_i32 = arith.constant 0 : i32
    %c0_i32_0 = arith.constant 0 : i32
    return %arg0, %c0_i32 : i32, i32
  }
  func.func @transform_5(%arg0: i32) -> (i32, i32) {
    %c0_i32 = arith.constant 0 : i32
    %c0_i32_0 = arith.constant 0 : i32
    return %arg0, %c0_i32 : i32, i32
  }
}

module attributes {stable_mosaic.version = 11 : i64} {
  func.func @_mm_kernel(%arg0: i32, %arg1: memref<384x2xbf16, #tpu.memory_space<vmem>>, %arg2: memref<2x32xbf16, #tpu.memory_space<vmem>>, %arg3: memref<1x32xf32, #tpu.memory_space<vmem>>, %arg4: memref<1x32xf32, #tpu.memory_space<vmem>>, %arg5: memref<384x32xf32, #tpu.memory_space<vmem>>) attributes {dimension_semantics = [#tpu.dimension_semantics<parallel>], iteration_bounds = array<i64: 1>, scalar_prefetch = 0 : i64, scratch_operands = 0 : i64, tpu.core_type = #tpu.core_type<tc>, window_params = [{transform_indices = @transform_0, window_bounds = array<i64: 384, 2>}, {pipeline_mode = #tpu.pipeline_mode<synchronous>, transform_indices = @transform_1, window_bounds = array<i64: 2, 32>}, {pipeline_mode = #tpu.pipeline_mode<synchronous>, transform_indices = @transform_2, window_bounds = array<i64: 1, 32>}, {pipeline_mode = #tpu.pipeline_mode<synchronous>, transform_indices = @transform_3, window_bounds = array<i64: 1, 32>}, {transform_indices = @transform_4, window_bounds = array<i64: 384, 32>}]} {
    %c0 = arith.constant 0 : index
    %c0_0 = arith.constant 0 : index
    %0 = vector.load %arg1[%c0, %c0_0] : memref<384x2xbf16, #tpu.memory_space<vmem>>, vector<384x2xbf16>
    %c0_1 = arith.constant 0 : index
    %c0_2 = arith.constant 0 : index
    %1 = vector.load %arg2[%c0_1, %c0_2] : memref<2x32xbf16, #tpu.memory_space<vmem>>, vector<2x32xbf16>
    %cst = arith.constant dense<0.000000e+00> : vector<384x32xf32>
    %2 = tpu.matmul %0, %1, %cst {dimension_numbers = #tpu.dot_dimension_numbers<[1], [0], [0], [1], [0, 0, 1, 1], [], []>} : vector<384x2xbf16>, vector<2x32xbf16>, vector<384x32xf32> -> vector<384x32xf32>
    %c0_3 = arith.constant 0 : index
    %c0_4 = arith.constant 0 : index
    %3 = vector.load %arg3[%c0_3, %c0_4] : memref<1x32xf32, #tpu.memory_space<vmem>>, vector<1x32xf32>
    %4 = vector.broadcast %3 : vector<1x32xf32> to vector<384x32xf32>
    %5 = arith.mulf %2, %4 : vector<384x32xf32>
    %c0_5 = arith.constant 0 : index
    %c0_6 = arith.constant 0 : index
    %6 = vector.load %arg4[%c0_5, %c0_6] : memref<1x32xf32, #tpu.memory_space<vmem>>, vector<1x32xf32>
    %7 = vector.broadcast %6 : vector<1x32xf32> to vector<384x32xf32>
    %8 = arith.addf %5, %7 : vector<384x32xf32>
    %c0_7 = arith.constant 0 : index
    %c0_8 = arith.constant 0 : index
    %9 = vector.load %arg5[%c0_7, %c0_8] : memref<384x32xf32, #tpu.memory_space<vmem>>, vector<384x32xf32>
    tpu.vector_store %arg5[%c0_7, %c0_8], %8 {strides = array<i32>} : memref<384x32xf32, #tpu.memory_space<vmem>>, vector<384x32xf32>,
    return
  }
  func.func @transform_0(%arg0: i32) -> (i32, i32) {
    %c0_i32 = arith.constant 0 : i32
    %c0_i32_0 = arith.constant 0 : i32
    return %arg0, %c0_i32 : i32, i32
  }
  func.func @transform_1(%arg0: i32) -> (i32, i32) {
    %c0_i32 = arith.constant 0 : i32
    %c0_i32_0 = arith.constant 0 : i32
    %c0_i32_1 = arith.constant 0 : i32
    return %c0_i32, %c0_i32_0 : i32, i32
  }
  func.func @transform_2(%arg0: i32) -> (i32, i32) {
    %c0_i32 = arith.constant 0 : i32
    %c0_i32_0 = arith.constant 0 : i32
    %c0_i32_1 = arith.constant 0 : i32
    return %c0_i32, %c0_i32_0 : i32, i32
  }
  func.func @transform_3(%arg0: i32) -> (i32, i32) {
    %c0_i32 = arith.constant 0 : i32
    %c0_i32_0 = arith.constant 0 : i32
    %c0_i32_1 = arith.constant 0 : i32
    return %c0_i32, %c0_i32_0 : i32, i32
  }
  func.func @transform_4(%arg0: i32) -> (i32, i32) {
    %c0_i32 = arith.constant 0 : i32
    %c0_i32_0 = arith.constant 0 : i32
    return %arg0, %c0_i32 : i32, i32
  }
}

module attributes {stable_mosaic.version = 11 : i64} {
  func.func @_mm_kernel(%arg0: i32, %arg1: memref<384x32xbf16, #tpu.memory_space<vmem>>, %arg2: memref<32x16xbf16, #tpu.memory_space<vmem>>, %arg3: memref<1x16xf32, #tpu.memory_space<vmem>>, %arg4: memref<1x16xf32, #tpu.memory_space<vmem>>, %arg5: memref<384x16xf32, #tpu.memory_space<vmem>>) attributes {dimension_semantics = [#tpu.dimension_semantics<parallel>], iteration_bounds = array<i64: 1>, scalar_prefetch = 0 : i64, scratch_operands = 0 : i64, tpu.core_type = #tpu.core_type<tc>, window_params = [{transform_indices = @transform_0, window_bounds = array<i64: 384, 32>}, {pipeline_mode = #tpu.pipeline_mode<synchronous>, transform_indices = @transform_1, window_bounds = array<i64: 32, 16>}, {pipeline_mode = #tpu.pipeline_mode<synchronous>, transform_indices = @transform_2, window_bounds = array<i64: 1, 16>}, {pipeline_mode = #tpu.pipeline_mode<synchronous>, transform_indices = @transform_3, window_bounds = array<i64: 1, 16>}, {transform_indices = @transform_4, window_bounds = array<i64: 384, 16>}]} {
    %c0 = arith.constant 0 : index
    %c0_0 = arith.constant 0 : index
    %0 = vector.load %arg1[%c0, %c0_0] : memref<384x32xbf16, #tpu.memory_space<vmem>>, vector<384x32xbf16>
    %c0_1 = arith.constant 0 : index
    %c0_2 = arith.constant 0 : index
    %1 = vector.load %arg2[%c0_1, %c0_2] : memref<32x16xbf16, #tpu.memory_space<vmem>>, vector<32x16xbf16>
    %cst = arith.constant dense<0.000000e+00> : vector<384x16xf32>
    %2 = tpu.matmul %0, %1, %cst {dimension_numbers = #tpu.dot_dimension_numbers<[1], [0], [0], [1], [0, 0, 1, 1], [], []>} : vector<384x32xbf16>, vector<32x16xbf16>, vector<384x16xf32> -> vector<384x16xf32>
    %c0_3 = arith.constant 0 : index
    %c0_4 = arith.constant 0 : index
    %3 = vector.load %arg3[%c0_3, %c0_4] : memref<1x16xf32, #tpu.memory_space<vmem>>, vector<1x16xf32>
    %4 = vector.broadcast %3 : vector<1x16xf32> to vector<384x16xf32>
    %5 = arith.mulf %2, %4 : vector<384x16xf32>
    %c0_5 = arith.constant 0 : index
    %c0_6 = arith.constant 0 : index
    %6 = vector.load %arg4[%c0_5, %c0_6] : memref<1x16xf32, #tpu.memory_space<vmem>>, vector<1x16xf32>
    %7 = vector.broadcast %6 : vector<1x16xf32> to vector<384x16xf32>
    %8 = arith.addf %5, %7 : vector<384x16xf32>
    %cst_7 = arith.constant 0.000000e+00 : f32
    %9 = vector.broadcast %cst_7 : f32 to vector<384x16xf32>
    %10 = arith.maximumf %8, %9 : vector<384x16xf32>
    %c0_8 = arith.constant 0 : index
    %c0_9 = arith.constant 0 : index
    %11 = vector.load %arg5[%c0_8, %c0_9] : memref<384x16xf32, #tpu.memory_space<vmem>>, vector<384x16xf32>
    tpu.vector_store %arg5[%c0_8, %c0_9], %10 {strides = array<i32>} : memref<384x16xf32, #tpu.memory_space<vmem>>, vector<384x16xf32>,
    return
  }
  func.func @transform_0(%arg0: i32) -> (i32, i32) {
    %c0_i32 = arith.constant 0 : i32
    %c0_i32_0 = arith.constant 0 : i32
    return %arg0, %c0_i32 : i32, i32
  }
  func.func @transform_1(%arg0: i32) -> (i32, i32) {
    %c0_i32 = arith.constant 0 : i32
    %c0_i32_0 = arith.constant 0 : i32
    %c0_i32_1 = arith.constant 0 : i32
    return %c0_i32, %c0_i32_0 : i32, i32
  }
  func.func @transform_2(%arg0: i32) -> (i32, i32) {
    %c0_i32 = arith.constant 0 : i32
    %c0_i32_0 = arith.constant 0 : i32
    %c0_i32_1 = arith.constant 0 : i32
    return %c0_i32, %c0_i32_0 : i32, i32
  }
  func.func @transform_3(%arg0: i32) -> (i32, i32) {
    %c0_i32 = arith.constant 0 : i32
    %c0_i32_0 = arith.constant 0 : i32
    %c0_i32_1 = arith.constant 0 : i32
    return %c0_i32, %c0_i32_0 : i32, i32
  }
  func.func @transform_4(%arg0: i32) -> (i32, i32) {
    %c0_i32 = arith.constant 0 : i32
    %c0_i32_0 = arith.constant 0 : i32
    return %arg0, %c0_i32 : i32, i32
  }
}

module attributes {stable_mosaic.version = 11 : i64} {
  func.func @_mm_kernel(%arg0: i32, %arg1: memref<384x32xbf16, #tpu.memory_space<vmem>>, %arg2: memref<32x32xbf16, #tpu.memory_space<vmem>>, %arg3: memref<1x32xf32, #tpu.memory_space<vmem>>, %arg4: memref<1x32xf32, #tpu.memory_space<vmem>>, %arg5: memref<384x32xf32, #tpu.memory_space<vmem>>) attributes {dimension_semantics = [#tpu.dimension_semantics<parallel>], iteration_bounds = array<i64: 1>, scalar_prefetch = 0 : i64, scratch_operands = 0 : i64, tpu.core_type = #tpu.core_type<tc>, window_params = [{transform_indices = @transform_0, window_bounds = array<i64: 384, 32>}, {pipeline_mode = #tpu.pipeline_mode<synchronous>, transform_indices = @transform_1, window_bounds = array<i64: 32, 32>}, {pipeline_mode = #tpu.pipeline_mode<synchronous>, transform_indices = @transform_2, window_bounds = array<i64: 1, 32>}, {pipeline_mode = #tpu.pipeline_mode<synchronous>, transform_indices = @transform_3, window_bounds = array<i64: 1, 32>}, {transform_indices = @transform_4, window_bounds = array<i64: 384, 32>}]} {
    %c0 = arith.constant 0 : index
    %c0_0 = arith.constant 0 : index
    %0 = vector.load %arg1[%c0, %c0_0] : memref<384x32xbf16, #tpu.memory_space<vmem>>, vector<384x32xbf16>
    %c0_1 = arith.constant 0 : index
    %c0_2 = arith.constant 0 : index
    %1 = vector.load %arg2[%c0_1, %c0_2] : memref<32x32xbf16, #tpu.memory_space<vmem>>, vector<32x32xbf16>
    %cst = arith.constant dense<0.000000e+00> : vector<384x32xf32>
    %2 = tpu.matmul %0, %1, %cst {dimension_numbers = #tpu.dot_dimension_numbers<[1], [0], [0], [1], [0, 0, 1, 1], [], []>} : vector<384x32xbf16>, vector<32x32xbf16>, vector<384x32xf32> -> vector<384x32xf32>
    %c0_3 = arith.constant 0 : index
    %c0_4 = arith.constant 0 : index
    %3 = vector.load %arg3[%c0_3, %c0_4] : memref<1x32xf32, #tpu.memory_space<vmem>>, vector<1x32xf32>
    %4 = vector.broadcast %3 : vector<1x32xf32> to vector<384x32xf32>
    %5 = arith.mulf %2, %4 : vector<384x32xf32>
    %c0_5 = arith.constant 0 : index
    %c0_6 = arith.constant 0 : index
    %6 = vector.load %arg4[%c0_5, %c0_6] : memref<1x32xf32, #tpu.memory_space<vmem>>, vector<1x32xf32>
    %7 = vector.broadcast %6 : vector<1x32xf32> to vector<384x32xf32>
    %8 = arith.addf %5, %7 : vector<384x32xf32>
    %cst_7 = arith.constant 0.000000e+00 : f32
    %9 = vector.broadcast %cst_7 : f32 to vector<384x32xf32>
    %10 = arith.maximumf %8, %9 : vector<384x32xf32>
    %c0_8 = arith.constant 0 : index
    %c0_9 = arith.constant 0 : index
    %11 = vector.load %arg5[%c0_8, %c0_9] : memref<384x32xf32, #tpu.memory_space<vmem>>, vector<384x32xf32>
    tpu.vector_store %arg5[%c0_8, %c0_9], %10 {strides = array<i32>} : memref<384x32xf32, #tpu.memory_space<vmem>>, vector<384x32xf32>,
    return
  }
  func.func @transform_0(%arg0: i32) -> (i32, i32) {
    %c0_i32 = arith.constant 0 : i32
    %c0_i32_0 = arith.constant 0 : i32
    return %arg0, %c0_i32 : i32, i32
  }
  func.func @transform_1(%arg0: i32) -> (i32, i32) {
    %c0_i32 = arith.constant 0 : i32
    %c0_i32_0 = arith.constant 0 : i32
    %c0_i32_1 = arith.constant 0 : i32
    return %c0_i32, %c0_i32_0 : i32, i32
  }
  func.func @transform_2(%arg0: i32) -> (i32, i32) {
    %c0_i32 = arith.constant 0 : i32
    %c0_i32_0 = arith.constant 0 : i32
    %c0_i32_1 = arith.constant 0 : i32
    return %c0_i32, %c0_i32_0 : i32, i32
  }
  func.func @transform_3(%arg0: i32) -> (i32, i32) {
    %c0_i32 = arith.constant 0 : i32
    %c0_i32_0 = arith.constant 0 : i32
    %c0_i32_1 = arith.constant 0 : i32
    return %c0_i32, %c0_i32_0 : i32, i32
  }
  func.func @transform_4(%arg0: i32) -> (i32, i32) {
    %c0_i32 = arith.constant 0 : i32
    %c0_i32_0 = arith.constant 0 : i32
    return %arg0, %c0_i32 : i32, i32
  }
}

module attributes {stable_mosaic.version = 11 : i64} {
  func.func @_mm_kernel(%arg0: i32, %arg1: memref<96x800xbf16, #tpu.memory_space<vmem>>, %arg2: memref<800x64xbf16, #tpu.memory_space<vmem>>, %arg3: memref<1x64xf32, #tpu.memory_space<vmem>>, %arg4: memref<1x64xf32, #tpu.memory_space<vmem>>, %arg5: memref<96x64xf32, #tpu.memory_space<vmem>>) attributes {dimension_semantics = [#tpu.dimension_semantics<parallel>], iteration_bounds = array<i64: 1>, scalar_prefetch = 0 : i64, scratch_operands = 0 : i64, tpu.core_type = #tpu.core_type<tc>, window_params = [{transform_indices = @transform_0, window_bounds = array<i64: 96, 800>}, {pipeline_mode = #tpu.pipeline_mode<synchronous>, transform_indices = @transform_1, window_bounds = array<i64: 800, 64>}, {pipeline_mode = #tpu.pipeline_mode<synchronous>, transform_indices = @transform_2, window_bounds = array<i64: 1, 64>}, {pipeline_mode = #tpu.pipeline_mode<synchronous>, transform_indices = @transform_3, window_bounds = array<i64: 1, 64>}, {transform_indices = @transform_4, window_bounds = array<i64: 96, 64>}]} {
    %c0 = arith.constant 0 : index
    %c0_0 = arith.constant 0 : index
    %0 = vector.load %arg1[%c0, %c0_0] : memref<96x800xbf16, #tpu.memory_space<vmem>>, vector<96x800xbf16>
    %c0_1 = arith.constant 0 : index
    %c0_2 = arith.constant 0 : index
    %1 = vector.load %arg2[%c0_1, %c0_2] : memref<800x64xbf16, #tpu.memory_space<vmem>>, vector<800x64xbf16>
    %cst = arith.constant dense<0.000000e+00> : vector<96x64xf32>
    %2 = tpu.matmul %0, %1, %cst {dimension_numbers = #tpu.dot_dimension_numbers<[1], [0], [0], [1], [0, 0, 1, 1], [], []>} : vector<96x800xbf16>, vector<800x64xbf16>, vector<96x64xf32> -> vector<96x64xf32>
    %c0_3 = arith.constant 0 : index
    %c0_4 = arith.constant 0 : index
    %3 = vector.load %arg3[%c0_3, %c0_4] : memref<1x64xf32, #tpu.memory_space<vmem>>, vector<1x64xf32>
    %4 = vector.broadcast %3 : vector<1x64xf32> to vector<96x64xf32>
    %5 = arith.mulf %2, %4 : vector<96x64xf32>
    %c0_5 = arith.constant 0 : index
    %c0_6 = arith.constant 0 : index
    %6 = vector.load %arg4[%c0_5, %c0_6] : memref<1x64xf32, #tpu.memory_space<vmem>>, vector<1x64xf32>
    %7 = vector.broadcast %6 : vector<1x64xf32> to vector<96x64xf32>
    %8 = arith.addf %5, %7 : vector<96x64xf32>
    %cst_7 = arith.constant 0.000000e+00 : f32
    %9 = vector.broadcast %cst_7 : f32 to vector<96x64xf32>
    %10 = arith.maximumf %8, %9 : vector<96x64xf32>
    %c0_8 = arith.constant 0 : index
    %c0_9 = arith.constant 0 : index
    %11 = vector.load %arg5[%c0_8, %c0_9] : memref<96x64xf32, #tpu.memory_space<vmem>>, vector<96x64xf32>
    tpu.vector_store %arg5[%c0_8, %c0_9], %10 {strides = array<i32>} : memref<96x64xf32, #tpu.memory_space<vmem>>, vector<96x64xf32>,
    return
  }
  func.func @transform_0(%arg0: i32) -> (i32, i32) {
    %c0_i32 = arith.constant 0 : i32
    %c0_i32_0 = arith.constant 0 : i32
    return %arg0, %c0_i32 : i32, i32
  }
  func.func @transform_1(%arg0: i32) -> (i32, i32) {
    %c0_i32 = arith.constant 0 : i32
    %c0_i32_0 = arith.constant 0 : i32
    %c0_i32_1 = arith.constant 0 : i32
    return %c0_i32, %c0_i32_0 : i32, i32
  }
  func.func @transform_2(%arg0: i32) -> (i32, i32) {
    %c0_i32 = arith.constant 0 : i32
    %c0_i32_0 = arith.constant 0 : i32
    %c0_i32_1 = arith.constant 0 : i32
    return %c0_i32, %c0_i32_0 : i32, i32
  }
  func.func @transform_3(%arg0: i32) -> (i32, i32) {
    %c0_i32 = arith.constant 0 : i32
    %c0_i32_0 = arith.constant 0 : i32
    %c0_i32_1 = arith.constant 0 : i32
    return %c0_i32, %c0_i32_0 : i32, i32
  }
  func.func @transform_4(%arg0: i32) -> (i32, i32) {
    %c0_i32 = arith.constant 0 : i32
    %c0_i32_0 = arith.constant 0 : i32
    return %arg0, %c0_i32 : i32, i32
  }
}

module attributes {stable_mosaic.version = 11 : i64} {
  func.func @_sk_combine_kernel(%arg0: memref<96x32xf32, #tpu.memory_space<vmem>>, %arg1: memref<96x32xf32, #tpu.memory_space<vmem>>, %arg2: memref<96x32xf32, #tpu.memory_space<vmem>>, %arg3: memref<96x32xf32, #tpu.memory_space<vmem>>, %arg4: memref<1x32xf32, #tpu.memory_space<vmem>>, %arg5: memref<1x32xf32, #tpu.memory_space<vmem>>, %arg6: memref<96x32xf32, #tpu.memory_space<vmem>>) attributes {dimension_semantics = [], scalar_prefetch = 0 : i64, scratch_operands = 0 : i64, tpu.core_type = #tpu.core_type<tc>} {
    %c0 = arith.constant 0 : index
    %c0_0 = arith.constant 0 : index
    %0 = vector.load %arg0[%c0, %c0_0] : memref<96x32xf32, #tpu.memory_space<vmem>>, vector<96x32xf32>
    %c0_1 = arith.constant 0 : index
    %c0_2 = arith.constant 0 : index
    %1 = vector.load %arg2[%c0_1, %c0_2] : memref<96x32xf32, #tpu.memory_space<vmem>>, vector<96x32xf32>
    %2 = arith.mulf %0, %1 : vector<96x32xf32>
    %c0_3 = arith.constant 0 : index
    %c0_4 = arith.constant 0 : index
    %3 = vector.load %arg1[%c0_3, %c0_4] : memref<96x32xf32, #tpu.memory_space<vmem>>, vector<96x32xf32>
    %c0_5 = arith.constant 0 : index
    %c0_6 = arith.constant 0 : index
    %4 = vector.load %arg3[%c0_5, %c0_6] : memref<96x32xf32, #tpu.memory_space<vmem>>, vector<96x32xf32>
    %5 = arith.mulf %3, %4 : vector<96x32xf32>
    %6 = arith.addf %2, %5 : vector<96x32xf32>
    %c0_7 = arith.constant 0 : index
    %c0_8 = arith.constant 0 : index
    %7 = vector.load %arg4[%c0_7, %c0_8] : memref<1x32xf32, #tpu.memory_space<vmem>>, vector<1x32xf32>
    %8 = vector.broadcast %7 : vector<1x32xf32> to vector<96x32xf32>
    %9 = arith.mulf %6, %8 : vector<96x32xf32>
    %c0_9 = arith.constant 0 : index
    %c0_10 = arith.constant 0 : index
    %10 = vector.load %arg5[%c0_9, %c0_10] : memref<1x32xf32, #tpu.memory_space<vmem>>, vector<1x32xf32>
    %11 = vector.broadcast %10 : vector<1x32xf32> to vector<96x32xf32>
    %12 = arith.addf %9, %11 : vector<96x32xf32>
    %cst = arith.constant 0.000000e+00 : f32
    %13 = vector.broadcast %cst : f32 to vector<96x32xf32>
    %14 = arith.maximumf %12, %13 : vector<96x32xf32>
    %c0_11 = arith.constant 0 : index
    %c0_12 = arith.constant 0 : index
    %15 = vector.load %arg6[%c0_11, %c0_12] : memref<96x32xf32, #tpu.memory_space<vmem>>, vector<96x32xf32>
    tpu.vector_store %arg6[%c0_11, %c0_12], %14 {strides = array<i32>} : memref<96x32xf32, #tpu.memory_space<vmem>>, vector<96x32xf32>,
    return
  }
}

module attributes {stable_mosaic.version = 11 : i64} {
  func.func @_mm_kernel(%arg0: i32, %arg1: memref<96x32xbf16, #tpu.memory_space<vmem>>, %arg2: memref<32x64xbf16, #tpu.memory_space<vmem>>, %arg3: memref<1x64xf32, #tpu.memory_space<vmem>>, %arg4: memref<1x64xf32, #tpu.memory_space<vmem>>, %arg5: memref<96x64xf32, #tpu.memory_space<vmem>>) attributes {dimension_semantics = [#tpu.dimension_semantics<parallel>], iteration_bounds = array<i64: 1>, scalar_prefetch = 0 : i64, scratch_operands = 0 : i64, tpu.core_type = #tpu.core_type<tc>, window_params = [{transform_indices = @transform_0, window_bounds = array<i64: 96, 32>}, {pipeline_mode = #tpu.pipeline_mode<synchronous>, transform_indices = @transform_1, window_bounds = array<i64: 32, 64>}, {pipeline_mode = #tpu.pipeline_mode<synchronous>, transform_indices = @transform_2, window_bounds = array<i64: 1, 64>}, {pipeline_mode = #tpu.pipeline_mode<synchronous>, transform_indices = @transform_3, window_bounds = array<i64: 1, 64>}, {transform_indices = @transform_4, window_bounds = array<i64: 96, 64>}]} {
    %c0 = arith.constant 0 : index
    %c0_0 = arith.constant 0 : index
    %0 = vector.load %arg1[%c0, %c0_0] : memref<96x32xbf16, #tpu.memory_space<vmem>>, vector<96x32xbf16>
    %c0_1 = arith.constant 0 : index
    %c0_2 = arith.constant 0 : index
    %1 = vector.load %arg2[%c0_1, %c0_2] : memref<32x64xbf16, #tpu.memory_space<vmem>>, vector<32x64xbf16>
    %cst = arith.constant dense<0.000000e+00> : vector<96x64xf32>
    %2 = tpu.matmul %0, %1, %cst {dimension_numbers = #tpu.dot_dimension_numbers<[1], [0], [0], [1], [0, 0, 1, 1], [], []>} : vector<96x32xbf16>, vector<32x64xbf16>, vector<96x64xf32> -> vector<96x64xf32>
    %c0_3 = arith.constant 0 : index
    %c0_4 = arith.constant 0 : index
    %3 = vector.load %arg3[%c0_3, %c0_4] : memref<1x64xf32, #tpu.memory_space<vmem>>, vector<1x64xf32>
    %4 = vector.broadcast %3 : vector<1x64xf32> to vector<96x64xf32>
    %5 = arith.mulf %2, %4 : vector<96x64xf32>
    %c0_5 = arith.constant 0 : index
    %c0_6 = arith.constant 0 : index
    %6 = vector.load %arg4[%c0_5, %c0_6] : memref<1x64xf32, #tpu.memory_space<vmem>>, vector<1x64xf32>
    %7 = vector.broadcast %6 : vector<1x64xf32> to vector<96x64xf32>
    %8 = arith.addf %5, %7 : vector<96x64xf32>
    %c0_7 = arith.constant 0 : index
    %c0_8 = arith.constant 0 : index
    %9 = vector.load %arg5[%c0_7, %c0_8] : memref<96x64xf32, #tpu.memory_space<vmem>>, vector<96x64xf32>
    tpu.vector_store %arg5[%c0_7, %c0_8], %8 {strides = array<i32>} : memref<96x64xf32, #tpu.memory_space<vmem>>, vector<96x64xf32>,
    return
  }
  func.func @transform_0(%arg0: i32) -> (i32, i32) {
    %c0_i32 = arith.constant 0 : i32
    %c0_i32_0 = arith.constant 0 : i32
    return %arg0, %c0_i32 : i32, i32
  }
  func.func @transform_1(%arg0: i32) -> (i32, i32) {
    %c0_i32 = arith.constant 0 : i32
    %c0_i32_0 = arith.constant 0 : i32
    %c0_i32_1 = arith.constant 0 : i32
    return %c0_i32, %c0_i32_0 : i32, i32
  }
  func.func @transform_2(%arg0: i32) -> (i32, i32) {
    %c0_i32 = arith.constant 0 : i32
    %c0_i32_0 = arith.constant 0 : i32
    %c0_i32_1 = arith.constant 0 : i32
    return %c0_i32, %c0_i32_0 : i32, i32
  }
  func.func @transform_3(%arg0: i32) -> (i32, i32) {
    %c0_i32 = arith.constant 0 : i32
    %c0_i32_0 = arith.constant 0 : i32
    %c0_i32_1 = arith.constant 0 : i32
    return %c0_i32, %c0_i32_0 : i32, i32
  }
  func.func @transform_4(%arg0: i32) -> (i32, i32) {
    %c0_i32 = arith.constant 0 : i32
    %c0_i32_0 = arith.constant 0 : i32
    return %arg0, %c0_i32 : i32, i32
  }
}

module attributes {stable_mosaic.version = 11 : i64} {
  func.func @_mm_kernel(%arg0: i32, %arg1: memref<96x32xbf16, #tpu.memory_space<vmem>>, %arg2: memref<32x64xbf16, #tpu.memory_space<vmem>>, %arg3: memref<1x64xf32, #tpu.memory_space<vmem>>, %arg4: memref<1x64xf32, #tpu.memory_space<vmem>>, %arg5: memref<96x64xf32, #tpu.memory_space<vmem>>, %arg6: memref<96x64xf32, #tpu.memory_space<vmem>>) attributes {dimension_semantics = [#tpu.dimension_semantics<parallel>], iteration_bounds = array<i64: 1>, scalar_prefetch = 0 : i64, scratch_operands = 0 : i64, tpu.core_type = #tpu.core_type<tc>, window_params = [{transform_indices = @transform_0, window_bounds = array<i64: 96, 32>}, {pipeline_mode = #tpu.pipeline_mode<synchronous>, transform_indices = @transform_1, window_bounds = array<i64: 32, 64>}, {pipeline_mode = #tpu.pipeline_mode<synchronous>, transform_indices = @transform_2, window_bounds = array<i64: 1, 64>}, {pipeline_mode = #tpu.pipeline_mode<synchronous>, transform_indices = @transform_3, window_bounds = array<i64: 1, 64>}, {transform_indices = @transform_4, window_bounds = array<i64: 96, 64>}, {transform_indices = @transform_5, window_bounds = array<i64: 96, 64>}]} {
    %c0 = arith.constant 0 : index
    %c0_0 = arith.constant 0 : index
    %0 = vector.load %arg1[%c0, %c0_0] : memref<96x32xbf16, #tpu.memory_space<vmem>>, vector<96x32xbf16>
    %c0_1 = arith.constant 0 : index
    %c0_2 = arith.constant 0 : index
    %1 = vector.load %arg2[%c0_1, %c0_2] : memref<32x64xbf16, #tpu.memory_space<vmem>>, vector<32x64xbf16>
    %cst = arith.constant dense<0.000000e+00> : vector<96x64xf32>
    %2 = tpu.matmul %0, %1, %cst {dimension_numbers = #tpu.dot_dimension_numbers<[1], [0], [0], [1], [0, 0, 1, 1], [], []>} : vector<96x32xbf16>, vector<32x64xbf16>, vector<96x64xf32> -> vector<96x64xf32>
    %c0_3 = arith.constant 0 : index
    %c0_4 = arith.constant 0 : index
    %3 = vector.load %arg3[%c0_3, %c0_4] : memref<1x64xf32, #tpu.memory_space<vmem>>, vector<1x64xf32>
    %4 = vector.broadcast %3 : vector<1x64xf32> to vector<96x64xf32>
    %5 = arith.mulf %2, %4 : vector<96x64xf32>
    %c0_5 = arith.constant 0 : index
    %c0_6 = arith.constant 0 : index
    %6 = vector.load %arg4[%c0_5, %c0_6] : memref<1x64xf32, #tpu.memory_space<vmem>>, vector<1x64xf32>
    %7 = vector.broadcast %6 : vector<1x64xf32> to vector<96x64xf32>
    %8 = arith.addf %5, %7 : vector<96x64xf32>
    %c0_7 = arith.constant 0 : index
    %c0_8 = arith.constant 0 : index
    %9 = vector.load %arg5[%c0_7, %c0_8] : memref<96x64xf32, #tpu.memory_space<vmem>>, vector<96x64xf32>
    %10 = arith.addf %8, %9 : vector<96x64xf32>
    %cst_9 = arith.constant 0.000000e+00 : f32
    %11 = vector.broadcast %cst_9 : f32 to vector<96x64xf32>
    %12 = arith.maximumf %10, %11 : vector<96x64xf32>
    %c0_10 = arith.constant 0 : index
    %c0_11 = arith.constant 0 : index
    %13 = vector.load %arg6[%c0_10, %c0_11] : memref<96x64xf32, #tpu.memory_space<vmem>>, vector<96x64xf32>
    tpu.vector_store %arg6[%c0_10, %c0_11], %12 {strides = array<i32>} : memref<96x64xf32, #tpu.memory_space<vmem>>, vector<96x64xf32>,
    return
  }
  func.func @transform_0(%arg0: i32) -> (i32, i32) {
    %c0_i32 = arith.constant 0 : i32
    %c0_i32_0 = arith.constant 0 : i32
    return %arg0, %c0_i32 : i32, i32
  }
  func.func @transform_1(%arg0: i32) -> (i32, i32) {
    %c0_i32 = arith.constant 0 : i32
    %c0_i32_0 = arith.constant 0 : i32
    %c0_i32_1 = arith.constant 0 : i32
    return %c0_i32, %c0_i32_0 : i32, i32
  }
  func.func @transform_2(%arg0: i32) -> (i32, i32) {
    %c0_i32 = arith.constant 0 : i32
    %c0_i32_0 = arith.constant 0 : i32
    %c0_i32_1 = arith.constant 0 : i32
    return %c0_i32, %c0_i32_0 : i32, i32
  }
  func.func @transform_3(%arg0: i32) -> (i32, i32) {
    %c0_i32 = arith.constant 0 : i32
    %c0_i32_0 = arith.constant 0 : i32
    %c0_i32_1 = arith.constant 0 : i32
    return %c0_i32, %c0_i32_0 : i32, i32
  }
  func.func @transform_4(%arg0: i32) -> (i32, i32) {
    %c0_i32 = arith.constant 0 : i32
    %c0_i32_0 = arith.constant 0 : i32
    return %arg0, %c0_i32 : i32, i32
  }
  func.func @transform_5(%arg0: i32) -> (i32, i32) {
    %c0_i32 = arith.constant 0 : i32
    %c0_i32_0 = arith.constant 0 : i32
    return %arg0, %c0_i32 : i32, i32
  }
}

module attributes {stable_mosaic.version = 11 : i64} {
  func.func @_mm_kernel(%arg0: i32, %arg1: memref<96x64xbf16, #tpu.memory_space<vmem>>, %arg2: memref<64x32xbf16, #tpu.memory_space<vmem>>, %arg3: memref<1x32xf32, #tpu.memory_space<vmem>>, %arg4: memref<1x32xf32, #tpu.memory_space<vmem>>, %arg5: memref<96x32xf32, #tpu.memory_space<vmem>>) attributes {dimension_semantics = [#tpu.dimension_semantics<parallel>], iteration_bounds = array<i64: 1>, scalar_prefetch = 0 : i64, scratch_operands = 0 : i64, tpu.core_type = #tpu.core_type<tc>, window_params = [{transform_indices = @transform_0, window_bounds = array<i64: 96, 64>}, {pipeline_mode = #tpu.pipeline_mode<synchronous>, transform_indices = @transform_1, window_bounds = array<i64: 64, 32>}, {pipeline_mode = #tpu.pipeline_mode<synchronous>, transform_indices = @transform_2, window_bounds = array<i64: 1, 32>}, {pipeline_mode = #tpu.pipeline_mode<synchronous>, transform_indices = @transform_3, window_bounds = array<i64: 1, 32>}, {transform_indices = @transform_4, window_bounds = array<i64: 96, 32>}]} {
    %c0 = arith.constant 0 : index
    %c0_0 = arith.constant 0 : index
    %0 = vector.load %arg1[%c0, %c0_0] : memref<96x64xbf16, #tpu.memory_space<vmem>>, vector<96x64xbf16>
    %c0_1 = arith.constant 0 : index
    %c0_2 = arith.constant 0 : index
    %1 = vector.load %arg2[%c0_1, %c0_2] : memref<64x32xbf16, #tpu.memory_space<vmem>>, vector<64x32xbf16>
    %cst = arith.constant dense<0.000000e+00> : vector<96x32xf32>
    %2 = tpu.matmul %0, %1, %cst {dimension_numbers = #tpu.dot_dimension_numbers<[1], [0], [0], [1], [0, 0, 1, 1], [], []>} : vector<96x64xbf16>, vector<64x32xbf16>, vector<96x32xf32> -> vector<96x32xf32>
    %c0_3 = arith.constant 0 : index
    %c0_4 = arith.constant 0 : index
    %3 = vector.load %arg3[%c0_3, %c0_4] : memref<1x32xf32, #tpu.memory_space<vmem>>, vector<1x32xf32>
    %4 = vector.broadcast %3 : vector<1x32xf32> to vector<96x32xf32>
    %5 = arith.mulf %2, %4 : vector<96x32xf32>
    %c0_5 = arith.constant 0 : index
    %c0_6 = arith.constant 0 : index
    %6 = vector.load %arg4[%c0_5, %c0_6] : memref<1x32xf32, #tpu.memory_space<vmem>>, vector<1x32xf32>
    %7 = vector.broadcast %6 : vector<1x32xf32> to vector<96x32xf32>
    %8 = arith.addf %5, %7 : vector<96x32xf32>
    %cst_7 = arith.constant 0.000000e+00 : f32
    %9 = vector.broadcast %cst_7 : f32 to vector<96x32xf32>
    %10 = arith.maximumf %8, %9 : vector<96x32xf32>
    %c0_8 = arith.constant 0 : index
    %c0_9 = arith.constant 0 : index
    %11 = vector.load %arg5[%c0_8, %c0_9] : memref<96x32xf32, #tpu.memory_space<vmem>>, vector<96x32xf32>
    tpu.vector_store %arg5[%c0_8, %c0_9], %10 {strides = array<i32>} : memref<96x32xf32, #tpu.memory_space<vmem>>, vector<96x32xf32>,
    return
  }
  func.func @transform_0(%arg0: i32) -> (i32, i32) {
    %c0_i32 = arith.constant 0 : i32
    %c0_i32_0 = arith.constant 0 : i32
    return %arg0, %c0_i32 : i32, i32
  }
  func.func @transform_1(%arg0: i32) -> (i32, i32) {
    %c0_i32 = arith.constant 0 : i32
    %c0_i32_0 = arith.constant 0 : i32
    %c0_i32_1 = arith.constant 0 : i32
    return %c0_i32, %c0_i32_0 : i32, i32
  }
  func.func @transform_2(%arg0: i32) -> (i32, i32) {
    %c0_i32 = arith.constant 0 : i32
    %c0_i32_0 = arith.constant 0 : i32
    %c0_i32_1 = arith.constant 0 : i32
    return %c0_i32, %c0_i32_0 : i32, i32
  }
  func.func @transform_3(%arg0: i32) -> (i32, i32) {
    %c0_i32 = arith.constant 0 : i32
    %c0_i32_0 = arith.constant 0 : i32
    %c0_i32_1 = arith.constant 0 : i32
    return %c0_i32, %c0_i32_0 : i32, i32
  }
  func.func @transform_4(%arg0: i32) -> (i32, i32) {
    %c0_i32 = arith.constant 0 : i32
    %c0_i32_0 = arith.constant 0 : i32
    return %arg0, %c0_i32 : i32, i32
  }
}

module attributes {stable_mosaic.version = 11 : i64} {
  func.func @_mm_kernel(%arg0: i32, %arg1: memref<2x192xbf16, #tpu.memory_space<vmem>>, %arg2: memref<192x1xbf16, #tpu.memory_space<vmem>>, %arg3: memref<1x1xf32, #tpu.memory_space<vmem>>, %arg4: memref<2x1xf32, #tpu.memory_space<vmem>>) attributes {dimension_semantics = [#tpu.dimension_semantics<parallel>], iteration_bounds = array<i64: 1>, scalar_prefetch = 0 : i64, scratch_operands = 0 : i64, tpu.core_type = #tpu.core_type<tc>, window_params = [{transform_indices = @transform_0, window_bounds = array<i64: 2, 192>}, {pipeline_mode = #tpu.pipeline_mode<synchronous>, transform_indices = @transform_1, window_bounds = array<i64: 192, 1>}, {pipeline_mode = #tpu.pipeline_mode<synchronous>, transform_indices = @transform_2, window_bounds = array<i64: 1, 1>}, {transform_indices = @transform_3, window_bounds = array<i64: 2, 1>}]} {
    %c0 = arith.constant 0 : index
    %c0_0 = arith.constant 0 : index
    %0 = vector.load %arg1[%c0, %c0_0] : memref<2x192xbf16, #tpu.memory_space<vmem>>, vector<2x192xbf16>
    %c0_1 = arith.constant 0 : index
    %c0_2 = arith.constant 0 : index
    %1 = vector.load %arg2[%c0_1, %c0_2] : memref<192x1xbf16, #tpu.memory_space<vmem>>, vector<192x1xbf16>
    %cst = arith.constant dense<0.000000e+00> : vector<2x1xf32>
    %2 = tpu.matmul %0, %1, %cst {dimension_numbers = #tpu.dot_dimension_numbers<[1], [0], [0], [1], [0, 0, 1, 1], [], []>} : vector<2x192xbf16>, vector<192x1xbf16>, vector<2x1xf32> -> vector<2x1xf32>
    %c0_3 = arith.constant 0 : index
    %c0_4 = arith.constant 0 : index
    %3 = vector.load %arg3[%c0_3, %c0_4] : memref<1x1xf32, #tpu.memory_space<vmem>>, vector<1x1xf32>
    %4 = vector.broadcast %3 : vector<1x1xf32> to vector<2x1xf32>
    %5 = arith.addf %2, %4 : vector<2x1xf32>
    %c0_5 = arith.constant 0 : index
    %c0_6 = arith.constant 0 : index
    %6 = vector.load %arg4[%c0_5, %c0_6] : memref<2x1xf32, #tpu.memory_space<vmem>>, vector<2x1xf32>
    tpu.vector_store %arg4[%c0_5, %c0_6], %5 {strides = array<i32>} : memref<2x1xf32, #tpu.memory_space<vmem>>, vector<2x1xf32>,
    return
  }
  func.func @transform_0(%arg0: i32) -> (i32, i32) {
    %c0_i32 = arith.constant 0 : i32
    %c0_i32_0 = arith.constant 0 : i32
    return %arg0, %c0_i32 : i32, i32
  }
  func.func @transform_1(%arg0: i32) -> (i32, i32) {
    %c0_i32 = arith.constant 0 : i32
    %c0_i32_0 = arith.constant 0 : i32
    %c0_i32_1 = arith.constant 0 : i32
    return %c0_i32, %c0_i32_0 : i32, i32
  }
  func.func @transform_2(%arg0: i32) -> (i32, i32) {
    %c0_i32 = arith.constant 0 : i32
    %c0_i32_0 = arith.constant 0 : i32
    %c0_i32_1 = arith.constant 0 : i32
    return %c0_i32, %c0_i32_0 : i32, i32
  }
  func.func @transform_3(%arg0: i32) -> (i32, i32) {
    %c0_i32 = arith.constant 0 : i32
    %c0_i32_0 = arith.constant 0 : i32
    return %arg0, %c0_i32 : i32, i32
  }
}

</mosaic_0001>

<bundles_post_ra>
// kernel: basicsknet_forward.19
= control target key start
LH: loop header
LB: loop body
LE: loop exit
PB: predicated region body
PF: predicated region fallthrough
CT: control target
= control target key end

     0   :  { %s1397_s15 = smov 0   ;;  %s1755_s0 = inlined_call_operand.vmem [shape: bf16[1536,2], index: 0, kind: input, shape index: {}]   ;;  %s1756_s1 = inlined_call_operand.vmem [shape: bf16[2,16], index: 1, kind: input, shape index: {}]   ;;  %s1757_s2 = inlined_call_operand.vmem [shape: f32[1,16], index: 2, kind: input, shape index: {}]   ;;  %s1758_s3 = inlined_call_operand.vmem [shape: f32[1,16], index: 3, kind: input, shape index: {}]   ;;  %s1759_s4 = inlined_call_operand.vmem [shape: f32[1536,16], index: 4, kind: output, shape index: {}]  }
   0x1 LB: > { %s1144_s16 = sadd.s32 4294967295, %s1370_s15   ;;  %p1148_p0 = scmp.ge.s32.totalorder %s1370_s15, 1  ;;  %s1370_s15 = sphi %s1397_s15, %s14_s15  }
   0x2   : > { %p163_p1 = scmp.lt.s32.totalorder %s1370_s15, 4 }
   0x4   : > { %p164_p2 = pnand %p1148_p0, %p163_p1 }
   0x5   : > { %v266_v0 = vld [vmem:[%s1756_s1] sm:$0x1] (!%p164_p2)  ;;  %vm524_vm0 = vcmask (!%p164_p2), 1040384   ;;  %s1149_s19 = sshll.u32 (!%p164_p2), %s1144_s16, 6  ;;  %vm427_vm1 = vcmask (!%p164_p2), 15360   ;;  %vm1023_vm2 = vcmask (!%p164_p2), 130048  }
   0x6   : > { %167 = sbr.rel (%p164_p2) target bundleno = 297 (0x129), region = 36  ;;  %1322 = vmatprep.subr.msk.bf16.mxu0 (!%p164_p2), %vm524_vm0, %v266_v0  ;;  %1323 = vmatprep.subr.msk.bf16.mxu1 (!%p164_p2), %vm524_vm0, %v266_v0  ;;  %v526_v1 = vsel (!%p164_p2), %vm524_vm0, %v266_v0, 0  ;;  %p190_p3 = scmp.lt.s32.totalorder (!%p164_p2), %s1149_s19, 191  ;;  %v1483_v34 = vld [vmem:[%s1757_s2] ss:$0 sm:$0xff] (!%p164_p2) }
   0x7   : > { %1255 = vmatpush3.bf16.msra.mxu0 (!%p164_p2), %v526_v1  ;;  %1321 = vmatpush3.bf16.msra.mxu1 (!%p164_p2), %v526_v1  ;;  %v1488_v36 = vld [vmem:[%s1758_s3] ss:$0 sm:$0xff] (!%p164_p2) }
   0xd   : > { %s1761_s19 = smov (!%p190_p3, %s1149_s19), 191 }
   0xe   : > { %s1150_s20 = sshll.u32 %s1761_s19, 2  ;;  %s1152_s28 = sshll.u32 %s1761_s19, 3 }
   0xf   : > { %s1414_s23 = scalar_lea.vmem %s1755_s0, %s1150_s20  ;;  %s1500_s5 = scalar_lea.vmem %s1759_s4, %s1152_s28 }
  0x10   : > { %v1332_v2 = vld [vmem:[%s1414_s23] sm:$0xff]   ;;  %v1334_v4 = vld [vmem:[%s1414_s23 + $0x8] sm:$0xff]   ;;  %v1336_v6 = vld [vmem:[%s1414_s23 + $0x10] sm:$0xff]  }
  0x11   : > { %v1333_v3 = vld [vmem:[%s1414_s23 + $0x80] sm:$0xff]   ;;  %1256 = vmatprep.mubr.msk.bf16.mxu0 %vm427_vm1, %v1332_v2  ;;  %v1335_v5 = vld [vmem:[%s1414_s23 + $0x88] sm:$0xff]   ;;  %v1337_v7 = vld [vmem:[%s1414_s23 + $0x90] sm:$0xff]  }
  0x12   : > { %1288 = vmatprep.mubr.msk.bf16.mxu1 %vm427_vm1, %v1333_v3  ;;  %1257 = vmatmul.mubr.msk.bf16.vlgmr.msra.gmra.mrb[0].mxu0 %vm427_vm1, %v1334_v4  ;;  %v1338_v8 = vld [vmem:[%s1414_s23 + $0x18] sm:$0xff]   ;;  %v1340_v10 = vld [vmem:[%s1414_s23 + $0x20] sm:$0xff]   ;;  %v1342_v12 = vld [vmem:[%s1414_s23 + $0x28] sm:$0xff]  }
  0x13   : > { %1289 = vmatmul.mubr.msk.bf16.vlgmr.msra.gmra.mrb[0].mxu1 %vm427_vm1, %v1335_v5  ;;  %1260 = vmatprep.mubr.msk.bf16.mxu0 %vm427_vm1, %v1336_v6  ;;  %v1339_v9 = vld [vmem:[%s1414_s23 + $0x98] sm:$0xff]   ;;  %v1341_v11 = vld [vmem:[%s1414_s23 + $0xa0] sm:$0xff]   ;;  %v1343_v13 = vld [vmem:[%s1414_s23 + $0xa8] sm:$0xff]  }
  0x14   : > { %1292 = vmatprep.mubr.msk.bf16.mxu1 %vm427_vm1, %v1337_v7  ;;  %v1344_v14 = vld [vmem:[%s1414_s23 + $0x30] sm:$0xff]   ;;  %v1346_v16 = vld [vmem:[%s1414_s23 + $0x38] sm:$0xff]   ;;  %v1348_v18 = vld [vmem:[%s1414_s23 + $0x40] sm:$0xff]  }
  0x15   : > { %v1345_v15 = vld [vmem:[%s1414_s23 + $0xb0] sm:$0xff]   ;;  %v1347_v17 = vld [vmem:[%s1414_s23 + $0xb8] sm:$0xff]   ;;  %v1349_v19 = vld [vmem:[%s1414_s23 + $0xc0] sm:$0xff]  }
  0x16   : > { %v1350_v20 = vld [vmem:[%s1414_s23 + $0x48] sm:$0xff]   ;;  %v1352_v22 = vld [vmem:[%s1414_s23 + $0x50] sm:$0xff]   ;;  %v1354_v24 = vld [vmem:[%s1414_s23 + $0x58] sm:$0xff]  }
  0x17   : > { %v1351_v21 = vld [vmem:[%s1414_s23 + $0xc8] sm:$0xff]   ;;  %v1353_v23 = vld [vmem:[%s1414_s23 + $0xd0] sm:$0xff]   ;;  %v1355_v25 = vld [vmem:[%s1414_s23 + $0xd8] sm:$0xff]  }
  0x18   : > { %v1356_v26 = vld [vmem:[%s1414_s23 + $0x60] sm:$0xff]   ;;  %v1358_v28 = vld [vmem:[%s1414_s23 + $0x68] sm:$0xff]   ;;  %v1360_v30 = vld [vmem:[%s1414_s23 + $0x70] sm:$0xff]  }
  0x19   : > { %v1357_v27 = vld [vmem:[%s1414_s23 + $0xe0] sm:$0xff]   ;;  %v1359_v29 = vld [vmem:[%s1414_s23 + $0xe8] sm:$0xff]   ;;  %v1361_v31 = vld [vmem:[%s1414_s23 + $0xf0] sm:$0xff]  }
  0x1a   : > { %1261 = vmatmul.mubr.msk.bf16.gmra.mrb[4].mxu0 %vm427_vm1, %v1338_v8  ;;  %v1362_v32 = vld [vmem:[%s1414_s23 + $0x78] sm:$0xff]  }
  0x1b   : > { %1293 = vmatmul.mubr.msk.bf16.gmra.mrb[4].mxu1 %vm427_vm1, %v1339_v9  ;;  %1264 = vmatprep.mubr.msk.bf16.mxu0 %vm427_vm1, %v1340_v10  ;;  %v1363_v33 = vld [vmem:[%s1414_s23 + $0xf8] sm:$0xff]  }
  0x1c   : > { %1296 = vmatprep.mubr.msk.bf16.mxu1 %vm427_vm1, %v1341_v11 }
  0x22   : > { %1265 = vmatmul.mubr.msk.bf16.gmra.mrb[8].mxu0 %vm427_vm1, %v1342_v12 }
  0x23   : > { %1297 = vmatmul.mubr.msk.bf16.gmra.mrb[8].mxu1 %vm427_vm1, %v1343_v13  ;;  %1268 = vmatprep.mubr.msk.bf16.mxu0 %vm427_vm1, %v1344_v14 }
  0x24   : > { %1300 = vmatprep.mubr.msk.bf16.mxu1 %vm427_vm1, %v1345_v15 }
  0x2a   : > { %1269 = vmatmul.mubr.msk.bf16.gmra.mrb[12].mxu0 %vm427_vm1, %v1346_v16 }
  0x2b   : > { %1301 = vmatmul.mubr.msk.bf16.gmra.mrb[12].mxu1 %vm427_vm1, %v1347_v17  ;;  %1272 = vmatprep.mubr.msk.bf16.mxu0 %vm427_vm1, %v1348_v18 }
  0x2c   : > { %1304 = vmatprep.mubr.msk.bf16.mxu1 %vm427_vm1, %v1349_v19 }
  0x32   : > { %1273 = vmatmul.mubr.msk.bf16.gmra.mrb[16].mxu0 %vm427_vm1, %v1350_v20 }
  0x33   : > { %1305 = vmatmul.mubr.msk.bf16.gmra.mrb[16].mxu1 %vm427_vm1, %v1351_v21  ;;  %1276 = vmatprep.mubr.msk.bf16.mxu0 %vm427_vm1, %v1352_v22 }
  0x34   : > { %1308 = vmatprep.mubr.msk.bf16.mxu1 %vm427_vm1, %v1353_v23 }
  0x3a   : > { %1277 = vmatmul.mubr.msk.bf16.gmra.mrb[20].mxu0 %vm427_vm1, %v1354_v24 }
  0x3b   : > { %1309 = vmatmul.mubr.msk.bf16.gmra.mrb[20].mxu1 %vm427_vm1, %v1355_v25  ;;  %1280 = vmatprep.mubr.msk.bf16.mxu0 %vm427_vm1, %v1356_v26 }
  0x3c   : > { %1312 = vmatprep.mubr.msk.bf16.mxu1 %vm427_vm1, %v1357_v27 }
  0x42   : > { %1281 = vmatmul.mubr.msk.bf16.gmra.mrb[24].mxu0 %vm427_vm1, %v1358_v28 }
  0x43   : > { %1313 = vmatmul.mubr.msk.bf16.gmra.mrb[24].mxu1 %vm427_vm1, %v1359_v29  ;;  %1284 = vmatprep.mubr.msk.bf16.mxu0 %vm427_vm1, %v1360_v30 }
  0x44   : > { %1316 = vmatprep.mubr.msk.bf16.mxu1 %vm427_vm1, %v1361_v31 }
  0x4a   : > { %1285 = vmatmul.mubr.msk.bf16.gmra.mrb[28].mxu0 %vm427_vm1, %v1362_v32 }
  0x4b   : > { %1317 = vmatmul.mubr.msk.bf16.gmra.mrb[28].mxu1 %vm427_vm1, %v1363_v33 }
  0xe5   : > { %v1258_v35 = vpop.f32.mrb[0].mxu0 }
  0xe6   : > { %v826_v37 = vmul.f32 %v1258_v35, %v1483_v34  ;;  %v1290_v38 = vpop.f32.mrb[0].mxu1  ;;  %v562_v39 = vpop.f32.mrb[1].mxu0 }
  0xe7   : > { %v858_v40 = vmul.f32 %v1290_v38, %v1483_v34  ;;  %v824_v41 = vmul.f32 %v1483_v34, %v562_v39  ;;  %v690_v42 = vpop.f32.mrb[1].mxu1  ;;  %v1259_v43 = vpop.f32.mrb[2].mxu0 }
  0xe8   : > { %v897_v44 = vadd.f32 %v1488_v36, %v826_v37  ;;  %v856_v45 = vmul.f32 %v1483_v34, %v690_v42  ;;  %v827_v46 = vmul.f32 %v1259_v43, %v1483_v34  ;;  %v1291_v47 = vpop.f32.mrb[2].mxu1  ;;  %v565_v48 = vpop.f32.mrb[3].mxu0 }
  0xe9   : > { %v929_v49 = vadd.f32 %v1488_v36, %v858_v40  ;;  %v895_v50 = vadd.f32 %v1488_v36, %v824_v41  ;;  %v859_v51 = vmul.f32 %v1291_v47, %v1483_v34  ;;  %v825_v52 = vmul.f32 %v1483_v34, %v565_v48  ;;  %v693_v53 = vpop.f32.mrb[3].mxu1 }
  0xea   : > { %v961_v54 = vmax.f32 %v897_v44, 0.0  ;;  %v927_v55 = vadd.f32 %v1488_v36, %v856_v45  ;;  %v898_v56 = vadd.f32 %v1488_v36, %v827_v46  ;;  %v857_v57 = vmul.f32 %v1483_v34, %v693_v53 }
  0xeb   : > { %v993_v58 = vmax.f32 %v929_v49, 0.0  ;;  %v959_v59 = vmax.f32 %v895_v50, 0.0  ;;  %v930_v60 = vadd.f32 %v1488_v36, %v859_v51  ;;  %v896_v61 = vadd.f32 %v1488_v36, %v825_v52 }
  0xec   : > { %1026 = vst.msk [vmem:[%s1500_s5 + $0x10] sm:$0xff] %vm1023_vm2, %v961_v54  ;;  %v991_v62 = vmax.f32 %v927_v55, 0.0  ;;  %v962_v63 = vmax.f32 %v898_v56, 0.0  ;;  %v928_v0 = vadd.f32 %v1488_v36, %v857_v57 }
  0xed   : > { %1058 = vst.msk [vmem:[%s1500_s5 + $0x110] sm:$0xff] %vm1023_vm2, %v993_v58  ;;  %1024 = vst.msk [vmem:[%s1500_s5] sm:$0xff] %vm1023_vm2, %v959_v59  ;;  %v994_v1 = vmax.f32 %v930_v60, 0.0  ;;  %v960_v2 = vmax.f32 %v896_v61, 0.0  ;;  %v1262_v3 = vpop.f32.mrb[4].mxu0 }
  0xee   : > { %1056 = vst.msk [vmem:[%s1500_s5 + $0x100] sm:$0xff] %vm1023_vm2, %v991_v62  ;;  %1027 = vst.msk [vmem:[%s1500_s5 + $0x18] sm:$0xff] %vm1023_vm2, %v962_v63  ;;  %v992_v4 = vmax.f32 %v928_v0, 0.0  ;;  %v830_v5 = vmul.f32 %v1262_v3, %v1483_v34  ;;  %v1294_v6 = vpop.f32.mrb[4].mxu1  ;;  %v578_v7 = vpop.f32.mrb[5].mxu0 }
  0xef   : > { %1059 = vst.msk [vmem:[%s1500_s5 + $0x118] sm:$0xff] %vm1023_vm2, %v994_v1  ;;  %1025 = vst.msk [vmem:[%s1500_s5 + $0x8] sm:$0xff] %vm1023_vm2, %v960_v2  ;;  %v862_v8 = vmul.f32 %v1294_v6, %v1483_v34  ;;  %v828_v9 = vmul.f32 %v1483_v34, %v578_v7  ;;  %v706_v10 = vpop.f32.mrb[5].mxu1  ;;  %v1263_v11 = vpop.f32.mrb[6].mxu0 }
  0xf0   : > { %1057 = vst.msk [vmem:[%s1500_s5 + $0x108] sm:$0xff] %vm1023_vm2, %v992_v4  ;;  %v901_v12 = vadd.f32 %v1488_v36, %v830_v5  ;;  %v860_v13 = vmul.f32 %v1483_v34, %v706_v10  ;;  %v831_v14 = vmul.f32 %v1263_v11, %v1483_v34  ;;  %v1295_v15 = vpop.f32.mrb[6].mxu1  ;;  %v581_v16 = vpop.f32.mrb[7].mxu0 }
  0xf1   : > { %v933_v17 = vadd.f32 %v1488_v36, %v862_v8  ;;  %v899_v18 = vadd.f32 %v1488_v36, %v828_v9  ;;  %v863_v19 = vmul.f32 %v1295_v15, %v1483_v34  ;;  %v829_v20 = vmul.f32 %v1483_v34, %v581_v16  ;;  %v709_v21 = vpop.f32.mrb[7].mxu1 }
  0xf2   : > { %v965_v22 = vmax.f32 %v901_v12, 0.0  ;;  %v931_v23 = vadd.f32 %v1488_v36, %v860_v13  ;;  %v902_v24 = vadd.f32 %v1488_v36, %v831_v14  ;;  %v861_v25 = vmul.f32 %v1483_v34, %v709_v21 }
  0xf3   : > { %v997_v26 = vmax.f32 %v933_v17, 0.0  ;;  %v963_v27 = vmax.f32 %v899_v18, 0.0  ;;  %v934_v28 = vadd.f32 %v1488_v36, %v863_v19  ;;  %v900_v29 = vadd.f32 %v1488_v36, %v829_v20 }
  0xf4   : > { %1030 = vst.msk [vmem:[%s1500_s5 + $0x30] sm:$0xff] %vm1023_vm2, %v965_v22  ;;  %v995_v30 = vmax.f32 %v931_v23, 0.0  ;;  %v966_v31 = vmax.f32 %v902_v24, 0.0  ;;  %v932_v32 = vadd.f32 %v1488_v36, %v861_v25 }
  0xf5   : > { %1062 = vst.msk [vmem:[%s1500_s5 + $0x130] sm:$0xff] %vm1023_vm2, %v997_v26  ;;  %1028 = vst.msk [vmem:[%s1500_s5 + $0x20] sm:$0xff] %vm1023_vm2, %v963_v27  ;;  %v998_v33 = vmax.f32 %v934_v28, 0.0  ;;  %v964_v35 = vmax.f32 %v900_v29, 0.0  ;;  %v1266_v37 = vpop.f32.mrb[8].mxu0 }
  0xf6   : > { %1060 = vst.msk [vmem:[%s1500_s5 + $0x120] sm:$0xff] %vm1023_vm2, %v995_v30  ;;  %1031 = vst.msk [vmem:[%s1500_s5 + $0x38] sm:$0xff] %vm1023_vm2, %v966_v31  ;;  %v996_v38 = vmax.f32 %v932_v32, 0.0  ;;  %v834_v39 = vmul.f32 %v1266_v37, %v1483_v34  ;;  %v1298_v40 = vpop.f32.mrb[8].mxu1  ;;  %v594_v41 = vpop.f32.mrb[9].mxu0 }
  0xf7   : > { %1063 = vst.msk [vmem:[%s1500_s5 + $0x138] sm:$0xff] %vm1023_vm2, %v998_v33  ;;  %1029 = vst.msk [vmem:[%s1500_s5 + $0x28] sm:$0xff] %vm1023_vm2, %v964_v35  ;;  %v866_v42 = vmul.f32 %v1298_v40, %v1483_v34  ;;  %v832_v43 = vmul.f32 %v1483_v34, %v594_v41  ;;  %v722_v44 = vpop.f32.mrb[9].mxu1  ;;  %v1267_v45 = vpop.f32.mrb[10].mxu0 }
  0xf8   : > { %1061 = vst.msk [vmem:[%s1500_s5 + $0x128] sm:$0xff] %vm1023_vm2, %v996_v38  ;;  %v905_v46 = vadd.f32 %v1488_v36, %v834_v39  ;;  %v864_v47 = vmul.f32 %v1483_v34, %v722_v44  ;;  %v835_v48 = vmul.f32 %v1267_v45, %v1483_v34  ;;  %v1299_v49 = vpop.f32.mrb[10].mxu1  ;;  %v597_v50 = vpop.f32.mrb[11].mxu0 }
  0xf9   : > { %v937_v51 = vadd.f32 %v1488_v36, %v866_v42  ;;  %v903_v52 = vadd.f32 %v1488_v36, %v832_v43  ;;  %v867_v53 = vmul.f32 %v1299_v49, %v1483_v34  ;;  %v833_v54 = vmul.f32 %v1483_v34, %v597_v50  ;;  %v725_v55 = vpop.f32.mrb[11].mxu1 }
  0xfa   : > { %v969_v56 = vmax.f32 %v905_v46, 0.0  ;;  %v935_v57 = vadd.f32 %v1488_v36, %v864_v47  ;;  %v906_v58 = vadd.f32 %v1488_v36, %v835_v48  ;;  %v865_v59 = vmul.f32 %v1483_v34, %v725_v55 }
  0xfb   : > { %v1001_v60 = vmax.f32 %v937_v51, 0.0  ;;  %v967_v61 = vmax.f32 %v903_v52, 0.0  ;;  %v938_v62 = vadd.f32 %v1488_v36, %v867_v53  ;;  %v904_v63 = vadd.f32 %v1488_v36, %v833_v54 }
  0xfc   : > { %1034 = vst.msk [vmem:[%s1500_s5 + $0x50] sm:$0xff] %vm1023_vm2, %v969_v56  ;;  %v999_v0 = vmax.f32 %v935_v57, 0.0  ;;  %v970_v1 = vmax.f32 %v906_v58, 0.0  ;;  %v936_v2 = vadd.f32 %v1488_v36, %v865_v59 }
  0xfd   : > { %1066 = vst.msk [vmem:[%s1500_s5 + $0x150] sm:$0xff] %vm1023_vm2, %v1001_v60  ;;  %1032 = vst.msk [vmem:[%s1500_s5 + $0x40] sm:$0xff] %vm1023_vm2, %v967_v61  ;;  %v1002_v3 = vmax.f32 %v938_v62, 0.0  ;;  %v968_v4 = vmax.f32 %v904_v63, 0.0  ;;  %v1270_v5 = vpop.f32.mrb[12].mxu0 }
  0xfe   : > { %1064 = vst.msk [vmem:[%s1500_s5 + $0x140] sm:$0xff] %vm1023_vm2, %v999_v0  ;;  %1035 = vst.msk [vmem:[%s1500_s5 + $0x58] sm:$0xff] %vm1023_vm2, %v970_v1  ;;  %v1000_v6 = vmax.f32 %v936_v2, 0.0  ;;  %v838_v7 = vmul.f32 %v1270_v5, %v1483_v34  ;;  %v1302_v8 = vpop.f32.mrb[12].mxu1  ;;  %v610_v9 = vpop.f32.mrb[13].mxu0 }
  0xff   : > { %1067 = vst.msk [vmem:[%s1500_s5 + $0x158] sm:$0xff] %vm1023_vm2, %v1002_v3  ;;  %1033 = vst.msk [vmem:[%s1500_s5 + $0x48] sm:$0xff] %vm1023_vm2, %v968_v4  ;;  %v870_v10 = vmul.f32 %v1302_v8, %v1483_v34  ;;  %v836_v11 = vmul.f32 %v1483_v34, %v610_v9  ;;  %v738_v12 = vpop.f32.mrb[13].mxu1  ;;  %v1271_v13 = vpop.f32.mrb[14].mxu0 }
 0x100   : > { %1065 = vst.msk [vmem:[%s1500_s5 + $0x148] sm:$0xff] %vm1023_vm2, %v1000_v6  ;;  %v909_v14 = vadd.f32 %v1488_v36, %v838_v7  ;;  %v868_v15 = vmul.f32 %v1483_v34, %v738_v12  ;;  %v839_v16 = vmul.f32 %v1271_v13, %v1483_v34  ;;  %v1303_v17 = vpop.f32.mrb[14].mxu1  ;;  %v613_v18 = vpop.f32.mrb[15].mxu0 }
 0x101   : > { %v941_v19 = vadd.f32 %v1488_v36, %v870_v10  ;;  %v907_v20 = vadd.f32 %v1488_v36, %v836_v11  ;;  %v871_v21 = vmul.f32 %v1303_v17, %v1483_v34  ;;  %v837_v22 = vmul.f32 %v1483_v34, %v613_v18  ;;  %v741_v23 = vpop.f32.mrb[15].mxu1 }
 0x102   : > { %v973_v24 = vmax.f32 %v909_v14, 0.0  ;;  %v939_v25 = vadd.f32 %v1488_v36, %v868_v15  ;;  %v910_v26 = vadd.f32 %v1488_v36, %v839_v16  ;;  %v869_v27 = vmul.f32 %v1483_v34, %v741_v23 }
 0x103   : > { %v1005_v28 = vmax.f32 %v941_v19, 0.0  ;;  %v971_v29 = vmax.f32 %v907_v20, 0.0  ;;  %v942_v30 = vadd.f32 %v1488_v36, %v871_v21  ;;  %v908_v31 = vadd.f32 %v1488_v36, %v837_v22 }
 0x104   : > { %1038 = vst.msk [vmem:[%s1500_s5 + $0x70] sm:$0xff] %vm1023_vm2, %v973_v24  ;;  %v1003_v32 = vmax.f32 %v939_v25, 0.0  ;;  %v974_v33 = vmax.f32 %v910_v26, 0.0  ;;  %v940_v35 = vadd.f32 %v1488_v36, %v869_v27 }
 0x105   : > { %1070 = vst.msk [vmem:[%s1500_s5 + $0x170] sm:$0xff] %vm1023_vm2, %v1005_v28  ;;  %1036 = vst.msk [vmem:[%s1500_s5 + $0x60] sm:$0xff] %vm1023_vm2, %v971_v29  ;;  %v1006_v37 = vmax.f32 %v942_v30, 0.0  ;;  %v972_v38 = vmax.f32 %v908_v31, 0.0  ;;  %v1274_v39 = vpop.f32.mrb[16].mxu0 }
 0x106   : > { %1068 = vst.msk [vmem:[%s1500_s5 + $0x160] sm:$0xff] %vm1023_vm2, %v1003_v32  ;;  %1039 = vst.msk [vmem:[%s1500_s5 + $0x78] sm:$0xff] %vm1023_vm2, %v974_v33  ;;  %v1004_v40 = vmax.f32 %v940_v35, 0.0  ;;  %v842_v41 = vmul.f32 %v1274_v39, %v1483_v34  ;;  %v1306_v42 = vpop.f32.mrb[16].mxu1  ;;  %v626_v43 = vpop.f32.mrb[17].mxu0 }
 0x107   : > { %1071 = vst.msk [vmem:[%s1500_s5 + $0x178] sm:$0xff] %vm1023_vm2, %v1006_v37  ;;  %1037 = vst.msk [vmem:[%s1500_s5 + $0x68] sm:$0xff] %vm1023_vm2, %v972_v38  ;;  %v874_v44 = vmul.f32 %v1306_v42, %v1483_v34  ;;  %v840_v45 = vmul.f32 %v1483_v34, %v626_v43  ;;  %v754_v46 = vpop.f32.mrb[17].mxu1  ;;  %v1275_v47 = vpop.f32.mrb[18].mxu0 }
 0x108   : > { %1069 = vst.msk [vmem:[%s1500_s5 + $0x168] sm:$0xff] %vm1023_vm2, %v1004_v40  ;;  %v913_v48 = vadd.f32 %v1488_v36, %v842_v41  ;;  %v872_v49 = vmul.f32 %v1483_v34, %v754_v46  ;;  %v843_v50 = vmul.f32 %v1275_v47, %v1483_v34  ;;  %v1307_v51 = vpop.f32.mrb[18].mxu1  ;;  %v629_v52 = vpop.f32.mrb[19].mxu0 }
 0x109   : > { %v945_v53 = vadd.f32 %v1488_v36, %v874_v44  ;;  %v911_v54 = vadd.f32 %v1488_v36, %v840_v45  ;;  %v875_v55 = vmul.f32 %v1307_v51, %v1483_v34  ;;  %v841_v56 = vmul.f32 %v1483_v34, %v629_v52  ;;  %v757_v57 = vpop.f32.mrb[19].mxu1 }
 0x10a   : > { %v977_v58 = vmax.f32 %v913_v48, 0.0  ;;  %v943_v59 = vadd.f32 %v1488_v36, %v872_v49  ;;  %v914_v60 = vadd.f32 %v1488_v36, %v843_v50  ;;  %v873_v61 = vmul.f32 %v1483_v34, %v757_v57 }
 0x10b   : > { %v1009_v62 = vmax.f32 %v945_v53, 0.0  ;;  %v975_v63 = vmax.f32 %v911_v54, 0.0  ;;  %v946_v0 = vadd.f32 %v1488_v36, %v875_v55  ;;  %v912_v1 = vadd.f32 %v1488_v36, %v841_v56 }
 0x10c   : > { %1042 = vst.msk [vmem:[%s1500_s5 + $0x90] sm:$0xff] %vm1023_vm2, %v977_v58  ;;  %v1007_v2 = vmax.f32 %v943_v59, 0.0  ;;  %v978_v3 = vmax.f32 %v914_v60, 0.0  ;;  %v944_v4 = vadd.f32 %v1488_v36, %v873_v61 }
 0x10d   : > { %1074 = vst.msk [vmem:[%s1500_s5 + $0x190] sm:$0xff] %vm1023_vm2, %v1009_v62  ;;  %1040 = vst.msk [vmem:[%s1500_s5 + $0x80] sm:$0xff] %vm1023_vm2, %v975_v63  ;;  %v1010_v5 = vmax.f32 %v946_v0, 0.0  ;;  %v976_v6 = vmax.f32 %v912_v1, 0.0  ;;  %v1278_v7 = vpop.f32.mrb[20].mxu0 }
 0x10e   : > { %1072 = vst.msk [vmem:[%s1500_s5 + $0x180] sm:$0xff] %vm1023_vm2, %v1007_v2  ;;  %1043 = vst.msk [vmem:[%s1500_s5 + $0x98] sm:$0xff] %vm1023_vm2, %v978_v3  ;;  %v1008_v8 = vmax.f32 %v944_v4, 0.0  ;;  %v846_v9 = vmul.f32 %v1278_v7, %v1483_v34  ;;  %v1310_v10 = vpop.f32.mrb[20].mxu1  ;;  %v642_v11 = vpop.f32.mrb[21].mxu0 }
 0x10f   : > { %1075 = vst.msk [vmem:[%s1500_s5 + $0x198] sm:$0xff] %vm1023_vm2, %v1010_v5  ;;  %1041 = vst.msk [vmem:[%s1500_s5 + $0x88] sm:$0xff] %vm1023_vm2, %v976_v6  ;;  %v878_v12 = vmul.f32 %v1310_v10, %v1483_v34  ;;  %v844_v13 = vmul.f32 %v1483_v34, %v642_v11  ;;  %v770_v14 = vpop.f32.mrb[21].mxu1  ;;  %v1279_v15 = vpop.f32.mrb[22].mxu0 }
 0x110   : > { %1073 = vst.msk [vmem:[%s1500_s5 + $0x188] sm:$0xff] %vm1023_vm2, %v1008_v8  ;;  %v917_v16 = vadd.f32 %v1488_v36, %v846_v9  ;;  %v876_v17 = vmul.f32 %v1483_v34, %v770_v14  ;;  %v847_v18 = vmul.f32 %v1279_v15, %v1483_v34  ;;  %v1311_v19 = vpop.f32.mrb[22].mxu1  ;;  %v645_v20 = vpop.f32.mrb[23].mxu0 }
 0x111   : > { %v949_v21 = vadd.f32 %v1488_v36, %v878_v12  ;;  %v915_v22 = vadd.f32 %v1488_v36, %v844_v13  ;;  %v879_v23 = vmul.f32 %v1311_v19, %v1483_v34  ;;  %v845_v24 = vmul.f32 %v1483_v34, %v645_v20  ;;  %v773_v25 = vpop.f32.mrb[23].mxu1 }
 0x112   : > { %v981_v26 = vmax.f32 %v917_v16, 0.0  ;;  %v947_v27 = vadd.f32 %v1488_v36, %v876_v17  ;;  %v918_v28 = vadd.f32 %v1488_v36, %v847_v18  ;;  %v877_v29 = vmul.f32 %v1483_v34, %v773_v25 }
 0x113   : > { %v1013_v30 = vmax.f32 %v949_v21, 0.0  ;;  %v979_v31 = vmax.f32 %v915_v22, 0.0  ;;  %v950_v32 = vadd.f32 %v1488_v36, %v879_v23  ;;  %v916_v33 = vadd.f32 %v1488_v36, %v845_v24 }
 0x114   : > { %1046 = vst.msk [vmem:[%s1500_s5 + $0xb0] sm:$0xff] %vm1023_vm2, %v981_v26  ;;  %v1011_v35 = vmax.f32 %v947_v27, 0.0  ;;  %v982_v37 = vmax.f32 %v918_v28, 0.0  ;;  %v948_v38 = vadd.f32 %v1488_v36, %v877_v29 }
 0x115   : > { %1078 = vst.msk [vmem:[%s1500_s5 + $0x1b0] sm:$0xff] %vm1023_vm2, %v1013_v30  ;;  %1044 = vst.msk [vmem:[%s1500_s5 + $0xa0] sm:$0xff] %vm1023_vm2, %v979_v31  ;;  %v1014_v39 = vmax.f32 %v950_v32, 0.0  ;;  %v980_v40 = vmax.f32 %v916_v33, 0.0  ;;  %v1282_v41 = vpop.f32.mrb[24].mxu0 }
 0x116   : > { %1076 = vst.msk [vmem:[%s1500_s5 + $0x1a0] sm:$0xff] %vm1023_vm2, %v1011_v35  ;;  %1047 = vst.msk [vmem:[%s1500_s5 + $0xb8] sm:$0xff] %vm1023_vm2, %v982_v37  ;;  %v1012_v42 = vmax.f32 %v948_v38, 0.0  ;;  %v850_v43 = vmul.f32 %v1282_v41, %v1483_v34  ;;  %v1314_v44 = vpop.f32.mrb[24].mxu1  ;;  %v658_v45 = vpop.f32.mrb[25].mxu0 }
 0x117   : > { %1079 = vst.msk [vmem:[%s1500_s5 + $0x1b8] sm:$0xff] %vm1023_vm2, %v1014_v39  ;;  %1045 = vst.msk [vmem:[%s1500_s5 + $0xa8] sm:$0xff] %vm1023_vm2, %v980_v40  ;;  %v882_v46 = vmul.f32 %v1314_v44, %v1483_v34  ;;  %v848_v47 = vmul.f32 %v1483_v34, %v658_v45  ;;  %v786_v48 = vpop.f32.mrb[25].mxu1  ;;  %v1283_v49 = vpop.f32.mrb[26].mxu0 }
 0x118   : > { %1077 = vst.msk [vmem:[%s1500_s5 + $0x1a8] sm:$0xff] %vm1023_vm2, %v1012_v42  ;;  %v921_v50 = vadd.f32 %v1488_v36, %v850_v43  ;;  %v880_v51 = vmul.f32 %v1483_v34, %v786_v48  ;;  %v851_v52 = vmul.f32 %v1283_v49, %v1483_v34  ;;  %v1315_v53 = vpop.f32.mrb[26].mxu1  ;;  %v661_v54 = vpop.f32.mrb[27].mxu0 }
 0x119   : > { %v953_v55 = vadd.f32 %v1488_v36, %v882_v46  ;;  %v919_v56 = vadd.f32 %v1488_v36, %v848_v47  ;;  %v883_v57 = vmul.f32 %v1315_v53, %v1483_v34  ;;  %v849_v58 = vmul.f32 %v1483_v34, %v661_v54  ;;  %v789_v59 = vpop.f32.mrb[27].mxu1 }
 0x11a   : > { %v985_v60 = vmax.f32 %v921_v50, 0.0  ;;  %v951_v61 = vadd.f32 %v1488_v36, %v880_v51  ;;  %v922_v62 = vadd.f32 %v1488_v36, %v851_v52  ;;  %v881_v63 = vmul.f32 %v1483_v34, %v789_v59 }
 0x11b   : > { %v1017_v0 = vmax.f32 %v953_v55, 0.0  ;;  %v983_v1 = vmax.f32 %v919_v56, 0.0  ;;  %v954_v2 = vadd.f32 %v1488_v36, %v883_v57  ;;  %v920_v3 = vadd.f32 %v1488_v36, %v849_v58 }
 0x11c   : > { %1050 = vst.msk [vmem:[%s1500_s5 + $0xd0] sm:$0xff] %vm1023_vm2, %v985_v60  ;;  %v1015_v4 = vmax.f32 %v951_v61, 0.0  ;;  %v986_v5 = vmax.f32 %v922_v62, 0.0  ;;  %v952_v6 = vadd.f32 %v1488_v36, %v881_v63 }
 0x11d   : > { %1082 = vst.msk [vmem:[%s1500_s5 + $0x1d0] sm:$0xff] %vm1023_vm2, %v1017_v0  ;;  %1048 = vst.msk [vmem:[%s1500_s5 + $0xc0] sm:$0xff] %vm1023_vm2, %v983_v1  ;;  %v1018_v7 = vmax.f32 %v954_v2, 0.0  ;;  %v984_v8 = vmax.f32 %v920_v3, 0.0  ;;  %v1286_v9 = vpop.f32.mrb[28].mxu0 }
 0x11e   : > { %1080 = vst.msk [vmem:[%s1500_s5 + $0x1c0] sm:$0xff] %vm1023_vm2, %v1015_v4  ;;  %1051 = vst.msk [vmem:[%s1500_s5 + $0xd8] sm:$0xff] %vm1023_vm2, %v986_v5  ;;  %v1016_v10 = vmax.f32 %v952_v6, 0.0  ;;  %v854_v11 = vmul.f32 %v1286_v9, %v1483_v34  ;;  %v1318_v12 = vpop.f32.mrb[28].mxu1  ;;  %v674_v13 = vpop.f32.mrb[29].mxu0 }
 0x11f   : > { %1083 = vst.msk [vmem:[%s1500_s5 + $0x1d8] sm:$0xff] %vm1023_vm2, %v1018_v7  ;;  %1049 = vst.msk [vmem:[%s1500_s5 + $0xc8] sm:$0xff] %vm1023_vm2, %v984_v8  ;;  %v886_v14 = vmul.f32 %v1318_v12, %v1483_v34  ;;  %v852_v15 = vmul.f32 %v1483_v34, %v674_v13  ;;  %v802_v16 = vpop.f32.mrb[29].mxu1  ;;  %v1287_v17 = vpop.f32.mrb[30].mxu0 }
 0x120   : > { %1081 = vst.msk [vmem:[%s1500_s5 + $0x1c8] sm:$0xff] %vm1023_vm2, %v1016_v10  ;;  %v925_v18 = vadd.f32 %v1488_v36, %v854_v11  ;;  %v884_v19 = vmul.f32 %v1483_v34, %v802_v16  ;;  %v855_v20 = vmul.f32 %v1287_v17, %v1483_v34  ;;  %v1319_v21 = vpop.f32.mrb[30].mxu1  ;;  %v677_v22 = vpop.f32.mrb[31].mxu0 }
 0x121   : > { %v957_v23 = vadd.f32 %v1488_v36, %v886_v14  ;;  %v923_v24 = vadd.f32 %v1488_v36, %v852_v15  ;;  %v887_v25 = vmul.f32 %v1319_v21, %v1483_v34  ;;  %v853_v26 = vmul.f32 %v1483_v34, %v677_v22  ;;  %v805_v27 = vpop.f32.mrb[31].mxu1 }
 0x122   : > { %v989_v28 = vmax.f32 %v925_v18, 0.0  ;;  %v955_v29 = vadd.f32 %v1488_v36, %v884_v19  ;;  %v926_v30 = vadd.f32 %v1488_v36, %v855_v20  ;;  %v885_v31 = vmul.f32 %v1483_v34, %v805_v27 }
 0x123   : > { %v1021_v32 = vmax.f32 %v957_v23, 0.0  ;;  %v987_v33 = vmax.f32 %v923_v24, 0.0  ;;  %v958_v35 = vadd.f32 %v1488_v36, %v887_v25  ;;  %v924_v37 = vadd.f32 %v1488_v36, %v853_v26 }
 0x124   : > { %1054 = vst.msk [vmem:[%s1500_s5 + $0xf0] sm:$0xff] %vm1023_vm2, %v989_v28  ;;  %v1019_v38 = vmax.f32 %v955_v29, 0.0  ;;  %v990_v39 = vmax.f32 %v926_v30, 0.0  ;;  %v956_v40 = vadd.f32 %v1488_v36, %v885_v31 }
 0x125   : > { %1086 = vst.msk [vmem:[%s1500_s5 + $0x1f0] sm:$0xff] %vm1023_vm2, %v1021_v32  ;;  %1052 = vst.msk [vmem:[%s1500_s5 + $0xe0] sm:$0xff] %vm1023_vm2, %v987_v33  ;;  %v1022_v34 = vmax.f32 %v958_v35, 0.0  ;;  %v988_v41 = vmax.f32 %v924_v37, 0.0 }
 0x126   : > { %1084 = vst.msk [vmem:[%s1500_s5 + $0x1e0] sm:$0xff] %vm1023_vm2, %v1019_v38  ;;  %1055 = vst.msk [vmem:[%s1500_s5 + $0xf8] sm:$0xff] %vm1023_vm2, %v990_v39  ;;  %v1020_v42 = vmax.f32 %v956_v40, 0.0 }
 0x127   : > { %1087 = vst.msk [vmem:[%s1500_s5 + $0x1f8] sm:$0xff] %vm1023_vm2, %v1022_v34  ;;  %1053 = vst.msk [vmem:[%s1500_s5 + $0xe8] sm:$0xff] %vm1023_vm2, %v988_v41 }
 0x128   : > { %1085 = vst.msk [vmem:[%s1500_s5 + $0x1e8] sm:$0xff] %vm1023_vm2, %v1020_v42 }
 0x129 PF: > { %s14_s15 = sadd.s32 1, %s1370_s15  }
 0x12a   : > { %p11_p4 = scmp.ge.s32.totalorder %s14_s15, 5  }
 0x12c   :  { %13 = sbr.rel (!%p11_p4) target bundleno = 1 (0x1), region = 66 }

// kernel: basicsknet_forward.20
= control target key start
LH: loop header
LB: loop body
LE: loop exit
PB: predicated region body
PF: predicated region fallthrough
CT: control target
= control target key end

     0   :  { %v1869_v0 = vmov 0   ;;  %vm770_vm0 = vcmask 130048   ;;  %vm1451_vm1 = vcmask 261120   ;;  %s2605_s1 = inlined_call_operand.vmem [shape: bf16[400,32], index: 1, kind: input, shape index: {}]   ;;  %s2606_s0 = inlined_call_operand.vmem [shape: bf16[384,400], index: 0, kind: input, shape index: {}]   ;;  %s2607_s2 = inlined_call_operand.vmem [shape: f32[1,32], index: 2, kind: input, shape index: {}]   ;;  %s2608_s3 = inlined_call_operand.vmem [shape: f32[1,32], index: 3, kind: input, shape index: {}]   ;;  %s2609_s4 = inlined_call_operand.vmem [shape: f32[384,32], index: 4, kind: output, shape index: {}]  }
   0x1   :  { %843 = vmatprep.subr.bf16.mxu1 %v1869_v0  ;;  %v1700_v1 = vld [vmem:[%s2605_s1] sm:$0xff]   ;;  %1068 = vmatprep.subr.bf16.mxu0 %v1869_v0  ;;  %v1701_v2 = vld [vmem:[%s2605_s1 + $0x8] sm:$0xff]   ;;  %v1702_v3 = vld [vmem:[%s2605_s1 + $0x10] sm:$0xff]  }
   0x2   :  { %844 = vmatpush1.bf16.msra.mxu1 %v1700_v1  ;;  %v1707_v4 = vld [vmem:[%s2605_s1 + $0x80] sm:$0xff]   ;;  %v1709_v5 = vld [vmem:[%s2605_s1 + $0x88] sm:$0xff]   ;;  %v1703_v6 = vld [vmem:[%s2605_s1 + $0x18] sm:$0xff]  }
   0x3   :  { %845 = vmatprep.subr.bf16.mxu1 %v1869_v0  ;;  %1069 = vmatpush1.bf16.msra.mxu0 %v1707_v4  ;;  %v1711_v7 = vld [vmem:[%s2605_s1 + $0x90] sm:$0xff]   ;;  %v1704_v8 = vld [vmem:[%s2605_s1 + $0x20] sm:$0xff]   ;;  %v1713_v9 = vld [vmem:[%s2605_s1 + $0x98] sm:$0xff]  }
   0x4   :  { %1070 = vmatprep.subr.bf16.mxu0 %v1869_v0  ;;  %v1705_v10 = vld [vmem:[%s2605_s1 + $0x28] sm:$0xff]   ;;  %v1715_v11 = vld [vmem:[%s2605_s1 + $0xa0] sm:$0xff]   ;;  %v1706_v12 = vld [vmem:[%s2605_s1 + $0x30] sm:$0xff]  }
   0x5   :  { %v1717_v13 = vld [vmem:[%s2605_s1 + $0xa8] sm:$0xff]   ;;  %v1708_v15 = vld [vmem:[%s2605_s1 + $0x38] sm:$0xff]   ;;  %v1730_v16 = vld [vmem:[%s2606_s0 + $0x4] ss:$16 sps:$4 sm:$0xff]  }
   0x6   :  { %846 = vmatpush1.bf16.msra.mxu1 %v1701_v2  ;;  %v1726_v14 = vld [vmem:[%s2606_s0 + $0xc] ss:$16 sps:$4 sm:$0xff]   ;;  %v1719_v17 = vld [vmem:[%s2605_s1 + $0xb0] sm:$0xff]   ;;  %875 = vmatprep.mubr.bf16.mxu1 %v1730_v16  ;;  %v1710_v18 = vld [vmem:[%s2605_s1 + $0x40] sm:$0xff]  }
   0x7   :  { %847 = vmatprep.subr.bf16.mxu1 %v1869_v0  ;;  %1071 = vmatpush1.bf16.msra.mxu0 %v1709_v5  ;;  %v1721_v19 = vld [vmem:[%s2605_s1 + $0xb8] sm:$0xff]   ;;  %v1712_v20 = vld [vmem:[%s2605_s1 + $0x48] sm:$0xff]   ;;  %v1723_v21 = vld [vmem:[%s2605_s1 + $0xc0] sm:$0xff]  }
   0x8   :  { %1072 = vmatprep.subr.bf16.mxu0 %v1869_v0  ;;  %1625 = vmatprep.mubr.msk.bf16.mxu0 %vm770_vm0, %v1726_v14  ;;  %v1714_v22 = vld [vmem:[%s2605_s1 + $0x50] sm:$0xff]   ;;  %v1724_v23 = vld [vmem:[%s2606_s0 + $0x8] ss:$16 sps:$4 sm:$0xff]   ;;  %v1731_v24 = vld [vmem:[%s2606_s0 + $0x2c] ss:$16 sps:$4 sm:$0xff]  }
   0x9   :  { %v1716_v25 = vld [vmem:[%s2605_s1 + $0x58] sm:$0xff]   ;;  %v1718_v26 = vld [vmem:[%s2605_s1 + $0x60] sm:$0xff]   ;;  %v1720_v29 = vld [vmem:[%s2605_s1 + $0x68] sm:$0xff]  }
   0xa   :  { %848 = vmatpush1.bf16.msra.mxu1 %v1702_v3  ;;  %v1733_v27 = vld [vmem:[%s2606_s0 + $0x28] ss:$16 sps:$4 sm:$0xff]   ;;  %v1737_v28 = vld [vmem:[%s2606_s0 + $0x4c] ss:$16 sps:$4 sm:$0xff]   ;;  %v1722_v30 = vld [vmem:[%s2605_s1 + $0x70] sm:$0xff]  }
   0xb   :  { %849 = vmatprep.subr.bf16.mxu1 %v1869_v0  ;;  %1073 = vmatpush1.bf16.msra.mxu0 %v1711_v7  ;;  %v1739_v31 = vld [vmem:[%s2606_s0 + $0x48] ss:$16 sps:$4 sm:$0xff]   ;;  %v1743_v32 = vld [vmem:[%s2606_s0 + $0x6c] ss:$16 sps:$4 sm:$0xff]   ;;  %v1728_v34 = vld [vmem:[%s2606_s0] ss:$16 sps:$4 sm:$0xff]  }
   0xc   :  { %1074 = vmatprep.subr.bf16.mxu0 %v1869_v0  ;;  %v1727_v33 = vld [vmem:[%s2605_s1 + $0x78] sm:$0xff]   ;;  %v1734_v35 = vld [vmem:[%s2606_s0 + $0x24] ss:$16 sps:$4 sm:$0xff]   ;;  %v1736_v38 = vld [vmem:[%s2606_s0 + $0x20] ss:$16 sps:$4 sm:$0xff]  }
   0xd   :  { %v1745_v36 = vld [vmem:[%s2606_s0 + $0x68] ss:$16 sps:$4 sm:$0xff]   ;;  %v1749_v37 = vld [vmem:[%s2606_s0 + $0x8c] ss:$16 sps:$4 sm:$0xff]   ;;  %v1740_v39 = vld [vmem:[%s2606_s0 + $0x44] ss:$16 sps:$4 sm:$0xff]  }
   0xe   :  { %850 = vmatpush1.bf16.msra.mxu1 %v1703_v6  ;;  %v1751_v40 = vld [vmem:[%s2606_s0 + $0x88] ss:$16 sps:$4 sm:$0xff]   ;;  %v1755_v41 = vld [vmem:[%s2606_s0 + $0xac] ss:$16 sps:$4 sm:$0xff]   ;;  %v1742_v42 = vld [vmem:[%s2606_s0 + $0x40] ss:$16 sps:$4 sm:$0xff]  }
   0xf   :  { %851 = vmatprep.subr.bf16.mxu1 %v1869_v0  ;;  %1075 = vmatpush1.bf16.msra.mxu0 %v1713_v9  ;;  %v1746_v43 = vld [vmem:[%s2606_s0 + $0x64] ss:$16 sps:$4 sm:$0xff]   ;;  %v1757_v44 = vld [vmem:[%s2606_s0 + $0xa8] ss:$16 sps:$4 sm:$0xff]   ;;  %v1761_v45 = vld [vmem:[%s2606_s0 + $0xcc] ss:$16 sps:$4 sm:$0xff]  }
  0x10   :  { %1076 = vmatprep.subr.bf16.mxu0 %v1869_v0  ;;  %v1748_v46 = vld [vmem:[%s2606_s0 + $0x60] ss:$16 sps:$4 sm:$0xff]   ;;  %v1752_v47 = vld [vmem:[%s2606_s0 + $0x84] ss:$16 sps:$4 sm:$0xff]   ;;  %v1763_v48 = vld [vmem:[%s2606_s0 + $0xc8] ss:$16 sps:$4 sm:$0xff]  }
  0x11   :  { %v1767_v49 = vld [vmem:[%s2606_s0 + $0xec] ss:$16 sps:$4 sm:$0xff]   ;;  %v1754_v50 = vld [vmem:[%s2606_s0 + $0x80] ss:$16 sps:$4 sm:$0xff]   ;;  %v1758_v51 = vld [vmem:[%s2606_s0 + $0xa4] ss:$16 sps:$4 sm:$0xff]  }
  0x12   :  { %852 = vmatpush1.bf16.msra.mxu1 %v1704_v8  ;;  %v1769_v52 = vld [vmem:[%s2606_s0 + $0xe8] ss:$16 sps:$4 sm:$0xff]   ;;  %v1773_v53 = vld [vmem:[%s2606_s0 + $0x10c] ss:$16 sps:$4 sm:$0xff]   ;;  %v1760_v54 = vld [vmem:[%s2606_s0 + $0xa0] ss:$16 sps:$4 sm:$0xff]  }
  0x13   :  { %853 = vmatprep.subr.bf16.mxu1 %v1869_v0  ;;  %1077 = vmatpush1.bf16.msra.mxu0 %v1715_v11  ;;  %v1764_v55 = vld [vmem:[%s2606_s0 + $0xc4] ss:$16 sps:$4 sm:$0xff]   ;;  %v1775_v56 = vld [vmem:[%s2606_s0 + $0x108] ss:$16 sps:$4 sm:$0xff]   ;;  %v1779_v57 = vld [vmem:[%s2606_s0 + $0x12c] ss:$16 sps:$4 sm:$0xff]  }
  0x14   :  { %1078 = vmatprep.subr.bf16.mxu0 %v1869_v0  ;;  %v1766_v58 = vld [vmem:[%s2606_s0 + $0xc0] ss:$16 sps:$4 sm:$0xff]   ;;  %v1770_v59 = vld [vmem:[%s2606_s0 + $0xe4] ss:$16 sps:$4 sm:$0xff]   ;;  %v1781_v60 = vld [vmem:[%s2606_s0 + $0x128] ss:$16 sps:$4 sm:$0xff]  }
  0x15   :  { %v1785_v61 = vld [vmem:[%s2606_s0 + $0x14c] ss:$16 sps:$4 sm:$0xff]   ;;  %v1772_v62 = vld [vmem:[%s2606_s0 + $0xe0] ss:$16 sps:$4 sm:$0xff]   ;;  %v1776_v63 = vld [vmem:[%s2606_s0 + $0x104] ss:$16 sps:$4 sm:$0xff]  }
  0x16   :  { %854 = vmatpush1.bf16.msra.mxu1 %v1705_v10  ;;  %v1791_v1 = vld [vmem:[%s2606_s0 + $0x16c] ss:$16 sps:$4 sm:$0xff]   ;;  %v1778_v2 = vld [vmem:[%s2606_s0 + $0x100] ss:$16 sps:$4 sm:$0xff]   ;;  %v1782_v3 = vld [vmem:[%s2606_s0 + $0x124] ss:$16 sps:$4 sm:$0xff]  }
  0x17   :  { %855 = vmatprep.subr.bf16.mxu1 %v1869_v0  ;;  %1079 = vmatpush1.bf16.msra.mxu0 %v1717_v13  ;;  %v1793_v4 = vld [vmem:[%s2606_s0 + $0x168] ss:$16 sps:$4 sm:$0xff]   ;;  %v1797_v5 = vld [vmem:[%s2606_s0 + $0x18c] ss:$16 sps:$4 sm:$0xff]   ;;  %v1784_v6 = vld [vmem:[%s2606_s0 + $0x120] ss:$16 sps:$4 sm:$0xff]  }
  0x18   :  { %1080 = vmatprep.subr.bf16.mxu0 %v1869_v0  ;;  %v1788_v7 = vld [vmem:[%s2606_s0 + $0x144] ss:$16 sps:$4 sm:$0xff]   ;;  %v1799_v8 = vld [vmem:[%s2606_s0 + $0x188] ss:$16 sps:$4 sm:$0xff]   ;;  %v1803_v9 = vld [vmem:[%s2606_s0 + $0x1ac] ss:$16 sps:$4 sm:$0xff]  }
  0x19   :  { %v1790_v10 = vld [vmem:[%s2606_s0 + $0x140] ss:$16 sps:$4 sm:$0xff]   ;;  %v1794_v11 = vld [vmem:[%s2606_s0 + $0x164] ss:$16 sps:$4 sm:$0xff]   ;;  %v1809_v13 = vld [vmem:[%s2606_s0 + $0x1cc] ss:$16 sps:$4 sm:$0xff]  }
  0x1a   :  { %856 = vmatpush1.bf16.msra.mxu1 %v1706_v12  ;;  %v1805_v12 = vld [vmem:[%s2606_s0 + $0x1a8] ss:$16 sps:$4 sm:$0xff]   ;;  %v1796_v14 = vld [vmem:[%s2606_s0 + $0x160] ss:$16 sps:$4 sm:$0xff]  }
  0x1b   :  { %857 = vmatprep.subr.bf16.mxu1 %v1869_v0  ;;  %1081 = vmatpush1.bf16.msra.mxu0 %v1719_v17  ;;  %v1811_v16 = vld [vmem:[%s2606_s0 + $0x1c8] ss:$16 sps:$4 sm:$0xff]   ;;  %v1815_v17 = vld [vmem:[%s2606_s0 + $0x1ec] ss:$16 sps:$4 sm:$0xff]  }
  0x1c   :  { %1082 = vmatprep.subr.bf16.mxu0 %v1869_v0 }
  0x1e   :  { %858 = vmatpush1.bf16.msra.mxu1 %v1708_v15  ;;  %v1800_v15 = vld [vmem:[%s2606_s0 + $0x184] ss:$16 sps:$4 sm:$0xff]  }
  0x1f   :  { %859 = vmatprep.subr.bf16.mxu1 %v1869_v0  ;;  %1083 = vmatpush1.bf16.msra.mxu0 %v1721_v19  ;;  %v1806_v19 = vld [vmem:[%s2606_s0 + $0x1a4] ss:$16 sps:$4 sm:$0xff]  }
  0x20   :  { %1084 = vmatprep.subr.bf16.mxu0 %v1869_v0 }
  0x22   :  { %860 = vmatpush1.bf16.msra.mxu1 %v1710_v18  ;;  %v1802_v18 = vld [vmem:[%s2606_s0 + $0x180] ss:$16 sps:$4 sm:$0xff]  }
  0x23   :  { %861 = vmatprep.subr.bf16.mxu1 %v1869_v0  ;;  %1085 = vmatpush1.bf16.msra.mxu0 %v1723_v21  ;;  %v1821_v21 = vld [vmem:[%s2606_s0 + $0x20c] ss:$16 sps:$4 sm:$0xff]  }
  0x26   :  { %862 = vmatpush1.bf16.msra.mxu1 %v1712_v20  ;;  %1101 = vmatmul.mubr.bf16.vlgmr.msra.gmra.mrb[0].mxu0 %v1724_v23  ;;  %v1817_v20 = vld [vmem:[%s2606_s0 + $0x1e8] ss:$16 sps:$4 sm:$0xff]   ;;  %v1812_v23 = vld [vmem:[%s2606_s0 + $0x1c4] ss:$16 sps:$4 sm:$0xff]  }
  0x27   :  { %863 = vmatprep.subr.bf16.mxu1 %v1869_v0  ;;  %1626 = vmatprep.mubr.msk.bf16.mxu0 %vm770_vm0, %v1731_v24  ;;  %v1823_v24 = vld [vmem:[%s2606_s0 + $0x208] ss:$16 sps:$4 sm:$0xff]  }
  0x2a   :  { %864 = vmatpush1.bf16.msra.mxu1 %v1714_v22  ;;  %v1808_v22 = vld [vmem:[%s2606_s0 + $0x1a0] ss:$16 sps:$4 sm:$0xff]  }
  0x2b   :  { %865 = vmatprep.subr.bf16.mxu1 %v1869_v0 }
  0x2e   :  { %866 = vmatpush1.bf16.msra.mxu1 %v1716_v25  ;;  %1109 = vmatmul.mubr.bf16.gmra.mrb[4].mxu0 %v1733_v27  ;;  %v1827_v25 = vld [vmem:[%s2606_s0 + $0x22c] ss:$16 sps:$4 sm:$0xff]   ;;  %v1818_v27 = vld [vmem:[%s2606_s0 + $0x1e4] ss:$16 sps:$4 sm:$0xff]  }
  0x2f   :  { %867 = vmatprep.subr.bf16.mxu1 %v1869_v0  ;;  %1627 = vmatprep.mubr.msk.bf16.mxu0 %vm770_vm0, %v1737_v28  ;;  %v1829_v28 = vld [vmem:[%s2606_s0 + $0x228] ss:$16 sps:$4 sm:$0xff]  }
  0x32   :  { %868 = vmatpush1.bf16.msra.mxu1 %v1718_v26  ;;  %v1814_v26 = vld [vmem:[%s2606_s0 + $0x1c0] ss:$16 sps:$4 sm:$0xff]  }
  0x33   :  { %869 = vmatprep.subr.bf16.mxu1 %v1869_v0 }
  0x36   :  { %870 = vmatpush1.bf16.msra.mxu1 %v1720_v29  ;;  %1117 = vmatmul.mubr.bf16.gmra.mrb[8].mxu0 %v1739_v31  ;;  %v1833_v29 = vld [vmem:[%s2606_s0 + $0x24c] ss:$16 sps:$4 sm:$0xff]   ;;  %v1824_v31 = vld [vmem:[%s2606_s0 + $0x204] ss:$16 sps:$4 sm:$0xff]  }
  0x37   :  { %871 = vmatprep.subr.bf16.mxu1 %v1869_v0  ;;  %1628 = vmatprep.mubr.msk.bf16.mxu0 %vm770_vm0, %v1743_v32  ;;  %v1835_v32 = vld [vmem:[%s2606_s0 + $0x248] ss:$16 sps:$4 sm:$0xff]  }
  0x3a   :  { %872 = vmatpush1.bf16.msra.mxu1 %v1722_v30  ;;  %v1820_v30 = vld [vmem:[%s2606_s0 + $0x1e0] ss:$16 sps:$4 sm:$0xff]  }
  0x3b   :  { %873 = vmatprep.subr.bf16.mxu1 %v1869_v0  ;;  %v1787_v0 = vld [vmem:[%s2606_s0 + $0x148] ss:$16 sps:$4 sm:$0xff]  }
  0x3e   :  { %874 = vmatpush1.bf16.msra.mxu1 %v1727_v33  ;;  %1125 = vmatmul.mubr.bf16.gmra.mrb[12].mxu0 %v1745_v36  ;;  %v1839_v33 = vld [vmem:[%s2606_s0 + $0x26c] ss:$16 sps:$4 sm:$0xff]   ;;  %v1841_v36 = vld [vmem:[%s2606_s0 + $0x268] ss:$16 sps:$4 sm:$0xff]  }
  0x3f   :  { %1629 = vmatprep.mubr.msk.bf16.mxu0 %vm770_vm0, %v1749_v37  ;;  %v1845_v37 = vld [vmem:[%s2606_s0 + $0x28c] ss:$16 sps:$4 sm:$0xff]  }
  0x41   :  { %876 = vmatmul.mubr.bf16.vlgmr.msra.gmra.mrb[0].mxu1 %v1728_v34  ;;  %v1826_v34 = vld [vmem:[%s2606_s0 + $0x200] ss:$16 sps:$4 sm:$0xff]  }
  0x42   :  { %883 = vmatprep.mubr.bf16.mxu1 %v1734_v35  ;;  %v1830_v35 = vld [vmem:[%s2606_s0 + $0x224] ss:$16 sps:$4 sm:$0xff]  }
  0x46   :  { %1133 = vmatmul.mubr.bf16.gmra.mrb[16].mxu0 %v1751_v40  ;;  %v1847_v40 = vld [vmem:[%s2606_s0 + $0x288] ss:$16 sps:$4 sm:$0xff]  }
  0x47   :  { %1630 = vmatprep.mubr.msk.bf16.mxu0 %vm770_vm0, %v1755_v41  ;;  %v1851_v41 = vld [vmem:[%s2606_s0 + $0x2ac] ss:$16 sps:$4 sm:$0xff]  }
  0x49   :  { %884 = vmatmul.mubr.bf16.gmra.mrb[4].mxu1 %v1736_v38  ;;  %v1832_v38 = vld [vmem:[%s2606_s0 + $0x220] ss:$16 sps:$4 sm:$0xff]  }
  0x4a   :  { %891 = vmatprep.mubr.bf16.mxu1 %v1740_v39  ;;  %v1836_v39 = vld [vmem:[%s2606_s0 + $0x244] ss:$16 sps:$4 sm:$0xff]  }
  0x4e   :  { %1141 = vmatmul.mubr.bf16.gmra.mrb[20].mxu0 %v1757_v44  ;;  %v1853_v44 = vld [vmem:[%s2606_s0 + $0x2a8] ss:$16 sps:$4 sm:$0xff]  }
  0x4f   :  { %1631 = vmatprep.mubr.msk.bf16.mxu0 %vm770_vm0, %v1761_v45  ;;  %v1857_v45 = vld [vmem:[%s2606_s0 + $0x2cc] ss:$16 sps:$4 sm:$0xff]  }
  0x51   :  { %892 = vmatmul.mubr.bf16.gmra.mrb[8].mxu1 %v1742_v42  ;;  %v1838_v42 = vld [vmem:[%s2606_s0 + $0x240] ss:$16 sps:$4 sm:$0xff]  }
  0x52   :  { %899 = vmatprep.mubr.bf16.mxu1 %v1746_v43  ;;  %v1842_v43 = vld [vmem:[%s2606_s0 + $0x264] ss:$16 sps:$4 sm:$0xff]  }
  0x56   :  { %1149 = vmatmul.mubr.bf16.gmra.mrb[24].mxu0 %v1763_v48  ;;  %v1859_v48 = vld [vmem:[%s2606_s0 + $0x2c8] ss:$16 sps:$4 sm:$0xff]  }
  0x57   :  { %1632 = vmatprep.mubr.msk.bf16.mxu0 %vm770_vm0, %v1767_v49  ;;  %v1863_v49 = vld [vmem:[%s2606_s0 + $0x2ec] ss:$16 sps:$4 sm:$0xff]  }
  0x59   :  { %900 = vmatmul.mubr.bf16.gmra.mrb[12].mxu1 %v1748_v46  ;;  %v1844_v46 = vld [vmem:[%s2606_s0 + $0x260] ss:$16 sps:$4 sm:$0xff]  }
  0x5a   :  { %907 = vmatprep.mubr.bf16.mxu1 %v1752_v47  ;;  %v1848_v47 = vld [vmem:[%s2606_s0 + $0x284] ss:$16 sps:$4 sm:$0xff]  }
  0x5e   :  { %1157 = vmatmul.mubr.bf16.gmra.mrb[28].mxu0 %v1769_v52  ;;  %v1865_v52 = vld [vmem:[%s2606_s0 + $0x2e8] ss:$16 sps:$4 sm:$0xff]  }
  0x5f   :  { %1633 = vmatprep.mubr.msk.bf16.mxu0 %vm770_vm0, %v1773_v53  ;;  %v1856_v53 = vld [vmem:[%s2606_s0 + $0x2a0] ss:$16 sps:$4 sm:$0xff]  }
  0x61   :  { %908 = vmatmul.mubr.bf16.gmra.mrb[16].mxu1 %v1754_v50  ;;  %v1850_v50 = vld [vmem:[%s2606_s0 + $0x280] ss:$16 sps:$4 sm:$0xff]  }
  0x62   :  { %915 = vmatprep.mubr.bf16.mxu1 %v1758_v51  ;;  %v1854_v51 = vld [vmem:[%s2606_s0 + $0x2a4] ss:$16 sps:$4 sm:$0xff]  }
  0x66   :  { %1165 = vmatmul.mubr.bf16.gmra.mrb[32].mxu0 %v1775_v56  ;;  %v1866_v56 = vld [vmem:[%s2606_s0 + $0x2e4] ss:$16 sps:$4 sm:$0xff]  }
  0x67   :  { %1634 = vmatprep.mubr.msk.bf16.mxu0 %vm770_vm0, %v1779_v57  ;;  %v1868_v57 = vld [vmem:[%s2606_s0 + $0x2e0] ss:$16 sps:$4 sm:$0xff]  }
  0x69   :  { %916 = vmatmul.mubr.bf16.gmra.mrb[20].mxu1 %v1760_v54  ;;  %v1860_v54 = vld [vmem:[%s2606_s0 + $0x2c4] ss:$16 sps:$4 sm:$0xff]  }
  0x6a   :  { %923 = vmatprep.mubr.bf16.mxu1 %v1764_v55  ;;  %v1862_v55 = vld [vmem:[%s2606_s0 + $0x2c0] ss:$16 sps:$4 sm:$0xff]  }
  0x6e   :  { %1173 = vmatmul.mubr.bf16.gmra.mrb[36].mxu0 %v1781_v60 }
  0x6f   :  { %1635 = vmatprep.mubr.msk.bf16.mxu0 %vm770_vm0, %v1785_v61 }
  0x71   :  { %924 = vmatmul.mubr.bf16.gmra.mrb[24].mxu1 %v1766_v58 }
  0x72   :  { %931 = vmatprep.mubr.bf16.mxu1 %v1770_v59 }
  0x76   :  { %1181 = vmatmul.mubr.bf16.gmra.mrb[40].mxu0 %v1787_v0 }
  0x77   :  { %1636 = vmatprep.mubr.msk.bf16.mxu0 %vm770_vm0, %v1791_v1 }
  0x79   :  { %932 = vmatmul.mubr.bf16.gmra.mrb[28].mxu1 %v1772_v62 }
  0x7a   :  { %939 = vmatprep.mubr.bf16.mxu1 %v1776_v63 }
  0x7e   :  { %1189 = vmatmul.mubr.bf16.gmra.mrb[44].mxu0 %v1793_v4 }
  0x7f   :  { %1637 = vmatprep.mubr.msk.bf16.mxu0 %vm770_vm0, %v1797_v5 }
  0x81   :  { %940 = vmatmul.mubr.bf16.gmra.mrb[32].mxu1 %v1778_v2 }
  0x82   :  { %947 = vmatprep.mubr.bf16.mxu1 %v1782_v3 }
  0x86   :  { %1197 = vmatmul.mubr.bf16.gmra.mrb[48].mxu0 %v1799_v8 }
  0x87   :  { %1638 = vmatprep.mubr.msk.bf16.mxu0 %vm770_vm0, %v1803_v9 }
  0x89   :  { %948 = vmatmul.mubr.bf16.gmra.mrb[36].mxu1 %v1784_v6 }
  0x8a   :  { %955 = vmatprep.mubr.bf16.mxu1 %v1788_v7  ;;  %v2310_v7 = vld [vmem:[%s2607_s2] ss:$0 sm:$0xff] }
  0x8e   :  { %1205 = vmatmul.mubr.bf16.gmra.mrb[52].mxu0 %v1805_v12 }
  0x8f   :  { %1639 = vmatprep.mubr.msk.bf16.mxu0 %vm770_vm0, %v1809_v13 }
  0x91   :  { %956 = vmatmul.mubr.bf16.gmra.mrb[40].mxu1 %v1790_v10  ;;  %v2315_v10 = vld [vmem:[%s2608_s3] ss:$0 sm:$0xff] }
  0x92   :  { %963 = vmatprep.mubr.bf16.mxu1 %v1794_v11 }
  0x96   :  { %1213 = vmatmul.mubr.bf16.gmra.mrb[56].mxu0 %v1811_v16 }
  0x97   :  { %1640 = vmatprep.mubr.msk.bf16.mxu0 %vm770_vm0, %v1815_v17 }
  0x99   :  { %964 = vmatmul.mubr.bf16.gmra.mrb[44].mxu1 %v1796_v14 }
  0x9a   :  { %971 = vmatprep.mubr.bf16.mxu1 %v1800_v15 }
  0x9e   :  { %1221 = vmatmul.mubr.bf16.gmra.mrb[60].mxu0 %v1817_v20 }
  0x9f   :  { %1641 = vmatprep.mubr.msk.bf16.mxu0 %vm770_vm0, %v1821_v21 }
  0xa1   :  { %972 = vmatmul.mubr.bf16.gmra.mrb[48].mxu1 %v1802_v18 }
  0xa2   :  { %979 = vmatprep.mubr.bf16.mxu1 %v1806_v19 }
  0xa6   :  { %1229 = vmatmul.mubr.bf16.gmra.mrb[64].mxu0 %v1823_v24 }
  0xa7   :  { %1642 = vmatprep.mubr.msk.bf16.mxu0 %vm770_vm0, %v1827_v25 }
  0xa9   :  { %980 = vmatmul.mubr.bf16.gmra.mrb[52].mxu1 %v1808_v22 }
  0xaa   :  { %987 = vmatprep.mubr.bf16.mxu1 %v1812_v23 }
  0xae   :  { %1237 = vmatmul.mubr.bf16.gmra.mrb[68].mxu0 %v1829_v28 }
  0xaf   :  { %1643 = vmatprep.mubr.msk.bf16.mxu0 %vm770_vm0, %v1833_v29 }
  0xb1   :  { %988 = vmatmul.mubr.bf16.gmra.mrb[56].mxu1 %v1814_v26 }
  0xb2   :  { %995 = vmatprep.mubr.bf16.mxu1 %v1818_v27 }
  0xb6   :  { %1245 = vmatmul.mubr.bf16.gmra.mrb[72].mxu0 %v1835_v32 }
  0xb7   :  { %1644 = vmatprep.mubr.msk.bf16.mxu0 %vm770_vm0, %v1839_v33 }
  0xb9   :  { %996 = vmatmul.mubr.bf16.gmra.mrb[60].mxu1 %v1820_v30 }
  0xba   :  { %1003 = vmatprep.mubr.bf16.mxu1 %v1824_v31 }
  0xbe   :  { %1253 = vmatmul.mubr.bf16.gmra.mrb[76].mxu0 %v1841_v36 }
  0xbf   :  { %1645 = vmatprep.mubr.msk.bf16.mxu0 %vm770_vm0, %v1845_v37 }
  0xc1   :  { %1004 = vmatmul.mubr.bf16.gmra.mrb[64].mxu1 %v1826_v34 }
  0xc2   :  { %1011 = vmatprep.mubr.bf16.mxu1 %v1830_v35 }
  0xc6   :  { %1261 = vmatmul.mubr.bf16.gmra.mrb[80].mxu0 %v1847_v40 }
  0xc7   :  { %1646 = vmatprep.mubr.msk.bf16.mxu0 %vm770_vm0, %v1851_v41 }
  0xc9   :  { %1012 = vmatmul.mubr.bf16.gmra.mrb[68].mxu1 %v1832_v38 }
  0xca   :  { %1019 = vmatprep.mubr.bf16.mxu1 %v1836_v39 }
  0xce   :  { %1269 = vmatmul.mubr.bf16.gmra.mrb[84].mxu0 %v1853_v44 }
  0xcf   :  { %1647 = vmatprep.mubr.msk.bf16.mxu0 %vm770_vm0, %v1857_v45 }
  0xd1   :  { %1020 = vmatmul.mubr.bf16.gmra.mrb[72].mxu1 %v1838_v42 }
  0xd2   :  { %1027 = vmatprep.mubr.bf16.mxu1 %v1842_v43 }
  0xd6   :  { %1277 = vmatmul.mubr.bf16.gmra.mrb[88].mxu0 %v1859_v48 }
  0xd7   :  { %1648 = vmatprep.mubr.msk.bf16.mxu0 %vm770_vm0, %v1863_v49 }
  0xd9   :  { %1028 = vmatmul.mubr.bf16.gmra.mrb[76].mxu1 %v1844_v46 }
  0xda   :  { %1035 = vmatprep.mubr.bf16.mxu1 %v1848_v47 }
  0xde   :  { %1285 = vmatmul.mubr.bf16.gmra.mrb[92].mxu0 %v1865_v52 }
  0xe1   :  { %1036 = vmatmul.mubr.bf16.gmra.mrb[80].mxu1 %v1850_v50 }
  0xe2   :  { %1043 = vmatprep.mubr.bf16.mxu1 %v1854_v51 }
  0xe9   :  { %1044 = vmatmul.mubr.bf16.gmra.mrb[84].mxu1 %v1856_v53 }
  0xea   :  { %1051 = vmatprep.mubr.bf16.mxu1 %v1860_v54 }
  0xf1   :  { %1052 = vmatmul.mubr.bf16.gmra.mrb[88].mxu1 %v1862_v55 }
  0xf2   :  { %1059 = vmatprep.mubr.bf16.mxu1 %v1866_v56 }
  0xf9   :  { %1060 = vmatmul.mubr.bf16.gmra.mrb[92].mxu1 %v1868_v57  ;;  %v1102_v58 = vpop.f32.mrb[0].mxu0 }
  0xfa   :  { %v1104_v59 = vpop.f32.mrb[1].mxu0 }
  0xfb   :  { %v1105_v60 = vpop.f32.mrb[2].mxu0 }
  0xfc   :  { %v1107_v61 = vpop.f32.mrb[3].mxu0 }
 0x101   :  { %v1110_v62 = vpop.f32.mrb[4].mxu0 }
 0x102   :  { %v1112_v63 = vpop.f32.mrb[5].mxu0 }
 0x103   :  { %v1113_v0 = vpop.f32.mrb[6].mxu0 }
 0x104   :  { %v1115_v1 = vpop.f32.mrb[7].mxu0 }
 0x109   :  { %v1118_v2 = vpop.f32.mrb[8].mxu0 }
 0x10a   :  { %v1120_v3 = vpop.f32.mrb[9].mxu0 }
 0x10b   :  { %v1121_v4 = vpop.f32.mrb[10].mxu0 }
 0x10c   :  { %v1123_v5 = vpop.f32.mrb[11].mxu0 }
 0x111   :  { %v1126_v15 = vpop.f32.mrb[12].mxu0 }
 0x112   :  { %v1128_v16 = vpop.f32.mrb[13].mxu0 }
 0x113   :  { %v1129_v19 = vpop.f32.mrb[14].mxu0 }
 0x114   :  { %v877_v6 = vpop.f32.mrb[0].mxu1  ;;  %v1131_v20 = vpop.f32.mrb[15].mxu0 }
 0x115   :  { %v1103_v8 = vadd.f32 %v1102_v58, %v877_v6  ;;  %v879_v9 = vpop.f32.mrb[1].mxu1 }
 0x116   :  { %v880_v11 = vpop.f32.mrb[2].mxu1 }
 0x117   :  { %v1300_v12 = vmul.f32 %v2310_v7, %v1103_v8  ;;  %v1106_v13 = vadd.f32 %v1105_v60, %v880_v11  ;;  %v882_v14 = vpop.f32.mrb[3].mxu1 }
 0x119   :  { %v1355_v17 = vadd.f32 %v2315_v10, %v1300_v12  ;;  %v1301_v18 = vmul.f32 %v2310_v7, %v1106_v13  ;;  %v1134_v31 = vpop.f32.mrb[16].mxu0 }
 0x11a   :  { %v1136_v32 = vpop.f32.mrb[17].mxu0 }
 0x11b   :  { %v1403_v21 = vmax.f32 %v1355_v17, 0.0  ;;  %v1356_v22 = vadd.f32 %v2315_v10, %v1301_v18  ;;  %v1137_v35 = vpop.f32.mrb[18].mxu0 }
 0x11c   :  { %v885_v23 = vpop.f32.mrb[4].mxu1  ;;  %v1139_v36 = vpop.f32.mrb[19].mxu0 }
 0x11d   :  { %1452 = vst.msk [vmem:[%s2609_s4] sm:$0xff] %vm1451_vm1, %v1403_v21  ;;  %v1404_v24 = vmax.f32 %v1356_v22, 0.0  ;;  %v1111_v25 = vadd.f32 %v1110_v62, %v885_v23  ;;  %v887_v26 = vpop.f32.mrb[5].mxu1 }
 0x11e   :  { %v888_v27 = vpop.f32.mrb[6].mxu1 }
 0x11f   :  { %1453 = vst.msk [vmem:[%s2609_s4 + $0x8] sm:$0xff] %vm1451_vm1, %v1404_v24  ;;  %v1302_v28 = vmul.f32 %v2310_v7, %v1111_v25  ;;  %v1114_v29 = vadd.f32 %v1113_v0, %v888_v27  ;;  %v890_v30 = vpop.f32.mrb[7].mxu1 }
 0x121   :  { %v1357_v33 = vadd.f32 %v2315_v10, %v1302_v28  ;;  %v1303_v34 = vmul.f32 %v2310_v7, %v1114_v29  ;;  %v1142_v47 = vpop.f32.mrb[20].mxu0 }
 0x122   :  { %v1144_v48 = vpop.f32.mrb[21].mxu0 }
 0x123   :  { %v1405_v37 = vmax.f32 %v1357_v33, 0.0  ;;  %v1358_v38 = vadd.f32 %v2315_v10, %v1303_v34  ;;  %v1145_v51 = vpop.f32.mrb[22].mxu0 }
 0x124   :  { %v893_v39 = vpop.f32.mrb[8].mxu1  ;;  %v1147_v52 = vpop.f32.mrb[23].mxu0 }
 0x125   :  { %1454 = vst.msk [vmem:[%s2609_s4 + $0x10] sm:$0xff] %vm1451_vm1, %v1405_v37  ;;  %v1406_v40 = vmax.f32 %v1358_v38, 0.0  ;;  %v1119_v41 = vadd.f32 %v1118_v2, %v893_v39  ;;  %v895_v42 = vpop.f32.mrb[9].mxu1 }
 0x126   :  { %v896_v43 = vpop.f32.mrb[10].mxu1 }
 0x127   :  { %1455 = vst.msk [vmem:[%s2609_s4 + $0x18] sm:$0xff] %vm1451_vm1, %v1406_v40  ;;  %v1304_v44 = vmul.f32 %v2310_v7, %v1119_v41  ;;  %v1122_v45 = vadd.f32 %v1121_v4, %v896_v43  ;;  %v898_v46 = vpop.f32.mrb[11].mxu1 }
 0x129   :  { %v1359_v49 = vadd.f32 %v2315_v10, %v1304_v44  ;;  %v1305_v50 = vmul.f32 %v2310_v7, %v1122_v45  ;;  %v1150_v63 = vpop.f32.mrb[24].mxu0 }
 0x12a   :  { %v1152_v0 = vpop.f32.mrb[25].mxu0 }
 0x12b   :  { %v1407_v53 = vmax.f32 %v1359_v49, 0.0  ;;  %v1360_v54 = vadd.f32 %v2315_v10, %v1305_v50  ;;  %v1153_v3 = vpop.f32.mrb[26].mxu0 }
 0x12c   :  { %v901_v55 = vpop.f32.mrb[12].mxu1  ;;  %v1155_v4 = vpop.f32.mrb[27].mxu0 }
 0x12d   :  { %1456 = vst.msk [vmem:[%s2609_s4 + $0x20] sm:$0xff] %vm1451_vm1, %v1407_v53  ;;  %v1408_v56 = vmax.f32 %v1360_v54, 0.0  ;;  %v1127_v57 = vadd.f32 %v1126_v15, %v901_v55  ;;  %v903_v58 = vpop.f32.mrb[13].mxu1 }
 0x12e   :  { %v904_v59 = vpop.f32.mrb[14].mxu1 }
 0x12f   :  { %1457 = vst.msk [vmem:[%s2609_s4 + $0x28] sm:$0xff] %vm1451_vm1, %v1408_v56  ;;  %v1306_v60 = vmul.f32 %v2310_v7, %v1127_v57  ;;  %v1130_v61 = vadd.f32 %v1129_v19, %v904_v59  ;;  %v906_v62 = vpop.f32.mrb[15].mxu1 }
 0x131   :  { %v1361_v1 = vadd.f32 %v2315_v10, %v1306_v60  ;;  %v1307_v2 = vmul.f32 %v2310_v7, %v1130_v61  ;;  %v1158_v17 = vpop.f32.mrb[28].mxu0 }
 0x132   :  { %v1160_v18 = vpop.f32.mrb[29].mxu0 }
 0x133   :  { %v1409_v5 = vmax.f32 %v1361_v1, 0.0  ;;  %v1362_v6 = vadd.f32 %v2315_v10, %v1307_v2  ;;  %v1161_v21 = vpop.f32.mrb[30].mxu0 }
 0x134   :  { %v909_v8 = vpop.f32.mrb[16].mxu1  ;;  %v1163_v22 = vpop.f32.mrb[31].mxu0 }
 0x135   :  { %1458 = vst.msk [vmem:[%s2609_s4 + $0x30] sm:$0xff] %vm1451_vm1, %v1409_v5  ;;  %v1410_v9 = vmax.f32 %v1362_v6, 0.0  ;;  %v1135_v11 = vadd.f32 %v1134_v31, %v909_v8  ;;  %v911_v12 = vpop.f32.mrb[17].mxu1 }
 0x136   :  { %v912_v13 = vpop.f32.mrb[18].mxu1 }
 0x137   :  { %1459 = vst.msk [vmem:[%s2609_s4 + $0x38] sm:$0xff] %vm1451_vm1, %v1410_v9  ;;  %v1308_v14 = vmul.f32 %v2310_v7, %v1135_v11  ;;  %v1138_v15 = vadd.f32 %v1137_v35, %v912_v13  ;;  %v914_v16 = vpop.f32.mrb[19].mxu1 }
 0x139   :  { %v1363_v19 = vadd.f32 %v2315_v10, %v1308_v14  ;;  %v1309_v20 = vmul.f32 %v2310_v7, %v1138_v15  ;;  %v1166_v33 = vpop.f32.mrb[32].mxu0 }
 0x13a   :  { %v1168_v34 = vpop.f32.mrb[33].mxu0 }
 0x13b   :  { %v1411_v23 = vmax.f32 %v1363_v19, 0.0  ;;  %v1364_v24 = vadd.f32 %v2315_v10, %v1309_v20  ;;  %v1169_v37 = vpop.f32.mrb[34].mxu0 }
 0x13c   :  { %v917_v25 = vpop.f32.mrb[20].mxu1  ;;  %v1171_v38 = vpop.f32.mrb[35].mxu0 }
 0x13d   :  { %1460 = vst.msk [vmem:[%s2609_s4 + $0x40] sm:$0xff] %vm1451_vm1, %v1411_v23  ;;  %v1412_v26 = vmax.f32 %v1364_v24, 0.0  ;;  %v1143_v27 = vadd.f32 %v1142_v47, %v917_v25  ;;  %v919_v28 = vpop.f32.mrb[21].mxu1 }
 0x13e   :  { %v920_v29 = vpop.f32.mrb[22].mxu1 }
 0x13f   :  { %1461 = vst.msk [vmem:[%s2609_s4 + $0x48] sm:$0xff] %vm1451_vm1, %v1412_v26  ;;  %v1310_v30 = vmul.f32 %v2310_v7, %v1143_v27  ;;  %v1146_v31 = vadd.f32 %v1145_v51, %v920_v29  ;;  %v922_v32 = vpop.f32.mrb[23].mxu1 }
 0x141   :  { %v1365_v35 = vadd.f32 %v2315_v10, %v1310_v30  ;;  %v1311_v36 = vmul.f32 %v2310_v7, %v1146_v31  ;;  %v1174_v49 = vpop.f32.mrb[36].mxu0 }
 0x142   :  { %v1176_v50 = vpop.f32.mrb[37].mxu0 }
 0x143   :  { %v1413_v39 = vmax.f32 %v1365_v35, 0.0  ;;  %v1366_v40 = vadd.f32 %v2315_v10, %v1311_v36  ;;  %v1177_v53 = vpop.f32.mrb[38].mxu0 }
 0x144   :  { %v925_v41 = vpop.f32.mrb[24].mxu1  ;;  %v1179_v54 = vpop.f32.mrb[39].mxu0 }
 0x145   :  { %1462 = vst.msk [vmem:[%s2609_s4 + $0x50] sm:$0xff] %vm1451_vm1, %v1413_v39  ;;  %v1414_v42 = vmax.f32 %v1366_v40, 0.0  ;;  %v1151_v43 = vadd.f32 %v1150_v63, %v925_v41  ;;  %v927_v44 = vpop.f32.mrb[25].mxu1 }
 0x146   :  { %v928_v45 = vpop.f32.mrb[26].mxu1 }
 0x147   :  { %1463 = vst.msk [vmem:[%s2609_s4 + $0x58] sm:$0xff] %vm1451_vm1, %v1414_v42  ;;  %v1312_v46 = vmul.f32 %v2310_v7, %v1151_v43  ;;  %v1154_v47 = vadd.f32 %v1153_v3, %v928_v45  ;;  %v930_v48 = vpop.f32.mrb[27].mxu1 }
 0x149   :  { %v1367_v51 = vadd.f32 %v2315_v10, %v1312_v46  ;;  %v1313_v52 = vmul.f32 %v2310_v7, %v1154_v47  ;;  %v1182_v1 = vpop.f32.mrb[40].mxu0 }
 0x14a   :  { %v1184_v2 = vpop.f32.mrb[41].mxu0 }
 0x14b   :  { %v1415_v55 = vmax.f32 %v1367_v51, 0.0  ;;  %v1368_v56 = vadd.f32 %v2315_v10, %v1313_v52  ;;  %v1185_v5 = vpop.f32.mrb[42].mxu0 }
 0x14c   :  { %v933_v57 = vpop.f32.mrb[28].mxu1  ;;  %v1187_v6 = vpop.f32.mrb[43].mxu0 }
 0x14d   :  { %1464 = vst.msk [vmem:[%s2609_s4 + $0x60] sm:$0xff] %vm1451_vm1, %v1415_v55  ;;  %v1416_v58 = vmax.f32 %v1368_v56, 0.0  ;;  %v1159_v59 = vadd.f32 %v1158_v17, %v933_v57  ;;  %v935_v60 = vpop.f32.mrb[29].mxu1 }
 0x14e   :  { %v936_v61 = vpop.f32.mrb[30].mxu1 }
 0x14f   :  { %1465 = vst.msk [vmem:[%s2609_s4 + $0x68] sm:$0xff] %vm1451_vm1, %v1416_v58  ;;  %v1314_v62 = vmul.f32 %v2310_v7, %v1159_v59  ;;  %v1162_v63 = vadd.f32 %v1161_v21, %v936_v61  ;;  %v938_v0 = vpop.f32.mrb[31].mxu1 }
 0x151   :  { %v1369_v3 = vadd.f32 %v2315_v10, %v1314_v62  ;;  %v1315_v4 = vmul.f32 %v2310_v7, %v1162_v63  ;;  %v1190_v19 = vpop.f32.mrb[44].mxu0 }
 0x152   :  { %v1192_v20 = vpop.f32.mrb[45].mxu0 }
 0x153   :  { %v1417_v8 = vmax.f32 %v1369_v3, 0.0  ;;  %v1370_v9 = vadd.f32 %v2315_v10, %v1315_v4  ;;  %v1193_v23 = vpop.f32.mrb[46].mxu0 }
 0x154   :  { %v941_v11 = vpop.f32.mrb[32].mxu1  ;;  %v1195_v24 = vpop.f32.mrb[47].mxu0 }
 0x155   :  { %1466 = vst.msk [vmem:[%s2609_s4 + $0x70] sm:$0xff] %vm1451_vm1, %v1417_v8  ;;  %v1418_v12 = vmax.f32 %v1370_v9, 0.0  ;;  %v1167_v13 = vadd.f32 %v1166_v33, %v941_v11  ;;  %v943_v14 = vpop.f32.mrb[33].mxu1 }
 0x156   :  { %v944_v15 = vpop.f32.mrb[34].mxu1 }
 0x157   :  { %1467 = vst.msk [vmem:[%s2609_s4 + $0x78] sm:$0xff] %vm1451_vm1, %v1418_v12  ;;  %v1316_v16 = vmul.f32 %v2310_v7, %v1167_v13  ;;  %v1170_v17 = vadd.f32 %v1169_v37, %v944_v15  ;;  %v946_v18 = vpop.f32.mrb[35].mxu1 }
 0x159   :  { %v1371_v21 = vadd.f32 %v2315_v10, %v1316_v16  ;;  %v1317_v22 = vmul.f32 %v2310_v7, %v1170_v17  ;;  %v1198_v35 = vpop.f32.mrb[48].mxu0 }
 0x15a   :  { %v1200_v36 = vpop.f32.mrb[49].mxu0 }
 0x15b   :  { %v1419_v25 = vmax.f32 %v1371_v21, 0.0  ;;  %v1372_v26 = vadd.f32 %v2315_v10, %v1317_v22  ;;  %v1201_v39 = vpop.f32.mrb[50].mxu0 }
 0x15c   :  { %v949_v27 = vpop.f32.mrb[36].mxu1  ;;  %v1203_v40 = vpop.f32.mrb[51].mxu0 }
 0x15d   :  { %1468 = vst.msk [vmem:[%s2609_s4 + $0x80] sm:$0xff] %vm1451_vm1, %v1419_v25  ;;  %v1420_v28 = vmax.f32 %v1372_v26, 0.0  ;;  %v1175_v29 = vadd.f32 %v1174_v49, %v949_v27  ;;  %v951_v30 = vpop.f32.mrb[37].mxu1 }
 0x15e   :  { %v952_v31 = vpop.f32.mrb[38].mxu1 }
 0x15f   :  { %1469 = vst.msk [vmem:[%s2609_s4 + $0x88] sm:$0xff] %vm1451_vm1, %v1420_v28  ;;  %v1318_v32 = vmul.f32 %v2310_v7, %v1175_v29  ;;  %v1178_v33 = vadd.f32 %v1177_v53, %v952_v31  ;;  %v954_v34 = vpop.f32.mrb[39].mxu1 }
 0x161   :  { %v1373_v37 = vadd.f32 %v2315_v10, %v1318_v32  ;;  %v1319_v38 = vmul.f32 %v2310_v7, %v1178_v33  ;;  %v1206_v51 = vpop.f32.mrb[52].mxu0 }
 0x162   :  { %v1208_v52 = vpop.f32.mrb[53].mxu0 }
 0x163   :  { %v1421_v41 = vmax.f32 %v1373_v37, 0.0  ;;  %v1374_v42 = vadd.f32 %v2315_v10, %v1319_v38  ;;  %v1209_v55 = vpop.f32.mrb[54].mxu0 }
 0x164   :  { %v957_v43 = vpop.f32.mrb[40].mxu1  ;;  %v1211_v56 = vpop.f32.mrb[55].mxu0 }
 0x165   :  { %1470 = vst.msk [vmem:[%s2609_s4 + $0x90] sm:$0xff] %vm1451_vm1, %v1421_v41  ;;  %v1422_v44 = vmax.f32 %v1374_v42, 0.0  ;;  %v1183_v45 = vadd.f32 %v1182_v1, %v957_v43  ;;  %v959_v46 = vpop.f32.mrb[41].mxu1 }
 0x166   :  { %v960_v47 = vpop.f32.mrb[42].mxu1 }
 0x167   :  { %1471 = vst.msk [vmem:[%s2609_s4 + $0x98] sm:$0xff] %vm1451_vm1, %v1422_v44  ;;  %v1320_v48 = vmul.f32 %v2310_v7, %v1183_v45  ;;  %v1186_v49 = vadd.f32 %v1185_v5, %v960_v47  ;;  %v962_v50 = vpop.f32.mrb[43].mxu1 }
 0x169   :  { %v1375_v53 = vadd.f32 %v2315_v10, %v1320_v48  ;;  %v1321_v54 = vmul.f32 %v2310_v7, %v1186_v49  ;;  %v1214_v3 = vpop.f32.mrb[56].mxu0 }
 0x16a   :  { %v1216_v4 = vpop.f32.mrb[57].mxu0 }
 0x16b   :  { %v1423_v57 = vmax.f32 %v1375_v53, 0.0  ;;  %v1376_v58 = vadd.f32 %v2315_v10, %v1321_v54  ;;  %v1217_v8 = vpop.f32.mrb[58].mxu0 }
 0x16c   :  { %v965_v59 = vpop.f32.mrb[44].mxu1  ;;  %v1219_v9 = vpop.f32.mrb[59].mxu0 }
 0x16d   :  { %1472 = vst.msk [vmem:[%s2609_s4 + $0xa0] sm:$0xff] %vm1451_vm1, %v1423_v57  ;;  %v1424_v60 = vmax.f32 %v1376_v58, 0.0  ;;  %v1191_v61 = vadd.f32 %v1190_v19, %v965_v59  ;;  %v967_v62 = vpop.f32.mrb[45].mxu1 }
 0x16e   :  { %v968_v63 = vpop.f32.mrb[46].mxu1 }
 0x16f   :  { %1473 = vst.msk [vmem:[%s2609_s4 + $0xa8] sm:$0xff] %vm1451_vm1, %v1424_v60  ;;  %v1322_v0 = vmul.f32 %v2310_v7, %v1191_v61  ;;  %v1194_v1 = vadd.f32 %v1193_v23, %v968_v63  ;;  %v970_v2 = vpop.f32.mrb[47].mxu1 }
 0x171   :  { %v1377_v5 = vadd.f32 %v2315_v10, %v1322_v0  ;;  %v1323_v6 = vmul.f32 %v2310_v7, %v1194_v1  ;;  %v1222_v21 = vpop.f32.mrb[60].mxu0 }
 0x172   :  { %v1224_v22 = vpop.f32.mrb[61].mxu0 }
 0x173   :  { %v1425_v11 = vmax.f32 %v1377_v5, 0.0  ;;  %v1378_v12 = vadd.f32 %v2315_v10, %v1323_v6  ;;  %v1225_v25 = vpop.f32.mrb[62].mxu0 }
 0x174   :  { %v973_v13 = vpop.f32.mrb[48].mxu1  ;;  %v1227_v26 = vpop.f32.mrb[63].mxu0 }
 0x175   :  { %1474 = vst.msk [vmem:[%s2609_s4 + $0xb0] sm:$0xff] %vm1451_vm1, %v1425_v11  ;;  %v1426_v14 = vmax.f32 %v1378_v12, 0.0  ;;  %v1199_v15 = vadd.f32 %v1198_v35, %v973_v13  ;;  %v975_v16 = vpop.f32.mrb[49].mxu1 }
 0x176   :  { %v976_v17 = vpop.f32.mrb[50].mxu1 }
 0x177   :  { %1475 = vst.msk [vmem:[%s2609_s4 + $0xb8] sm:$0xff] %vm1451_vm1, %v1426_v14  ;;  %v1324_v18 = vmul.f32 %v2310_v7, %v1199_v15  ;;  %v1202_v19 = vadd.f32 %v1201_v39, %v976_v17  ;;  %v978_v20 = vpop.f32.mrb[51].mxu1 }
 0x179   :  { %v1379_v23 = vadd.f32 %v2315_v10, %v1324_v18  ;;  %v1325_v24 = vmul.f32 %v2310_v7, %v1202_v19  ;;  %v1230_v37 = vpop.f32.mrb[64].mxu0 }
 0x17a   :  { %v1232_v38 = vpop.f32.mrb[65].mxu0 }
 0x17b   :  { %v1427_v27 = vmax.f32 %v1379_v23, 0.0  ;;  %v1380_v28 = vadd.f32 %v2315_v10, %v1325_v24  ;;  %v1233_v41 = vpop.f32.mrb[66].mxu0 }
 0x17c   :  { %v981_v29 = vpop.f32.mrb[52].mxu1  ;;  %v1235_v42 = vpop.f32.mrb[67].mxu0 }
 0x17d   :  { %1476 = vst.msk [vmem:[%s2609_s4 + $0xc0] sm:$0xff] %vm1451_vm1, %v1427_v27  ;;  %v1428_v30 = vmax.f32 %v1380_v28, 0.0  ;;  %v1207_v31 = vadd.f32 %v1206_v51, %v981_v29  ;;  %v983_v32 = vpop.f32.mrb[53].mxu1 }
 0x17e   :  { %v984_v33 = vpop.f32.mrb[54].mxu1 }
 0x17f   :  { %1477 = vst.msk [vmem:[%s2609_s4 + $0xc8] sm:$0xff] %vm1451_vm1, %v1428_v30  ;;  %v1326_v34 = vmul.f32 %v2310_v7, %v1207_v31  ;;  %v1210_v35 = vadd.f32 %v1209_v55, %v984_v33  ;;  %v986_v36 = vpop.f32.mrb[55].mxu1 }
 0x181   :  { %v1381_v39 = vadd.f32 %v2315_v10, %v1326_v34  ;;  %v1327_v40 = vmul.f32 %v2310_v7, %v1210_v35  ;;  %v1238_v53 = vpop.f32.mrb[68].mxu0 }
 0x182   :  { %v1240_v54 = vpop.f32.mrb[69].mxu0 }
 0x183   :  { %v1429_v43 = vmax.f32 %v1381_v39, 0.0  ;;  %v1382_v44 = vadd.f32 %v2315_v10, %v1327_v40  ;;  %v1241_v57 = vpop.f32.mrb[70].mxu0 }
 0x184   :  { %v989_v45 = vpop.f32.mrb[56].mxu1  ;;  %v1243_v58 = vpop.f32.mrb[71].mxu0 }
 0x185   :  { %1478 = vst.msk [vmem:[%s2609_s4 + $0xd0] sm:$0xff] %vm1451_vm1, %v1429_v43  ;;  %v1430_v46 = vmax.f32 %v1382_v44, 0.0  ;;  %v1215_v47 = vadd.f32 %v1214_v3, %v989_v45  ;;  %v991_v48 = vpop.f32.mrb[57].mxu1 }
 0x186   :  { %v992_v49 = vpop.f32.mrb[58].mxu1 }
 0x187   :  { %1479 = vst.msk [vmem:[%s2609_s4 + $0xd8] sm:$0xff] %vm1451_vm1, %v1430_v46  ;;  %v1328_v50 = vmul.f32 %v2310_v7, %v1215_v47  ;;  %v1218_v51 = vadd.f32 %v1217_v8, %v992_v49  ;;  %v994_v52 = vpop.f32.mrb[59].mxu1 }
 0x189   :  { %v1383_v55 = vadd.f32 %v2315_v10, %v1328_v50  ;;  %v1329_v56 = vmul.f32 %v2310_v7, %v1218_v51  ;;  %v1246_v5 = vpop.f32.mrb[72].mxu0 }
 0x18a   :  { %v1248_v6 = vpop.f32.mrb[73].mxu0 }
 0x18b   :  { %v1431_v59 = vmax.f32 %v1383_v55, 0.0  ;;  %v1384_v60 = vadd.f32 %v2315_v10, %v1329_v56  ;;  %v1249_v11 = vpop.f32.mrb[74].mxu0 }
 0x18c   :  { %v997_v61 = vpop.f32.mrb[60].mxu1  ;;  %v1251_v12 = vpop.f32.mrb[75].mxu0 }
 0x18d   :  { %1480 = vst.msk [vmem:[%s2609_s4 + $0xe0] sm:$0xff] %vm1451_vm1, %v1431_v59  ;;  %v1432_v62 = vmax.f32 %v1384_v60, 0.0  ;;  %v1223_v63 = vadd.f32 %v1222_v21, %v997_v61  ;;  %v999_v0 = vpop.f32.mrb[61].mxu1 }
 0x18e   :  { %v1000_v1 = vpop.f32.mrb[62].mxu1 }
 0x18f   :  { %1481 = vst.msk [vmem:[%s2609_s4 + $0xe8] sm:$0xff] %vm1451_vm1, %v1432_v62  ;;  %v1330_v2 = vmul.f32 %v2310_v7, %v1223_v63  ;;  %v1226_v3 = vadd.f32 %v1225_v25, %v1000_v1  ;;  %v1002_v4 = vpop.f32.mrb[63].mxu1 }
 0x191   :  { %v1385_v8 = vadd.f32 %v2315_v10, %v1330_v2  ;;  %v1331_v9 = vmul.f32 %v2310_v7, %v1226_v3  ;;  %v1254_v23 = vpop.f32.mrb[76].mxu0 }
 0x192   :  { %v1256_v24 = vpop.f32.mrb[77].mxu0 }
 0x193   :  { %v1433_v13 = vmax.f32 %v1385_v8, 0.0  ;;  %v1386_v14 = vadd.f32 %v2315_v10, %v1331_v9  ;;  %v1257_v27 = vpop.f32.mrb[78].mxu0 }
 0x194   :  { %v1005_v15 = vpop.f32.mrb[64].mxu1  ;;  %v1259_v28 = vpop.f32.mrb[79].mxu0 }
 0x195   :  { %1482 = vst.msk [vmem:[%s2609_s4 + $0xf0] sm:$0xff] %vm1451_vm1, %v1433_v13  ;;  %v1434_v16 = vmax.f32 %v1386_v14, 0.0  ;;  %v1231_v17 = vadd.f32 %v1230_v37, %v1005_v15  ;;  %v1007_v18 = vpop.f32.mrb[65].mxu1 }
 0x196   :  { %v1008_v19 = vpop.f32.mrb[66].mxu1 }
 0x197   :  { %1483 = vst.msk [vmem:[%s2609_s4 + $0xf8] sm:$0xff] %vm1451_vm1, %v1434_v16  ;;  %v1332_v20 = vmul.f32 %v2310_v7, %v1231_v17  ;;  %v1234_v21 = vadd.f32 %v1233_v41, %v1008_v19  ;;  %v1010_v22 = vpop.f32.mrb[67].mxu1 }
 0x199   :  { %v1387_v25 = vadd.f32 %v2315_v10, %v1332_v20  ;;  %v1333_v26 = vmul.f32 %v2310_v7, %v1234_v21  ;;  %v1262_v39 = vpop.f32.mrb[80].mxu0 }
 0x19a   :  { %v1264_v40 = vpop.f32.mrb[81].mxu0 }
 0x19b   :  { %v1435_v29 = vmax.f32 %v1387_v25, 0.0  ;;  %v1388_v30 = vadd.f32 %v2315_v10, %v1333_v26  ;;  %v1265_v43 = vpop.f32.mrb[82].mxu0 }
 0x19c   :  { %v1013_v31 = vpop.f32.mrb[68].mxu1  ;;  %v1267_v44 = vpop.f32.mrb[83].mxu0 }
 0x19d   :  { %1484 = vst.msk [vmem:[%s2609_s4 + $0x100] sm:$0xff] %vm1451_vm1, %v1435_v29  ;;  %v1436_v32 = vmax.f32 %v1388_v30, 0.0  ;;  %v1239_v33 = vadd.f32 %v1238_v53, %v1013_v31  ;;  %v1015_v34 = vpop.f32.mrb[69].mxu1 }
 0x19e   :  { %v1016_v35 = vpop.f32.mrb[70].mxu1 }
 0x19f   :  { %1485 = vst.msk [vmem:[%s2609_s4 + $0x108] sm:$0xff] %vm1451_vm1, %v1436_v32  ;;  %v1334_v36 = vmul.f32 %v2310_v7, %v1239_v33  ;;  %v1242_v37 = vadd.f32 %v1241_v57, %v1016_v35  ;;  %v1018_v38 = vpop.f32.mrb[71].mxu1 }
 0x1a1   :  { %v1389_v41 = vadd.f32 %v2315_v10, %v1334_v36  ;;  %v1335_v42 = vmul.f32 %v2310_v7, %v1242_v37  ;;  %v1270_v55 = vpop.f32.mrb[84].mxu0 }
 0x1a2   :  { %v1272_v56 = vpop.f32.mrb[85].mxu0 }
 0x1a3   :  { %v1437_v45 = vmax.f32 %v1389_v41, 0.0  ;;  %v1390_v46 = vadd.f32 %v2315_v10, %v1335_v42  ;;  %v1273_v59 = vpop.f32.mrb[86].mxu0 }
 0x1a4   :  { %v1021_v47 = vpop.f32.mrb[72].mxu1  ;;  %v1275_v60 = vpop.f32.mrb[87].mxu0 }
 0x1a5   :  { %1486 = vst.msk [vmem:[%s2609_s4 + $0x110] sm:$0xff] %vm1451_vm1, %v1437_v45  ;;  %v1438_v48 = vmax.f32 %v1390_v46, 0.0  ;;  %v1247_v49 = vadd.f32 %v1246_v5, %v1021_v47  ;;  %v1023_v50 = vpop.f32.mrb[73].mxu1 }
 0x1a6   :  { %v1024_v51 = vpop.f32.mrb[74].mxu1 }
 0x1a7   :  { %1487 = vst.msk [vmem:[%s2609_s4 + $0x118] sm:$0xff] %vm1451_vm1, %v1438_v48  ;;  %v1336_v52 = vmul.f32 %v2310_v7, %v1247_v49  ;;  %v1250_v53 = vadd.f32 %v1249_v11, %v1024_v51  ;;  %v1026_v54 = vpop.f32.mrb[75].mxu1 }
 0x1a9   :  { %v1391_v57 = vadd.f32 %v2315_v10, %v1336_v52  ;;  %v1337_v58 = vmul.f32 %v2310_v7, %v1250_v53  ;;  %v1278_v8 = vpop.f32.mrb[88].mxu0 }
 0x1aa   :  { %v1280_v9 = vpop.f32.mrb[89].mxu0 }
 0x1ab   :  { %v1439_v61 = vmax.f32 %v1391_v57, 0.0  ;;  %v1392_v62 = vadd.f32 %v2315_v10, %v1337_v58  ;;  %v1281_v13 = vpop.f32.mrb[90].mxu0 }
 0x1ac   :  { %v1029_v63 = vpop.f32.mrb[76].mxu1  ;;  %v1283_v14 = vpop.f32.mrb[91].mxu0 }
 0x1ad   :  { %1488 = vst.msk [vmem:[%s2609_s4 + $0x120] sm:$0xff] %vm1451_vm1, %v1439_v61  ;;  %v1440_v0 = vmax.f32 %v1392_v62, 0.0  ;;  %v1255_v1 = vadd.f32 %v1254_v23, %v1029_v63  ;;  %v1031_v2 = vpop.f32.mrb[77].mxu1 }
 0x1ae   :  { %v1032_v3 = vpop.f32.mrb[78].mxu1 }
 0x1af   :  { %1489 = vst.msk [vmem:[%s2609_s4 + $0x128] sm:$0xff] %vm1451_vm1, %v1440_v0  ;;  %v1338_v4 = vmul.f32 %v2310_v7, %v1255_v1  ;;  %v1258_v5 = vadd.f32 %v1257_v27, %v1032_v3  ;;  %v1034_v6 = vpop.f32.mrb[79].mxu1 }
 0x1b1   :  { %v1393_v11 = vadd.f32 %v2315_v10, %v1338_v4  ;;  %v1339_v12 = vmul.f32 %v2310_v7, %v1258_v5  ;;  %v1286_v25 = vpop.f32.mrb[92].mxu0 }
 0x1b2   :  { %v1288_v26 = vpop.f32.mrb[93].mxu0 }
 0x1b3   :  { %v1441_v15 = vmax.f32 %v1393_v11, 0.0  ;;  %v1394_v16 = vadd.f32 %v2315_v10, %v1339_v12  ;;  %v1289_v29 = vpop.f32.mrb[94].mxu0 }
 0x1b4   :  { %v1037_v17 = vpop.f32.mrb[80].mxu1  ;;  %v1291_v30 = vpop.f32.mrb[95].mxu0 }
 0x1b5   :  { %1490 = vst.msk [vmem:[%s2609_s4 + $0x130] sm:$0xff] %vm1451_vm1, %v1441_v15  ;;  %v1442_v18 = vmax.f32 %v1394_v16, 0.0  ;;  %v1263_v19 = vadd.f32 %v1262_v39, %v1037_v17  ;;  %v1039_v20 = vpop.f32.mrb[81].mxu1 }
 0x1b6   :  { %v1040_v21 = vpop.f32.mrb[82].mxu1 }
 0x1b7   :  { %1491 = vst.msk [vmem:[%s2609_s4 + $0x138] sm:$0xff] %vm1451_vm1, %v1442_v18  ;;  %v1340_v22 = vmul.f32 %v2310_v7, %v1263_v19  ;;  %v1266_v23 = vadd.f32 %v1265_v43, %v1040_v21  ;;  %v1042_v24 = vpop.f32.mrb[83].mxu1 }
 0x1b9   :  { %v1395_v27 = vadd.f32 %v2315_v10, %v1340_v22  ;;  %v1341_v28 = vmul.f32 %v2310_v7, %v1266_v23 }
 0x1bb   :  { %v1443_v31 = vmax.f32 %v1395_v27, 0.0  ;;  %v1396_v32 = vadd.f32 %v2315_v10, %v1341_v28 }
 0x1bc   :  { %v1045_v33 = vpop.f32.mrb[84].mxu1 }
 0x1bd   :  { %1492 = vst.msk [vmem:[%s2609_s4 + $0x140] sm:$0xff] %vm1451_vm1, %v1443_v31  ;;  %v1444_v34 = vmax.f32 %v1396_v32, 0.0  ;;  %v1271_v35 = vadd.f32 %v1270_v55, %v1045_v33  ;;  %v1047_v36 = vpop.f32.mrb[85].mxu1 }
 0x1be   :  { %v1048_v37 = vpop.f32.mrb[86].mxu1 }
 0x1bf   :  { %1493 = vst.msk [vmem:[%s2609_s4 + $0x148] sm:$0xff] %vm1451_vm1, %v1444_v34  ;;  %v1342_v38 = vmul.f32 %v2310_v7, %v1271_v35  ;;  %v1274_v39 = vadd.f32 %v1273_v59, %v1048_v37  ;;  %v1050_v40 = vpop.f32.mrb[87].mxu1 }
 0x1c1   :  { %v1397_v41 = vadd.f32 %v2315_v10, %v1342_v38  ;;  %v1343_v42 = vmul.f32 %v2310_v7, %v1274_v39 }
 0x1c3   :  { %v1445_v43 = vmax.f32 %v1397_v41, 0.0  ;;  %v1398_v44 = vadd.f32 %v2315_v10, %v1343_v42 }
 0x1c4   :  { %v1053_v45 = vpop.f32.mrb[88].mxu1 }
 0x1c5   :  { %1494 = vst.msk [vmem:[%s2609_s4 + $0x150] sm:$0xff] %vm1451_vm1, %v1445_v43  ;;  %v1446_v46 = vmax.f32 %v1398_v44, 0.0  ;;  %v1279_v47 = vadd.f32 %v1278_v8, %v1053_v45  ;;  %v1055_v48 = vpop.f32.mrb[89].mxu1 }
 0x1c6   :  { %v1056_v49 = vpop.f32.mrb[90].mxu1 }
 0x1c7   :  { %1495 = vst.msk [vmem:[%s2609_s4 + $0x158] sm:$0xff] %vm1451_vm1, %v1446_v46  ;;  %v1344_v50 = vmul.f32 %v2310_v7, %v1279_v47  ;;  %v1282_v51 = vadd.f32 %v1281_v13, %v1056_v49  ;;  %v1058_v52 = vpop.f32.mrb[91].mxu1 }
 0x1c9   :  { %v1399_v53 = vadd.f32 %v2315_v10, %v1344_v50  ;;  %v1345_v54 = vmul.f32 %v2310_v7, %v1282_v51 }
 0x1cb   :  { %v1447_v55 = vmax.f32 %v1399_v53, 0.0  ;;  %v1400_v56 = vadd.f32 %v2315_v10, %v1345_v54 }
 0x1cc   :  { %v1061_v57 = vpop.f32.mrb[92].mxu1 }
 0x1cd   :  { %1496 = vst.msk [vmem:[%s2609_s4 + $0x160] sm:$0xff] %vm1451_vm1, %v1447_v55  ;;  %v1448_v58 = vmax.f32 %v1400_v56, 0.0  ;;  %v1287_v59 = vadd.f32 %v1286_v25, %v1061_v57  ;;  %v1063_v60 = vpop.f32.mrb[93].mxu1 }
 0x1ce   :  { %v1064_v61 = vpop.f32.mrb[94].mxu1 }
 0x1cf   :  { %1497 = vst.msk [vmem:[%s2609_s4 + $0x168] sm:$0xff] %vm1451_vm1, %v1448_v58  ;;  %v1346_v62 = vmul.f32 %v2310_v7, %v1287_v59  ;;  %v1290_v63 = vadd.f32 %v1289_v29, %v1064_v61  ;;  %v1066_v0 = vpop.f32.mrb[95].mxu1 }
 0x1d1   :  { %v1401_v1 = vadd.f32 %v2315_v10, %v1346_v62  ;;  %v1347_v2 = vmul.f32 %v2310_v7, %v1290_v63 }
 0x1d3   :  { %v1449_v3 = vmax.f32 %v1401_v1, 0.0  ;;  %v1402_v4 = vadd.f32 %v2315_v10, %v1347_v2 }
 0x1d5   :  { %1498 = vst.msk [vmem:[%s2609_s4 + $0x170] sm:$0xff] %vm1451_vm1, %v1449_v3  ;;  %v1450_v5 = vmax.f32 %v1402_v4, 0.0 }
 0x1d7   :  { %1499 = vst.msk [vmem:[%s2609_s4 + $0x178] sm:$0xff] %vm1451_vm1, %v1450_v5 }

// kernel: basicsknet_forward.21
= control target key start
LH: loop header
LB: loop body
LE: loop exit
PB: predicated region body
PF: predicated region fallthrough
CT: control target
= control target key end

     0   :  { %vm517_vm0 = vcmask 130048   ;;  %s1485_s0 = inlined_call_operand.vmem [shape: f32[384,16], index: 0, kind: input, shape index: {}]   ;;  %s1486_s1 = inlined_call_operand.vmem [shape: f32[384,16], index: 1, kind: input, shape index: {}]   ;;  %s1487_s2 = inlined_call_operand.vmem [shape: f32[384,16], index: 2, kind: input, shape index: {}]   ;;  %s1488_s3 = inlined_call_operand.vmem [shape: f32[384,16], index: 3, kind: input, shape index: {}]   ;;  %s1489_s4 = inlined_call_operand.vmem [shape: f32[1,16], index: 4, kind: input, shape index: {}]   ;;  %s1490_s5 = inlined_call_operand.vmem [shape: f32[1,16], index: 5, kind: input, shape index: {}]   ;;  %s1491_s6 = inlined_call_operand.vmem [shape: f32[384,16], index: 6, kind: output, shape index: {}]  }
   0x1   :  { %v23_v0 = vld [vmem:[%s1485_s0] sm:$0xff]  ;;  %v24_v7 = vld [vmem:[%s1485_s0 + $0x8] sm:$0xff]  ;;  %v25_v13 = vld [vmem:[%s1485_s0 + $0x10] sm:$0xff] }
   0x2   :  { %v71_v1 = vld [vmem:[%s1487_s2] sm:$0xff]  ;;  %v72_v8 = vld [vmem:[%s1487_s2 + $0x8] sm:$0xff]  ;;  %v73_v14 = vld [vmem:[%s1487_s2 + $0x10] sm:$0xff] }
   0x3   :  { %v167_v2 = vld [vmem:[%s1486_s1] sm:$0xff]  ;;  %v119_v3 = vmul.f32 %v71_v1, %v23_v0  ;;  %v168_v9 = vld [vmem:[%s1486_s1 + $0x8] sm:$0xff]  ;;  %v120_v11 = vmul.f32 %v72_v8, %v24_v7  ;;  %v121_v17 = vmul.f32 %v73_v14, %v25_v13  ;;  %v169_v18 = vld [vmem:[%s1486_s1 + $0x10] sm:$0xff] }
   0x4   :  { %v215_v4 = vld [vmem:[%s1488_s3] sm:$0xff]  ;;  %v216_v12 = vld [vmem:[%s1488_s3 + $0x8] sm:$0xff]  ;;  %v217_v19 = vld [vmem:[%s1488_s3 + $0x10] sm:$0xff] }
   0x5   :  { %v624_v5 = vld [vmem:[%s1489_s4] ss:$0 sm:$0xff]  ;;  %v263_v6 = vmul.f32 %v215_v4, %v167_v2  ;;  %v264_v16 = vmul.f32 %v216_v12, %v168_v9  ;;  %v26_v20 = vld [vmem:[%s1485_s0 + $0x18] sm:$0xff]  ;;  %v265_v21 = vmul.f32 %v217_v19, %v169_v18  ;;  %v28_v35 = vld [vmem:[%s1485_s0 + $0x28] sm:$0xff] }
   0x6   :  { %v638_v10 = vld [vmem:[%s1490_s5] ss:$0 sm:$0xff]  ;;  %v74_v22 = vld [vmem:[%s1487_s2 + $0x18] sm:$0xff]  ;;  %v76_v36 = vld [vmem:[%s1487_s2 + $0x28] sm:$0xff] }
   0x7   :  { %v311_v15 = vadd.f32 %v263_v6, %v119_v3  ;;  %v170_v23 = vld [vmem:[%s1486_s1 + $0x18] sm:$0xff]  ;;  %v312_v26 = vadd.f32 %v264_v16, %v120_v11  ;;  %v122_v27 = vmul.f32 %v74_v22, %v26_v20  ;;  %v27_v29 = vld [vmem:[%s1485_s0 + $0x20] sm:$0xff]  ;;  %v313_v32 = vadd.f32 %v265_v21, %v121_v17  ;;  %v172_v41 = vld [vmem:[%s1486_s1 + $0x28] sm:$0xff] }
   0x8   :  { %v218_v24 = vld [vmem:[%s1488_s3 + $0x18] sm:$0xff]  ;;  %v75_v30 = vld [vmem:[%s1487_s2 + $0x20] sm:$0xff]  ;;  %v220_v42 = vld [vmem:[%s1488_s3 + $0x28] sm:$0xff]  ;;  %v124_v45 = vmul.f32 %v76_v36, %v28_v35 }
   0x9   :  { %v366_v25 = vmul.f32 %v624_v5, %v311_v15  ;;  %v266_v28 = vmul.f32 %v218_v24, %v170_v23  ;;  %v171_v31 = vld [vmem:[%s1486_s1 + $0x20] sm:$0xff]  ;;  %v123_v33 = vmul.f32 %v75_v30, %v27_v29  ;;  %v367_v38 = vmul.f32 %v624_v5, %v312_v26  ;;  %v29_v43 = vld [vmem:[%s1485_s0 + $0x30] sm:$0xff]  ;;  %v30_v54 = vld [vmem:[%s1485_s0 + $0x38] sm:$0xff] }
   0xa   :  { %v219_v34 = vld [vmem:[%s1488_s3 + $0x20] sm:$0xff]  ;;  %v368_v44 = vmul.f32 %v624_v5, %v313_v32  ;;  %v268_v46 = vmul.f32 %v220_v42, %v172_v41  ;;  %v77_v47 = vld [vmem:[%s1487_s2 + $0x30] sm:$0xff]  ;;  %v78_v55 = vld [vmem:[%s1487_s2 + $0x38] sm:$0xff] }
   0xb   :  { %v421_v37 = vadd.f32 %v638_v10, %v366_v25  ;;  %v314_v39 = vadd.f32 %v266_v28, %v122_v27  ;;  %v267_v40 = vmul.f32 %v219_v34, %v171_v31  ;;  %v173_v48 = vld [vmem:[%s1486_s1 + $0x30] sm:$0xff]  ;;  %v422_v51 = vadd.f32 %v638_v10, %v367_v38  ;;  %v174_v56 = vld [vmem:[%s1486_s1 + $0x38] sm:$0xff]  ;;  %v31_v62 = vld [vmem:[%s1485_s0 + $0x40] sm:$0xff] }
   0xc   :  { %v221_v49 = vld [vmem:[%s1488_s3 + $0x30] sm:$0xff]  ;;  %v423_v57 = vadd.f32 %v638_v10, %v368_v44  ;;  %v316_v58 = vadd.f32 %v268_v46, %v124_v45  ;;  %v125_v59 = vmul.f32 %v77_v47, %v29_v43  ;;  %v222_v61 = vld [vmem:[%s1488_s3 + $0x38] sm:$0xff]  ;;  %v79_v63 = vld [vmem:[%s1487_s2 + $0x40] sm:$0xff]  ;;  %v126_v3 = vmul.f32 %v78_v55, %v30_v54 }
   0xd   :  { %v469_v50 = vmax.f32 %v421_v37, 0.0  ;;  %v369_v52 = vmul.f32 %v624_v5, %v314_v39  ;;  %v315_v53 = vadd.f32 %v267_v40, %v123_v33  ;;  %v269_v60 = vmul.f32 %v221_v49, %v173_v48  ;;  %v175_v4 = vld [vmem:[%s1486_s1 + $0x40] sm:$0xff]  ;;  %v32_v7 = vld [vmem:[%s1485_s0 + $0x48] sm:$0xff]  ;;  %v33_v20 = vld [vmem:[%s1485_s0 + $0x50] sm:$0xff] }
   0xe   :  { %v470_v0 = vmax.f32 %v422_v51, 0.0  ;;  %v223_v6 = vld [vmem:[%s1488_s3 + $0x40] sm:$0xff]  ;;  %v471_v8 = vmax.f32 %v423_v57, 0.0  ;;  %v371_v9 = vmul.f32 %v624_v5, %v316_v58  ;;  %v270_v12 = vmul.f32 %v222_v61, %v174_v56  ;;  %v80_v13 = vld [vmem:[%s1487_s2 + $0x48] sm:$0xff]  ;;  %v81_v21 = vld [vmem:[%s1487_s2 + $0x50] sm:$0xff] }
   0xf   :  { %518 = vst.msk [vmem:[%s1491_s6] sm:$0xff] %vm517_vm0, %v469_v50  ;;  %v424_v1 = vadd.f32 %v638_v10, %v369_v52  ;;  %v370_v2 = vmul.f32 %v624_v5, %v315_v53  ;;  %v317_v11 = vadd.f32 %v269_v60, %v125_v59  ;;  %v176_v14 = vld [vmem:[%s1486_s1 + $0x48] sm:$0xff]  ;;  %v127_v18 = vmul.f32 %v79_v63, %v31_v62  ;;  %v177_v22 = vld [vmem:[%s1486_s1 + $0x50] sm:$0xff]  ;;  %v34_v28 = vld [vmem:[%s1485_s0 + $0x58] sm:$0xff] }
  0x10   :  { %v224_v15 = vld [vmem:[%s1488_s3 + $0x48] sm:$0xff]  ;;  %519 = vst.msk [vmem:[%s1491_s6 + $0x8] sm:$0xff] %vm517_vm0, %v470_v0  ;;  %v271_v19 = vmul.f32 %v223_v6, %v175_v4  ;;  %520 = vst.msk [vmem:[%s1491_s6 + $0x10] sm:$0xff] %vm517_vm0, %v471_v8  ;;  %v426_v23 = vadd.f32 %v638_v10, %v371_v9  ;;  %v318_v25 = vadd.f32 %v270_v12, %v126_v3  ;;  %v225_v27 = vld [vmem:[%s1488_s3 + $0x50] sm:$0xff] }
  0x11   :  { %v472_v16 = vmax.f32 %v424_v1, 0.0  ;;  %v425_v17 = vadd.f32 %v638_v10, %v370_v2  ;;  %v372_v24 = vmul.f32 %v624_v5, %v317_v11  ;;  %v128_v26 = vmul.f32 %v80_v13, %v32_v7  ;;  %v82_v29 = vld [vmem:[%s1487_s2 + $0x58] sm:$0xff]  ;;  %v35_v36 = vld [vmem:[%s1485_s0 + $0x60] sm:$0xff]  ;;  %v36_v48 = vld [vmem:[%s1485_s0 + $0x68] sm:$0xff] }
  0x12   :  { %v319_v31 = vadd.f32 %v271_v19, %v127_v18  ;;  %v272_v32 = vmul.f32 %v224_v15, %v176_v14  ;;  %v129_v33 = vmul.f32 %v81_v21, %v33_v20  ;;  %v178_v34 = vld [vmem:[%s1486_s1 + $0x58] sm:$0xff]  ;;  %v474_v37 = vmax.f32 %v426_v23, 0.0  ;;  %v83_v41 = vld [vmem:[%s1487_s2 + $0x60] sm:$0xff]  ;;  %v84_v49 = vld [vmem:[%s1487_s2 + $0x68] sm:$0xff] }
  0x13   :  { %521 = vst.msk [vmem:[%s1491_s6 + $0x18] sm:$0xff] %vm517_vm0, %v472_v16  ;;  %v473_v30 = vmax.f32 %v425_v17, 0.0  ;;  %v226_v35 = vld [vmem:[%s1488_s3 + $0x58] sm:$0xff]  ;;  %v427_v38 = vadd.f32 %v638_v10, %v372_v24  ;;  %v373_v39 = vmul.f32 %v624_v5, %v318_v25  ;;  %v273_v40 = vmul.f32 %v225_v27, %v177_v22  ;;  %v179_v42 = vld [vmem:[%s1486_s1 + $0x60] sm:$0xff]  ;;  %v180_v50 = vld [vmem:[%s1486_s1 + $0x68] sm:$0xff] }
  0x14   :  { %v227_v43 = vld [vmem:[%s1488_s3 + $0x60] sm:$0xff]  ;;  %v374_v44 = vmul.f32 %v624_v5, %v319_v31  ;;  %v320_v45 = vadd.f32 %v272_v32, %v128_v26  ;;  %v130_v46 = vmul.f32 %v82_v29, %v34_v28  ;;  %v274_v47 = vmul.f32 %v226_v35, %v178_v34  ;;  %523 = vst.msk [vmem:[%s1491_s6 + $0x28] sm:$0xff] %vm517_vm0, %v474_v37  ;;  %v228_v55 = vld [vmem:[%s1488_s3 + $0x68] sm:$0xff]  ;;  %v37_v56 = vld [vmem:[%s1485_s0 + $0x70] sm:$0xff] }
  0x15   :  { %522 = vst.msk [vmem:[%s1491_s6 + $0x20] sm:$0xff] %vm517_vm0, %v473_v30  ;;  %v475_v51 = vmax.f32 %v427_v38, 0.0  ;;  %v428_v52 = vadd.f32 %v638_v10, %v373_v39  ;;  %v321_v53 = vadd.f32 %v273_v40, %v129_v33  ;;  %v131_v54 = vmul.f32 %v83_v41, %v35_v36  ;;  %v85_v61 = vld [vmem:[%s1487_s2 + $0x70] sm:$0xff]  ;;  %v38_v4 = vld [vmem:[%s1485_s0 + $0x78] sm:$0xff]  ;;  %v39_v14 = vld [vmem:[%s1485_s0 + $0x80] sm:$0xff] }
  0x16   :  { %v429_v57 = vadd.f32 %v638_v10, %v374_v44  ;;  %v375_v58 = vmul.f32 %v624_v5, %v320_v45  ;;  %v322_v59 = vadd.f32 %v274_v47, %v130_v46  ;;  %v275_v60 = vmul.f32 %v227_v43, %v179_v42  ;;  %v181_v62 = vld [vmem:[%s1486_s1 + $0x70] sm:$0xff]  ;;  %v86_v6 = vld [vmem:[%s1487_s2 + $0x78] sm:$0xff]  ;;  %v87_v19 = vld [vmem:[%s1487_s2 + $0x80] sm:$0xff] }
  0x17   :  { %v229_v63 = vld [vmem:[%s1488_s3 + $0x70] sm:$0xff]  ;;  %524 = vst.msk [vmem:[%s1491_s6 + $0x30] sm:$0xff] %vm517_vm0, %v475_v51  ;;  %v476_v0 = vmax.f32 %v428_v52, 0.0  ;;  %v376_v1 = vmul.f32 %v624_v5, %v321_v53  ;;  %v132_v2 = vmul.f32 %v84_v49, %v36_v48  ;;  %v276_v3 = vmul.f32 %v228_v55, %v180_v50  ;;  %v182_v12 = vld [vmem:[%s1486_s1 + $0x78] sm:$0xff]  ;;  %v183_v20 = vld [vmem:[%s1486_s1 + $0x80] sm:$0xff] }
  0x18   :  { %v477_v7 = vmax.f32 %v429_v57, 0.0  ;;  %v430_v8 = vadd.f32 %v638_v10, %v375_v58  ;;  %v377_v9 = vmul.f32 %v624_v5, %v322_v59  ;;  %v323_v11 = vadd.f32 %v275_v60, %v131_v54  ;;  %v230_v13 = vld [vmem:[%s1488_s3 + $0x78] sm:$0xff]  ;;  %v231_v21 = vld [vmem:[%s1488_s3 + $0x80] sm:$0xff]  ;;  %v40_v26 = vld [vmem:[%s1485_s0 + $0x88] sm:$0xff] }
  0x19   :  { %525 = vst.msk [vmem:[%s1491_s6 + $0x38] sm:$0xff] %vm517_vm0, %v476_v0  ;;  %v431_v15 = vadd.f32 %v638_v10, %v376_v1  ;;  %v324_v16 = vadd.f32 %v276_v3, %v132_v2  ;;  %v133_v17 = vmul.f32 %v85_v61, %v37_v56  ;;  %v277_v18 = vmul.f32 %v229_v63, %v181_v62  ;;  %v88_v27 = vld [vmem:[%s1487_s2 + $0x88] sm:$0xff]  ;;  %v41_v34 = vld [vmem:[%s1485_s0 + $0x90] sm:$0xff]  ;;  %v42_v42 = vld [vmem:[%s1485_s0 + $0x98] sm:$0xff] }
  0x1a   :  { %526 = vst.msk [vmem:[%s1491_s6 + $0x40] sm:$0xff] %vm517_vm0, %v477_v7  ;;  %v478_v22 = vmax.f32 %v430_v8, 0.0  ;;  %v432_v23 = vadd.f32 %v638_v10, %v377_v9  ;;  %v378_v24 = vmul.f32 %v624_v5, %v323_v11  ;;  %v134_v25 = vmul.f32 %v86_v6, %v38_v4  ;;  %v184_v28 = vld [vmem:[%s1486_s1 + $0x88] sm:$0xff]  ;;  %v89_v35 = vld [vmem:[%s1487_s2 + $0x90] sm:$0xff]  ;;  %v90_v47 = vld [vmem:[%s1487_s2 + $0x98] sm:$0xff] }
  0x1b   :  { %v479_v29 = vmax.f32 %v431_v15, 0.0  ;;  %v379_v30 = vmul.f32 %v624_v5, %v324_v16  ;;  %v325_v31 = vadd.f32 %v277_v18, %v133_v17  ;;  %v278_v32 = vmul.f32 %v230_v13, %v182_v12  ;;  %v232_v33 = vld [vmem:[%s1488_s3 + $0x88] sm:$0xff]  ;;  %v185_v40 = vld [vmem:[%s1486_s1 + $0x90] sm:$0xff]  ;;  %v186_v48 = vld [vmem:[%s1486_s1 + $0x98] sm:$0xff] }
  0x1c   :  { %527 = vst.msk [vmem:[%s1491_s6 + $0x48] sm:$0xff] %vm517_vm0, %v478_v22  ;;  %v480_v36 = vmax.f32 %v432_v23, 0.0  ;;  %v433_v37 = vadd.f32 %v638_v10, %v378_v24  ;;  %v135_v38 = vmul.f32 %v87_v19, %v39_v14  ;;  %v279_v39 = vmul.f32 %v231_v21, %v183_v20  ;;  %v233_v41 = vld [vmem:[%s1488_s3 + $0x90] sm:$0xff]  ;;  %v234_v49 = vld [vmem:[%s1488_s3 + $0x98] sm:$0xff]  ;;  %v43_v54 = vld [vmem:[%s1485_s0 + $0xa0] sm:$0xff] }
  0x1d   :  { %528 = vst.msk [vmem:[%s1491_s6 + $0x50] sm:$0xff] %vm517_vm0, %v479_v29  ;;  %v434_v43 = vadd.f32 %v638_v10, %v379_v30  ;;  %v380_v44 = vmul.f32 %v624_v5, %v325_v31  ;;  %v326_v45 = vadd.f32 %v278_v32, %v134_v25  ;;  %v136_v46 = vmul.f32 %v88_v27, %v40_v26  ;;  %v91_v55 = vld [vmem:[%s1487_s2 + $0xa0] sm:$0xff]  ;;  %v44_v62 = vld [vmem:[%s1485_s0 + $0xa8] sm:$0xff]  ;;  %v45_v12 = vld [vmem:[%s1485_s0 + $0xb0] sm:$0xff] }
  0x1e   :  { %529 = vst.msk [vmem:[%s1491_s6 + $0x58] sm:$0xff] %vm517_vm0, %v480_v36  ;;  %v481_v50 = vmax.f32 %v433_v37, 0.0  ;;  %v327_v51 = vadd.f32 %v279_v39, %v135_v38  ;;  %v280_v52 = vmul.f32 %v232_v33, %v184_v28  ;;  %v137_v53 = vmul.f32 %v89_v35, %v41_v34  ;;  %v187_v60 = vld [vmem:[%s1486_s1 + $0xa0] sm:$0xff]  ;;  %v92_v3 = vld [vmem:[%s1487_s2 + $0xa8] sm:$0xff]  ;;  %v93_v17 = vld [vmem:[%s1487_s2 + $0xb0] sm:$0xff] }
  0x1f   :  { %v482_v56 = vmax.f32 %v434_v43, 0.0  ;;  %v435_v57 = vadd.f32 %v638_v10, %v380_v44  ;;  %v381_v58 = vmul.f32 %v624_v5, %v326_v45  ;;  %v281_v59 = vmul.f32 %v233_v41, %v185_v40  ;;  %v235_v61 = vld [vmem:[%s1488_s3 + $0xa0] sm:$0xff]  ;;  %v188_v4 = vld [vmem:[%s1486_s1 + $0xa8] sm:$0xff]  ;;  %v189_v18 = vld [vmem:[%s1486_s1 + $0xb0] sm:$0xff] }
  0x20   :  { %530 = vst.msk [vmem:[%s1491_s6 + $0x60] sm:$0xff] %vm517_vm0, %v481_v50  ;;  %v382_v63 = vmul.f32 %v624_v5, %v327_v51  ;;  %v328_v0 = vadd.f32 %v280_v52, %v136_v46  ;;  %v138_v1 = vmul.f32 %v90_v47, %v42_v42  ;;  %v282_v2 = vmul.f32 %v234_v49, %v186_v48  ;;  %v236_v6 = vld [vmem:[%s1488_s3 + $0xa8] sm:$0xff]  ;;  %v237_v19 = vld [vmem:[%s1488_s3 + $0xb0] sm:$0xff]  ;;  %v46_v24 = vld [vmem:[%s1485_s0 + $0xb8] sm:$0xff] }
  0x21   :  { %531 = vst.msk [vmem:[%s1491_s6 + $0x68] sm:$0xff] %vm517_vm0, %v482_v56  ;;  %v483_v7 = vmax.f32 %v435_v57, 0.0  ;;  %v436_v8 = vadd.f32 %v638_v10, %v381_v58  ;;  %v329_v9 = vadd.f32 %v281_v59, %v137_v53  ;;  %v139_v11 = vmul.f32 %v91_v55, %v43_v54  ;;  %v94_v25 = vld [vmem:[%s1487_s2 + $0xb8] sm:$0xff]  ;;  %v47_v32 = vld [vmem:[%s1485_s0 + $0xc0] sm:$0xff]  ;;  %v48_v44 = vld [vmem:[%s1485_s0 + $0xc8] sm:$0xff] }
  0x22   :  { %v437_v13 = vadd.f32 %v638_v10, %v382_v63  ;;  %v383_v14 = vmul.f32 %v624_v5, %v328_v0  ;;  %v330_v15 = vadd.f32 %v282_v2, %v138_v1  ;;  %v283_v16 = vmul.f32 %v235_v61, %v187_v60  ;;  %v190_v30 = vld [vmem:[%s1486_s1 + $0xb8] sm:$0xff]  ;;  %v95_v37 = vld [vmem:[%s1487_s2 + $0xc0] sm:$0xff]  ;;  %v96_v45 = vld [vmem:[%s1487_s2 + $0xc8] sm:$0xff] }
  0x23   :  { %532 = vst.msk [vmem:[%s1491_s6 + $0x70] sm:$0xff] %vm517_vm0, %v483_v7  ;;  %v484_v20 = vmax.f32 %v436_v8, 0.0  ;;  %v384_v21 = vmul.f32 %v624_v5, %v329_v9  ;;  %v140_v22 = vmul.f32 %v92_v3, %v44_v62  ;;  %v284_v23 = vmul.f32 %v236_v6, %v188_v4  ;;  %v238_v31 = vld [vmem:[%s1488_s3 + $0xb8] sm:$0xff]  ;;  %v191_v38 = vld [vmem:[%s1486_s1 + $0xc0] sm:$0xff]  ;;  %v192_v46 = vld [vmem:[%s1486_s1 + $0xc8] sm:$0xff] }
  0x24   :  { %v485_v26 = vmax.f32 %v437_v13, 0.0  ;;  %v438_v27 = vadd.f32 %v638_v10, %v383_v14  ;;  %v385_v28 = vmul.f32 %v624_v5, %v330_v15  ;;  %v331_v29 = vadd.f32 %v283_v16, %v139_v11  ;;  %v239_v39 = vld [vmem:[%s1488_s3 + $0xc0] sm:$0xff]  ;;  %v240_v51 = vld [vmem:[%s1488_s3 + $0xc8] sm:$0xff]  ;;  %v49_v52 = vld [vmem:[%s1485_s0 + $0xd0] sm:$0xff] }
  0x25   :  { %533 = vst.msk [vmem:[%s1491_s6 + $0x78] sm:$0xff] %vm517_vm0, %v484_v20  ;;  %v439_v33 = vadd.f32 %v638_v10, %v384_v21  ;;  %v332_v34 = vadd.f32 %v284_v23, %v140_v22  ;;  %v141_v35 = vmul.f32 %v93_v17, %v45_v12  ;;  %v285_v36 = vmul.f32 %v237_v19, %v189_v18  ;;  %v97_v53 = vld [vmem:[%s1487_s2 + $0xd0] sm:$0xff]  ;;  %v50_v60 = vld [vmem:[%s1485_s0 + $0xd8] sm:$0xff]  ;;  %v51_v9 = vld [vmem:[%s1485_s0 + $0xe0] sm:$0xff] }
  0x26   :  { %534 = vst.msk [vmem:[%s1491_s6 + $0x80] sm:$0xff] %vm517_vm0, %v485_v26  ;;  %v486_v40 = vmax.f32 %v438_v27, 0.0  ;;  %v440_v41 = vadd.f32 %v638_v10, %v385_v28  ;;  %v386_v42 = vmul.f32 %v624_v5, %v331_v29  ;;  %v142_v43 = vmul.f32 %v94_v25, %v46_v24  ;;  %v193_v58 = vld [vmem:[%s1486_s1 + $0xd0] sm:$0xff]  ;;  %v98_v1 = vld [vmem:[%s1487_s2 + $0xd8] sm:$0xff]  ;;  %v99_v11 = vld [vmem:[%s1487_s2 + $0xe0] sm:$0xff] }
  0x27   :  { %v487_v47 = vmax.f32 %v439_v33, 0.0  ;;  %v387_v48 = vmul.f32 %v624_v5, %v332_v34  ;;  %v333_v49 = vadd.f32 %v285_v36, %v141_v35  ;;  %v286_v50 = vmul.f32 %v238_v31, %v190_v30  ;;  %v241_v59 = vld [vmem:[%s1488_s3 + $0xd0] sm:$0xff]  ;;  %v194_v2 = vld [vmem:[%s1486_s1 + $0xd8] sm:$0xff]  ;;  %v195_v16 = vld [vmem:[%s1486_s1 + $0xe0] sm:$0xff] }
  0x28   :  { %535 = vst.msk [vmem:[%s1491_s6 + $0x88] sm:$0xff] %vm517_vm0, %v486_v40  ;;  %v488_v54 = vmax.f32 %v440_v41, 0.0  ;;  %v441_v55 = vadd.f32 %v638_v10, %v386_v42  ;;  %v143_v56 = vmul.f32 %v95_v37, %v47_v32  ;;  %v287_v57 = vmul.f32 %v239_v39, %v191_v38  ;;  %v242_v3 = vld [vmem:[%s1488_s3 + $0xd8] sm:$0xff]  ;;  %v243_v17 = vld [vmem:[%s1488_s3 + $0xe0] sm:$0xff]  ;;  %v52_v18 = vld [vmem:[%s1485_s0 + $0xe8] sm:$0xff] }
  0x29   :  { %536 = vst.msk [vmem:[%s1491_s6 + $0x90] sm:$0xff] %vm517_vm0, %v487_v47  ;;  %v442_v61 = vadd.f32 %v638_v10, %v387_v48  ;;  %v388_v62 = vmul.f32 %v624_v5, %v333_v49  ;;  %v334_v63 = vadd.f32 %v286_v50, %v142_v43  ;;  %v144_v0 = vmul.f32 %v96_v45, %v48_v44  ;;  %v100_v23 = vld [vmem:[%s1487_s2 + $0xe8] sm:$0xff]  ;;  %v53_v30 = vld [vmem:[%s1485_s0 + $0xf0] sm:$0xff]  ;;  %v54_v42 = vld [vmem:[%s1485_s0 + $0xf8] sm:$0xff] }
  0x2a   :  { %537 = vst.msk [vmem:[%s1491_s6 + $0x98] sm:$0xff] %vm517_vm0, %v488_v54  ;;  %v489_v4 = vmax.f32 %v441_v55, 0.0  ;;  %v335_v6 = vadd.f32 %v287_v57, %v143_v56  ;;  %v288_v7 = vmul.f32 %v240_v51, %v192_v46  ;;  %v145_v8 = vmul.f32 %v97_v53, %v49_v52  ;;  %v196_v24 = vld [vmem:[%s1486_s1 + $0xe8] sm:$0xff]  ;;  %v101_v35 = vld [vmem:[%s1487_s2 + $0xf0] sm:$0xff]  ;;  %v102_v43 = vld [vmem:[%s1487_s2 + $0xf8] sm:$0xff] }
  0x2b   :  { %v490_v12 = vmax.f32 %v442_v61, 0.0  ;;  %v443_v13 = vadd.f32 %v638_v10, %v388_v62  ;;  %v389_v14 = vmul.f32 %v624_v5, %v334_v63  ;;  %v289_v15 = vmul.f32 %v241_v59, %v193_v58  ;;  %v244_v25 = vld [vmem:[%s1488_s3 + $0xe8] sm:$0xff]  ;;  %v197_v36 = vld [vmem:[%s1486_s1 + $0xf0] sm:$0xff]  ;;  %v198_v48 = vld [vmem:[%s1486_s1 + $0xf8] sm:$0xff] }
  0x2c   :  { %538 = vst.msk [vmem:[%s1491_s6 + $0xa0] sm:$0xff] %vm517_vm0, %v489_v4  ;;  %v390_v19 = vmul.f32 %v624_v5, %v335_v6  ;;  %v336_v20 = vadd.f32 %v288_v7, %v144_v0  ;;  %v146_v21 = vmul.f32 %v98_v1, %v50_v60  ;;  %v290_v22 = vmul.f32 %v242_v3, %v194_v2  ;;  %v245_v37 = vld [vmem:[%s1488_s3 + $0xf0] sm:$0xff]  ;;  %v246_v49 = vld [vmem:[%s1488_s3 + $0xf8] sm:$0xff]  ;;  %v55_v50 = vld [vmem:[%s1485_s0 + $0x100] sm:$0xff] }
  0x2d   :  { %539 = vst.msk [vmem:[%s1491_s6 + $0xa8] sm:$0xff] %vm517_vm0, %v490_v12  ;;  %v491_v26 = vmax.f32 %v443_v13, 0.0  ;;  %v444_v27 = vadd.f32 %v638_v10, %v389_v14  ;;  %v337_v28 = vadd.f32 %v289_v15, %v145_v8  ;;  %v147_v29 = vmul.f32 %v99_v11, %v51_v9  ;;  %v103_v55 = vld [vmem:[%s1487_s2 + $0x100] sm:$0xff]  ;;  %v56_v62 = vld [vmem:[%s1485_s0 + $0x108] sm:$0xff]  ;;  %v57_v7 = vld [vmem:[%s1485_s0 + $0x110] sm:$0xff] }
  0x2e   :  { %v445_v31 = vadd.f32 %v638_v10, %v390_v19  ;;  %v391_v32 = vmul.f32 %v624_v5, %v336_v20  ;;  %v338_v33 = vadd.f32 %v290_v22, %v146_v21  ;;  %v291_v34 = vmul.f32 %v243_v17, %v195_v16  ;;  %v199_v56 = vld [vmem:[%s1486_s1 + $0x100] sm:$0xff]  ;;  %v104_v63 = vld [vmem:[%s1487_s2 + $0x108] sm:$0xff]  ;;  %v105_v8 = vld [vmem:[%s1487_s2 + $0x110] sm:$0xff] }
  0x2f   :  { %540 = vst.msk [vmem:[%s1491_s6 + $0xb0] sm:$0xff] %vm517_vm0, %v491_v26  ;;  %v492_v38 = vmax.f32 %v444_v27, 0.0  ;;  %v392_v39 = vmul.f32 %v624_v5, %v337_v28  ;;  %v148_v40 = vmul.f32 %v100_v23, %v52_v18  ;;  %v292_v41 = vmul.f32 %v244_v25, %v196_v24  ;;  %v247_v57 = vld [vmem:[%s1488_s3 + $0x100] sm:$0xff]  ;;  %v200_v0 = vld [vmem:[%s1486_s1 + $0x108] sm:$0xff]  ;;  %v201_v14 = vld [vmem:[%s1486_s1 + $0x110] sm:$0xff] }
  0x30   :  { %v493_v44 = vmax.f32 %v445_v31, 0.0  ;;  %v446_v45 = vadd.f32 %v638_v10, %v391_v32  ;;  %v393_v46 = vmul.f32 %v624_v5, %v338_v33  ;;  %v339_v47 = vadd.f32 %v291_v34, %v147_v29  ;;  %v248_v6 = vld [vmem:[%s1488_s3 + $0x108] sm:$0xff]  ;;  %v249_v15 = vld [vmem:[%s1488_s3 + $0x110] sm:$0xff]  ;;  %v58_v16 = vld [vmem:[%s1485_s0 + $0x118] sm:$0xff] }
  0x31   :  { %541 = vst.msk [vmem:[%s1491_s6 + $0xb8] sm:$0xff] %vm517_vm0, %v492_v38  ;;  %v447_v51 = vadd.f32 %v638_v10, %v392_v39  ;;  %v340_v52 = vadd.f32 %v292_v41, %v148_v40  ;;  %v149_v53 = vmul.f32 %v101_v35, %v53_v30  ;;  %v293_v54 = vmul.f32 %v245_v37, %v197_v36  ;;  %v106_v21 = vld [vmem:[%s1487_s2 + $0x118] sm:$0xff]  ;;  %v59_v28 = vld [vmem:[%s1485_s0 + $0x120] sm:$0xff]  ;;  %v60_v36 = vld [vmem:[%s1485_s0 + $0x128] sm:$0xff] }
  0x32   :  { %542 = vst.msk [vmem:[%s1491_s6 + $0xc0] sm:$0xff] %vm517_vm0, %v493_v44  ;;  %v494_v58 = vmax.f32 %v446_v45, 0.0  ;;  %v448_v59 = vadd.f32 %v638_v10, %v393_v46  ;;  %v394_v60 = vmul.f32 %v624_v5, %v339_v47  ;;  %v150_v61 = vmul.f32 %v102_v43, %v54_v42  ;;  %v202_v22 = vld [vmem:[%s1486_s1 + $0x118] sm:$0xff]  ;;  %v107_v29 = vld [vmem:[%s1487_s2 + $0x120] sm:$0xff]  ;;  %v108_v41 = vld [vmem:[%s1487_s2 + $0x128] sm:$0xff] }
  0x33   :  { %v495_v1 = vmax.f32 %v447_v51, 0.0  ;;  %v395_v2 = vmul.f32 %v624_v5, %v340_v52  ;;  %v341_v3 = vadd.f32 %v293_v54, %v149_v53  ;;  %v294_v4 = vmul.f32 %v246_v49, %v198_v48  ;;  %v250_v23 = vld [vmem:[%s1488_s3 + $0x118] sm:$0xff]  ;;  %v203_v34 = vld [vmem:[%s1486_s1 + $0x120] sm:$0xff]  ;;  %v204_v42 = vld [vmem:[%s1486_s1 + $0x128] sm:$0xff] }
  0x34   :  { %543 = vst.msk [vmem:[%s1491_s6 + $0xc8] sm:$0xff] %vm517_vm0, %v494_v58  ;;  %v496_v9 = vmax.f32 %v448_v59, 0.0  ;;  %v449_v11 = vadd.f32 %v638_v10, %v394_v60  ;;  %v151_v12 = vmul.f32 %v103_v55, %v55_v50  ;;  %v295_v13 = vmul.f32 %v247_v57, %v199_v56  ;;  %v251_v35 = vld [vmem:[%s1488_s3 + $0x120] sm:$0xff]  ;;  %v252_v43 = vld [vmem:[%s1488_s3 + $0x128] sm:$0xff]  ;;  %v61_v48 = vld [vmem:[%s1485_s0 + $0x130] sm:$0xff] }
  0x35   :  { %544 = vst.msk [vmem:[%s1491_s6 + $0xd0] sm:$0xff] %vm517_vm0, %v495_v1  ;;  %v450_v17 = vadd.f32 %v638_v10, %v395_v2  ;;  %v396_v18 = vmul.f32 %v624_v5, %v341_v3  ;;  %v342_v19 = vadd.f32 %v294_v4, %v150_v61  ;;  %v152_v20 = vmul.f32 %v104_v63, %v56_v62  ;;  %v109_v53 = vld [vmem:[%s1487_s2 + $0x130] sm:$0xff]  ;;  %v62_v60 = vld [vmem:[%s1485_s0 + $0x138] sm:$0xff]  ;;  %v63_v4 = vld [vmem:[%s1485_s0 + $0x140] sm:$0xff] }
  0x36   :  { %545 = vst.msk [vmem:[%s1491_s6 + $0xd8] sm:$0xff] %vm517_vm0, %v496_v9  ;;  %v497_v24 = vmax.f32 %v449_v11, 0.0  ;;  %v343_v25 = vadd.f32 %v295_v13, %v151_v12  ;;  %v296_v26 = vmul.f32 %v248_v6, %v200_v0  ;;  %v153_v27 = vmul.f32 %v105_v8, %v57_v7  ;;  %v205_v54 = vld [vmem:[%s1486_s1 + $0x130] sm:$0xff]  ;;  %v110_v61 = vld [vmem:[%s1487_s2 + $0x138] sm:$0xff]  ;;  %v111_v11 = vld [vmem:[%s1487_s2 + $0x140] sm:$0xff] }
  0x37   :  { %v498_v30 = vmax.f32 %v450_v17, 0.0  ;;  %v451_v31 = vadd.f32 %v638_v10, %v396_v18  ;;  %v397_v32 = vmul.f32 %v624_v5, %v342_v19  ;;  %v297_v33 = vmul.f32 %v249_v15, %v201_v14  ;;  %v253_v55 = vld [vmem:[%s1488_s3 + $0x130] sm:$0xff]  ;;  %v206_v2 = vld [vmem:[%s1486_s1 + $0x138] sm:$0xff]  ;;  %v207_v12 = vld [vmem:[%s1486_s1 + $0x140] sm:$0xff] }
  0x38   :  { %546 = vst.msk [vmem:[%s1491_s6 + $0xe0] sm:$0xff] %vm517_vm0, %v497_v24  ;;  %v398_v37 = vmul.f32 %v624_v5, %v343_v25  ;;  %v344_v38 = vadd.f32 %v296_v26, %v152_v20  ;;  %v154_v39 = vmul.f32 %v106_v21, %v58_v16  ;;  %v298_v40 = vmul.f32 %v250_v23, %v202_v22  ;;  %v254_v3 = vld [vmem:[%s1488_s3 + $0x138] sm:$0xff]  ;;  %v255_v13 = vld [vmem:[%s1488_s3 + $0x140] sm:$0xff]  ;;  %v64_v18 = vld [vmem:[%s1485_s0 + $0x148] sm:$0xff] }
  0x39   :  { %547 = vst.msk [vmem:[%s1491_s6 + $0xe8] sm:$0xff] %vm517_vm0, %v498_v30  ;;  %v499_v44 = vmax.f32 %v451_v31, 0.0  ;;  %v452_v45 = vadd.f32 %v638_v10, %v397_v32  ;;  %v345_v46 = vadd.f32 %v297_v33, %v153_v27  ;;  %v155_v47 = vmul.f32 %v107_v29, %v59_v28  ;;  %v112_v19 = vld [vmem:[%s1487_s2 + $0x148] sm:$0xff]  ;;  %v65_v26 = vld [vmem:[%s1485_s0 + $0x150] sm:$0xff] }
  0x3a   :  { %v453_v49 = vadd.f32 %v638_v10, %v398_v37  ;;  %v399_v50 = vmul.f32 %v624_v5, %v344_v38  ;;  %v346_v51 = vadd.f32 %v298_v40, %v154_v39  ;;  %v299_v52 = vmul.f32 %v251_v35, %v203_v34  ;;  %v208_v20 = vld [vmem:[%s1486_s1 + $0x148] sm:$0xff]  ;;  %v113_v27 = vld [vmem:[%s1487_s2 + $0x150] sm:$0xff]  ;;  %v66_v34 = vld [vmem:[%s1485_s0 + $0x158] sm:$0xff] }
  0x3b   :  { %548 = vst.msk [vmem:[%s1491_s6 + $0xf0] sm:$0xff] %vm517_vm0, %v499_v44  ;;  %v500_v56 = vmax.f32 %v452_v45, 0.0  ;;  %v400_v57 = vmul.f32 %v624_v5, %v345_v46  ;;  %v156_v58 = vmul.f32 %v108_v41, %v60_v36  ;;  %v300_v59 = vmul.f32 %v252_v43, %v204_v42  ;;  %v256_v25 = vld [vmem:[%s1488_s3 + $0x148] sm:$0xff]  ;;  %v209_v32 = vld [vmem:[%s1486_s1 + $0x150] sm:$0xff]  ;;  %v114_v39 = vld [vmem:[%s1487_s2 + $0x158] sm:$0xff] }
  0x3c   :  { %v501_v62 = vmax.f32 %v453_v49, 0.0  ;;  %v454_v63 = vadd.f32 %v638_v10, %v399_v50  ;;  %v401_v0 = vmul.f32 %v624_v5, %v346_v51  ;;  %v347_v1 = vadd.f32 %v299_v52, %v155_v47  ;;  %v257_v33 = vld [vmem:[%s1488_s3 + $0x150] sm:$0xff]  ;;  %v210_v40 = vld [vmem:[%s1486_s1 + $0x158] sm:$0xff]  ;;  %v67_v46 = vld [vmem:[%s1485_s0 + $0x160] sm:$0xff] }
  0x3d   :  { %549 = vst.msk [vmem:[%s1491_s6 + $0xf8] sm:$0xff] %vm517_vm0, %v500_v56  ;;  %v455_v6 = vadd.f32 %v638_v10, %v400_v57  ;;  %v348_v7 = vadd.f32 %v300_v59, %v156_v58  ;;  %v157_v8 = vmul.f32 %v109_v53, %v61_v48  ;;  %v301_v9 = vmul.f32 %v253_v55, %v205_v54  ;;  %v258_v41 = vld [vmem:[%s1488_s3 + $0x158] sm:$0xff]  ;;  %v115_v47 = vld [vmem:[%s1487_s2 + $0x160] sm:$0xff]  ;;  %v68_v54 = vld [vmem:[%s1485_s0 + $0x168] sm:$0xff] }
  0x3e   :  { %550 = vst.msk [vmem:[%s1491_s6 + $0x100] sm:$0xff] %vm517_vm0, %v501_v62  ;;  %v502_v14 = vmax.f32 %v454_v63, 0.0  ;;  %v456_v15 = vadd.f32 %v638_v10, %v401_v0  ;;  %v402_v16 = vmul.f32 %v624_v5, %v347_v1  ;;  %v158_v17 = vmul.f32 %v110_v61, %v62_v60  ;;  %v211_v52 = vld [vmem:[%s1486_s1 + $0x160] sm:$0xff]  ;;  %v116_v59 = vld [vmem:[%s1487_s2 + $0x168] sm:$0xff] }
  0x3f   :  { %v503_v21 = vmax.f32 %v455_v6, 0.0  ;;  %v403_v22 = vmul.f32 %v624_v5, %v348_v7  ;;  %v349_v23 = vadd.f32 %v301_v9, %v157_v8  ;;  %v302_v24 = vmul.f32 %v254_v3, %v206_v2  ;;  %v259_v53 = vld [vmem:[%s1488_s3 + $0x160] sm:$0xff]  ;;  %v212_v60 = vld [vmem:[%s1486_s1 + $0x168] sm:$0xff]  ;;  %v69_v2 = vld [vmem:[%s1485_s0 + $0x170] sm:$0xff] }
  0x40   :  { %551 = vst.msk [vmem:[%s1491_s6 + $0x108] sm:$0xff] %vm517_vm0, %v502_v14  ;;  %v504_v28 = vmax.f32 %v456_v15, 0.0  ;;  %v457_v29 = vadd.f32 %v638_v10, %v402_v16  ;;  %v159_v30 = vmul.f32 %v111_v11, %v63_v4  ;;  %v303_v31 = vmul.f32 %v255_v13, %v207_v12  ;;  %v260_v61 = vld [vmem:[%s1488_s3 + $0x168] sm:$0xff]  ;;  %v117_v8 = vld [vmem:[%s1487_s2 + $0x170] sm:$0xff]  ;;  %v70_v16 = vld [vmem:[%s1485_s0 + $0x178] sm:$0xff] }
  0x41   :  { %552 = vst.msk [vmem:[%s1491_s6 + $0x110] sm:$0xff] %vm517_vm0, %v503_v21  ;;  %v458_v35 = vadd.f32 %v638_v10, %v403_v22  ;;  %v404_v36 = vmul.f32 %v624_v5, %v349_v23  ;;  %v350_v37 = vadd.f32 %v302_v24, %v158_v17  ;;  %v160_v38 = vmul.f32 %v112_v19, %v64_v18  ;;  %v213_v9 = vld [vmem:[%s1486_s1 + $0x170] sm:$0xff]  ;;  %v118_v17 = vld [vmem:[%s1487_s2 + $0x178] sm:$0xff] }
  0x42   :  { %553 = vst.msk [vmem:[%s1491_s6 + $0x118] sm:$0xff] %vm517_vm0, %v504_v28  ;;  %v505_v42 = vmax.f32 %v457_v29, 0.0  ;;  %v351_v43 = vadd.f32 %v303_v31, %v159_v30  ;;  %v304_v44 = vmul.f32 %v256_v25, %v208_v20  ;;  %v161_v45 = vmul.f32 %v113_v27, %v65_v26  ;;  %v261_v11 = vld [vmem:[%s1488_s3 + $0x170] sm:$0xff]  ;;  %v214_v22 = vld [vmem:[%s1486_s1 + $0x178] sm:$0xff] }
  0x43   :  { %v506_v48 = vmax.f32 %v458_v35, 0.0  ;;  %v459_v49 = vadd.f32 %v638_v10, %v404_v36  ;;  %v405_v50 = vmul.f32 %v624_v5, %v350_v37  ;;  %v305_v51 = vmul.f32 %v257_v33, %v209_v32  ;;  %v262_v23 = vld [vmem:[%s1488_s3 + $0x178] sm:$0xff] }
  0x44   :  { %554 = vst.msk [vmem:[%s1491_s6 + $0x120] sm:$0xff] %vm517_vm0, %v505_v42  ;;  %v406_v55 = vmul.f32 %v624_v5, %v351_v43  ;;  %v352_v56 = vadd.f32 %v304_v44, %v160_v38  ;;  %v162_v57 = vmul.f32 %v114_v39, %v66_v34  ;;  %v306_v58 = vmul.f32 %v258_v41, %v210_v40  ;;  %v573_v43 = vld [vmem:[%s1490_s5] ss:$0 sm:$0xff] }
  0x45   :  { %555 = vst.msk [vmem:[%s1491_s6 + $0x128] sm:$0xff] %vm517_vm0, %v506_v48  ;;  %v507_v62 = vmax.f32 %v459_v49, 0.0  ;;  %v460_v63 = vadd.f32 %v638_v10, %v405_v50  ;;  %v353_v0 = vadd.f32 %v305_v51, %v161_v45  ;;  %v163_v1 = vmul.f32 %v115_v47, %v67_v46 }
  0x46   :  { %v461_v3 = vadd.f32 %v638_v10, %v406_v55  ;;  %v407_v4 = vmul.f32 %v624_v5, %v352_v56  ;;  %v354_v6 = vadd.f32 %v306_v58, %v162_v57  ;;  %v307_v7 = vmul.f32 %v259_v53, %v211_v52 }
  0x47   :  { %556 = vst.msk [vmem:[%s1491_s6 + $0x130] sm:$0xff] %vm517_vm0, %v507_v62  ;;  %v508_v12 = vmax.f32 %v460_v63, 0.0  ;;  %v408_v13 = vmul.f32 %v624_v5, %v353_v0  ;;  %v164_v14 = vmul.f32 %v116_v59, %v68_v54  ;;  %v308_v15 = vmul.f32 %v260_v61, %v212_v60 }
  0x48   :  { %v509_v18 = vmax.f32 %v461_v3, 0.0  ;;  %v462_v19 = vadd.f32 %v638_v10, %v407_v4  ;;  %v409_v20 = vmul.f32 %v624_v5, %v354_v6  ;;  %v355_v21 = vadd.f32 %v307_v7, %v163_v1 }
  0x49   :  { %557 = vst.msk [vmem:[%s1491_s6 + $0x138] sm:$0xff] %vm517_vm0, %v508_v12  ;;  %v463_v24 = vadd.f32 %v638_v10, %v408_v13  ;;  %v356_v25 = vadd.f32 %v308_v15, %v164_v14  ;;  %v165_v26 = vmul.f32 %v117_v8, %v69_v2  ;;  %v309_v27 = vmul.f32 %v261_v11, %v213_v9 }
  0x4a   :  { %558 = vst.msk [vmem:[%s1491_s6 + $0x140] sm:$0xff] %vm517_vm0, %v509_v18  ;;  %v510_v28 = vmax.f32 %v462_v19, 0.0  ;;  %v464_v29 = vadd.f32 %v638_v10, %v409_v20  ;;  %v410_v30 = vmul.f32 %v624_v5, %v355_v21  ;;  %v166_v31 = vmul.f32 %v118_v17, %v70_v16 }
  0x4b   :  { %v511_v32 = vmax.f32 %v463_v24, 0.0  ;;  %v411_v33 = vmul.f32 %v624_v5, %v356_v25  ;;  %v357_v34 = vadd.f32 %v309_v27, %v165_v26  ;;  %v310_v35 = vmul.f32 %v262_v23, %v214_v22  ;;  %v572_v5 = vld [vmem:[%s1489_s4] ss:$0 sm:$0xff] }
  0x4c   :  { %559 = vst.msk [vmem:[%s1491_s6 + $0x148] sm:$0xff] %vm517_vm0, %v510_v28  ;;  %v512_v36 = vmax.f32 %v464_v29, 0.0  ;;  %v465_v37 = vadd.f32 %v638_v10, %v410_v30 }
  0x4d   :  { %560 = vst.msk [vmem:[%s1491_s6 + $0x150] sm:$0xff] %vm517_vm0, %v511_v32  ;;  %v466_v38 = vadd.f32 %v638_v10, %v411_v33  ;;  %v412_v39 = vmul.f32 %v572_v5, %v357_v34  ;;  %v358_v40 = vadd.f32 %v310_v35, %v166_v31 }
  0x4e   :  { %561 = vst.msk [vmem:[%s1491_s6 + $0x158] sm:$0xff] %vm517_vm0, %v512_v36  ;;  %v513_v41 = vmax.f32 %v465_v37, 0.0 }
  0x4f   :  { %v514_v42 = vmax.f32 %v466_v38, 0.0  ;;  %v467_v44 = vadd.f32 %v573_v43, %v412_v39  ;;  %v413_v45 = vmul.f32 %v572_v5, %v358_v40 }
  0x50   :  { %562 = vst.msk [vmem:[%s1491_s6 + $0x160] sm:$0xff] %vm517_vm0, %v513_v41 }
  0x51   :  { %563 = vst.msk [vmem:[%s1491_s6 + $0x168] sm:$0xff] %vm517_vm0, %v514_v42  ;;  %v515_v10 = vmax.f32 %v467_v44, 0.0  ;;  %v468_v46 = vadd.f32 %v573_v43, %v413_v45 }
  0x53   :  { %564 = vst.msk [vmem:[%s1491_s6 + $0x170] sm:$0xff] %vm517_vm0, %v515_v10  ;;  %v516_v47 = vmax.f32 %v468_v46, 0.0 }
  0x55   :  { %565 = vst.msk [vmem:[%s1491_s6 + $0x178] sm:$0xff] %vm517_vm0, %v516_v47 }

// kernel: basicsknet_forward.23
= control target key start
LH: loop header
LB: loop body
LE: loop exit
PB: predicated region body
PF: predicated region fallthrough
CT: control target
= control target key end

     0   :  { %vm197_vm0 = vcmask 130048   ;;  %vm749_vm1 = vcmask 261120   ;;  %s1526_s1 = inlined_call_operand.vmem [shape: bf16[16,32], index: 1, kind: input, shape index: {}]   ;;  %s1527_s0 = inlined_call_operand.vmem [shape: bf16[384,16], index: 0, kind: input, shape index: {}]   ;;  %s1528_s2 = inlined_call_operand.vmem [shape: f32[1,32], index: 2, kind: input, shape index: {}]   ;;  %s1529_s3 = inlined_call_operand.vmem [shape: f32[1,32], index: 3, kind: input, shape index: {}]   ;;  %s1530_s4 = inlined_call_operand.vmem [shape: f32[384,32], index: 4, kind: input, shape index: {}]   ;;  %s1531_s5 = inlined_call_operand.vmem [shape: f32[384,32], index: 5, kind: output, shape index: {}]  }
   0x1   :  { %v930_v0 = vld [vmem:[%s1526_s1] sm:$0xff]   ;;  %v933_v3 = vld [vmem:[%s1527_s0 + $0x8] sm:$0xff]   ;;  %v935_v5 = vld [vmem:[%s1527_s0 + $0x10] sm:$0xff]  }
   0x2   :  { %v931_v1 = vld [vmem:[%s1527_s0] sm:$0xff]   ;;  %878 = vmatprep.subr.bf16.mxu0 %v930_v0  ;;  %928 = vmatprep.subr.bf16.mxu1 %v930_v0  ;;  %v934_v4 = vld [vmem:[%s1527_s0 + $0x68] sm:$0xff]   ;;  %v936_v6 = vld [vmem:[%s1527_s0 + $0x70] sm:$0xff]  }
   0x3   :  { %v932_v2 = vld [vmem:[%s1527_s0 + $0x60] sm:$0xff]   ;;  %879 = vmatpush3.bf16.msra.mxu0 %v930_v0  ;;  %929 = vmatpush3.bf16.msra.mxu1 %v930_v0  ;;  %v937_v7 = vld [vmem:[%s1527_s0 + $0x18] sm:$0xff]   ;;  %v941_v11 = vld [vmem:[%s1527_s0 + $0x28] sm:$0xff]  }
   0x4   :  { %880 = vmatprep.mubr.msk.bf16.mxu0 %vm197_vm0, %v931_v1  ;;  %904 = vmatprep.mubr.msk.bf16.mxu1 %vm197_vm0, %v932_v2  ;;  %v938_v8 = vld [vmem:[%s1527_s0 + $0x78] sm:$0xff]   ;;  %v939_v9 = vld [vmem:[%s1527_s0 + $0x20] sm:$0xff]   ;;  %v942_v12 = vld [vmem:[%s1527_s0 + $0x88] sm:$0xff]  }
   0x5   :  { %v940_v10 = vld [vmem:[%s1527_s0 + $0x80] sm:$0xff]   ;;  %v943_v13 = vld [vmem:[%s1527_s0 + $0x30] sm:$0xff]   ;;  %v945_v15 = vld [vmem:[%s1527_s0 + $0x38] sm:$0xff]  }
   0x6   :  { %881 = vmatmul.mubr.msk.bf16.vlgmr.msra.gmra.mrb[0].mxu0 %vm197_vm0, %v933_v3  ;;  %905 = vmatmul.mubr.msk.bf16.vlgmr.msra.gmra.mrb[0].mxu1 %vm197_vm0, %v934_v4  ;;  %v944_v14 = vld [vmem:[%s1527_s0 + $0x90] sm:$0xff]   ;;  %v946_v16 = vld [vmem:[%s1527_s0 + $0x98] sm:$0xff]   ;;  %v947_v17 = vld [vmem:[%s1527_s0 + $0x40] sm:$0xff]  }
   0x7   :  { %884 = vmatprep.mubr.msk.bf16.mxu0 %vm197_vm0, %v935_v5  ;;  %908 = vmatprep.mubr.msk.bf16.mxu1 %vm197_vm0, %v936_v6  ;;  %v948_v18 = vld [vmem:[%s1527_s0 + $0xa0] sm:$0xff]   ;;  %v949_v19 = vld [vmem:[%s1527_s0 + $0x48] sm:$0xff]   ;;  %v951_v21 = vld [vmem:[%s1527_s0 + $0x50] sm:$0xff]  }
   0x8   :  { %v950_v20 = vld [vmem:[%s1527_s0 + $0xa8] sm:$0xff]   ;;  %v952_v22 = vld [vmem:[%s1527_s0 + $0xb0] sm:$0xff]   ;;  %v953_v23 = vld [vmem:[%s1527_s0 + $0x58] sm:$0xff]  }
   0x9   :  { %v954_v24 = vld [vmem:[%s1527_s0 + $0xb8] sm:$0xff]   ;;  %v1087_v25 = vld [vmem:[%s1528_s2] ss:$0 sm:$0xff]  ;;  %v607_v33 = vld [vmem:[%s1530_s4 + $0x10] sm:$0xff] }
   0xa   :  { %v1092_v27 = vld [vmem:[%s1529_s3] ss:$0 sm:$0xff]  ;;  %v631_v34 = vld [vmem:[%s1530_s4 + $0xd0] sm:$0xff]  ;;  %v608_v49 = vld [vmem:[%s1530_s4 + $0x18] sm:$0xff] }
   0xb   :  { %v605_v41 = vld [vmem:[%s1530_s4] sm:$0xff]  ;;  %v632_v50 = vld [vmem:[%s1530_s4 + $0xd8] sm:$0xff]  ;;  %v606_v57 = vld [vmem:[%s1530_s4 + $0x8] sm:$0xff] }
   0xc   :  { %v629_v42 = vld [vmem:[%s1530_s4 + $0xc0] sm:$0xff]  ;;  %v630_v58 = vld [vmem:[%s1530_s4 + $0xc8] sm:$0xff] }
   0xe   :  { %885 = vmatmul.mubr.msk.bf16.gmra.mrb[4].mxu0 %vm197_vm0, %v937_v7  ;;  %909 = vmatmul.mubr.msk.bf16.gmra.mrb[4].mxu1 %vm197_vm0, %v938_v8 }
   0xf   :  { %888 = vmatprep.mubr.msk.bf16.mxu0 %vm197_vm0, %v939_v9  ;;  %912 = vmatprep.mubr.msk.bf16.mxu1 %vm197_vm0, %v940_v10 }
  0x16   :  { %889 = vmatmul.mubr.msk.bf16.gmra.mrb[8].mxu0 %vm197_vm0, %v941_v11  ;;  %913 = vmatmul.mubr.msk.bf16.gmra.mrb[8].mxu1 %vm197_vm0, %v942_v12 }
  0x17   :  { %892 = vmatprep.mubr.msk.bf16.mxu0 %vm197_vm0, %v943_v13  ;;  %916 = vmatprep.mubr.msk.bf16.mxu1 %vm197_vm0, %v944_v14 }
  0x1e   :  { %893 = vmatmul.mubr.msk.bf16.gmra.mrb[12].mxu0 %vm197_vm0, %v945_v15  ;;  %917 = vmatmul.mubr.msk.bf16.gmra.mrb[12].mxu1 %vm197_vm0, %v946_v16 }
  0x1f   :  { %896 = vmatprep.mubr.msk.bf16.mxu0 %vm197_vm0, %v947_v17  ;;  %920 = vmatprep.mubr.msk.bf16.mxu1 %vm197_vm0, %v948_v18  ;;  %v611_v17 = vld [vmem:[%s1530_s4 + $0x30] sm:$0xff] }
  0x20   :  { %v635_v18 = vld [vmem:[%s1530_s4 + $0xf0] sm:$0xff] }
  0x26   :  { %897 = vmatmul.mubr.msk.bf16.gmra.mrb[16].mxu0 %vm197_vm0, %v949_v19  ;;  %921 = vmatmul.mubr.msk.bf16.gmra.mrb[16].mxu1 %vm197_vm0, %v950_v20 }
  0x27   :  { %900 = vmatprep.mubr.msk.bf16.mxu0 %vm197_vm0, %v951_v21  ;;  %924 = vmatprep.mubr.msk.bf16.mxu1 %vm197_vm0, %v952_v22 }
  0x2e   :  { %901 = vmatmul.mubr.msk.bf16.gmra.mrb[20].mxu0 %vm197_vm0, %v953_v23  ;;  %925 = vmatmul.mubr.msk.bf16.gmra.mrb[20].mxu1 %vm197_vm0, %v954_v24 }
  0xd9   :  { %v882_v26 = vpop.f32.mrb[0].mxu0  ;;  %v906_v28 = vpop.f32.mrb[0].mxu1 }
  0xda   :  { %v504_v29 = vmul.f32 %v882_v26, %v1087_v25  ;;  %v528_v30 = vmul.f32 %v906_v28, %v1087_v25  ;;  %v304_v31 = vpop.f32.mrb[1].mxu0  ;;  %v400_v32 = vpop.f32.mrb[1].mxu1  ;;  %v609_v26 = vld [vmem:[%s1530_s4 + $0x20] sm:$0xff] }
  0xdb   :  { %v502_v35 = vmul.f32 %v1087_v25, %v304_v31  ;;  %v526_v36 = vmul.f32 %v1087_v25, %v400_v32  ;;  %v883_v37 = vpop.f32.mrb[2].mxu0  ;;  %v907_v38 = vpop.f32.mrb[2].mxu1  ;;  %v633_v28 = vld [vmem:[%s1530_s4 + $0xe0] sm:$0xff] }
  0xdc   :  { %v559_v39 = vadd.f32 %v1092_v27, %v504_v29  ;;  %v583_v40 = vadd.f32 %v1092_v27, %v528_v30  ;;  %v505_v43 = vmul.f32 %v883_v37, %v1087_v25  ;;  %v529_v44 = vmul.f32 %v907_v38, %v1087_v25  ;;  %v307_v45 = vpop.f32.mrb[3].mxu0  ;;  %v403_v46 = vpop.f32.mrb[3].mxu1 }
  0xdd   :  { %v557_v47 = vadd.f32 %v1092_v27, %v502_v35  ;;  %v581_v48 = vadd.f32 %v1092_v27, %v526_v36  ;;  %v503_v51 = vmul.f32 %v1087_v25, %v307_v45  ;;  %v527_v52 = vmul.f32 %v1087_v25, %v403_v46  ;;  %v612_v35 = vld [vmem:[%s1530_s4 + $0x38] sm:$0xff] }
  0xde   :  { %v655_v53 = vadd.f32 %v607_v33, %v559_v39  ;;  %v679_v54 = vadd.f32 %v631_v34, %v583_v40  ;;  %v560_v55 = vadd.f32 %v1092_v27, %v505_v43  ;;  %v584_v56 = vadd.f32 %v1092_v27, %v529_v44  ;;  %v636_v36 = vld [vmem:[%s1530_s4 + $0xf8] sm:$0xff]  ;;  %v610_v43 = vld [vmem:[%s1530_s4 + $0x28] sm:$0xff] }
  0xdf   :  { %v653_v59 = vadd.f32 %v605_v41, %v557_v47  ;;  %v677_v60 = vadd.f32 %v629_v42, %v581_v48  ;;  %v558_v61 = vadd.f32 %v1092_v27, %v503_v51  ;;  %v582_v62 = vadd.f32 %v1092_v27, %v527_v52  ;;  %v634_v44 = vld [vmem:[%s1530_s4 + $0xe8] sm:$0xff] }
  0xe0   :  { %v703_v63 = vmax.f32 %v655_v53, 0.0  ;;  %v727_v0 = vmax.f32 %v679_v54, 0.0  ;;  %v656_v1 = vadd.f32 %v608_v49, %v560_v55  ;;  %v680_v2 = vadd.f32 %v632_v50, %v584_v56 }
  0xe1   :  { %v701_v3 = vmax.f32 %v653_v59, 0.0  ;;  %v725_v4 = vmax.f32 %v677_v60, 0.0  ;;  %v654_v5 = vadd.f32 %v606_v57, %v558_v61  ;;  %v678_v6 = vadd.f32 %v630_v58, %v582_v62  ;;  %v886_v7 = vpop.f32.mrb[4].mxu0  ;;  %v910_v8 = vpop.f32.mrb[4].mxu1 }
  0xe2   :  { %752 = vst.msk [vmem:[%s1531_s5 + $0x10] sm:$0xff] %vm749_vm1, %v703_v63  ;;  %776 = vst.msk [vmem:[%s1531_s5 + $0xd0] sm:$0xff] %vm749_vm1, %v727_v0  ;;  %v704_v9 = vmax.f32 %v656_v1, 0.0  ;;  %v728_v10 = vmax.f32 %v680_v2, 0.0  ;;  %v508_v11 = vmul.f32 %v886_v7, %v1087_v25  ;;  %v532_v12 = vmul.f32 %v910_v8, %v1087_v25  ;;  %v320_v13 = vpop.f32.mrb[5].mxu0  ;;  %v416_v14 = vpop.f32.mrb[5].mxu1 }
  0xe3   :  { %750 = vst.msk [vmem:[%s1531_s5] sm:$0xff] %vm749_vm1, %v701_v3  ;;  %774 = vst.msk [vmem:[%s1531_s5 + $0xc0] sm:$0xff] %vm749_vm1, %v725_v4  ;;  %v702_v15 = vmax.f32 %v654_v5, 0.0  ;;  %v726_v16 = vmax.f32 %v678_v6, 0.0  ;;  %v506_v19 = vmul.f32 %v1087_v25, %v320_v13  ;;  %v530_v20 = vmul.f32 %v1087_v25, %v416_v14  ;;  %v887_v21 = vpop.f32.mrb[6].mxu0  ;;  %v911_v22 = vpop.f32.mrb[6].mxu1 }
  0xe4   :  { %753 = vst.msk [vmem:[%s1531_s5 + $0x18] sm:$0xff] %vm749_vm1, %v704_v9  ;;  %777 = vst.msk [vmem:[%s1531_s5 + $0xd8] sm:$0xff] %vm749_vm1, %v728_v10  ;;  %v563_v23 = vadd.f32 %v1092_v27, %v508_v11  ;;  %v587_v24 = vadd.f32 %v1092_v27, %v532_v12  ;;  %v509_v29 = vmul.f32 %v887_v21, %v1087_v25  ;;  %v323_v31 = vpop.f32.mrb[7].mxu0  ;;  %v419_v32 = vpop.f32.mrb[7].mxu1  ;;  %v615_v3 = vld [vmem:[%s1530_s4 + $0x50] sm:$0xff]  ;;  %v613_v11 = vld [vmem:[%s1530_s4 + $0x40] sm:$0xff] }
  0xe5   :  { %v533_v30 = vmul.f32 %v911_v22, %v1087_v25  ;;  %751 = vst.msk [vmem:[%s1531_s5 + $0x8] sm:$0xff] %vm749_vm1, %v702_v15  ;;  %775 = vst.msk [vmem:[%s1531_s5 + $0xc8] sm:$0xff] %vm749_vm1, %v726_v16  ;;  %v561_v33 = vadd.f32 %v1092_v27, %v506_v19  ;;  %v585_v34 = vadd.f32 %v1092_v27, %v530_v20  ;;  %v639_v4 = vld [vmem:[%s1530_s4 + $0x110] sm:$0xff]  ;;  %v637_v12 = vld [vmem:[%s1530_s4 + $0x100] sm:$0xff] }
  0xe6   :  { %v507_v37 = vmul.f32 %v1087_v25, %v323_v31  ;;  %v531_v38 = vmul.f32 %v1087_v25, %v419_v32  ;;  %v659_v39 = vadd.f32 %v611_v17, %v563_v23  ;;  %v683_v40 = vadd.f32 %v635_v18, %v587_v24  ;;  %v616_v19 = vld [vmem:[%s1530_s4 + $0x58] sm:$0xff] }
  0xe7   :  { %v564_v41 = vadd.f32 %v1092_v27, %v509_v29  ;;  %v588_v42 = vadd.f32 %v1092_v27, %v533_v30  ;;  %v657_v45 = vadd.f32 %v609_v26, %v561_v33  ;;  %v681_v46 = vadd.f32 %v633_v28, %v585_v34  ;;  %v640_v20 = vld [vmem:[%s1530_s4 + $0x118] sm:$0xff]  ;;  %v614_v29 = vld [vmem:[%s1530_s4 + $0x48] sm:$0xff] }
  0xe8   :  { %v562_v47 = vadd.f32 %v1092_v27, %v507_v37  ;;  %v586_v48 = vadd.f32 %v1092_v27, %v531_v38  ;;  %v707_v49 = vmax.f32 %v659_v39, 0.0  ;;  %v731_v50 = vmax.f32 %v683_v40, 0.0  ;;  %v638_v30 = vld [vmem:[%s1530_s4 + $0x108] sm:$0xff] }
  0xe9   :  { %v660_v51 = vadd.f32 %v612_v35, %v564_v41  ;;  %v684_v52 = vadd.f32 %v636_v36, %v588_v42  ;;  %v705_v53 = vmax.f32 %v657_v45, 0.0  ;;  %v729_v54 = vmax.f32 %v681_v46, 0.0  ;;  %v890_v57 = vpop.f32.mrb[8].mxu0  ;;  %v914_v58 = vpop.f32.mrb[8].mxu1 }
  0xea   :  { %v658_v55 = vadd.f32 %v610_v43, %v562_v47  ;;  %v682_v56 = vadd.f32 %v634_v44, %v586_v48  ;;  %756 = vst.msk [vmem:[%s1531_s5 + $0x30] sm:$0xff] %vm749_vm1, %v707_v49  ;;  %780 = vst.msk [vmem:[%s1531_s5 + $0xf0] sm:$0xff] %vm749_vm1, %v731_v50  ;;  %v512_v61 = vmul.f32 %v890_v57, %v1087_v25  ;;  %v336_v63 = vpop.f32.mrb[9].mxu0  ;;  %v432_v0 = vpop.f32.mrb[9].mxu1 }
  0xeb   :  { %v708_v59 = vmax.f32 %v660_v51, 0.0  ;;  %v732_v60 = vmax.f32 %v684_v52, 0.0  ;;  %v536_v62 = vmul.f32 %v914_v58, %v1087_v25  ;;  %754 = vst.msk [vmem:[%s1531_s5 + $0x20] sm:$0xff] %vm749_vm1, %v705_v53  ;;  %778 = vst.msk [vmem:[%s1531_s5 + $0xe0] sm:$0xff] %vm749_vm1, %v729_v54  ;;  %v510_v5 = vmul.f32 %v1087_v25, %v336_v63  ;;  %v891_v7 = vpop.f32.mrb[10].mxu0  ;;  %v915_v8 = vpop.f32.mrb[10].mxu1 }
  0xec   :  { %v706_v1 = vmax.f32 %v658_v55, 0.0  ;;  %v730_v2 = vmax.f32 %v682_v56, 0.0  ;;  %v534_v6 = vmul.f32 %v1087_v25, %v432_v0  ;;  %v567_v9 = vadd.f32 %v1092_v27, %v512_v61  ;;  %v339_v15 = vpop.f32.mrb[11].mxu0  ;;  %v435_v16 = vpop.f32.mrb[11].mxu1  ;;  %v619_v53 = vld [vmem:[%s1530_s4 + $0x70] sm:$0xff]  ;;  %v617_v61 = vld [vmem:[%s1530_s4 + $0x60] sm:$0xff] }
  0xed   :  { %757 = vst.msk [vmem:[%s1531_s5 + $0x38] sm:$0xff] %vm749_vm1, %v708_v59  ;;  %781 = vst.msk [vmem:[%s1531_s5 + $0xf8] sm:$0xff] %vm749_vm1, %v732_v60  ;;  %v591_v10 = vadd.f32 %v1092_v27, %v536_v62  ;;  %v513_v13 = vmul.f32 %v891_v7, %v1087_v25  ;;  %v537_v14 = vmul.f32 %v915_v8, %v1087_v25  ;;  %v643_v54 = vld [vmem:[%s1530_s4 + $0x130] sm:$0xff]  ;;  %v641_v62 = vld [vmem:[%s1530_s4 + $0x120] sm:$0xff] }
  0xee   :  { %755 = vst.msk [vmem:[%s1531_s5 + $0x28] sm:$0xff] %vm749_vm1, %v706_v1  ;;  %779 = vst.msk [vmem:[%s1531_s5 + $0xe8] sm:$0xff] %vm749_vm1, %v730_v2  ;;  %v565_v17 = vadd.f32 %v1092_v27, %v510_v5  ;;  %v589_v18 = vadd.f32 %v1092_v27, %v534_v6  ;;  %v511_v21 = vmul.f32 %v1087_v25, %v339_v15  ;;  %v620_v5 = vld [vmem:[%s1530_s4 + $0x78] sm:$0xff] }
  0xef   :  { %v535_v22 = vmul.f32 %v1087_v25, %v435_v16  ;;  %v663_v23 = vadd.f32 %v615_v3, %v567_v9  ;;  %v687_v24 = vadd.f32 %v639_v4, %v591_v10  ;;  %v568_v26 = vadd.f32 %v1092_v27, %v513_v13  ;;  %v644_v6 = vld [vmem:[%s1530_s4 + $0x138] sm:$0xff]  ;;  %v618_v13 = vld [vmem:[%s1530_s4 + $0x68] sm:$0xff] }
  0xf0   :  { %v592_v28 = vadd.f32 %v1092_v27, %v537_v14  ;;  %v661_v31 = vadd.f32 %v613_v11, %v565_v17  ;;  %v685_v32 = vadd.f32 %v637_v12, %v589_v18  ;;  %v566_v33 = vadd.f32 %v1092_v27, %v511_v21  ;;  %v642_v14 = vld [vmem:[%s1530_s4 + $0x128] sm:$0xff] }
  0xf1   :  { %v590_v34 = vadd.f32 %v1092_v27, %v535_v22  ;;  %v711_v35 = vmax.f32 %v663_v23, 0.0  ;;  %v735_v36 = vmax.f32 %v687_v24, 0.0  ;;  %v664_v37 = vadd.f32 %v616_v19, %v568_v26  ;;  %v894_v43 = vpop.f32.mrb[12].mxu0  ;;  %v918_v44 = vpop.f32.mrb[12].mxu1 }
  0xf2   :  { %v688_v38 = vadd.f32 %v640_v20, %v592_v28  ;;  %v709_v39 = vmax.f32 %v661_v31, 0.0  ;;  %v733_v40 = vmax.f32 %v685_v32, 0.0  ;;  %v662_v41 = vadd.f32 %v614_v29, %v566_v33  ;;  %v352_v49 = vpop.f32.mrb[13].mxu0  ;;  %v448_v50 = vpop.f32.mrb[13].mxu1 }
  0xf3   :  { %v686_v42 = vadd.f32 %v638_v30, %v590_v34  ;;  %760 = vst.msk [vmem:[%s1531_s5 + $0x50] sm:$0xff] %vm749_vm1, %v711_v35  ;;  %784 = vst.msk [vmem:[%s1531_s5 + $0x110] sm:$0xff] %vm749_vm1, %v735_v36  ;;  %v712_v45 = vmax.f32 %v664_v37, 0.0  ;;  %v516_v47 = vmul.f32 %v894_v43, %v1087_v25  ;;  %v540_v48 = vmul.f32 %v918_v44, %v1087_v25  ;;  %v895_v57 = vpop.f32.mrb[14].mxu0  ;;  %v919_v58 = vpop.f32.mrb[14].mxu1 }
  0xf4   :  { %v736_v46 = vmax.f32 %v688_v38, 0.0  ;;  %758 = vst.msk [vmem:[%s1531_s5 + $0x40] sm:$0xff] %vm749_vm1, %v709_v39  ;;  %782 = vst.msk [vmem:[%s1531_s5 + $0x100] sm:$0xff] %vm749_vm1, %v733_v40  ;;  %v710_v51 = vmax.f32 %v662_v41, 0.0  ;;  %v514_v55 = vmul.f32 %v1087_v25, %v352_v49  ;;  %v538_v56 = vmul.f32 %v1087_v25, %v448_v50  ;;  %v355_v1 = vpop.f32.mrb[15].mxu0  ;;  %v451_v2 = vpop.f32.mrb[15].mxu1 }
  0xf5   :  { %v734_v52 = vmax.f32 %v686_v42, 0.0  ;;  %761 = vst.msk [vmem:[%s1531_s5 + $0x58] sm:$0xff] %vm749_vm1, %v712_v45  ;;  %v571_v59 = vadd.f32 %v1092_v27, %v516_v47  ;;  %v595_v60 = vadd.f32 %v1092_v27, %v540_v48  ;;  %v517_v63 = vmul.f32 %v895_v57, %v1087_v25  ;;  %v623_v39 = vld [vmem:[%s1530_s4 + $0x90] sm:$0xff]  ;;  %v621_v47 = vld [vmem:[%s1530_s4 + $0x80] sm:$0xff] }
  0xf6   :  { %785 = vst.msk [vmem:[%s1531_s5 + $0x118] sm:$0xff] %vm749_vm1, %v736_v46  ;;  %v541_v0 = vmul.f32 %v919_v58, %v1087_v25  ;;  %759 = vst.msk [vmem:[%s1531_s5 + $0x48] sm:$0xff] %vm749_vm1, %v710_v51  ;;  %v569_v3 = vadd.f32 %v1092_v27, %v514_v55  ;;  %v593_v4 = vadd.f32 %v1092_v27, %v538_v56  ;;  %v647_v40 = vld [vmem:[%s1530_s4 + $0x150] sm:$0xff]  ;;  %v645_v48 = vld [vmem:[%s1530_s4 + $0x140] sm:$0xff] }
  0xf7   :  { %783 = vst.msk [vmem:[%s1531_s5 + $0x108] sm:$0xff] %vm749_vm1, %v734_v52  ;;  %v515_v7 = vmul.f32 %v1087_v25, %v355_v1  ;;  %v539_v8 = vmul.f32 %v1087_v25, %v451_v2  ;;  %v667_v9 = vadd.f32 %v619_v53, %v571_v59  ;;  %v691_v10 = vadd.f32 %v643_v54, %v595_v60  ;;  %v624_v55 = vld [vmem:[%s1530_s4 + $0x98] sm:$0xff] }
  0xf8   :  { %v572_v11 = vadd.f32 %v1092_v27, %v517_v63  ;;  %v596_v12 = vadd.f32 %v1092_v27, %v541_v0  ;;  %v665_v15 = vadd.f32 %v617_v61, %v569_v3  ;;  %v689_v16 = vadd.f32 %v641_v62, %v593_v4  ;;  %v648_v56 = vld [vmem:[%s1530_s4 + $0x158] sm:$0xff]  ;;  %v622_v63 = vld [vmem:[%s1530_s4 + $0x88] sm:$0xff] }
  0xf9   :  { %v570_v17 = vadd.f32 %v1092_v27, %v515_v7  ;;  %v594_v18 = vadd.f32 %v1092_v27, %v539_v8  ;;  %v715_v19 = vmax.f32 %v667_v9, 0.0  ;;  %v739_v20 = vmax.f32 %v691_v10, 0.0  ;;  %v898_v29 = vpop.f32.mrb[16].mxu0  ;;  %v922_v30 = vpop.f32.mrb[16].mxu1  ;;  %v646_v0 = vld [vmem:[%s1530_s4 + $0x148] sm:$0xff] }
  0xfa   :  { %v668_v21 = vadd.f32 %v620_v5, %v572_v11  ;;  %v692_v22 = vadd.f32 %v644_v6, %v596_v12  ;;  %v713_v23 = vmax.f32 %v665_v15, 0.0  ;;  %v737_v24 = vmax.f32 %v689_v16, 0.0  ;;  %v368_v35 = vpop.f32.mrb[17].mxu0  ;;  %v464_v36 = vpop.f32.mrb[17].mxu1 }
  0xfb   :  { %v666_v26 = vadd.f32 %v618_v13, %v570_v17  ;;  %v690_v28 = vadd.f32 %v642_v14, %v594_v18  ;;  %764 = vst.msk [vmem:[%s1531_s5 + $0x70] sm:$0xff] %vm749_vm1, %v715_v19  ;;  %788 = vst.msk [vmem:[%s1531_s5 + $0x130] sm:$0xff] %vm749_vm1, %v739_v20  ;;  %v520_v33 = vmul.f32 %v898_v29, %v1087_v25  ;;  %v899_v43 = vpop.f32.mrb[18].mxu0  ;;  %v923_v44 = vpop.f32.mrb[18].mxu1 }
  0xfc   :  { %v716_v31 = vmax.f32 %v668_v21, 0.0  ;;  %v740_v32 = vmax.f32 %v692_v22, 0.0  ;;  %v544_v34 = vmul.f32 %v922_v30, %v1087_v25  ;;  %762 = vst.msk [vmem:[%s1531_s5 + $0x60] sm:$0xff] %vm749_vm1, %v713_v23  ;;  %786 = vst.msk [vmem:[%s1531_s5 + $0x120] sm:$0xff] %vm749_vm1, %v737_v24  ;;  %v518_v41 = vmul.f32 %v1087_v25, %v368_v35  ;;  %v371_v51 = vpop.f32.mrb[19].mxu0  ;;  %v467_v52 = vpop.f32.mrb[19].mxu1 }
  0xfd   :  { %v714_v37 = vmax.f32 %v666_v26, 0.0  ;;  %v738_v38 = vmax.f32 %v690_v28, 0.0  ;;  %v542_v42 = vmul.f32 %v1087_v25, %v464_v36  ;;  %v575_v45 = vadd.f32 %v1092_v27, %v520_v33  ;;  %v627_v23 = vld [vmem:[%s1530_s4 + $0xb0] sm:$0xff]  ;;  %v625_v33 = vld [vmem:[%s1530_s4 + $0xa0] sm:$0xff] }
  0xfe   :  { %765 = vst.msk [vmem:[%s1531_s5 + $0x78] sm:$0xff] %vm749_vm1, %v716_v31  ;;  %789 = vst.msk [vmem:[%s1531_s5 + $0x138] sm:$0xff] %vm749_vm1, %v740_v32  ;;  %v599_v46 = vadd.f32 %v1092_v27, %v544_v34  ;;  %v521_v49 = vmul.f32 %v899_v43, %v1087_v25  ;;  %v545_v50 = vmul.f32 %v923_v44, %v1087_v25  ;;  %v651_v24 = vld [vmem:[%s1530_s4 + $0x170] sm:$0xff]  ;;  %v649_v34 = vld [vmem:[%s1530_s4 + $0x160] sm:$0xff] }
  0xff   :  { %763 = vst.msk [vmem:[%s1531_s5 + $0x68] sm:$0xff] %vm749_vm1, %v714_v37  ;;  %787 = vst.msk [vmem:[%s1531_s5 + $0x128] sm:$0xff] %vm749_vm1, %v738_v38  ;;  %v573_v53 = vadd.f32 %v1092_v27, %v518_v41  ;;  %v597_v54 = vadd.f32 %v1092_v27, %v542_v42  ;;  %v519_v57 = vmul.f32 %v1087_v25, %v371_v51  ;;  %v628_v41 = vld [vmem:[%s1530_s4 + $0xb8] sm:$0xff] }
 0x100   :  { %v543_v58 = vmul.f32 %v1087_v25, %v467_v52  ;;  %v671_v59 = vadd.f32 %v623_v39, %v575_v45  ;;  %v695_v60 = vadd.f32 %v647_v40, %v599_v46  ;;  %v576_v61 = vadd.f32 %v1092_v27, %v521_v49  ;;  %v652_v42 = vld [vmem:[%s1530_s4 + $0x178] sm:$0xff]  ;;  %v626_v49 = vld [vmem:[%s1530_s4 + $0xa8] sm:$0xff] }
 0x101   :  { %v600_v62 = vadd.f32 %v1092_v27, %v545_v50  ;;  %v669_v1 = vadd.f32 %v621_v47, %v573_v53  ;;  %v693_v2 = vadd.f32 %v645_v48, %v597_v54  ;;  %v574_v3 = vadd.f32 %v1092_v27, %v519_v57  ;;  %v902_v13 = vpop.f32.mrb[20].mxu0  ;;  %v926_v14 = vpop.f32.mrb[20].mxu1  ;;  %v650_v50 = vld [vmem:[%s1530_s4 + $0x168] sm:$0xff] }
 0x102   :  { %v598_v4 = vadd.f32 %v1092_v27, %v543_v58  ;;  %v719_v5 = vmax.f32 %v671_v59, 0.0  ;;  %v743_v6 = vmax.f32 %v695_v60, 0.0  ;;  %v672_v7 = vadd.f32 %v624_v55, %v576_v61  ;;  %v384_v19 = vpop.f32.mrb[21].mxu0  ;;  %v480_v20 = vpop.f32.mrb[21].mxu1 }
 0x103   :  { %v696_v8 = vadd.f32 %v648_v56, %v600_v62  ;;  %v717_v9 = vmax.f32 %v669_v1, 0.0  ;;  %v741_v10 = vmax.f32 %v693_v2, 0.0  ;;  %v670_v11 = vadd.f32 %v622_v63, %v574_v3  ;;  %v903_v29 = vpop.f32.mrb[22].mxu0  ;;  %v927_v30 = vpop.f32.mrb[22].mxu1 }
 0x104   :  { %v694_v12 = vadd.f32 %v646_v0, %v598_v4  ;;  %768 = vst.msk [vmem:[%s1531_s5 + $0x90] sm:$0xff] %vm749_vm1, %v719_v5  ;;  %792 = vst.msk [vmem:[%s1531_s5 + $0x150] sm:$0xff] %vm749_vm1, %v743_v6  ;;  %v720_v15 = vmax.f32 %v672_v7, 0.0  ;;  %v524_v17 = vmul.f32 %v902_v13, %v1087_v25  ;;  %v548_v18 = vmul.f32 %v926_v14, %v1087_v25  ;;  %v387_v37 = vpop.f32.mrb[23].mxu0  ;;  %v483_v38 = vpop.f32.mrb[23].mxu1 }
 0x105   :  { %v744_v16 = vmax.f32 %v696_v8, 0.0  ;;  %766 = vst.msk [vmem:[%s1531_s5 + $0x80] sm:$0xff] %vm749_vm1, %v717_v9  ;;  %790 = vst.msk [vmem:[%s1531_s5 + $0x140] sm:$0xff] %vm749_vm1, %v741_v10  ;;  %v718_v21 = vmax.f32 %v670_v11, 0.0  ;;  %v522_v26 = vmul.f32 %v1087_v25, %v384_v19  ;;  %v546_v28 = vmul.f32 %v1087_v25, %v480_v20 }
 0x106   :  { %v742_v22 = vmax.f32 %v694_v12, 0.0  ;;  %769 = vst.msk [vmem:[%s1531_s5 + $0x98] sm:$0xff] %vm749_vm1, %v720_v15  ;;  %v579_v31 = vadd.f32 %v1092_v27, %v524_v17  ;;  %v603_v32 = vadd.f32 %v1092_v27, %v548_v18  ;;  %v525_v35 = vmul.f32 %v903_v29, %v1087_v25 }
 0x107   :  { %793 = vst.msk [vmem:[%s1531_s5 + $0x158] sm:$0xff] %vm749_vm1, %v744_v16  ;;  %v549_v36 = vmul.f32 %v927_v30, %v1087_v25  ;;  %767 = vst.msk [vmem:[%s1531_s5 + $0x88] sm:$0xff] %vm749_vm1, %v718_v21  ;;  %v577_v39 = vadd.f32 %v1092_v27, %v522_v26  ;;  %v601_v40 = vadd.f32 %v1092_v27, %v546_v28 }
 0x108   :  { %791 = vst.msk [vmem:[%s1531_s5 + $0x148] sm:$0xff] %vm749_vm1, %v742_v22  ;;  %v523_v43 = vmul.f32 %v1087_v25, %v387_v37  ;;  %v547_v44 = vmul.f32 %v1087_v25, %v483_v38  ;;  %v675_v45 = vadd.f32 %v627_v23, %v579_v31  ;;  %v699_v46 = vadd.f32 %v651_v24, %v603_v32 }
 0x109   :  { %v580_v47 = vadd.f32 %v1092_v27, %v525_v35  ;;  %v604_v48 = vadd.f32 %v1092_v27, %v549_v36  ;;  %v673_v51 = vadd.f32 %v625_v33, %v577_v39  ;;  %v697_v52 = vadd.f32 %v649_v34, %v601_v40 }
 0x10a   :  { %v578_v53 = vadd.f32 %v1092_v27, %v523_v43  ;;  %v602_v25 = vadd.f32 %v1092_v27, %v547_v44  ;;  %v723_v54 = vmax.f32 %v675_v45, 0.0  ;;  %v747_v55 = vmax.f32 %v699_v46, 0.0 }
 0x10b   :  { %v676_v56 = vadd.f32 %v628_v41, %v580_v47  ;;  %v700_v57 = vadd.f32 %v652_v42, %v604_v48  ;;  %v721_v58 = vmax.f32 %v673_v51, 0.0  ;;  %v745_v59 = vmax.f32 %v697_v52, 0.0 }
 0x10c   :  { %v674_v60 = vadd.f32 %v626_v49, %v578_v53  ;;  %v698_v61 = vadd.f32 %v650_v50, %v602_v25  ;;  %772 = vst.msk [vmem:[%s1531_s5 + $0xb0] sm:$0xff] %vm749_vm1, %v723_v54  ;;  %796 = vst.msk [vmem:[%s1531_s5 + $0x170] sm:$0xff] %vm749_vm1, %v747_v55 }
 0x10d   :  { %v724_v62 = vmax.f32 %v676_v56, 0.0  ;;  %v748_v27 = vmax.f32 %v700_v57, 0.0  ;;  %770 = vst.msk [vmem:[%s1531_s5 + $0xa0] sm:$0xff] %vm749_vm1, %v721_v58  ;;  %794 = vst.msk [vmem:[%s1531_s5 + $0x160] sm:$0xff] %vm749_vm1, %v745_v59 }
 0x10e   :  { %v722_v63 = vmax.f32 %v674_v60, 0.0  ;;  %v746_v0 = vmax.f32 %v698_v61, 0.0 }
 0x10f   :  { %773 = vst.msk [vmem:[%s1531_s5 + $0xb8] sm:$0xff] %vm749_vm1, %v724_v62  ;;  %797 = vst.msk [vmem:[%s1531_s5 + $0x178] sm:$0xff] %vm749_vm1, %v748_v27 }
 0x110   :  { %771 = vst.msk [vmem:[%s1531_s5 + $0xa8] sm:$0xff] %vm749_vm1, %v722_v63  ;;  %795 = vst.msk [vmem:[%s1531_s5 + $0x168] sm:$0xff] %vm749_vm1, %v746_v0 }

// kernel: basicsknet_forward.22
= control target key start
LH: loop header
LB: loop body
LE: loop exit
PB: predicated region body
PF: predicated region fallthrough
CT: control target
= control target key end

     0   :  { %vm260_vm0 = vcmask 1040384   ;;  %vm187_vm1 = vcmask 15360   ;;  %vm599_vm2 = vcmask 261120   ;;  %s1227_s1 = inlined_call_operand.vmem [shape: bf16[2,32], index: 1, kind: input, shape index: {}]   ;;  %s1228_s0 = inlined_call_operand.vmem [shape: bf16[384,2], index: 0, kind: input, shape index: {}]   ;;  %s1229_s2 = inlined_call_operand.vmem [shape: f32[1,32], index: 2, kind: input, shape index: {}]   ;;  %s1230_s3 = inlined_call_operand.vmem [shape: f32[1,32], index: 3, kind: input, shape index: {}]   ;;  %s1231_s4 = inlined_call_operand.vmem [shape: f32[384,32], index: 4, kind: output, shape index: {}]  }
   0x1   :  { %v66_v0 = vld [vmem:[%s1227_s1] sm:$0x1]  ;;  %v783_v4 = vld [vmem:[%s1228_s0 + $0x8] sm:$0xff]   ;;  %v785_v6 = vld [vmem:[%s1228_s0 + $0x10] sm:$0xff]  }
   0x2   :  { %779 = vmatprep.subr.msk.bf16.mxu0 %vm260_vm0, %v66_v0  ;;  %780 = vmatprep.subr.msk.bf16.mxu1 %vm260_vm0, %v66_v0  ;;  %v262_v1 = vsel %vm260_vm0, %v66_v0, 0  ;;  %v781_v2 = vld [vmem:[%s1228_s0] sm:$0xff]   ;;  %v784_v5 = vld [vmem:[%s1228_s0 + $0x68] sm:$0xff]   ;;  %v786_v7 = vld [vmem:[%s1228_s0 + $0x70] sm:$0xff]  }
   0x3   :  { %728 = vmatpush3.bf16.msra.mxu0 %v262_v1  ;;  %778 = vmatpush3.bf16.msra.mxu1 %v262_v1  ;;  %v782_v3 = vld [vmem:[%s1228_s0 + $0x60] sm:$0xff]   ;;  %v787_v8 = vld [vmem:[%s1228_s0 + $0x18] sm:$0xff]   ;;  %v791_v12 = vld [vmem:[%s1228_s0 + $0x28] sm:$0xff]  }
   0x4   :  { %729 = vmatprep.mubr.msk.bf16.mxu0 %vm187_vm1, %v781_v2  ;;  %753 = vmatprep.mubr.msk.bf16.mxu1 %vm187_vm1, %v782_v3  ;;  %v788_v9 = vld [vmem:[%s1228_s0 + $0x78] sm:$0xff]   ;;  %v789_v10 = vld [vmem:[%s1228_s0 + $0x20] sm:$0xff]   ;;  %v792_v13 = vld [vmem:[%s1228_s0 + $0x88] sm:$0xff]  }
   0x5   :  { %v790_v11 = vld [vmem:[%s1228_s0 + $0x80] sm:$0xff]   ;;  %v793_v14 = vld [vmem:[%s1228_s0 + $0x30] sm:$0xff]   ;;  %v795_v16 = vld [vmem:[%s1228_s0 + $0x38] sm:$0xff]  }
   0x6   :  { %730 = vmatmul.mubr.msk.bf16.vlgmr.msra.gmra.mrb[0].mxu0 %vm187_vm1, %v783_v4  ;;  %754 = vmatmul.mubr.msk.bf16.vlgmr.msra.gmra.mrb[0].mxu1 %vm187_vm1, %v784_v5  ;;  %v794_v15 = vld [vmem:[%s1228_s0 + $0x90] sm:$0xff]   ;;  %v796_v17 = vld [vmem:[%s1228_s0 + $0x98] sm:$0xff]   ;;  %v797_v18 = vld [vmem:[%s1228_s0 + $0x40] sm:$0xff]  }
   0x7   :  { %733 = vmatprep.mubr.msk.bf16.mxu0 %vm187_vm1, %v785_v6  ;;  %757 = vmatprep.mubr.msk.bf16.mxu1 %vm187_vm1, %v786_v7  ;;  %v798_v19 = vld [vmem:[%s1228_s0 + $0xa0] sm:$0xff]   ;;  %v799_v20 = vld [vmem:[%s1228_s0 + $0x48] sm:$0xff]   ;;  %v801_v22 = vld [vmem:[%s1228_s0 + $0x50] sm:$0xff]  }
   0x8   :  { %v800_v21 = vld [vmem:[%s1228_s0 + $0xa8] sm:$0xff]   ;;  %v802_v23 = vld [vmem:[%s1228_s0 + $0xb0] sm:$0xff]   ;;  %v803_v24 = vld [vmem:[%s1228_s0 + $0x58] sm:$0xff]  }
   0x9   :  { %v804_v25 = vld [vmem:[%s1228_s0 + $0xb8] sm:$0xff]   ;;  %v932_v26 = vld [vmem:[%s1229_s2] ss:$0 sm:$0xff] }
   0xa   :  { %v937_v28 = vld [vmem:[%s1230_s3] ss:$0 sm:$0xff] }
   0xe   :  { %734 = vmatmul.mubr.msk.bf16.gmra.mrb[4].mxu0 %vm187_vm1, %v787_v8  ;;  %758 = vmatmul.mubr.msk.bf16.gmra.mrb[4].mxu1 %vm187_vm1, %v788_v9 }
   0xf   :  { %737 = vmatprep.mubr.msk.bf16.mxu0 %vm187_vm1, %v789_v10  ;;  %761 = vmatprep.mubr.msk.bf16.mxu1 %vm187_vm1, %v790_v11 }
  0x16   :  { %738 = vmatmul.mubr.msk.bf16.gmra.mrb[8].mxu0 %vm187_vm1, %v791_v12  ;;  %762 = vmatmul.mubr.msk.bf16.gmra.mrb[8].mxu1 %vm187_vm1, %v792_v13 }
  0x17   :  { %741 = vmatprep.mubr.msk.bf16.mxu0 %vm187_vm1, %v793_v14  ;;  %765 = vmatprep.mubr.msk.bf16.mxu1 %vm187_vm1, %v794_v15 }
  0x1e   :  { %742 = vmatmul.mubr.msk.bf16.gmra.mrb[12].mxu0 %vm187_vm1, %v795_v16  ;;  %766 = vmatmul.mubr.msk.bf16.gmra.mrb[12].mxu1 %vm187_vm1, %v796_v17 }
  0x1f   :  { %745 = vmatprep.mubr.msk.bf16.mxu0 %vm187_vm1, %v797_v18  ;;  %769 = vmatprep.mubr.msk.bf16.mxu1 %vm187_vm1, %v798_v19 }
  0x26   :  { %746 = vmatmul.mubr.msk.bf16.gmra.mrb[16].mxu0 %vm187_vm1, %v799_v20  ;;  %770 = vmatmul.mubr.msk.bf16.gmra.mrb[16].mxu1 %vm187_vm1, %v800_v21 }
  0x27   :  { %749 = vmatprep.mubr.msk.bf16.mxu0 %vm187_vm1, %v801_v22  ;;  %773 = vmatprep.mubr.msk.bf16.mxu1 %vm187_vm1, %v802_v23 }
  0x2e   :  { %750 = vmatmul.mubr.msk.bf16.gmra.mrb[20].mxu0 %vm187_vm1, %v803_v24  ;;  %774 = vmatmul.mubr.msk.bf16.gmra.mrb[20].mxu1 %vm187_vm1, %v804_v25 }
  0xd9   :  { %v731_v27 = vpop.f32.mrb[0].mxu0  ;;  %v755_v30 = vpop.f32.mrb[0].mxu1 }
  0xda   :  { %v498_v29 = vmul.f32 %v731_v27, %v932_v26  ;;  %v298_v31 = vpop.f32.mrb[1].mxu0  ;;  %v522_v32 = vmul.f32 %v755_v30, %v932_v26  ;;  %v394_v34 = vpop.f32.mrb[1].mxu1 }
  0xdb   :  { %v496_v33 = vmul.f32 %v932_v26, %v298_v31  ;;  %v732_v35 = vpop.f32.mrb[2].mxu0  ;;  %v520_v37 = vmul.f32 %v932_v26, %v394_v34  ;;  %v756_v39 = vpop.f32.mrb[2].mxu1 }
  0xdc   :  { %v553_v36 = vadd.f32 %v937_v28, %v498_v29  ;;  %v499_v38 = vmul.f32 %v732_v35, %v932_v26  ;;  %v301_v40 = vpop.f32.mrb[3].mxu0  ;;  %v577_v41 = vadd.f32 %v937_v28, %v522_v32  ;;  %v523_v43 = vmul.f32 %v756_v39, %v932_v26  ;;  %v397_v45 = vpop.f32.mrb[3].mxu1 }
  0xdd   :  { %v551_v42 = vadd.f32 %v937_v28, %v496_v33  ;;  %v497_v44 = vmul.f32 %v932_v26, %v301_v40  ;;  %v575_v46 = vadd.f32 %v937_v28, %v520_v37  ;;  %v521_v48 = vmul.f32 %v932_v26, %v397_v45 }
  0xde   :  { %602 = vst.msk [vmem:[%s1231_s4 + $0x10] sm:$0xff] %vm599_vm2, %v553_v36  ;;  %v554_v47 = vadd.f32 %v937_v28, %v499_v38  ;;  %626 = vst.msk [vmem:[%s1231_s4 + $0xd0] sm:$0xff] %vm599_vm2, %v577_v41  ;;  %v578_v49 = vadd.f32 %v937_v28, %v523_v43 }
  0xdf   :  { %600 = vst.msk [vmem:[%s1231_s4] sm:$0xff] %vm599_vm2, %v551_v42  ;;  %v552_v50 = vadd.f32 %v937_v28, %v497_v44  ;;  %624 = vst.msk [vmem:[%s1231_s4 + $0xc0] sm:$0xff] %vm599_vm2, %v575_v46  ;;  %v576_v51 = vadd.f32 %v937_v28, %v521_v48 }
  0xe0   :  { %603 = vst.msk [vmem:[%s1231_s4 + $0x18] sm:$0xff] %vm599_vm2, %v554_v47  ;;  %627 = vst.msk [vmem:[%s1231_s4 + $0xd8] sm:$0xff] %vm599_vm2, %v578_v49 }
  0xe1   :  { %601 = vst.msk [vmem:[%s1231_s4 + $0x8] sm:$0xff] %vm599_vm2, %v552_v50  ;;  %v735_v52 = vpop.f32.mrb[4].mxu0  ;;  %625 = vst.msk [vmem:[%s1231_s4 + $0xc8] sm:$0xff] %vm599_vm2, %v576_v51  ;;  %v759_v54 = vpop.f32.mrb[4].mxu1 }
  0xe2   :  { %v502_v53 = vmul.f32 %v735_v52, %v932_v26  ;;  %v314_v55 = vpop.f32.mrb[5].mxu0  ;;  %v526_v56 = vmul.f32 %v759_v54, %v932_v26  ;;  %v410_v58 = vpop.f32.mrb[5].mxu1 }
  0xe3   :  { %v500_v57 = vmul.f32 %v932_v26, %v314_v55  ;;  %v736_v59 = vpop.f32.mrb[6].mxu0  ;;  %v524_v61 = vmul.f32 %v932_v26, %v410_v58  ;;  %v760_v63 = vpop.f32.mrb[6].mxu1 }
  0xe4   :  { %v557_v60 = vadd.f32 %v937_v28, %v502_v53  ;;  %v503_v62 = vmul.f32 %v736_v59, %v932_v26  ;;  %v317_v0 = vpop.f32.mrb[7].mxu0  ;;  %v581_v1 = vadd.f32 %v937_v28, %v526_v56  ;;  %v527_v3 = vmul.f32 %v760_v63, %v932_v26  ;;  %v413_v5 = vpop.f32.mrb[7].mxu1 }
  0xe5   :  { %v555_v2 = vadd.f32 %v937_v28, %v500_v57  ;;  %v501_v4 = vmul.f32 %v932_v26, %v317_v0  ;;  %v579_v6 = vadd.f32 %v937_v28, %v524_v61  ;;  %v525_v8 = vmul.f32 %v932_v26, %v413_v5 }
  0xe6   :  { %606 = vst.msk [vmem:[%s1231_s4 + $0x30] sm:$0xff] %vm599_vm2, %v557_v60  ;;  %v558_v7 = vadd.f32 %v937_v28, %v503_v62  ;;  %630 = vst.msk [vmem:[%s1231_s4 + $0xf0] sm:$0xff] %vm599_vm2, %v581_v1  ;;  %v582_v9 = vadd.f32 %v937_v28, %v527_v3 }
  0xe7   :  { %604 = vst.msk [vmem:[%s1231_s4 + $0x20] sm:$0xff] %vm599_vm2, %v555_v2  ;;  %v556_v10 = vadd.f32 %v937_v28, %v501_v4  ;;  %628 = vst.msk [vmem:[%s1231_s4 + $0xe0] sm:$0xff] %vm599_vm2, %v579_v6  ;;  %v580_v11 = vadd.f32 %v937_v28, %v525_v8 }
  0xe8   :  { %607 = vst.msk [vmem:[%s1231_s4 + $0x38] sm:$0xff] %vm599_vm2, %v558_v7  ;;  %631 = vst.msk [vmem:[%s1231_s4 + $0xf8] sm:$0xff] %vm599_vm2, %v582_v9 }
  0xe9   :  { %605 = vst.msk [vmem:[%s1231_s4 + $0x28] sm:$0xff] %vm599_vm2, %v556_v10  ;;  %v739_v12 = vpop.f32.mrb[8].mxu0  ;;  %629 = vst.msk [vmem:[%s1231_s4 + $0xe8] sm:$0xff] %vm599_vm2, %v580_v11  ;;  %v763_v14 = vpop.f32.mrb[8].mxu1 }
  0xea   :  { %v506_v13 = vmul.f32 %v739_v12, %v932_v26  ;;  %v330_v15 = vpop.f32.mrb[9].mxu0  ;;  %v530_v16 = vmul.f32 %v763_v14, %v932_v26  ;;  %v426_v18 = vpop.f32.mrb[9].mxu1 }
  0xeb   :  { %v504_v17 = vmul.f32 %v932_v26, %v330_v15  ;;  %v740_v19 = vpop.f32.mrb[10].mxu0  ;;  %v528_v21 = vmul.f32 %v932_v26, %v426_v18  ;;  %v764_v23 = vpop.f32.mrb[10].mxu1 }
  0xec   :  { %v561_v20 = vadd.f32 %v937_v28, %v506_v13  ;;  %v507_v22 = vmul.f32 %v740_v19, %v932_v26  ;;  %v333_v24 = vpop.f32.mrb[11].mxu0  ;;  %v585_v25 = vadd.f32 %v937_v28, %v530_v16  ;;  %v531_v29 = vmul.f32 %v764_v23, %v932_v26  ;;  %v429_v31 = vpop.f32.mrb[11].mxu1 }
  0xed   :  { %v559_v27 = vadd.f32 %v937_v28, %v504_v17  ;;  %v505_v30 = vmul.f32 %v932_v26, %v333_v24  ;;  %v583_v32 = vadd.f32 %v937_v28, %v528_v21  ;;  %v529_v34 = vmul.f32 %v932_v26, %v429_v31 }
  0xee   :  { %610 = vst.msk [vmem:[%s1231_s4 + $0x50] sm:$0xff] %vm599_vm2, %v561_v20  ;;  %v562_v33 = vadd.f32 %v937_v28, %v507_v22  ;;  %634 = vst.msk [vmem:[%s1231_s4 + $0x110] sm:$0xff] %vm599_vm2, %v585_v25  ;;  %v586_v35 = vadd.f32 %v937_v28, %v531_v29 }
  0xef   :  { %608 = vst.msk [vmem:[%s1231_s4 + $0x40] sm:$0xff] %vm599_vm2, %v559_v27  ;;  %v560_v36 = vadd.f32 %v937_v28, %v505_v30  ;;  %632 = vst.msk [vmem:[%s1231_s4 + $0x100] sm:$0xff] %vm599_vm2, %v583_v32  ;;  %v584_v37 = vadd.f32 %v937_v28, %v529_v34 }
  0xf0   :  { %611 = vst.msk [vmem:[%s1231_s4 + $0x58] sm:$0xff] %vm599_vm2, %v562_v33  ;;  %635 = vst.msk [vmem:[%s1231_s4 + $0x118] sm:$0xff] %vm599_vm2, %v586_v35 }
  0xf1   :  { %609 = vst.msk [vmem:[%s1231_s4 + $0x48] sm:$0xff] %vm599_vm2, %v560_v36  ;;  %v743_v38 = vpop.f32.mrb[12].mxu0  ;;  %633 = vst.msk [vmem:[%s1231_s4 + $0x108] sm:$0xff] %vm599_vm2, %v584_v37  ;;  %v767_v40 = vpop.f32.mrb[12].mxu1 }
  0xf2   :  { %v510_v39 = vmul.f32 %v743_v38, %v932_v26  ;;  %v346_v41 = vpop.f32.mrb[13].mxu0  ;;  %v534_v42 = vmul.f32 %v767_v40, %v932_v26  ;;  %v442_v44 = vpop.f32.mrb[13].mxu1 }
  0xf3   :  { %v508_v43 = vmul.f32 %v932_v26, %v346_v41  ;;  %v744_v45 = vpop.f32.mrb[14].mxu0  ;;  %v532_v47 = vmul.f32 %v932_v26, %v442_v44  ;;  %v768_v49 = vpop.f32.mrb[14].mxu1 }
  0xf4   :  { %v565_v46 = vadd.f32 %v937_v28, %v510_v39  ;;  %v511_v48 = vmul.f32 %v744_v45, %v932_v26  ;;  %v349_v50 = vpop.f32.mrb[15].mxu0  ;;  %v589_v51 = vadd.f32 %v937_v28, %v534_v42  ;;  %v535_v53 = vmul.f32 %v768_v49, %v932_v26  ;;  %v445_v55 = vpop.f32.mrb[15].mxu1 }
  0xf5   :  { %v563_v52 = vadd.f32 %v937_v28, %v508_v43  ;;  %v509_v54 = vmul.f32 %v932_v26, %v349_v50  ;;  %v587_v56 = vadd.f32 %v937_v28, %v532_v47  ;;  %v533_v58 = vmul.f32 %v932_v26, %v445_v55 }
  0xf6   :  { %614 = vst.msk [vmem:[%s1231_s4 + $0x70] sm:$0xff] %vm599_vm2, %v565_v46  ;;  %v566_v57 = vadd.f32 %v937_v28, %v511_v48  ;;  %638 = vst.msk [vmem:[%s1231_s4 + $0x130] sm:$0xff] %vm599_vm2, %v589_v51  ;;  %v590_v59 = vadd.f32 %v937_v28, %v535_v53 }
  0xf7   :  { %612 = vst.msk [vmem:[%s1231_s4 + $0x60] sm:$0xff] %vm599_vm2, %v563_v52  ;;  %v564_v60 = vadd.f32 %v937_v28, %v509_v54  ;;  %636 = vst.msk [vmem:[%s1231_s4 + $0x120] sm:$0xff] %vm599_vm2, %v587_v56  ;;  %v588_v61 = vadd.f32 %v937_v28, %v533_v58 }
  0xf8   :  { %615 = vst.msk [vmem:[%s1231_s4 + $0x78] sm:$0xff] %vm599_vm2, %v566_v57  ;;  %639 = vst.msk [vmem:[%s1231_s4 + $0x138] sm:$0xff] %vm599_vm2, %v590_v59 }
  0xf9   :  { %613 = vst.msk [vmem:[%s1231_s4 + $0x68] sm:$0xff] %vm599_vm2, %v564_v60  ;;  %v747_v62 = vpop.f32.mrb[16].mxu0  ;;  %637 = vst.msk [vmem:[%s1231_s4 + $0x128] sm:$0xff] %vm599_vm2, %v588_v61  ;;  %v771_v0 = vpop.f32.mrb[16].mxu1 }
  0xfa   :  { %v514_v63 = vmul.f32 %v747_v62, %v932_v26  ;;  %v362_v1 = vpop.f32.mrb[17].mxu0  ;;  %v538_v2 = vmul.f32 %v771_v0, %v932_v26  ;;  %v458_v4 = vpop.f32.mrb[17].mxu1 }
  0xfb   :  { %v512_v3 = vmul.f32 %v932_v26, %v362_v1  ;;  %v748_v5 = vpop.f32.mrb[18].mxu0  ;;  %v536_v7 = vmul.f32 %v932_v26, %v458_v4  ;;  %v772_v9 = vpop.f32.mrb[18].mxu1 }
  0xfc   :  { %v569_v6 = vadd.f32 %v937_v28, %v514_v63  ;;  %v515_v8 = vmul.f32 %v748_v5, %v932_v26  ;;  %v365_v10 = vpop.f32.mrb[19].mxu0  ;;  %v593_v11 = vadd.f32 %v937_v28, %v538_v2  ;;  %v539_v13 = vmul.f32 %v772_v9, %v932_v26  ;;  %v461_v15 = vpop.f32.mrb[19].mxu1 }
  0xfd   :  { %v567_v12 = vadd.f32 %v937_v28, %v512_v3  ;;  %v513_v14 = vmul.f32 %v932_v26, %v365_v10  ;;  %v591_v16 = vadd.f32 %v937_v28, %v536_v7  ;;  %v537_v18 = vmul.f32 %v932_v26, %v461_v15 }
  0xfe   :  { %618 = vst.msk [vmem:[%s1231_s4 + $0x90] sm:$0xff] %vm599_vm2, %v569_v6  ;;  %v570_v17 = vadd.f32 %v937_v28, %v515_v8  ;;  %642 = vst.msk [vmem:[%s1231_s4 + $0x150] sm:$0xff] %vm599_vm2, %v593_v11  ;;  %v594_v19 = vadd.f32 %v937_v28, %v539_v13 }
  0xff   :  { %616 = vst.msk [vmem:[%s1231_s4 + $0x80] sm:$0xff] %vm599_vm2, %v567_v12  ;;  %v568_v20 = vadd.f32 %v937_v28, %v513_v14  ;;  %640 = vst.msk [vmem:[%s1231_s4 + $0x140] sm:$0xff] %vm599_vm2, %v591_v16  ;;  %v592_v21 = vadd.f32 %v937_v28, %v537_v18 }
 0x100   :  { %619 = vst.msk [vmem:[%s1231_s4 + $0x98] sm:$0xff] %vm599_vm2, %v570_v17  ;;  %643 = vst.msk [vmem:[%s1231_s4 + $0x158] sm:$0xff] %vm599_vm2, %v594_v19 }
 0x101   :  { %617 = vst.msk [vmem:[%s1231_s4 + $0x88] sm:$0xff] %vm599_vm2, %v568_v20  ;;  %v751_v22 = vpop.f32.mrb[20].mxu0  ;;  %641 = vst.msk [vmem:[%s1231_s4 + $0x148] sm:$0xff] %vm599_vm2, %v592_v21  ;;  %v775_v24 = vpop.f32.mrb[20].mxu1 }
 0x102   :  { %v518_v23 = vmul.f32 %v751_v22, %v932_v26  ;;  %v378_v25 = vpop.f32.mrb[21].mxu0  ;;  %v542_v27 = vmul.f32 %v775_v24, %v932_v26  ;;  %v474_v30 = vpop.f32.mrb[21].mxu1 }
 0x103   :  { %v516_v29 = vmul.f32 %v932_v26, %v378_v25  ;;  %v752_v31 = vpop.f32.mrb[22].mxu0  ;;  %v540_v33 = vmul.f32 %v932_v26, %v474_v30  ;;  %v776_v35 = vpop.f32.mrb[22].mxu1 }
 0x104   :  { %v573_v32 = vadd.f32 %v937_v28, %v518_v23  ;;  %v519_v34 = vmul.f32 %v752_v31, %v932_v26  ;;  %v381_v36 = vpop.f32.mrb[23].mxu0  ;;  %v597_v37 = vadd.f32 %v937_v28, %v542_v27  ;;  %v543_v39 = vmul.f32 %v776_v35, %v932_v26  ;;  %v477_v41 = vpop.f32.mrb[23].mxu1 }
 0x105   :  { %v571_v38 = vadd.f32 %v937_v28, %v516_v29  ;;  %v517_v40 = vmul.f32 %v932_v26, %v381_v36  ;;  %v595_v42 = vadd.f32 %v937_v28, %v540_v33  ;;  %v541_v44 = vmul.f32 %v932_v26, %v477_v41 }
 0x106   :  { %622 = vst.msk [vmem:[%s1231_s4 + $0xb0] sm:$0xff] %vm599_vm2, %v573_v32  ;;  %v574_v43 = vadd.f32 %v937_v28, %v519_v34  ;;  %646 = vst.msk [vmem:[%s1231_s4 + $0x170] sm:$0xff] %vm599_vm2, %v597_v37  ;;  %v598_v45 = vadd.f32 %v937_v28, %v543_v39 }
 0x107   :  { %620 = vst.msk [vmem:[%s1231_s4 + $0xa0] sm:$0xff] %vm599_vm2, %v571_v38  ;;  %v572_v46 = vadd.f32 %v937_v28, %v517_v40  ;;  %644 = vst.msk [vmem:[%s1231_s4 + $0x160] sm:$0xff] %vm599_vm2, %v595_v42  ;;  %v596_v26 = vadd.f32 %v937_v28, %v541_v44 }
 0x108   :  { %623 = vst.msk [vmem:[%s1231_s4 + $0xb8] sm:$0xff] %vm599_vm2, %v574_v43  ;;  %647 = vst.msk [vmem:[%s1231_s4 + $0x178] sm:$0xff] %vm599_vm2, %v598_v45 }
 0x109   :  { %621 = vst.msk [vmem:[%s1231_s4 + $0xa8] sm:$0xff] %vm599_vm2, %v572_v46  ;;  %645 = vst.msk [vmem:[%s1231_s4 + $0x168] sm:$0xff] %vm599_vm2, %v596_v26 }

// kernel: basicsknet_forward.24
= control target key start
LH: loop header
LB: loop body
LE: loop exit
PB: predicated region body
PF: predicated region fallthrough
CT: control target
= control target key end

     0   :  { %vm202_vm0 = vcmask 261120   ;;  %vm658_vm1 = vcmask 130048   ;;  %s1296_s1 = inlined_call_operand.vmem [shape: bf16[32,16], index: 1, kind: input, shape index: {}]   ;;  %s1297_s0 = inlined_call_operand.vmem [shape: bf16[384,32], index: 0, kind: input, shape index: {}]   ;;  %s1298_s2 = inlined_call_operand.vmem [shape: f32[1,16], index: 2, kind: input, shape index: {}]   ;;  %s1299_s3 = inlined_call_operand.vmem [shape: f32[1,16], index: 3, kind: input, shape index: {}]   ;;  %s1300_s4 = inlined_call_operand.vmem [shape: f32[384,16], index: 4, kind: output, shape index: {}]  }
   0x1   :  { %v845_v0 = vld [vmem:[%s1296_s1] sm:$0xff]   ;;  %v846_v1 = vld [vmem:[%s1296_s1 + $0x8] sm:$0xff]   ;;  %v851_v6 = vld [vmem:[%s1297_s0 + $0x10] sm:$0xff]  }
   0x2   :  { %789 = vmatprep.subr.bf16.mxu0 %v845_v0  ;;  %841 = vmatprep.subr.bf16.mxu1 %v845_v0  ;;  %v847_v2 = vld [vmem:[%s1297_s0] sm:$0xff]   ;;  %v849_v4 = vld [vmem:[%s1297_s0 + $0x8] sm:$0xff]   ;;  %v852_v7 = vld [vmem:[%s1297_s0 + $0x70] sm:$0xff]  }
   0x3   :  { %790 = vmatpush3.bf16.msra.mxu0 %v845_v0  ;;  %843 = vmatpush3.bf16.msra.mxu1 %v845_v0  ;;  %v848_v3 = vld [vmem:[%s1297_s0 + $0x60] sm:$0xff]   ;;  %v850_v5 = vld [vmem:[%s1297_s0 + $0x68] sm:$0xff]   ;;  %v853_v8 = vld [vmem:[%s1297_s0 + $0x18] sm:$0xff]  }
   0x4   :  { %791 = vmatprep.subr.bf16.mxu0 %v846_v1  ;;  %842 = vmatprep.subr.bf16.mxu1 %v846_v1  ;;  %v854_v9 = vld [vmem:[%s1297_s0 + $0x78] sm:$0xff]   ;;  %v855_v10 = vld [vmem:[%s1297_s0 + $0x20] sm:$0xff]   ;;  %v857_v12 = vld [vmem:[%s1297_s0 + $0x28] sm:$0xff]  }
   0x5   :  { %793 = vmatprep.mubr.msk.bf16.mxu0 %vm202_vm0, %v847_v2  ;;  %817 = vmatprep.mubr.msk.bf16.mxu1 %vm202_vm0, %v848_v3  ;;  %v856_v11 = vld [vmem:[%s1297_s0 + $0x80] sm:$0xff]   ;;  %v858_v13 = vld [vmem:[%s1297_s0 + $0x88] sm:$0xff]   ;;  %v859_v14 = vld [vmem:[%s1297_s0 + $0x30] sm:$0xff]  }
   0x6   :  { %v860_v15 = vld [vmem:[%s1297_s0 + $0x90] sm:$0xff]   ;;  %v861_v16 = vld [vmem:[%s1297_s0 + $0x38] sm:$0xff]   ;;  %v863_v18 = vld [vmem:[%s1297_s0 + $0x40] sm:$0xff]  }
   0x7   :  { %792 = vmatpush3.bf16.msra.mxu0 %v846_v1  ;;  %844 = vmatpush3.bf16.msra.mxu1 %v846_v1  ;;  %v862_v17 = vld [vmem:[%s1297_s0 + $0x98] sm:$0xff]   ;;  %v864_v19 = vld [vmem:[%s1297_s0 + $0xa0] sm:$0xff]   ;;  %v865_v20 = vld [vmem:[%s1297_s0 + $0x48] sm:$0xff]  }
   0x8   :  { %v866_v21 = vld [vmem:[%s1297_s0 + $0xa8] sm:$0xff]   ;;  %v867_v22 = vld [vmem:[%s1297_s0 + $0x50] sm:$0xff]   ;;  %v869_v24 = vld [vmem:[%s1297_s0 + $0x58] sm:$0xff]  }
   0x9   :  { %v868_v23 = vld [vmem:[%s1297_s0 + $0xb0] sm:$0xff]   ;;  %v870_v25 = vld [vmem:[%s1297_s0 + $0xb8] sm:$0xff]   ;;  %v1001_v26 = vld [vmem:[%s1298_s2] ss:$0 sm:$0xff] }
   0xa   :  { %794 = vmatmul.mubr.msk.bf16.vlgmr.msra.gmra.mrb[0].mxu0 %vm202_vm0, %v849_v4  ;;  %818 = vmatmul.mubr.msk.bf16.vlgmr.msra.gmra.mrb[0].mxu1 %vm202_vm0, %v850_v5  ;;  %v1006_v28 = vld [vmem:[%s1299_s3] ss:$0 sm:$0xff] }
   0xb   :  { %797 = vmatprep.mubr.msk.bf16.mxu0 %vm202_vm0, %v851_v6  ;;  %821 = vmatprep.mubr.msk.bf16.mxu1 %vm202_vm0, %v852_v7 }
  0x12   :  { %798 = vmatmul.mubr.msk.bf16.gmra.mrb[4].mxu0 %vm202_vm0, %v853_v8  ;;  %822 = vmatmul.mubr.msk.bf16.gmra.mrb[4].mxu1 %vm202_vm0, %v854_v9 }
  0x13   :  { %801 = vmatprep.mubr.msk.bf16.mxu0 %vm202_vm0, %v855_v10  ;;  %825 = vmatprep.mubr.msk.bf16.mxu1 %vm202_vm0, %v856_v11 }
  0x1a   :  { %802 = vmatmul.mubr.msk.bf16.gmra.mrb[8].mxu0 %vm202_vm0, %v857_v12  ;;  %826 = vmatmul.mubr.msk.bf16.gmra.mrb[8].mxu1 %vm202_vm0, %v858_v13 }
  0x1b   :  { %805 = vmatprep.mubr.msk.bf16.mxu0 %vm202_vm0, %v859_v14  ;;  %829 = vmatprep.mubr.msk.bf16.mxu1 %vm202_vm0, %v860_v15 }
  0x22   :  { %806 = vmatmul.mubr.msk.bf16.gmra.mrb[12].mxu0 %vm202_vm0, %v861_v16  ;;  %830 = vmatmul.mubr.msk.bf16.gmra.mrb[12].mxu1 %vm202_vm0, %v862_v17 }
  0x23   :  { %809 = vmatprep.mubr.msk.bf16.mxu0 %vm202_vm0, %v863_v18  ;;  %833 = vmatprep.mubr.msk.bf16.mxu1 %vm202_vm0, %v864_v19 }
  0x2a   :  { %810 = vmatmul.mubr.msk.bf16.gmra.mrb[16].mxu0 %vm202_vm0, %v865_v20  ;;  %834 = vmatmul.mubr.msk.bf16.gmra.mrb[16].mxu1 %vm202_vm0, %v866_v21 }
  0x2b   :  { %813 = vmatprep.mubr.msk.bf16.mxu0 %vm202_vm0, %v867_v22  ;;  %837 = vmatprep.mubr.msk.bf16.mxu1 %vm202_vm0, %v868_v23 }
  0x32   :  { %814 = vmatmul.mubr.msk.bf16.gmra.mrb[20].mxu0 %vm202_vm0, %v869_v24  ;;  %838 = vmatmul.mubr.msk.bf16.gmra.mrb[20].mxu1 %vm202_vm0, %v870_v25 }
  0xdd   :  { %v795_v27 = vpop.f32.mrb[0].mxu0  ;;  %v819_v29 = vpop.f32.mrb[0].mxu1 }
  0xde   :  { %v509_v30 = vmul.f32 %v795_v27, %v1001_v26  ;;  %v533_v31 = vmul.f32 %v819_v29, %v1001_v26  ;;  %v309_v32 = vpop.f32.mrb[1].mxu0  ;;  %v405_v33 = vpop.f32.mrb[1].mxu1 }
  0xdf   :  { %v507_v34 = vmul.f32 %v1001_v26, %v309_v32  ;;  %v531_v35 = vmul.f32 %v1001_v26, %v405_v33  ;;  %v796_v36 = vpop.f32.mrb[2].mxu0  ;;  %v820_v37 = vpop.f32.mrb[2].mxu1 }
  0xe0   :  { %v564_v38 = vadd.f32 %v1006_v28, %v509_v30  ;;  %v588_v39 = vadd.f32 %v1006_v28, %v533_v31  ;;  %v510_v40 = vmul.f32 %v796_v36, %v1001_v26  ;;  %v534_v41 = vmul.f32 %v820_v37, %v1001_v26  ;;  %v312_v42 = vpop.f32.mrb[3].mxu0  ;;  %v408_v43 = vpop.f32.mrb[3].mxu1 }
  0xe1   :  { %v562_v44 = vadd.f32 %v1006_v28, %v507_v34  ;;  %v586_v45 = vadd.f32 %v1006_v28, %v531_v35  ;;  %v508_v46 = vmul.f32 %v1001_v26, %v312_v42  ;;  %v532_v47 = vmul.f32 %v1001_v26, %v408_v43 }
  0xe2   :  { %v612_v48 = vmax.f32 %v564_v38, 0.0  ;;  %v636_v49 = vmax.f32 %v588_v39, 0.0  ;;  %v565_v50 = vadd.f32 %v1006_v28, %v510_v40  ;;  %v589_v51 = vadd.f32 %v1006_v28, %v534_v41 }
  0xe3   :  { %v610_v52 = vmax.f32 %v562_v44, 0.0  ;;  %v634_v53 = vmax.f32 %v586_v45, 0.0  ;;  %v563_v54 = vadd.f32 %v1006_v28, %v508_v46  ;;  %v587_v55 = vadd.f32 %v1006_v28, %v532_v47 }
  0xe4   :  { %661 = vst.msk [vmem:[%s1300_s4 + $0x10] sm:$0xff] %vm658_vm1, %v612_v48  ;;  %685 = vst.msk [vmem:[%s1300_s4 + $0xd0] sm:$0xff] %vm658_vm1, %v636_v49  ;;  %v613_v56 = vmax.f32 %v565_v50, 0.0  ;;  %v637_v57 = vmax.f32 %v589_v51, 0.0 }
  0xe5   :  { %659 = vst.msk [vmem:[%s1300_s4] sm:$0xff] %vm658_vm1, %v610_v52  ;;  %683 = vst.msk [vmem:[%s1300_s4 + $0xc0] sm:$0xff] %vm658_vm1, %v634_v53  ;;  %v611_v58 = vmax.f32 %v563_v54, 0.0  ;;  %v635_v59 = vmax.f32 %v587_v55, 0.0  ;;  %v799_v60 = vpop.f32.mrb[4].mxu0  ;;  %v823_v61 = vpop.f32.mrb[4].mxu1 }
  0xe6   :  { %662 = vst.msk [vmem:[%s1300_s4 + $0x18] sm:$0xff] %vm658_vm1, %v613_v56  ;;  %686 = vst.msk [vmem:[%s1300_s4 + $0xd8] sm:$0xff] %vm658_vm1, %v637_v57  ;;  %v513_v62 = vmul.f32 %v799_v60, %v1001_v26  ;;  %v537_v63 = vmul.f32 %v823_v61, %v1001_v26  ;;  %v325_v0 = vpop.f32.mrb[5].mxu0  ;;  %v421_v1 = vpop.f32.mrb[5].mxu1 }
  0xe7   :  { %660 = vst.msk [vmem:[%s1300_s4 + $0x8] sm:$0xff] %vm658_vm1, %v611_v58  ;;  %684 = vst.msk [vmem:[%s1300_s4 + $0xc8] sm:$0xff] %vm658_vm1, %v635_v59  ;;  %v511_v2 = vmul.f32 %v1001_v26, %v325_v0  ;;  %v535_v3 = vmul.f32 %v1001_v26, %v421_v1  ;;  %v800_v4 = vpop.f32.mrb[6].mxu0  ;;  %v824_v5 = vpop.f32.mrb[6].mxu1 }
  0xe8   :  { %v568_v6 = vadd.f32 %v1006_v28, %v513_v62  ;;  %v592_v7 = vadd.f32 %v1006_v28, %v537_v63  ;;  %v514_v8 = vmul.f32 %v800_v4, %v1001_v26  ;;  %v538_v9 = vmul.f32 %v824_v5, %v1001_v26  ;;  %v328_v10 = vpop.f32.mrb[7].mxu0  ;;  %v424_v11 = vpop.f32.mrb[7].mxu1 }
  0xe9   :  { %v566_v12 = vadd.f32 %v1006_v28, %v511_v2  ;;  %v590_v13 = vadd.f32 %v1006_v28, %v535_v3  ;;  %v512_v14 = vmul.f32 %v1001_v26, %v328_v10  ;;  %v536_v15 = vmul.f32 %v1001_v26, %v424_v11 }
  0xea   :  { %v616_v16 = vmax.f32 %v568_v6, 0.0  ;;  %v640_v17 = vmax.f32 %v592_v7, 0.0  ;;  %v569_v18 = vadd.f32 %v1006_v28, %v514_v8  ;;  %v593_v19 = vadd.f32 %v1006_v28, %v538_v9 }
  0xeb   :  { %v614_v20 = vmax.f32 %v566_v12, 0.0  ;;  %v638_v21 = vmax.f32 %v590_v13, 0.0  ;;  %v567_v22 = vadd.f32 %v1006_v28, %v512_v14  ;;  %v591_v23 = vadd.f32 %v1006_v28, %v536_v15 }
  0xec   :  { %665 = vst.msk [vmem:[%s1300_s4 + $0x30] sm:$0xff] %vm658_vm1, %v616_v16  ;;  %689 = vst.msk [vmem:[%s1300_s4 + $0xf0] sm:$0xff] %vm658_vm1, %v640_v17  ;;  %v617_v24 = vmax.f32 %v569_v18, 0.0  ;;  %v641_v25 = vmax.f32 %v593_v19, 0.0 }
  0xed   :  { %663 = vst.msk [vmem:[%s1300_s4 + $0x20] sm:$0xff] %vm658_vm1, %v614_v20  ;;  %687 = vst.msk [vmem:[%s1300_s4 + $0xe0] sm:$0xff] %vm658_vm1, %v638_v21  ;;  %v615_v27 = vmax.f32 %v567_v22, 0.0  ;;  %v639_v29 = vmax.f32 %v591_v23, 0.0  ;;  %v803_v30 = vpop.f32.mrb[8].mxu0  ;;  %v827_v31 = vpop.f32.mrb[8].mxu1 }
  0xee   :  { %666 = vst.msk [vmem:[%s1300_s4 + $0x38] sm:$0xff] %vm658_vm1, %v617_v24  ;;  %690 = vst.msk [vmem:[%s1300_s4 + $0xf8] sm:$0xff] %vm658_vm1, %v641_v25  ;;  %v517_v32 = vmul.f32 %v803_v30, %v1001_v26  ;;  %v541_v33 = vmul.f32 %v827_v31, %v1001_v26  ;;  %v341_v34 = vpop.f32.mrb[9].mxu0  ;;  %v437_v35 = vpop.f32.mrb[9].mxu1 }
  0xef   :  { %664 = vst.msk [vmem:[%s1300_s4 + $0x28] sm:$0xff] %vm658_vm1, %v615_v27  ;;  %688 = vst.msk [vmem:[%s1300_s4 + $0xe8] sm:$0xff] %vm658_vm1, %v639_v29  ;;  %v515_v36 = vmul.f32 %v1001_v26, %v341_v34  ;;  %v539_v37 = vmul.f32 %v1001_v26, %v437_v35  ;;  %v804_v38 = vpop.f32.mrb[10].mxu0  ;;  %v828_v39 = vpop.f32.mrb[10].mxu1 }
  0xf0   :  { %v572_v40 = vadd.f32 %v1006_v28, %v517_v32  ;;  %v596_v41 = vadd.f32 %v1006_v28, %v541_v33  ;;  %v518_v42 = vmul.f32 %v804_v38, %v1001_v26  ;;  %v542_v43 = vmul.f32 %v828_v39, %v1001_v26  ;;  %v344_v44 = vpop.f32.mrb[11].mxu0  ;;  %v440_v45 = vpop.f32.mrb[11].mxu1 }
  0xf1   :  { %v570_v46 = vadd.f32 %v1006_v28, %v515_v36  ;;  %v594_v47 = vadd.f32 %v1006_v28, %v539_v37  ;;  %v516_v48 = vmul.f32 %v1001_v26, %v344_v44  ;;  %v540_v49 = vmul.f32 %v1001_v26, %v440_v45 }
  0xf2   :  { %v620_v50 = vmax.f32 %v572_v40, 0.0  ;;  %v644_v51 = vmax.f32 %v596_v41, 0.0  ;;  %v573_v52 = vadd.f32 %v1006_v28, %v518_v42  ;;  %v597_v53 = vadd.f32 %v1006_v28, %v542_v43 }
  0xf3   :  { %v618_v54 = vmax.f32 %v570_v46, 0.0  ;;  %v642_v55 = vmax.f32 %v594_v47, 0.0  ;;  %v571_v56 = vadd.f32 %v1006_v28, %v516_v48  ;;  %v595_v57 = vadd.f32 %v1006_v28, %v540_v49 }
  0xf4   :  { %669 = vst.msk [vmem:[%s1300_s4 + $0x50] sm:$0xff] %vm658_vm1, %v620_v50  ;;  %693 = vst.msk [vmem:[%s1300_s4 + $0x110] sm:$0xff] %vm658_vm1, %v644_v51  ;;  %v621_v58 = vmax.f32 %v573_v52, 0.0  ;;  %v645_v59 = vmax.f32 %v597_v53, 0.0 }
  0xf5   :  { %667 = vst.msk [vmem:[%s1300_s4 + $0x40] sm:$0xff] %vm658_vm1, %v618_v54  ;;  %691 = vst.msk [vmem:[%s1300_s4 + $0x100] sm:$0xff] %vm658_vm1, %v642_v55  ;;  %v619_v60 = vmax.f32 %v571_v56, 0.0  ;;  %v643_v61 = vmax.f32 %v595_v57, 0.0  ;;  %v807_v62 = vpop.f32.mrb[12].mxu0  ;;  %v831_v63 = vpop.f32.mrb[12].mxu1 }
  0xf6   :  { %670 = vst.msk [vmem:[%s1300_s4 + $0x58] sm:$0xff] %vm658_vm1, %v621_v58  ;;  %694 = vst.msk [vmem:[%s1300_s4 + $0x118] sm:$0xff] %vm658_vm1, %v645_v59  ;;  %v521_v0 = vmul.f32 %v807_v62, %v1001_v26  ;;  %v545_v1 = vmul.f32 %v831_v63, %v1001_v26  ;;  %v357_v2 = vpop.f32.mrb[13].mxu0  ;;  %v453_v3 = vpop.f32.mrb[13].mxu1 }
  0xf7   :  { %668 = vst.msk [vmem:[%s1300_s4 + $0x48] sm:$0xff] %vm658_vm1, %v619_v60  ;;  %692 = vst.msk [vmem:[%s1300_s4 + $0x108] sm:$0xff] %vm658_vm1, %v643_v61  ;;  %v519_v4 = vmul.f32 %v1001_v26, %v357_v2  ;;  %v543_v5 = vmul.f32 %v1001_v26, %v453_v3  ;;  %v808_v6 = vpop.f32.mrb[14].mxu0  ;;  %v832_v7 = vpop.f32.mrb[14].mxu1 }
  0xf8   :  { %v576_v8 = vadd.f32 %v1006_v28, %v521_v0  ;;  %v600_v9 = vadd.f32 %v1006_v28, %v545_v1  ;;  %v522_v10 = vmul.f32 %v808_v6, %v1001_v26  ;;  %v546_v11 = vmul.f32 %v832_v7, %v1001_v26  ;;  %v360_v12 = vpop.f32.mrb[15].mxu0  ;;  %v456_v13 = vpop.f32.mrb[15].mxu1 }
  0xf9   :  { %v574_v14 = vadd.f32 %v1006_v28, %v519_v4  ;;  %v598_v15 = vadd.f32 %v1006_v28, %v543_v5  ;;  %v520_v16 = vmul.f32 %v1001_v26, %v360_v12  ;;  %v544_v17 = vmul.f32 %v1001_v26, %v456_v13 }
  0xfa   :  { %v624_v18 = vmax.f32 %v576_v8, 0.0  ;;  %v648_v19 = vmax.f32 %v600_v9, 0.0  ;;  %v577_v20 = vadd.f32 %v1006_v28, %v522_v10  ;;  %v601_v21 = vadd.f32 %v1006_v28, %v546_v11 }
  0xfb   :  { %v622_v22 = vmax.f32 %v574_v14, 0.0  ;;  %v646_v23 = vmax.f32 %v598_v15, 0.0  ;;  %v575_v24 = vadd.f32 %v1006_v28, %v520_v16  ;;  %v599_v25 = vadd.f32 %v1006_v28, %v544_v17 }
  0xfc   :  { %673 = vst.msk [vmem:[%s1300_s4 + $0x70] sm:$0xff] %vm658_vm1, %v624_v18  ;;  %697 = vst.msk [vmem:[%s1300_s4 + $0x130] sm:$0xff] %vm658_vm1, %v648_v19  ;;  %v625_v27 = vmax.f32 %v577_v20, 0.0  ;;  %v649_v29 = vmax.f32 %v601_v21, 0.0 }
  0xfd   :  { %671 = vst.msk [vmem:[%s1300_s4 + $0x60] sm:$0xff] %vm658_vm1, %v622_v22  ;;  %695 = vst.msk [vmem:[%s1300_s4 + $0x120] sm:$0xff] %vm658_vm1, %v646_v23  ;;  %v623_v30 = vmax.f32 %v575_v24, 0.0  ;;  %v647_v31 = vmax.f32 %v599_v25, 0.0  ;;  %v811_v32 = vpop.f32.mrb[16].mxu0  ;;  %v835_v33 = vpop.f32.mrb[16].mxu1 }
  0xfe   :  { %674 = vst.msk [vmem:[%s1300_s4 + $0x78] sm:$0xff] %vm658_vm1, %v625_v27  ;;  %698 = vst.msk [vmem:[%s1300_s4 + $0x138] sm:$0xff] %vm658_vm1, %v649_v29  ;;  %v525_v34 = vmul.f32 %v811_v32, %v1001_v26  ;;  %v549_v35 = vmul.f32 %v835_v33, %v1001_v26  ;;  %v373_v36 = vpop.f32.mrb[17].mxu0  ;;  %v469_v37 = vpop.f32.mrb[17].mxu1 }
  0xff   :  { %672 = vst.msk [vmem:[%s1300_s4 + $0x68] sm:$0xff] %vm658_vm1, %v623_v30  ;;  %696 = vst.msk [vmem:[%s1300_s4 + $0x128] sm:$0xff] %vm658_vm1, %v647_v31  ;;  %v523_v38 = vmul.f32 %v1001_v26, %v373_v36  ;;  %v547_v39 = vmul.f32 %v1001_v26, %v469_v37  ;;  %v812_v40 = vpop.f32.mrb[18].mxu0  ;;  %v836_v41 = vpop.f32.mrb[18].mxu1 }
 0x100   :  { %v580_v42 = vadd.f32 %v1006_v28, %v525_v34  ;;  %v604_v43 = vadd.f32 %v1006_v28, %v549_v35  ;;  %v526_v44 = vmul.f32 %v812_v40, %v1001_v26  ;;  %v550_v45 = vmul.f32 %v836_v41, %v1001_v26  ;;  %v376_v46 = vpop.f32.mrb[19].mxu0  ;;  %v472_v47 = vpop.f32.mrb[19].mxu1 }
 0x101   :  { %v578_v48 = vadd.f32 %v1006_v28, %v523_v38  ;;  %v602_v49 = vadd.f32 %v1006_v28, %v547_v39  ;;  %v524_v50 = vmul.f32 %v1001_v26, %v376_v46  ;;  %v548_v51 = vmul.f32 %v1001_v26, %v472_v47 }
 0x102   :  { %v628_v52 = vmax.f32 %v580_v42, 0.0  ;;  %v652_v53 = vmax.f32 %v604_v43, 0.0  ;;  %v581_v54 = vadd.f32 %v1006_v28, %v526_v44  ;;  %v605_v55 = vadd.f32 %v1006_v28, %v550_v45 }
 0x103   :  { %v626_v56 = vmax.f32 %v578_v48, 0.0  ;;  %v650_v57 = vmax.f32 %v602_v49, 0.0  ;;  %v579_v58 = vadd.f32 %v1006_v28, %v524_v50  ;;  %v603_v59 = vadd.f32 %v1006_v28, %v548_v51 }
 0x104   :  { %677 = vst.msk [vmem:[%s1300_s4 + $0x90] sm:$0xff] %vm658_vm1, %v628_v52  ;;  %701 = vst.msk [vmem:[%s1300_s4 + $0x150] sm:$0xff] %vm658_vm1, %v652_v53  ;;  %v629_v60 = vmax.f32 %v581_v54, 0.0  ;;  %v653_v61 = vmax.f32 %v605_v55, 0.0 }
 0x105   :  { %675 = vst.msk [vmem:[%s1300_s4 + $0x80] sm:$0xff] %vm658_vm1, %v626_v56  ;;  %699 = vst.msk [vmem:[%s1300_s4 + $0x140] sm:$0xff] %vm658_vm1, %v650_v57  ;;  %v627_v62 = vmax.f32 %v579_v58, 0.0  ;;  %v651_v63 = vmax.f32 %v603_v59, 0.0  ;;  %v815_v0 = vpop.f32.mrb[20].mxu0  ;;  %v839_v1 = vpop.f32.mrb[20].mxu1 }
 0x106   :  { %678 = vst.msk [vmem:[%s1300_s4 + $0x98] sm:$0xff] %vm658_vm1, %v629_v60  ;;  %702 = vst.msk [vmem:[%s1300_s4 + $0x158] sm:$0xff] %vm658_vm1, %v653_v61  ;;  %v529_v2 = vmul.f32 %v815_v0, %v1001_v26  ;;  %v553_v3 = vmul.f32 %v839_v1, %v1001_v26  ;;  %v389_v4 = vpop.f32.mrb[21].mxu0  ;;  %v485_v5 = vpop.f32.mrb[21].mxu1 }
 0x107   :  { %676 = vst.msk [vmem:[%s1300_s4 + $0x88] sm:$0xff] %vm658_vm1, %v627_v62  ;;  %700 = vst.msk [vmem:[%s1300_s4 + $0x148] sm:$0xff] %vm658_vm1, %v651_v63  ;;  %v527_v6 = vmul.f32 %v1001_v26, %v389_v4  ;;  %v551_v7 = vmul.f32 %v1001_v26, %v485_v5  ;;  %v816_v8 = vpop.f32.mrb[22].mxu0  ;;  %v840_v9 = vpop.f32.mrb[22].mxu1 }
 0x108   :  { %v584_v10 = vadd.f32 %v1006_v28, %v529_v2  ;;  %v608_v11 = vadd.f32 %v1006_v28, %v553_v3  ;;  %v530_v12 = vmul.f32 %v816_v8, %v1001_v26  ;;  %v554_v13 = vmul.f32 %v840_v9, %v1001_v26  ;;  %v392_v14 = vpop.f32.mrb[23].mxu0  ;;  %v488_v15 = vpop.f32.mrb[23].mxu1 }
 0x109   :  { %v582_v16 = vadd.f32 %v1006_v28, %v527_v6  ;;  %v606_v17 = vadd.f32 %v1006_v28, %v551_v7  ;;  %v528_v18 = vmul.f32 %v1001_v26, %v392_v14  ;;  %v552_v19 = vmul.f32 %v1001_v26, %v488_v15 }
 0x10a   :  { %v632_v20 = vmax.f32 %v584_v10, 0.0  ;;  %v656_v21 = vmax.f32 %v608_v11, 0.0  ;;  %v585_v22 = vadd.f32 %v1006_v28, %v530_v12  ;;  %v609_v23 = vadd.f32 %v1006_v28, %v554_v13 }
 0x10b   :  { %v630_v24 = vmax.f32 %v582_v16, 0.0  ;;  %v654_v25 = vmax.f32 %v606_v17, 0.0  ;;  %v583_v27 = vadd.f32 %v1006_v28, %v528_v18  ;;  %v607_v29 = vadd.f32 %v1006_v28, %v552_v19 }
 0x10c   :  { %681 = vst.msk [vmem:[%s1300_s4 + $0xb0] sm:$0xff] %vm658_vm1, %v632_v20  ;;  %705 = vst.msk [vmem:[%s1300_s4 + $0x170] sm:$0xff] %vm658_vm1, %v656_v21  ;;  %v633_v26 = vmax.f32 %v585_v22, 0.0  ;;  %v657_v30 = vmax.f32 %v609_v23, 0.0 }
 0x10d   :  { %679 = vst.msk [vmem:[%s1300_s4 + $0xa0] sm:$0xff] %vm658_vm1, %v630_v24  ;;  %703 = vst.msk [vmem:[%s1300_s4 + $0x160] sm:$0xff] %vm658_vm1, %v654_v25  ;;  %v631_v28 = vmax.f32 %v583_v27, 0.0  ;;  %v655_v31 = vmax.f32 %v607_v29, 0.0 }
 0x10e   :  { %682 = vst.msk [vmem:[%s1300_s4 + $0xb8] sm:$0xff] %vm658_vm1, %v633_v26  ;;  %706 = vst.msk [vmem:[%s1300_s4 + $0x178] sm:$0xff] %vm658_vm1, %v657_v30 }
 0x10f   :  { %680 = vst.msk [vmem:[%s1300_s4 + $0xa8] sm:$0xff] %vm658_vm1, %v631_v28  ;;  %704 = vst.msk [vmem:[%s1300_s4 + $0x168] sm:$0xff] %vm658_vm1, %v655_v31 }

// kernel: basicsknet_forward.28
= control target key start
LH: loop header
LB: loop body
LE: loop exit
PB: predicated region body
PF: predicated region fallthrough
CT: control target
= control target key end

     0   :  { %vm202_vm0 = vcmask 261120   ;;  %s1295_s1 = inlined_call_operand.vmem [shape: bf16[32,32], index: 1, kind: input, shape index: {}]   ;;  %s1296_s0 = inlined_call_operand.vmem [shape: bf16[384,32], index: 0, kind: input, shape index: {}]   ;;  %s1297_s2 = inlined_call_operand.vmem [shape: f32[1,32], index: 2, kind: input, shape index: {}]   ;;  %s1298_s3 = inlined_call_operand.vmem [shape: f32[1,32], index: 3, kind: input, shape index: {}]   ;;  %s1299_s4 = inlined_call_operand.vmem [shape: f32[384,32], index: 4, kind: output, shape index: {}]  }
   0x1   :  { %v844_v0 = vld [vmem:[%s1295_s1] sm:$0xff]   ;;  %v845_v1 = vld [vmem:[%s1295_s1 + $0x8] sm:$0xff]   ;;  %v850_v6 = vld [vmem:[%s1296_s0 + $0x10] sm:$0xff]  }
   0x2   :  { %788 = vmatprep.subr.bf16.mxu0 %v844_v0  ;;  %840 = vmatprep.subr.bf16.mxu1 %v844_v0  ;;  %v846_v2 = vld [vmem:[%s1296_s0] sm:$0xff]   ;;  %v848_v4 = vld [vmem:[%s1296_s0 + $0x8] sm:$0xff]   ;;  %v851_v7 = vld [vmem:[%s1296_s0 + $0x70] sm:$0xff]  }
   0x3   :  { %789 = vmatpush3.bf16.msra.mxu0 %v844_v0  ;;  %842 = vmatpush3.bf16.msra.mxu1 %v844_v0  ;;  %v847_v3 = vld [vmem:[%s1296_s0 + $0x60] sm:$0xff]   ;;  %v849_v5 = vld [vmem:[%s1296_s0 + $0x68] sm:$0xff]   ;;  %v852_v8 = vld [vmem:[%s1296_s0 + $0x18] sm:$0xff]  }
   0x4   :  { %790 = vmatprep.subr.bf16.mxu0 %v845_v1  ;;  %841 = vmatprep.subr.bf16.mxu1 %v845_v1  ;;  %v853_v9 = vld [vmem:[%s1296_s0 + $0x78] sm:$0xff]   ;;  %v854_v10 = vld [vmem:[%s1296_s0 + $0x20] sm:$0xff]   ;;  %v856_v12 = vld [vmem:[%s1296_s0 + $0x28] sm:$0xff]  }
   0x5   :  { %792 = vmatprep.mubr.msk.bf16.mxu0 %vm202_vm0, %v846_v2  ;;  %816 = vmatprep.mubr.msk.bf16.mxu1 %vm202_vm0, %v847_v3  ;;  %v855_v11 = vld [vmem:[%s1296_s0 + $0x80] sm:$0xff]   ;;  %v857_v13 = vld [vmem:[%s1296_s0 + $0x88] sm:$0xff]   ;;  %v858_v14 = vld [vmem:[%s1296_s0 + $0x30] sm:$0xff]  }
   0x6   :  { %v859_v15 = vld [vmem:[%s1296_s0 + $0x90] sm:$0xff]   ;;  %v860_v16 = vld [vmem:[%s1296_s0 + $0x38] sm:$0xff]   ;;  %v862_v18 = vld [vmem:[%s1296_s0 + $0x40] sm:$0xff]  }
   0x7   :  { %791 = vmatpush3.bf16.msra.mxu0 %v845_v1  ;;  %843 = vmatpush3.bf16.msra.mxu1 %v845_v1  ;;  %v861_v17 = vld [vmem:[%s1296_s0 + $0x98] sm:$0xff]   ;;  %v863_v19 = vld [vmem:[%s1296_s0 + $0xa0] sm:$0xff]   ;;  %v864_v20 = vld [vmem:[%s1296_s0 + $0x48] sm:$0xff]  }
   0x8   :  { %v865_v21 = vld [vmem:[%s1296_s0 + $0xa8] sm:$0xff]   ;;  %v866_v22 = vld [vmem:[%s1296_s0 + $0x50] sm:$0xff]   ;;  %v868_v24 = vld [vmem:[%s1296_s0 + $0x58] sm:$0xff]  }
   0x9   :  { %v867_v23 = vld [vmem:[%s1296_s0 + $0xb0] sm:$0xff]   ;;  %v869_v25 = vld [vmem:[%s1296_s0 + $0xb8] sm:$0xff]   ;;  %v1000_v26 = vld [vmem:[%s1297_s2] ss:$0 sm:$0xff] }
   0xa   :  { %793 = vmatmul.mubr.msk.bf16.vlgmr.msra.gmra.mrb[0].mxu0 %vm202_vm0, %v848_v4  ;;  %817 = vmatmul.mubr.msk.bf16.vlgmr.msra.gmra.mrb[0].mxu1 %vm202_vm0, %v849_v5  ;;  %v1005_v28 = vld [vmem:[%s1298_s3] ss:$0 sm:$0xff] }
   0xb   :  { %796 = vmatprep.mubr.msk.bf16.mxu0 %vm202_vm0, %v850_v6  ;;  %820 = vmatprep.mubr.msk.bf16.mxu1 %vm202_vm0, %v851_v7 }
  0x12   :  { %797 = vmatmul.mubr.msk.bf16.gmra.mrb[4].mxu0 %vm202_vm0, %v852_v8  ;;  %821 = vmatmul.mubr.msk.bf16.gmra.mrb[4].mxu1 %vm202_vm0, %v853_v9 }
  0x13   :  { %800 = vmatprep.mubr.msk.bf16.mxu0 %vm202_vm0, %v854_v10  ;;  %824 = vmatprep.mubr.msk.bf16.mxu1 %vm202_vm0, %v855_v11 }
  0x1a   :  { %801 = vmatmul.mubr.msk.bf16.gmra.mrb[8].mxu0 %vm202_vm0, %v856_v12  ;;  %825 = vmatmul.mubr.msk.bf16.gmra.mrb[8].mxu1 %vm202_vm0, %v857_v13 }
  0x1b   :  { %804 = vmatprep.mubr.msk.bf16.mxu0 %vm202_vm0, %v858_v14  ;;  %828 = vmatprep.mubr.msk.bf16.mxu1 %vm202_vm0, %v859_v15 }
  0x22   :  { %805 = vmatmul.mubr.msk.bf16.gmra.mrb[12].mxu0 %vm202_vm0, %v860_v16  ;;  %829 = vmatmul.mubr.msk.bf16.gmra.mrb[12].mxu1 %vm202_vm0, %v861_v17 }
  0x23   :  { %808 = vmatprep.mubr.msk.bf16.mxu0 %vm202_vm0, %v862_v18  ;;  %832 = vmatprep.mubr.msk.bf16.mxu1 %vm202_vm0, %v863_v19 }
  0x2a   :  { %809 = vmatmul.mubr.msk.bf16.gmra.mrb[16].mxu0 %vm202_vm0, %v864_v20  ;;  %833 = vmatmul.mubr.msk.bf16.gmra.mrb[16].mxu1 %vm202_vm0, %v865_v21 }
  0x2b   :  { %812 = vmatprep.mubr.msk.bf16.mxu0 %vm202_vm0, %v866_v22  ;;  %836 = vmatprep.mubr.msk.bf16.mxu1 %vm202_vm0, %v867_v23 }
  0x32   :  { %813 = vmatmul.mubr.msk.bf16.gmra.mrb[20].mxu0 %vm202_vm0, %v868_v24  ;;  %837 = vmatmul.mubr.msk.bf16.gmra.mrb[20].mxu1 %vm202_vm0, %v869_v25 }
  0xdd   :  { %v794_v27 = vpop.f32.mrb[0].mxu0  ;;  %v818_v29 = vpop.f32.mrb[0].mxu1 }
  0xde   :  { %v509_v30 = vmul.f32 %v794_v27, %v1000_v26  ;;  %v533_v31 = vmul.f32 %v818_v29, %v1000_v26  ;;  %v309_v32 = vpop.f32.mrb[1].mxu0  ;;  %v405_v33 = vpop.f32.mrb[1].mxu1 }
  0xdf   :  { %v507_v34 = vmul.f32 %v1000_v26, %v309_v32  ;;  %v531_v35 = vmul.f32 %v1000_v26, %v405_v33  ;;  %v795_v36 = vpop.f32.mrb[2].mxu0  ;;  %v819_v37 = vpop.f32.mrb[2].mxu1 }
  0xe0   :  { %v564_v38 = vadd.f32 %v1005_v28, %v509_v30  ;;  %v588_v39 = vadd.f32 %v1005_v28, %v533_v31  ;;  %v510_v40 = vmul.f32 %v795_v36, %v1000_v26  ;;  %v534_v41 = vmul.f32 %v819_v37, %v1000_v26  ;;  %v312_v42 = vpop.f32.mrb[3].mxu0  ;;  %v408_v43 = vpop.f32.mrb[3].mxu1 }
  0xe1   :  { %v562_v44 = vadd.f32 %v1005_v28, %v507_v34  ;;  %v586_v45 = vadd.f32 %v1005_v28, %v531_v35  ;;  %v508_v46 = vmul.f32 %v1000_v26, %v312_v42  ;;  %v532_v47 = vmul.f32 %v1000_v26, %v408_v43 }
  0xe2   :  { %v612_v48 = vmax.f32 %v564_v38, 0.0  ;;  %v636_v49 = vmax.f32 %v588_v39, 0.0  ;;  %v565_v50 = vadd.f32 %v1005_v28, %v510_v40  ;;  %v589_v51 = vadd.f32 %v1005_v28, %v534_v41 }
  0xe3   :  { %v610_v52 = vmax.f32 %v562_v44, 0.0  ;;  %v634_v53 = vmax.f32 %v586_v45, 0.0  ;;  %v563_v54 = vadd.f32 %v1005_v28, %v508_v46  ;;  %v587_v55 = vadd.f32 %v1005_v28, %v532_v47 }
  0xe4   :  { %660 = vst.msk [vmem:[%s1299_s4 + $0x10] sm:$0xff] %vm202_vm0, %v612_v48  ;;  %684 = vst.msk [vmem:[%s1299_s4 + $0xd0] sm:$0xff] %vm202_vm0, %v636_v49  ;;  %v613_v56 = vmax.f32 %v565_v50, 0.0  ;;  %v637_v57 = vmax.f32 %v589_v51, 0.0 }
  0xe5   :  { %658 = vst.msk [vmem:[%s1299_s4] sm:$0xff] %vm202_vm0, %v610_v52  ;;  %682 = vst.msk [vmem:[%s1299_s4 + $0xc0] sm:$0xff] %vm202_vm0, %v634_v53  ;;  %v611_v58 = vmax.f32 %v563_v54, 0.0  ;;  %v635_v59 = vmax.f32 %v587_v55, 0.0  ;;  %v798_v60 = vpop.f32.mrb[4].mxu0  ;;  %v822_v61 = vpop.f32.mrb[4].mxu1 }
  0xe6   :  { %661 = vst.msk [vmem:[%s1299_s4 + $0x18] sm:$0xff] %vm202_vm0, %v613_v56  ;;  %685 = vst.msk [vmem:[%s1299_s4 + $0xd8] sm:$0xff] %vm202_vm0, %v637_v57  ;;  %v513_v62 = vmul.f32 %v798_v60, %v1000_v26  ;;  %v537_v63 = vmul.f32 %v822_v61, %v1000_v26  ;;  %v325_v0 = vpop.f32.mrb[5].mxu0  ;;  %v421_v1 = vpop.f32.mrb[5].mxu1 }
  0xe7   :  { %659 = vst.msk [vmem:[%s1299_s4 + $0x8] sm:$0xff] %vm202_vm0, %v611_v58  ;;  %683 = vst.msk [vmem:[%s1299_s4 + $0xc8] sm:$0xff] %vm202_vm0, %v635_v59  ;;  %v511_v2 = vmul.f32 %v1000_v26, %v325_v0  ;;  %v535_v3 = vmul.f32 %v1000_v26, %v421_v1  ;;  %v799_v4 = vpop.f32.mrb[6].mxu0  ;;  %v823_v5 = vpop.f32.mrb[6].mxu1 }
  0xe8   :  { %v568_v6 = vadd.f32 %v1005_v28, %v513_v62  ;;  %v592_v7 = vadd.f32 %v1005_v28, %v537_v63  ;;  %v514_v8 = vmul.f32 %v799_v4, %v1000_v26  ;;  %v538_v9 = vmul.f32 %v823_v5, %v1000_v26  ;;  %v328_v10 = vpop.f32.mrb[7].mxu0  ;;  %v424_v11 = vpop.f32.mrb[7].mxu1 }
  0xe9   :  { %v566_v12 = vadd.f32 %v1005_v28, %v511_v2  ;;  %v590_v13 = vadd.f32 %v1005_v28, %v535_v3  ;;  %v512_v14 = vmul.f32 %v1000_v26, %v328_v10  ;;  %v536_v15 = vmul.f32 %v1000_v26, %v424_v11 }
  0xea   :  { %v616_v16 = vmax.f32 %v568_v6, 0.0  ;;  %v640_v17 = vmax.f32 %v592_v7, 0.0  ;;  %v569_v18 = vadd.f32 %v1005_v28, %v514_v8  ;;  %v593_v19 = vadd.f32 %v1005_v28, %v538_v9 }
  0xeb   :  { %v614_v20 = vmax.f32 %v566_v12, 0.0  ;;  %v638_v21 = vmax.f32 %v590_v13, 0.0  ;;  %v567_v22 = vadd.f32 %v1005_v28, %v512_v14  ;;  %v591_v23 = vadd.f32 %v1005_v28, %v536_v15 }
  0xec   :  { %664 = vst.msk [vmem:[%s1299_s4 + $0x30] sm:$0xff] %vm202_vm0, %v616_v16  ;;  %688 = vst.msk [vmem:[%s1299_s4 + $0xf0] sm:$0xff] %vm202_vm0, %v640_v17  ;;  %v617_v24 = vmax.f32 %v569_v18, 0.0  ;;  %v641_v25 = vmax.f32 %v593_v19, 0.0 }
  0xed   :  { %662 = vst.msk [vmem:[%s1299_s4 + $0x20] sm:$0xff] %vm202_vm0, %v614_v20  ;;  %686 = vst.msk [vmem:[%s1299_s4 + $0xe0] sm:$0xff] %vm202_vm0, %v638_v21  ;;  %v615_v27 = vmax.f32 %v567_v22, 0.0  ;;  %v639_v29 = vmax.f32 %v591_v23, 0.0  ;;  %v802_v30 = vpop.f32.mrb[8].mxu0  ;;  %v826_v31 = vpop.f32.mrb[8].mxu1 }
  0xee   :  { %665 = vst.msk [vmem:[%s1299_s4 + $0x38] sm:$0xff] %vm202_vm0, %v617_v24  ;;  %689 = vst.msk [vmem:[%s1299_s4 + $0xf8] sm:$0xff] %vm202_vm0, %v641_v25  ;;  %v517_v32 = vmul.f32 %v802_v30, %v1000_v26  ;;  %v541_v33 = vmul.f32 %v826_v31, %v1000_v26  ;;  %v341_v34 = vpop.f32.mrb[9].mxu0  ;;  %v437_v35 = vpop.f32.mrb[9].mxu1 }
  0xef   :  { %663 = vst.msk [vmem:[%s1299_s4 + $0x28] sm:$0xff] %vm202_vm0, %v615_v27  ;;  %687 = vst.msk [vmem:[%s1299_s4 + $0xe8] sm:$0xff] %vm202_vm0, %v639_v29  ;;  %v515_v36 = vmul.f32 %v1000_v26, %v341_v34  ;;  %v539_v37 = vmul.f32 %v1000_v26, %v437_v35  ;;  %v803_v38 = vpop.f32.mrb[10].mxu0  ;;  %v827_v39 = vpop.f32.mrb[10].mxu1 }
  0xf0   :  { %v572_v40 = vadd.f32 %v1005_v28, %v517_v32  ;;  %v596_v41 = vadd.f32 %v1005_v28, %v541_v33  ;;  %v518_v42 = vmul.f32 %v803_v38, %v1000_v26  ;;  %v542_v43 = vmul.f32 %v827_v39, %v1000_v26  ;;  %v344_v44 = vpop.f32.mrb[11].mxu0  ;;  %v440_v45 = vpop.f32.mrb[11].mxu1 }
  0xf1   :  { %v570_v46 = vadd.f32 %v1005_v28, %v515_v36  ;;  %v594_v47 = vadd.f32 %v1005_v28, %v539_v37  ;;  %v516_v48 = vmul.f32 %v1000_v26, %v344_v44  ;;  %v540_v49 = vmul.f32 %v1000_v26, %v440_v45 }
  0xf2   :  { %v620_v50 = vmax.f32 %v572_v40, 0.0  ;;  %v644_v51 = vmax.f32 %v596_v41, 0.0  ;;  %v573_v52 = vadd.f32 %v1005_v28, %v518_v42  ;;  %v597_v53 = vadd.f32 %v1005_v28, %v542_v43 }
  0xf3   :  { %v618_v54 = vmax.f32 %v570_v46, 0.0  ;;  %v642_v55 = vmax.f32 %v594_v47, 0.0  ;;  %v571_v56 = vadd.f32 %v1005_v28, %v516_v48  ;;  %v595_v57 = vadd.f32 %v1005_v28, %v540_v49 }
  0xf4   :  { %668 = vst.msk [vmem:[%s1299_s4 + $0x50] sm:$0xff] %vm202_vm0, %v620_v50  ;;  %692 = vst.msk [vmem:[%s1299_s4 + $0x110] sm:$0xff] %vm202_vm0, %v644_v51  ;;  %v621_v58 = vmax.f32 %v573_v52, 0.0  ;;  %v645_v59 = vmax.f32 %v597_v53, 0.0 }
  0xf5   :  { %666 = vst.msk [vmem:[%s1299_s4 + $0x40] sm:$0xff] %vm202_vm0, %v618_v54  ;;  %690 = vst.msk [vmem:[%s1299_s4 + $0x100] sm:$0xff] %vm202_vm0, %v642_v55  ;;  %v619_v60 = vmax.f32 %v571_v56, 0.0  ;;  %v643_v61 = vmax.f32 %v595_v57, 0.0  ;;  %v806_v62 = vpop.f32.mrb[12].mxu0  ;;  %v830_v63 = vpop.f32.mrb[12].mxu1 }
  0xf6   :  { %669 = vst.msk [vmem:[%s1299_s4 + $0x58] sm:$0xff] %vm202_vm0, %v621_v58  ;;  %693 = vst.msk [vmem:[%s1299_s4 + $0x118] sm:$0xff] %vm202_vm0, %v645_v59  ;;  %v521_v0 = vmul.f32 %v806_v62, %v1000_v26  ;;  %v545_v1 = vmul.f32 %v830_v63, %v1000_v26  ;;  %v357_v2 = vpop.f32.mrb[13].mxu0  ;;  %v453_v3 = vpop.f32.mrb[13].mxu1 }
  0xf7   :  { %667 = vst.msk [vmem:[%s1299_s4 + $0x48] sm:$0xff] %vm202_vm0, %v619_v60  ;;  %691 = vst.msk [vmem:[%s1299_s4 + $0x108] sm:$0xff] %vm202_vm0, %v643_v61  ;;  %v519_v4 = vmul.f32 %v1000_v26, %v357_v2  ;;  %v543_v5 = vmul.f32 %v1000_v26, %v453_v3  ;;  %v807_v6 = vpop.f32.mrb[14].mxu0  ;;  %v831_v7 = vpop.f32.mrb[14].mxu1 }
  0xf8   :  { %v576_v8 = vadd.f32 %v1005_v28, %v521_v0  ;;  %v600_v9 = vadd.f32 %v1005_v28, %v545_v1  ;;  %v522_v10 = vmul.f32 %v807_v6, %v1000_v26  ;;  %v546_v11 = vmul.f32 %v831_v7, %v1000_v26  ;;  %v360_v12 = vpop.f32.mrb[15].mxu0  ;;  %v456_v13 = vpop.f32.mrb[15].mxu1 }
  0xf9   :  { %v574_v14 = vadd.f32 %v1005_v28, %v519_v4  ;;  %v598_v15 = vadd.f32 %v1005_v28, %v543_v5  ;;  %v520_v16 = vmul.f32 %v1000_v26, %v360_v12  ;;  %v544_v17 = vmul.f32 %v1000_v26, %v456_v13 }
  0xfa   :  { %v624_v18 = vmax.f32 %v576_v8, 0.0  ;;  %v648_v19 = vmax.f32 %v600_v9, 0.0  ;;  %v577_v20 = vadd.f32 %v1005_v28, %v522_v10  ;;  %v601_v21 = vadd.f32 %v1005_v28, %v546_v11 }
  0xfb   :  { %v622_v22 = vmax.f32 %v574_v14, 0.0  ;;  %v646_v23 = vmax.f32 %v598_v15, 0.0  ;;  %v575_v24 = vadd.f32 %v1005_v28, %v520_v16  ;;  %v599_v25 = vadd.f32 %v1005_v28, %v544_v17 }
  0xfc   :  { %672 = vst.msk [vmem:[%s1299_s4 + $0x70] sm:$0xff] %vm202_vm0, %v624_v18  ;;  %696 = vst.msk [vmem:[%s1299_s4 + $0x130] sm:$0xff] %vm202_vm0, %v648_v19  ;;  %v625_v27 = vmax.f32 %v577_v20, 0.0  ;;  %v649_v29 = vmax.f32 %v601_v21, 0.0 }
  0xfd   :  { %670 = vst.msk [vmem:[%s1299_s4 + $0x60] sm:$0xff] %vm202_vm0, %v622_v22  ;;  %694 = vst.msk [vmem:[%s1299_s4 + $0x120] sm:$0xff] %vm202_vm0, %v646_v23  ;;  %v623_v30 = vmax.f32 %v575_v24, 0.0  ;;  %v647_v31 = vmax.f32 %v599_v25, 0.0  ;;  %v810_v32 = vpop.f32.mrb[16].mxu0  ;;  %v834_v33 = vpop.f32.mrb[16].mxu1 }
  0xfe   :  { %673 = vst.msk [vmem:[%s1299_s4 + $0x78] sm:$0xff] %vm202_vm0, %v625_v27  ;;  %697 = vst.msk [vmem:[%s1299_s4 + $0x138] sm:$0xff] %vm202_vm0, %v649_v29  ;;  %v525_v34 = vmul.f32 %v810_v32, %v1000_v26  ;;  %v549_v35 = vmul.f32 %v834_v33, %v1000_v26  ;;  %v373_v36 = vpop.f32.mrb[17].mxu0  ;;  %v469_v37 = vpop.f32.mrb[17].mxu1 }
  0xff   :  { %671 = vst.msk [vmem:[%s1299_s4 + $0x68] sm:$0xff] %vm202_vm0, %v623_v30  ;;  %695 = vst.msk [vmem:[%s1299_s4 + $0x128] sm:$0xff] %vm202_vm0, %v647_v31  ;;  %v523_v38 = vmul.f32 %v1000_v26, %v373_v36  ;;  %v547_v39 = vmul.f32 %v1000_v26, %v469_v37  ;;  %v811_v40 = vpop.f32.mrb[18].mxu0  ;;  %v835_v41 = vpop.f32.mrb[18].mxu1 }
 0x100   :  { %v580_v42 = vadd.f32 %v1005_v28, %v525_v34  ;;  %v604_v43 = vadd.f32 %v1005_v28, %v549_v35  ;;  %v526_v44 = vmul.f32 %v811_v40, %v1000_v26  ;;  %v550_v45 = vmul.f32 %v835_v41, %v1000_v26  ;;  %v376_v46 = vpop.f32.mrb[19].mxu0  ;;  %v472_v47 = vpop.f32.mrb[19].mxu1 }
 0x101   :  { %v578_v48 = vadd.f32 %v1005_v28, %v523_v38  ;;  %v602_v49 = vadd.f32 %v1005_v28, %v547_v39  ;;  %v524_v50 = vmul.f32 %v1000_v26, %v376_v46  ;;  %v548_v51 = vmul.f32 %v1000_v26, %v472_v47 }
 0x102   :  { %v628_v52 = vmax.f32 %v580_v42, 0.0  ;;  %v652_v53 = vmax.f32 %v604_v43, 0.0  ;;  %v581_v54 = vadd.f32 %v1005_v28, %v526_v44  ;;  %v605_v55 = vadd.f32 %v1005_v28, %v550_v45 }
 0x103   :  { %v626_v56 = vmax.f32 %v578_v48, 0.0  ;;  %v650_v57 = vmax.f32 %v602_v49, 0.0  ;;  %v579_v58 = vadd.f32 %v1005_v28, %v524_v50  ;;  %v603_v59 = vadd.f32 %v1005_v28, %v548_v51 }
 0x104   :  { %676 = vst.msk [vmem:[%s1299_s4 + $0x90] sm:$0xff] %vm202_vm0, %v628_v52  ;;  %700 = vst.msk [vmem:[%s1299_s4 + $0x150] sm:$0xff] %vm202_vm0, %v652_v53  ;;  %v629_v60 = vmax.f32 %v581_v54, 0.0  ;;  %v653_v61 = vmax.f32 %v605_v55, 0.0 }
 0x105   :  { %674 = vst.msk [vmem:[%s1299_s4 + $0x80] sm:$0xff] %vm202_vm0, %v626_v56  ;;  %698 = vst.msk [vmem:[%s1299_s4 + $0x140] sm:$0xff] %vm202_vm0, %v650_v57  ;;  %v627_v62 = vmax.f32 %v579_v58, 0.0  ;;  %v651_v63 = vmax.f32 %v603_v59, 0.0  ;;  %v814_v0 = vpop.f32.mrb[20].mxu0  ;;  %v838_v1 = vpop.f32.mrb[20].mxu1 }
 0x106   :  { %677 = vst.msk [vmem:[%s1299_s4 + $0x98] sm:$0xff] %vm202_vm0, %v629_v60  ;;  %701 = vst.msk [vmem:[%s1299_s4 + $0x158] sm:$0xff] %vm202_vm0, %v653_v61  ;;  %v529_v2 = vmul.f32 %v814_v0, %v1000_v26  ;;  %v553_v3 = vmul.f32 %v838_v1, %v1000_v26  ;;  %v389_v4 = vpop.f32.mrb[21].mxu0  ;;  %v485_v5 = vpop.f32.mrb[21].mxu1 }
 0x107   :  { %675 = vst.msk [vmem:[%s1299_s4 + $0x88] sm:$0xff] %vm202_vm0, %v627_v62  ;;  %699 = vst.msk [vmem:[%s1299_s4 + $0x148] sm:$0xff] %vm202_vm0, %v651_v63  ;;  %v527_v6 = vmul.f32 %v1000_v26, %v389_v4  ;;  %v551_v7 = vmul.f32 %v1000_v26, %v485_v5  ;;  %v815_v8 = vpop.f32.mrb[22].mxu0  ;;  %v839_v9 = vpop.f32.mrb[22].mxu1 }
 0x108   :  { %v584_v10 = vadd.f32 %v1005_v28, %v529_v2  ;;  %v608_v11 = vadd.f32 %v1005_v28, %v553_v3  ;;  %v530_v12 = vmul.f32 %v815_v8, %v1000_v26  ;;  %v554_v13 = vmul.f32 %v839_v9, %v1000_v26  ;;  %v392_v14 = vpop.f32.mrb[23].mxu0  ;;  %v488_v15 = vpop.f32.mrb[23].mxu1 }
 0x109   :  { %v582_v16 = vadd.f32 %v1005_v28, %v527_v6  ;;  %v606_v17 = vadd.f32 %v1005_v28, %v551_v7  ;;  %v528_v18 = vmul.f32 %v1000_v26, %v392_v14  ;;  %v552_v19 = vmul.f32 %v1000_v26, %v488_v15 }
 0x10a   :  { %v632_v20 = vmax.f32 %v584_v10, 0.0  ;;  %v656_v21 = vmax.f32 %v608_v11, 0.0  ;;  %v585_v22 = vadd.f32 %v1005_v28, %v530_v12  ;;  %v609_v23 = vadd.f32 %v1005_v28, %v554_v13 }
 0x10b   :  { %v630_v24 = vmax.f32 %v582_v16, 0.0  ;;  %v654_v25 = vmax.f32 %v606_v17, 0.0  ;;  %v583_v27 = vadd.f32 %v1005_v28, %v528_v18  ;;  %v607_v29 = vadd.f32 %v1005_v28, %v552_v19 }
 0x10c   :  { %680 = vst.msk [vmem:[%s1299_s4 + $0xb0] sm:$0xff] %vm202_vm0, %v632_v20  ;;  %704 = vst.msk [vmem:[%s1299_s4 + $0x170] sm:$0xff] %vm202_vm0, %v656_v21  ;;  %v633_v26 = vmax.f32 %v585_v22, 0.0  ;;  %v657_v30 = vmax.f32 %v609_v23, 0.0 }
 0x10d   :  { %678 = vst.msk [vmem:[%s1299_s4 + $0xa0] sm:$0xff] %vm202_vm0, %v630_v24  ;;  %702 = vst.msk [vmem:[%s1299_s4 + $0x160] sm:$0xff] %vm202_vm0, %v654_v25  ;;  %v631_v28 = vmax.f32 %v583_v27, 0.0  ;;  %v655_v31 = vmax.f32 %v607_v29, 0.0 }
 0x10e   :  { %681 = vst.msk [vmem:[%s1299_s4 + $0xb8] sm:$0xff] %vm202_vm0, %v633_v26  ;;  %705 = vst.msk [vmem:[%s1299_s4 + $0x178] sm:$0xff] %vm202_vm0, %v657_v30 }
 0x10f   :  { %679 = vst.msk [vmem:[%s1299_s4 + $0xa8] sm:$0xff] %vm202_vm0, %v631_v28  ;;  %703 = vst.msk [vmem:[%s1299_s4 + $0x168] sm:$0xff] %vm202_vm0, %v655_v31 }

// kernel: basicsknet_forward.29
= control target key start
LH: loop header
LB: loop body
LE: loop exit
PB: predicated region body
PF: predicated region fallthrough
CT: control target
= control target key end

     0   :  { %vm676_vm0 = vcmask 261120   ;;  %vm1069_vm1 = vcmask 523264   ;;  %s1914_s1 = inlined_call_operand.vmem [shape: bf16[800,64], index: 1, kind: input, shape index: {}]   ;;  %s1915_s0 = inlined_call_operand.vmem [shape: bf16[96,800], index: 0, kind: input, shape index: {}]   ;;  %s1916_s2 = inlined_call_operand.vmem [shape: f32[1,64], index: 2, kind: input, shape index: {}]   ;;  %s1917_s3 = inlined_call_operand.vmem [shape: f32[1,64], index: 3, kind: input, shape index: {}]   ;;  %s1918_s4 = inlined_call_operand.vmem [shape: f32[96,64], index: 4, kind: output, shape index: {}]  }
   0x1   :  { %v1382_v0 = vld [vmem:[%s1914_s1 + $0x40] sm:$0xff]   ;;  %v1386_v4 = vld [vmem:[%s1914_s1 + $0x48] sm:$0xff]   ;;  %v1390_v8 = vld [vmem:[%s1914_s1 + $0x50] sm:$0xff]  }
   0x2   :  { %v1383_v1 = vld [vmem:[%s1914_s1 + $0xc0] sm:$0xff]   ;;  %1186 = vmatprep.subr.bf16.mxu0 %v1382_v0  ;;  %v1387_v5 = vld [vmem:[%s1914_s1 + $0xc8] sm:$0xff]   ;;  %v1391_v9 = vld [vmem:[%s1914_s1 + $0xd0] sm:$0xff]  }
   0x3   :  { %v1384_v2 = vld [vmem:[%s1914_s1] sm:$0xff]   ;;  %1238 = vmatprep.subr.bf16.mxu1 %v1383_v1  ;;  %v1388_v6 = vld [vmem:[%s1914_s1 + $0x8] sm:$0xff]   ;;  %v1392_v10 = vld [vmem:[%s1914_s1 + $0x10] sm:$0xff]  }
   0x4   :  { %v1385_v3 = vld [vmem:[%s1914_s1 + $0x80] sm:$0xff]   ;;  %1187 = vmatpush3.bf16.msra.mxu0 %v1384_v2  ;;  %v1389_v7 = vld [vmem:[%s1914_s1 + $0x88] sm:$0xff]   ;;  %v1393_v11 = vld [vmem:[%s1914_s1 + $0x90] sm:$0xff]  }
   0x5   :  { %1239 = vmatpush3.bf16.msra.mxu1 %v1385_v3  ;;  %1188 = vmatprep.subr.bf16.mxu0 %v1386_v4  ;;  %v1394_v12 = vld [vmem:[%s1914_s1 + $0x58] sm:$0xff]   ;;  %v1398_v16 = vld [vmem:[%s1914_s1 + $0x60] sm:$0xff]   ;;  %v1402_v20 = vld [vmem:[%s1914_s1 + $0x68] sm:$0xff]  }
   0x6   :  { %1240 = vmatprep.subr.bf16.mxu1 %v1387_v5  ;;  %v1395_v13 = vld [vmem:[%s1914_s1 + $0xd8] sm:$0xff]   ;;  %v1399_v17 = vld [vmem:[%s1914_s1 + $0xe0] sm:$0xff]   ;;  %v1403_v21 = vld [vmem:[%s1914_s1 + $0xe8] sm:$0xff]  }
   0x7   :  { %v1396_v14 = vld [vmem:[%s1914_s1 + $0x18] sm:$0xff]   ;;  %v1400_v18 = vld [vmem:[%s1914_s1 + $0x20] sm:$0xff]   ;;  %v1404_v22 = vld [vmem:[%s1914_s1 + $0x28] sm:$0xff]  }
   0x8   :  { %1189 = vmatpush3.bf16.msra.mxu0 %v1388_v6  ;;  %v1397_v15 = vld [vmem:[%s1914_s1 + $0x98] sm:$0xff]   ;;  %v1401_v19 = vld [vmem:[%s1914_s1 + $0xa0] sm:$0xff]   ;;  %v1405_v23 = vld [vmem:[%s1914_s1 + $0xa8] sm:$0xff]  }
   0x9   :  { %1241 = vmatpush3.bf16.msra.mxu1 %v1389_v7  ;;  %1190 = vmatprep.subr.bf16.mxu0 %v1390_v8  ;;  %v1406_v24 = vld [vmem:[%s1914_s1 + $0x70] sm:$0xff]   ;;  %v1410_v28 = vld [vmem:[%s1914_s1 + $0x78] sm:$0xff]   ;;  %v1416_v33 = vld [vmem:[%s1915_s0 + $0x4] ss:$28 sps:$4 sm:$0xff]  }
   0xa   :  { %1242 = vmatprep.subr.bf16.mxu1 %v1391_v9  ;;  %v1407_v25 = vld [vmem:[%s1914_s1 + $0xf0] sm:$0xff]   ;;  %v1411_v29 = vld [vmem:[%s1914_s1 + $0xf8] sm:$0xff]   ;;  %v1417_v34 = vld [vmem:[%s1915_s0 + $0x8] ss:$28 sps:$4 sm:$0xff]   ;;  %727 = vmatprep.mubr.bf16.mxu0 %v1416_v33 }
   0xb   :  { %v1408_v26 = vld [vmem:[%s1914_s1 + $0x30] sm:$0xff]   ;;  %v1412_v30 = vld [vmem:[%s1914_s1 + $0x38] sm:$0xff]   ;;  %v1419_v35 = vld [vmem:[%s1915_s0 + $0xc] ss:$28 sps:$4 sm:$0xff]  }
   0xc   :  { %1191 = vmatpush3.bf16.msra.mxu0 %v1392_v10  ;;  %v1409_v27 = vld [vmem:[%s1914_s1 + $0xb0] sm:$0xff]   ;;  %v1413_v31 = vld [vmem:[%s1914_s1 + $0xb8] sm:$0xff]   ;;  %v1420_v36 = vld [vmem:[%s1914_s1 + $0x140] sm:$0xff]   ;;  %808 = vmatprep.mubr.bf16.mxu1 %v1419_v35 }
   0xd   :  { %1243 = vmatpush3.bf16.msra.mxu1 %v1393_v11  ;;  %1192 = vmatprep.subr.bf16.mxu0 %v1394_v12  ;;  %v1414_v32 = vld [vmem:[%s1915_s0] ss:$28 sps:$4 sm:$0xff]   ;;  %v1422_v38 = vld [vmem:[%s1914_s1 + $0x148] sm:$0xff]   ;;  %v1428_v42 = vld [vmem:[%s1915_s0 + $0x38] ss:$28 sps:$4 sm:$0xff]  }
   0xe   :  { %1244 = vmatprep.subr.bf16.mxu1 %v1395_v13  ;;  %v1421_v37 = vld [vmem:[%s1914_s1 + $0x100] sm:$0xff]   ;;  %v1423_v39 = vld [vmem:[%s1915_s0 + $0x3c] ss:$28 sps:$4 sm:$0xff]   ;;  %v1427_v41 = vld [vmem:[%s1914_s1 + $0x108] sm:$0xff]  }
   0xf   :  { %v1425_v40 = vld [vmem:[%s1915_s0 + $0x44] ss:$28 sps:$4 sm:$0xff]   ;;  %v1430_v44 = vld [vmem:[%s1914_s1 + $0x150] sm:$0xff]   ;;  %v1434_v47 = vld [vmem:[%s1915_s0 + $0x7c] ss:$28 sps:$4 sm:$0xff]  }
  0x10   :  { %1193 = vmatpush3.bf16.msra.mxu0 %v1396_v14  ;;  %v1429_v43 = vld [vmem:[%s1915_s0 + $0x40] ss:$28 sps:$4 sm:$0xff]   ;;  %v1431_v45 = vld [vmem:[%s1914_s1 + $0x110] sm:$0xff]   ;;  %v1440_v52 = vld [vmem:[%s1915_s0 + $0xac] ss:$28 sps:$4 sm:$0xff]  }
  0x11   :  { %1245 = vmatpush3.bf16.msra.mxu1 %v1397_v15  ;;  %1194 = vmatprep.subr.bf16.mxu0 %v1398_v16  ;;  %v1432_v46 = vld [vmem:[%s1915_s0 + $0x74] ss:$28 sps:$4 sm:$0xff]   ;;  %v1438_v49 = vld [vmem:[%s1914_s1 + $0x158] sm:$0xff]   ;;  %v1446_v54 = vld [vmem:[%s1914_s1 + $0x160] sm:$0xff]  }
  0x12   :  { %1246 = vmatprep.subr.bf16.mxu1 %v1399_v17  ;;  %v1436_v48 = vld [vmem:[%s1915_s0 + $0x70] ss:$28 sps:$4 sm:$0xff]   ;;  %v1439_v50 = vld [vmem:[%s1914_s1 + $0x118] sm:$0xff]   ;;  %v1447_v55 = vld [vmem:[%s1914_s1 + $0x120] sm:$0xff]  }
  0x13   :  { %v1437_v51 = vld [vmem:[%s1915_s0 + $0x78] ss:$28 sps:$4 sm:$0xff]   ;;  %v1448_v56 = vld [vmem:[%s1914_s1 + $0x168] sm:$0xff]   ;;  %v1449_v59 = vld [vmem:[%s1915_s0 + $0xe4] ss:$28 sps:$4 sm:$0xff]  }
  0x14   :  { %1195 = vmatpush3.bf16.msra.mxu0 %v1400_v18  ;;  %v1442_v53 = vld [vmem:[%s1915_s0 + $0xb4] ss:$28 sps:$4 sm:$0xff]   ;;  %v1444_v57 = vld [vmem:[%s1915_s0 + $0xa8] ss:$28 sps:$4 sm:$0xff]   ;;  %v1454_v0 = vld [vmem:[%s1915_s0 + $0xe0] ss:$28 sps:$4 sm:$0xff]  }
  0x15   :  { %1247 = vmatpush3.bf16.msra.mxu1 %v1401_v19  ;;  %1196 = vmatprep.subr.bf16.mxu0 %v1402_v20  ;;  %v1445_v58 = vld [vmem:[%s1915_s0 + $0xb0] ss:$28 sps:$4 sm:$0xff]   ;;  %v1464_v1 = vld [vmem:[%s1914_s1 + $0x178] sm:$0xff]   ;;  %v1455_v3 = vld [vmem:[%s1915_s0 + $0xe8] ss:$28 sps:$4 sm:$0xff]  }
  0x16   :  { %1248 = vmatprep.subr.bf16.mxu1 %v1403_v21  ;;  %v1453_v60 = vld [vmem:[%s1914_s1 + $0x128] sm:$0xff]   ;;  %v1456_v62 = vld [vmem:[%s1914_s1 + $0x170] sm:$0xff]   ;;  %v1465_v2 = vld [vmem:[%s1914_s1 + $0x138] sm:$0xff]  }
  0x17   :  { %v1451_v61 = vld [vmem:[%s1915_s0 + $0xec] ss:$28 sps:$4 sm:$0xff]   ;;  %v1457_v63 = vld [vmem:[%s1914_s1 + $0x130] sm:$0xff]   ;;  %v1458_v4 = vld [vmem:[%s1915_s0 + $0x11c] ss:$28 sps:$4 sm:$0xff]  }
  0x18   :  { %1197 = vmatpush3.bf16.msra.mxu0 %v1404_v22  ;;  %v1460_v5 = vld [vmem:[%s1915_s0 + $0x124] ss:$28 sps:$4 sm:$0xff]   ;;  %v1462_v7 = vld [vmem:[%s1915_s0 + $0x118] ss:$28 sps:$4 sm:$0xff]   ;;  %v1471_v10 = vld [vmem:[%s1915_s0 + $0x12c] ss:$28 sps:$4 sm:$0xff]  }
  0x19   :  { %1249 = vmatpush3.bf16.msra.mxu1 %v1405_v23  ;;  %1198 = vmatprep.subr.bf16.mxu0 %v1406_v24  ;;  %v1472_v6 = vld [vmem:[%s1914_s1 + $0x180] sm:$0xff]   ;;  %v1468_v9 = vld [vmem:[%s1915_s0 + $0x14] ss:$28 sps:$4 sm:$0xff]   ;;  %v1474_v13 = vld [vmem:[%s1915_s0 + $0x4c] ss:$28 sps:$4 sm:$0xff]  }
  0x1a   :  { %1250 = vmatprep.subr.bf16.mxu1 %v1407_v25  ;;  %v1463_v8 = vld [vmem:[%s1915_s0 + $0x120] ss:$28 sps:$4 sm:$0xff]   ;;  %v1466_v11 = vld [vmem:[%s1915_s0 + $0x10] ss:$28 sps:$4 sm:$0xff]   ;;  %v1469_v12 = vld [vmem:[%s1915_s0 + $0x128] ss:$28 sps:$4 sm:$0xff]  }
  0x1b   :  { %v1476_v14 = vld [vmem:[%s1915_s0 + $0x18] ss:$28 sps:$4 sm:$0xff]   ;;  %v1473_v15 = vld [vmem:[%s1914_s1 + $0x188] sm:$0xff]   ;;  %v1479_v18 = vld [vmem:[%s1915_s0 + $0x84] ss:$28 sps:$4 sm:$0xff]  }
  0x1c   :  { %1199 = vmatpush3.bf16.msra.mxu0 %v1408_v26  ;;  %v1477_v16 = vld [vmem:[%s1915_s0 + $0x48] ss:$28 sps:$4 sm:$0xff]   ;;  %v1478_v17 = vld [vmem:[%s1915_s0 + $0x50] ss:$28 sps:$4 sm:$0xff]   ;;  %v1482_v20 = vld [vmem:[%s1915_s0 + $0x80] ss:$28 sps:$4 sm:$0xff]  }
  0x1d   :  { %1251 = vmatpush3.bf16.msra.mxu1 %v1409_v27  ;;  %1200 = vmatprep.subr.bf16.mxu0 %v1410_v28  ;;  %v1481_v19 = vld [vmem:[%s1915_s0 + $0x88] ss:$28 sps:$4 sm:$0xff]   ;;  %v1483_v21 = vld [vmem:[%s1915_s0 + $0xc0] ss:$28 sps:$4 sm:$0xff]   ;;  %v1486_v23 = vld [vmem:[%s1915_s0 + $0xf8] ss:$28 sps:$4 sm:$0xff]  }
  0x1e   :  { %1252 = vmatprep.subr.bf16.mxu1 %v1411_v29  ;;  %v1484_v22 = vld [vmem:[%s1915_s0 + $0xbc] ss:$28 sps:$4 sm:$0xff]   ;;  %v1488_v25 = vld [vmem:[%s1915_s0 + $0x130] ss:$28 sps:$4 sm:$0xff]  }
  0x1f   :  { %v1487_v24 = vld [vmem:[%s1915_s0 + $0xb8] ss:$28 sps:$4 sm:$0xff]   ;;  %v1491_v27 = vld [vmem:[%s1915_s0 + $0xf0] ss:$28 sps:$4 sm:$0xff]  }
  0x20   :  { %1201 = vmatpush3.bf16.msra.mxu0 %v1412_v30  ;;  %v1489_v26 = vld [vmem:[%s1915_s0 + $0xf4] ss:$28 sps:$4 sm:$0xff]  }
  0x21   :  { %1253 = vmatpush3.bf16.msra.mxu1 %v1413_v31  ;;  %1290 = vmatprep.subr.bf16.mxu0 %v1420_v36 }
  0x22   :  { %1366 = vmatprep.subr.bf16.mxu1 %v1420_v36 }
  0x23   :  { %728 = vmatmul.mubr.bf16.vlgmr.msra.gmra.mrb[0].mxu0 %v1414_v32 }
  0x24   :  { %809 = vmatmul.mubr.bf16.vlgmr.msra.gmra.mrb[0].mxu1 %v1417_v34  ;;  %1291 = vmatpush3.bf16.msra.mxu0 %v1421_v37 }
  0x25   :  { %1292 = vmatprep.subr.bf16.mxu0 %v1422_v38  ;;  %1374 = vmatpush3.bf16.msra.mxu1 %v1421_v37 }
  0x26   :  { %735 = vmatprep.mubr.bf16.mxu0 %v1423_v39  ;;  %1367 = vmatprep.subr.bf16.mxu1 %v1422_v38 }
  0x27   :  { %816 = vmatprep.mubr.bf16.mxu1 %v1425_v40 }
  0x28   :  { %1293 = vmatpush3.bf16.msra.mxu0 %v1427_v41 }
  0x29   :  { %1375 = vmatpush3.bf16.msra.mxu1 %v1427_v41  ;;  %1294 = vmatprep.subr.bf16.mxu0 %v1430_v44 }
  0x2a   :  { %1368 = vmatprep.subr.bf16.mxu1 %v1430_v44 }
  0x2b   :  { %736 = vmatmul.mubr.bf16.gmra.mrb[4].mxu0 %v1428_v42 }
  0x2c   :  { %817 = vmatmul.mubr.bf16.gmra.mrb[4].mxu1 %v1429_v43  ;;  %1295 = vmatpush3.bf16.msra.mxu0 %v1431_v45 }
  0x2d   :  { %743 = vmatprep.mubr.bf16.mxu0 %v1432_v46  ;;  %824 = vmatprep.mubr.bf16.mxu1 %v1434_v47 }
  0x2e   :  { %1376 = vmatpush3.bf16.msra.mxu1 %v1431_v45  ;;  %1296 = vmatprep.subr.bf16.mxu0 %v1438_v49 }
  0x2f   :  { %1369 = vmatprep.subr.bf16.mxu1 %v1438_v49 }
  0x30   :  { %1297 = vmatpush3.bf16.msra.mxu0 %v1439_v50 }
  0x31   :  { %1298 = vmatprep.subr.bf16.mxu0 %v1446_v54 }
  0x32   :  { %1377 = vmatpush3.bf16.msra.mxu1 %v1439_v50 }
  0x33   :  { %744 = vmatmul.mubr.bf16.gmra.mrb[8].mxu0 %v1436_v48  ;;  %1370 = vmatprep.subr.bf16.mxu1 %v1446_v54 }
  0x34   :  { %825 = vmatmul.mubr.bf16.gmra.mrb[8].mxu1 %v1437_v51  ;;  %751 = vmatprep.mubr.bf16.mxu0 %v1440_v52 }
  0x35   :  { %832 = vmatprep.mubr.bf16.mxu1 %v1442_v53  ;;  %1299 = vmatpush3.bf16.msra.mxu0 %v1447_v55 }
  0x36   :  { %1300 = vmatprep.subr.bf16.mxu0 %v1448_v56  ;;  %1378 = vmatpush3.bf16.msra.mxu1 %v1447_v55 }
  0x37   :  { %1371 = vmatprep.subr.bf16.mxu1 %v1448_v56 }
  0x39   :  { %1301 = vmatpush3.bf16.msra.mxu0 %v1453_v60 }
  0x3a   :  { %1302 = vmatprep.subr.bf16.mxu0 %v1456_v62  ;;  %1379 = vmatpush3.bf16.msra.mxu1 %v1453_v60 }
  0x3b   :  { %752 = vmatmul.mubr.bf16.gmra.mrb[12].mxu0 %v1444_v57  ;;  %1372 = vmatprep.subr.bf16.mxu1 %v1456_v62 }
  0x3c   :  { %833 = vmatmul.mubr.bf16.gmra.mrb[12].mxu1 %v1445_v58  ;;  %759 = vmatprep.mubr.bf16.mxu0 %v1449_v59 }
  0x3d   :  { %840 = vmatprep.mubr.bf16.mxu1 %v1451_v61  ;;  %1303 = vmatpush3.bf16.msra.mxu0 %v1457_v63 }
  0x3e   :  { %1304 = vmatprep.subr.bf16.mxu0 %v1464_v1  ;;  %1380 = vmatpush3.bf16.msra.mxu1 %v1457_v63 }
  0x3f   :  { %1373 = vmatprep.subr.bf16.mxu1 %v1464_v1 }
  0x41   :  { %1305 = vmatpush3.bf16.msra.mxu0 %v1465_v2 }
  0x42   :  { %1381 = vmatpush3.bf16.msra.mxu1 %v1465_v2 }
  0x43   :  { %760 = vmatmul.mubr.bf16.gmra.mrb[16].mxu0 %v1454_v0  ;;  %1350 = vmatprep.subr.bf16.mxu1 %v1472_v6 }
  0x44   :  { %841 = vmatmul.mubr.bf16.gmra.mrb[16].mxu1 %v1455_v3  ;;  %767 = vmatprep.mubr.bf16.mxu0 %v1458_v4 }
  0x45   :  { %848 = vmatprep.mubr.bf16.mxu1 %v1460_v5 }
  0x4b   :  { %768 = vmatmul.mubr.bf16.gmra.mrb[20].mxu0 %v1462_v7 }
  0x4c   :  { %849 = vmatmul.mubr.bf16.gmra.mrb[20].mxu1 %v1463_v8  ;;  %889 = vmatprep.mubr.bf16.mxu0 %v1468_v9 }
  0x4d   :  { %929 = vmatprep.mubr.bf16.mxu1 %v1471_v10 }
  0x53   :  { %890 = vmatmul.mubr.bf16.vlgmr.msra.gmra.mrb[24].mxu0 %v1466_v11 }
  0x54   :  { %930 = vmatmul.mubr.bf16.vlgmr.msra.gmra.mrb[24].mxu1 %v1469_v12  ;;  %897 = vmatprep.mubr.bf16.mxu0 %v1474_v13 }
  0x55   :  { %1351 = vmatpush3.bf16.msra.mxu1 %v1472_v6  ;;  %1354 = vmatprep.mubr.msk.bf16.mxu1 %vm676_vm0, %v1476_v14 }
  0x56   :  { %1352 = vmatprep.subr.bf16.mxu1 %v1473_v15 }
  0x59   :  { %1353 = vmatpush3.bf16.msra.mxu1 %v1473_v15 }
  0x5b   :  { %898 = vmatmul.mubr.bf16.gmra.mrb[28].mxu0 %v1477_v16 }
  0x5c   :  { %1355 = vmatmul.mubr.msk.bf16.vlgmr.msra.gmra.mrb[28].mxu1 %vm676_vm0, %v1478_v17  ;;  %905 = vmatprep.mubr.bf16.mxu0 %v1479_v18 }
  0x5d   :  { %1358 = vmatprep.mubr.msk.bf16.mxu1 %vm676_vm0, %v1481_v19 }
  0x63   :  { %906 = vmatmul.mubr.bf16.gmra.mrb[32].mxu0 %v1482_v20 }
  0x64   :  { %1359 = vmatmul.mubr.msk.bf16.gmra.mrb[32].mxu1 %vm676_vm0, %v1483_v21  ;;  %913 = vmatprep.mubr.bf16.mxu0 %v1484_v22 }
  0x65   :  { %1362 = vmatprep.mubr.msk.bf16.mxu1 %vm676_vm0, %v1486_v23 }
  0x6b   :  { %914 = vmatmul.mubr.bf16.gmra.mrb[36].mxu0 %v1487_v24 }
  0x6c   :  { %1363 = vmatmul.mubr.msk.bf16.gmra.mrb[36].mxu1 %vm676_vm0, %v1488_v25  ;;  %921 = vmatprep.mubr.bf16.mxu0 %v1489_v26 }
  0x73   :  { %922 = vmatmul.mubr.bf16.gmra.mrb[40].mxu0 %v1491_v27 }
  0xf6   :  { %v1202_v28 = vpop.f32.mrb[0].mxu0 }
  0xf7   :  { %v1254_v29 = vpop.f32.mrb[0].mxu1  ;;  %v1203_v30 = vpop.f32.mrb[1].mxu0 }
  0xf8   :  { %v1204_v31 = vadd.f32 %v1203_v30, %v1202_v28  ;;  %v1255_v32 = vpop.f32.mrb[1].mxu1  ;;  %v1205_v33 = vpop.f32.mrb[2].mxu0 }
  0xf9   :  { %v1256_v34 = vadd.f32 %v1255_v32, %v1254_v29  ;;  %v1257_v35 = vpop.f32.mrb[2].mxu1  ;;  %v1206_v36 = vpop.f32.mrb[3].mxu0 }
  0xfa   :  { %v1207_v37 = vadd.f32 %v1206_v36, %v1205_v33  ;;  %v1258_v38 = vpop.f32.mrb[3].mxu1 }
  0xfb   :  { %v1799_v39 = vadd.f32 %v1256_v34, %v1204_v31  ;;  %v1259_v40 = vadd.f32 %v1258_v38, %v1257_v35 }
  0xfd   :  { %v1801_v41 = vadd.f32 %v1259_v40, %v1207_v37 }
  0xfe   :  { %v1208_v42 = vpop.f32.mrb[4].mxu0 }
  0xff   :  { %v1260_v43 = vpop.f32.mrb[4].mxu1  ;;  %v1209_v44 = vpop.f32.mrb[5].mxu0 }
 0x100   :  { %v1210_v45 = vadd.f32 %v1209_v44, %v1208_v42  ;;  %v1261_v46 = vpop.f32.mrb[5].mxu1  ;;  %v1211_v47 = vpop.f32.mrb[6].mxu0 }
 0x101   :  { %v1262_v48 = vadd.f32 %v1261_v46, %v1260_v43  ;;  %v1263_v49 = vpop.f32.mrb[6].mxu1  ;;  %v1212_v50 = vpop.f32.mrb[7].mxu0 }
 0x102   :  { %v1213_v51 = vadd.f32 %v1212_v50, %v1211_v47  ;;  %v1264_v52 = vpop.f32.mrb[7].mxu1 }
 0x103   :  { %v1803_v53 = vadd.f32 %v1262_v48, %v1210_v45  ;;  %v1265_v54 = vadd.f32 %v1264_v52, %v1263_v49 }
 0x105   :  { %v1805_v55 = vadd.f32 %v1265_v54, %v1213_v51 }
 0x106   :  { %v1214_v56 = vpop.f32.mrb[8].mxu0 }
 0x107   :  { %v1266_v57 = vpop.f32.mrb[8].mxu1  ;;  %v1215_v58 = vpop.f32.mrb[9].mxu0 }
 0x108   :  { %v1216_v59 = vadd.f32 %v1215_v58, %v1214_v56  ;;  %v1267_v60 = vpop.f32.mrb[9].mxu1  ;;  %v1217_v61 = vpop.f32.mrb[10].mxu0 }
 0x109   :  { %v1268_v62 = vadd.f32 %v1267_v60, %v1266_v57  ;;  %v1269_v63 = vpop.f32.mrb[10].mxu1  ;;  %v1218_v0 = vpop.f32.mrb[11].mxu0 }
 0x10a   :  { %v1219_v1 = vadd.f32 %v1218_v0, %v1217_v61  ;;  %v1270_v2 = vpop.f32.mrb[11].mxu1 }
 0x10b   :  { %v1807_v3 = vadd.f32 %v1268_v62, %v1216_v59  ;;  %v1271_v4 = vadd.f32 %v1270_v2, %v1269_v63 }
 0x10d   :  { %v1809_v5 = vadd.f32 %v1271_v4, %v1219_v1 }
 0x10e   :  { %v1220_v6 = vpop.f32.mrb[12].mxu0 }
 0x10f   :  { %v1272_v7 = vpop.f32.mrb[12].mxu1  ;;  %v1221_v8 = vpop.f32.mrb[13].mxu0 }
 0x110   :  { %v1222_v9 = vadd.f32 %v1221_v8, %v1220_v6  ;;  %v1273_v10 = vpop.f32.mrb[13].mxu1  ;;  %v1223_v11 = vpop.f32.mrb[14].mxu0 }
 0x111   :  { %v1274_v12 = vadd.f32 %v1273_v10, %v1272_v7  ;;  %v1275_v13 = vpop.f32.mrb[14].mxu1  ;;  %v1224_v14 = vpop.f32.mrb[15].mxu0  ;;  %v1826_v10 = vld [vmem:[%s1916_s2] ss:$0 sm:$0xff] }
 0x112   :  { %v1225_v15 = vadd.f32 %v1224_v14, %v1223_v11  ;;  %v1276_v16 = vpop.f32.mrb[15].mxu1 }
 0x113   :  { %v1811_v17 = vadd.f32 %v1274_v12, %v1222_v9  ;;  %v1277_v18 = vadd.f32 %v1276_v16, %v1275_v13 }
 0x115   :  { %v1813_v19 = vadd.f32 %v1277_v18, %v1225_v15 }
 0x116   :  { %v1226_v20 = vpop.f32.mrb[16].mxu0 }
 0x117   :  { %v1278_v21 = vpop.f32.mrb[16].mxu1  ;;  %v1227_v22 = vpop.f32.mrb[17].mxu0 }
 0x118   :  { %v1228_v23 = vadd.f32 %v1227_v22, %v1226_v20  ;;  %v1279_v24 = vpop.f32.mrb[17].mxu1  ;;  %v1229_v25 = vpop.f32.mrb[18].mxu0 }
 0x119   :  { %v1280_v26 = vadd.f32 %v1279_v24, %v1278_v21  ;;  %v1281_v27 = vpop.f32.mrb[18].mxu1  ;;  %v1230_v28 = vpop.f32.mrb[19].mxu0 }
 0x11a   :  { %v1231_v29 = vadd.f32 %v1230_v28, %v1229_v25  ;;  %v1282_v30 = vpop.f32.mrb[19].mxu1 }
 0x11b   :  { %v1815_v31 = vadd.f32 %v1280_v26, %v1228_v23  ;;  %v1283_v32 = vadd.f32 %v1282_v30, %v1281_v27 }
 0x11d   :  { %v1817_v33 = vadd.f32 %v1283_v32, %v1231_v29 }
 0x11e   :  { %v1232_v34 = vpop.f32.mrb[20].mxu0 }
 0x11f   :  { %v1284_v35 = vpop.f32.mrb[20].mxu1  ;;  %v1233_v36 = vpop.f32.mrb[21].mxu0 }
 0x120   :  { %v1234_v37 = vadd.f32 %v1233_v36, %v1232_v34  ;;  %v1285_v38 = vpop.f32.mrb[21].mxu1  ;;  %v1235_v40 = vpop.f32.mrb[22].mxu0 }
 0x121   :  { %v1286_v42 = vadd.f32 %v1285_v38, %v1284_v35  ;;  %v1287_v43 = vpop.f32.mrb[22].mxu1  ;;  %v1236_v44 = vpop.f32.mrb[23].mxu0 }
 0x122   :  { %v1237_v45 = vadd.f32 %v1236_v44, %v1235_v40  ;;  %v1288_v46 = vpop.f32.mrb[23].mxu1 }
 0x123   :  { %v851_v47 = vadd.f32 %v1286_v42, %v1234_v37  ;;  %v1289_v48 = vadd.f32 %v1288_v46, %v1287_v43 }
 0x125   :  { %v854_v49 = vadd.f32 %v1289_v48, %v1237_v45 }
 0x126   :  { %v1306_v50 = vpop.f32.mrb[24].mxu0 }
 0x127   :  { %v1336_v51 = vpop.f32.mrb[24].mxu1  ;;  %v1307_v52 = vpop.f32.mrb[25].mxu0 }
 0x128   :  { %v1308_v54 = vadd.f32 %v1307_v52, %v1306_v50  ;;  %v1337_v56 = vpop.f32.mrb[25].mxu1  ;;  %v1309_v57 = vpop.f32.mrb[26].mxu0 }
 0x129   :  { %v1338_v58 = vadd.f32 %v1337_v56, %v1336_v51  ;;  %v1339_v59 = vpop.f32.mrb[26].mxu1  ;;  %v1310_v60 = vpop.f32.mrb[27].mxu0 }
 0x12a   :  { %v1311_v61 = vadd.f32 %v1310_v60, %v1309_v57  ;;  %v1340_v62 = vpop.f32.mrb[27].mxu1  ;;  %v892_v63 = vadd.f32 %v1308_v54, %v1799_v39 }
 0x12b   :  { %v1341_v0 = vadd.f32 %v1340_v62, %v1339_v59  ;;  %v932_v1 = vadd.f32 %v1338_v58, %v851_v47 }
 0x12c   :  { %v895_v2 = vadd.f32 %v1311_v61, %v1801_v41  ;;  %v1832_v41 = vld [vmem:[%s1917_s3] ss:$0 sm:$0xff] }
 0x12d   :  { %v1821_v4 = vadd.f32 %v1341_v0, %v854_v49 }
 0x12e   :  { %v1312_v6 = vpop.f32.mrb[28].mxu0 }
 0x12f   :  { %v1356_v7 = vpop.f32.mrb[28].mxu1  ;;  %v1313_v8 = vpop.f32.mrb[29].mxu0 }
 0x130   :  { %v1314_v9 = vadd.f32 %v1313_v8, %v1312_v6  ;;  %v972_v11 = vpop.f32.mrb[29].mxu1  ;;  %v1315_v12 = vpop.f32.mrb[30].mxu0 }
 0x131   :  { %v973_v13 = vadd.f32 %v972_v11, %v892_v63  ;;  %v1357_v14 = vpop.f32.mrb[30].mxu1  ;;  %v1316_v39 = vpop.f32.mrb[31].mxu0 }
 0x132   :  { %v900_v15 = vadd.f32 %v1314_v9, %v1803_v53  ;;  %v1317_v16 = vadd.f32 %v1316_v39, %v1315_v12  ;;  %v975_v18 = vpop.f32.mrb[31].mxu1 }
 0x133   :  { %v1026_v20 = vmul.f32 %v1826_v10, %v973_v13  ;;  %v976_v21 = vadd.f32 %v975_v18, %v895_v2 }
 0x134   :  { %v981_v22 = vadd.f32 %v1356_v7, %v900_v15  ;;  %v903_v23 = vadd.f32 %v1317_v16, %v1805_v55 }
 0x135   :  { %v1045_v24 = vadd.f32 %v1832_v41, %v1026_v20  ;;  %v1027_v25 = vmul.f32 %v1826_v10, %v976_v21 }
 0x136   :  { %v1028_v26 = vmul.f32 %v1826_v10, %v981_v22  ;;  %v984_v53 = vadd.f32 %v1357_v14, %v903_v23  ;;  %v1318_v27 = vpop.f32.mrb[32].mxu0 }
 0x137   :  { %v1057_v28 = vmax.f32 %v1045_v24, 0.0  ;;  %v1046_v29 = vadd.f32 %v1832_v41, %v1027_v25  ;;  %v1319_v30 = vpop.f32.mrb[33].mxu0  ;;  %v1360_v32 = vpop.f32.mrb[32].mxu1 }
 0x138   :  { %v1047_v34 = vadd.f32 %v1832_v41, %v1028_v26  ;;  %v1029_v35 = vmul.f32 %v1826_v10, %v984_v53  ;;  %v1320_v36 = vadd.f32 %v1319_v30, %v1318_v27  ;;  %v1321_v55 = vpop.f32.mrb[34].mxu0  ;;  %v988_v37 = vpop.f32.mrb[33].mxu1 }
 0x139   :  { %1070 = vst.msk [vmem:[%s1918_s4] sm:$0xff] %vm1069_vm1, %v1057_v28  ;;  %v1058_v38 = vmax.f32 %v1046_v29, 0.0  ;;  %v1322_v40 = vpop.f32.mrb[35].mxu0  ;;  %v1361_v42 = vpop.f32.mrb[34].mxu1 }
 0x13a   :  { %v1059_v43 = vmax.f32 %v1047_v34, 0.0  ;;  %v1048_v44 = vadd.f32 %v1832_v41, %v1029_v35  ;;  %v1323_v45 = vadd.f32 %v1322_v40, %v1321_v55  ;;  %v908_v46 = vadd.f32 %v1320_v36, %v1807_v3  ;;  %v991_v47 = vpop.f32.mrb[35].mxu1 }
 0x13b   :  { %1071 = vst.msk [vmem:[%s1918_s4 + $0x8] sm:$0xff] %vm1069_vm1, %v1058_v38 }
 0x13c   :  { %1072 = vst.msk [vmem:[%s1918_s4 + $0x10] sm:$0xff] %vm1069_vm1, %v1059_v43  ;;  %v1060_v48 = vmax.f32 %v1048_v44, 0.0  ;;  %v989_v49 = vadd.f32 %v988_v37, %v908_v46  ;;  %v911_v50 = vadd.f32 %v1323_v45, %v1809_v5 }
 0x13e   :  { %1073 = vst.msk [vmem:[%s1918_s4 + $0x18] sm:$0xff] %vm1069_vm1, %v1060_v48  ;;  %v1030_v3 = vmul.f32 %v1826_v10, %v989_v49  ;;  %v992_v51 = vadd.f32 %v991_v47, %v911_v50  ;;  %v1324_v52 = vpop.f32.mrb[36].mxu0 }
 0x13f   :  { %v1364_v54 = vpop.f32.mrb[36].mxu1  ;;  %v1325_v56 = vpop.f32.mrb[37].mxu0 }
 0x140   :  { %v1049_v57 = vadd.f32 %v1832_v41, %v1030_v3  ;;  %v1031_v58 = vmul.f32 %v1826_v10, %v992_v51  ;;  %v1013_v59 = vadd.f32 %v1364_v54, %v932_v1  ;;  %v1326_v60 = vadd.f32 %v1325_v56, %v1324_v52  ;;  %v1004_v61 = vpop.f32.mrb[37].mxu1  ;;  %v1327_v62 = vpop.f32.mrb[38].mxu0 }
 0x141   :  { %v1365_v5 = vpop.f32.mrb[38].mxu1  ;;  %v1328_v63 = vpop.f32.mrb[39].mxu0 }
 0x142   :  { %v1061_v0 = vmax.f32 %v1049_v57, 0.0  ;;  %v1050_v2 = vadd.f32 %v1832_v41, %v1031_v58  ;;  %v1036_v6 = vmul.f32 %v1826_v10, %v1013_v59  ;;  %v916_v7 = vadd.f32 %v1326_v60, %v1811_v17  ;;  %v1007_v8 = vpop.f32.mrb[39].mxu1 }
 0x143   :  { %v1016_v9 = vadd.f32 %v1365_v5, %v1821_v4  ;;  %v1329_v11 = vadd.f32 %v1328_v63, %v1327_v62 }
 0x144   :  { %1074 = vst.msk [vmem:[%s1918_s4 + $0x20] sm:$0xff] %vm1069_vm1, %v1061_v0  ;;  %v1062_v1 = vmax.f32 %v1050_v2, 0.0  ;;  %v1055_v12 = vadd.f32 %v1832_v41, %v1036_v6  ;;  %v997_v13 = vadd.f32 %v1360_v32, %v916_v7 }
 0x145   :  { %v1037_v14 = vmul.f32 %v1826_v10, %v1016_v9  ;;  %v919_v39 = vadd.f32 %v1329_v11, %v1813_v19 }
 0x146   :  { %1075 = vst.msk [vmem:[%s1918_s4 + $0x28] sm:$0xff] %vm1069_vm1, %v1062_v1  ;;  %v1067_v17 = vmax.f32 %v1055_v12, 0.0  ;;  %v1032_v4 = vmul.f32 %v1826_v10, %v997_v13  ;;  %v1330_v15 = vpop.f32.mrb[40].mxu0 }
 0x147   :  { %v1056_v16 = vadd.f32 %v1832_v41, %v1037_v14  ;;  %v1000_v18 = vadd.f32 %v1361_v42, %v919_v39  ;;  %v1331_v20 = vpop.f32.mrb[41].mxu0 }
 0x148   :  { %1080 = vst.msk [vmem:[%s1918_s4 + $0x50] sm:$0xff] %vm1069_vm1, %v1067_v17  ;;  %v1051_v19 = vadd.f32 %v1832_v41, %v1032_v4  ;;  %v1332_v21 = vadd.f32 %v1331_v20, %v1330_v15  ;;  %v1333_v22 = vpop.f32.mrb[42].mxu0 }
 0x149   :  { %v1068_v23 = vmax.f32 %v1056_v16, 0.0  ;;  %v1033_v24 = vmul.f32 %v1826_v10, %v1000_v18  ;;  %v1334_v25 = vpop.f32.mrb[43].mxu0 }
 0x14a   :  { %v1063_v26 = vmax.f32 %v1051_v19, 0.0  ;;  %v924_v53 = vadd.f32 %v1332_v21, %v1815_v31  ;;  %v1335_v27 = vadd.f32 %v1334_v25, %v1333_v22 }
 0x14b   :  { %1081 = vst.msk [vmem:[%s1918_s4 + $0x58] sm:$0xff] %vm1069_vm1, %v1068_v23  ;;  %v1052_v28 = vadd.f32 %v1832_v41, %v1033_v24 }
 0x14c   :  { %1076 = vst.msk [vmem:[%s1918_s4 + $0x30] sm:$0xff] %vm1069_vm1, %v1063_v26  ;;  %v1005_v29 = vadd.f32 %v1004_v61, %v924_v53  ;;  %v927_v30 = vadd.f32 %v1335_v27, %v1817_v33 }
 0x14d   :  { %v1064_v32 = vmax.f32 %v1052_v28, 0.0 }
 0x14e   :  { %v1034_v34 = vmul.f32 %v1826_v10, %v1005_v29  ;;  %v1008_v31 = vadd.f32 %v1007_v8, %v927_v30 }
 0x14f   :  { %1077 = vst.msk [vmem:[%s1918_s4 + $0x38] sm:$0xff] %vm1069_vm1, %v1064_v32 }
 0x150   :  { %v1053_v35 = vadd.f32 %v1832_v41, %v1034_v34  ;;  %v1035_v36 = vmul.f32 %v1826_v10, %v1008_v31 }
 0x152   :  { %v1065_v55 = vmax.f32 %v1053_v35, 0.0  ;;  %v1054_v37 = vadd.f32 %v1832_v41, %v1035_v36 }
 0x154   :  { %1078 = vst.msk [vmem:[%s1918_s4 + $0x40] sm:$0xff] %vm1069_vm1, %v1065_v55  ;;  %v1066_v33 = vmax.f32 %v1054_v37, 0.0 }
 0x156   :  { %1079 = vst.msk [vmem:[%s1918_s4 + $0x48] sm:$0xff] %vm1069_vm1, %v1066_v33 }

// kernel: basicsknet_forward.30
= control target key start
LH: loop header
LB: loop body
LE: loop exit
PB: predicated region body
PF: predicated region fallthrough
CT: control target
= control target key end

     0   :  { %vm157_vm0 = vcmask 261120   ;;  %s437_s0 = inlined_call_operand.vmem [shape: f32[96,32], index: 0, kind: input, shape index: {}]   ;;  %s438_s1 = inlined_call_operand.vmem [shape: f32[96,32], index: 1, kind: input, shape index: {}]   ;;  %s439_s2 = inlined_call_operand.vmem [shape: f32[96,32], index: 2, kind: input, shape index: {}]   ;;  %s440_s3 = inlined_call_operand.vmem [shape: f32[96,32], index: 3, kind: input, shape index: {}]   ;;  %s441_s4 = inlined_call_operand.vmem [shape: f32[1,32], index: 4, kind: input, shape index: {}]   ;;  %s442_s5 = inlined_call_operand.vmem [shape: f32[1,32], index: 5, kind: input, shape index: {}]   ;;  %s443_s6 = inlined_call_operand.vmem [shape: f32[96,32], index: 6, kind: output, shape index: {}]  }
   0x1   :  { %v23_v0 = vld [vmem:[%s437_s0] sm:$0xff]  ;;  %v24_v7 = vld [vmem:[%s437_s0 + $0x8] sm:$0xff]  ;;  %v25_v13 = vld [vmem:[%s437_s0 + $0x10] sm:$0xff] }
   0x2   :  { %v35_v1 = vld [vmem:[%s439_s2] sm:$0xff]  ;;  %v36_v8 = vld [vmem:[%s439_s2 + $0x8] sm:$0xff]  ;;  %v37_v14 = vld [vmem:[%s439_s2 + $0x10] sm:$0xff] }
   0x3   :  { %v59_v2 = vld [vmem:[%s438_s1] sm:$0xff]  ;;  %v47_v3 = vmul.f32 %v35_v1, %v23_v0  ;;  %v60_v9 = vld [vmem:[%s438_s1 + $0x8] sm:$0xff]  ;;  %v48_v11 = vmul.f32 %v36_v8, %v24_v7  ;;  %v49_v17 = vmul.f32 %v37_v14, %v25_v13  ;;  %v61_v18 = vld [vmem:[%s438_s1 + $0x10] sm:$0xff] }
   0x4   :  { %v71_v4 = vld [vmem:[%s440_s3] sm:$0xff]  ;;  %v72_v12 = vld [vmem:[%s440_s3 + $0x8] sm:$0xff]  ;;  %v73_v19 = vld [vmem:[%s440_s3 + $0x10] sm:$0xff] }
   0x5   :  { %v226_v5 = vld [vmem:[%s441_s4] ss:$0 sm:$0xff]  ;;  %v83_v6 = vmul.f32 %v71_v4, %v59_v2  ;;  %v84_v16 = vmul.f32 %v72_v12, %v60_v9  ;;  %v26_v20 = vld [vmem:[%s437_s0 + $0x18] sm:$0xff]  ;;  %v85_v21 = vmul.f32 %v73_v19, %v61_v18  ;;  %v28_v35 = vld [vmem:[%s437_s0 + $0x28] sm:$0xff] }
   0x6   :  { %v240_v10 = vld [vmem:[%s442_s5] ss:$0 sm:$0xff]  ;;  %v38_v22 = vld [vmem:[%s439_s2 + $0x18] sm:$0xff]  ;;  %v40_v36 = vld [vmem:[%s439_s2 + $0x28] sm:$0xff] }
   0x7   :  { %v95_v15 = vadd.f32 %v83_v6, %v47_v3  ;;  %v62_v23 = vld [vmem:[%s438_s1 + $0x18] sm:$0xff]  ;;  %v96_v26 = vadd.f32 %v84_v16, %v48_v11  ;;  %v50_v27 = vmul.f32 %v38_v22, %v26_v20  ;;  %v27_v29 = vld [vmem:[%s437_s0 + $0x20] sm:$0xff]  ;;  %v97_v32 = vadd.f32 %v85_v21, %v49_v17  ;;  %v64_v41 = vld [vmem:[%s438_s1 + $0x28] sm:$0xff] }
   0x8   :  { %v74_v24 = vld [vmem:[%s440_s3 + $0x18] sm:$0xff]  ;;  %v39_v30 = vld [vmem:[%s439_s2 + $0x20] sm:$0xff]  ;;  %v76_v42 = vld [vmem:[%s440_s3 + $0x28] sm:$0xff]  ;;  %v52_v45 = vmul.f32 %v40_v36, %v28_v35 }
   0x9   :  { %v114_v25 = vmul.f32 %v226_v5, %v95_v15  ;;  %v86_v28 = vmul.f32 %v74_v24, %v62_v23  ;;  %v63_v31 = vld [vmem:[%s438_s1 + $0x20] sm:$0xff]  ;;  %v51_v33 = vmul.f32 %v39_v30, %v27_v29  ;;  %v115_v38 = vmul.f32 %v226_v5, %v96_v26  ;;  %v29_v43 = vld [vmem:[%s437_s0 + $0x30] sm:$0xff]  ;;  %v30_v54 = vld [vmem:[%s437_s0 + $0x38] sm:$0xff] }
   0xa   :  { %v75_v34 = vld [vmem:[%s440_s3 + $0x20] sm:$0xff]  ;;  %v116_v44 = vmul.f32 %v226_v5, %v97_v32  ;;  %v88_v46 = vmul.f32 %v76_v42, %v64_v41  ;;  %v41_v47 = vld [vmem:[%s439_s2 + $0x30] sm:$0xff]  ;;  %v42_v55 = vld [vmem:[%s439_s2 + $0x38] sm:$0xff] }
   0xb   :  { %v133_v37 = vadd.f32 %v240_v10, %v114_v25  ;;  %v98_v39 = vadd.f32 %v86_v28, %v50_v27  ;;  %v87_v40 = vmul.f32 %v75_v34, %v63_v31  ;;  %v65_v48 = vld [vmem:[%s438_s1 + $0x30] sm:$0xff]  ;;  %v134_v51 = vadd.f32 %v240_v10, %v115_v38  ;;  %v66_v56 = vld [vmem:[%s438_s1 + $0x38] sm:$0xff]  ;;  %v31_v62 = vld [vmem:[%s437_s0 + $0x40] sm:$0xff] }
   0xc   :  { %v77_v49 = vld [vmem:[%s440_s3 + $0x30] sm:$0xff]  ;;  %v135_v57 = vadd.f32 %v240_v10, %v116_v44  ;;  %v100_v58 = vadd.f32 %v88_v46, %v52_v45  ;;  %v53_v59 = vmul.f32 %v41_v47, %v29_v43  ;;  %v78_v61 = vld [vmem:[%s440_s3 + $0x38] sm:$0xff]  ;;  %v43_v63 = vld [vmem:[%s439_s2 + $0x40] sm:$0xff]  ;;  %v54_v3 = vmul.f32 %v42_v55, %v30_v54 }
   0xd   :  { %v145_v50 = vmax.f32 %v133_v37, 0.0  ;;  %v117_v52 = vmul.f32 %v226_v5, %v98_v39  ;;  %v99_v53 = vadd.f32 %v87_v40, %v51_v33  ;;  %v89_v60 = vmul.f32 %v77_v49, %v65_v48  ;;  %v67_v4 = vld [vmem:[%s438_s1 + $0x40] sm:$0xff]  ;;  %v32_v7 = vld [vmem:[%s437_s0 + $0x48] sm:$0xff]  ;;  %v33_v20 = vld [vmem:[%s437_s0 + $0x50] sm:$0xff] }
   0xe   :  { %v146_v0 = vmax.f32 %v134_v51, 0.0  ;;  %v79_v6 = vld [vmem:[%s440_s3 + $0x40] sm:$0xff]  ;;  %v147_v8 = vmax.f32 %v135_v57, 0.0  ;;  %v119_v9 = vmul.f32 %v226_v5, %v100_v58  ;;  %v90_v12 = vmul.f32 %v78_v61, %v66_v56  ;;  %v44_v13 = vld [vmem:[%s439_s2 + $0x48] sm:$0xff]  ;;  %v45_v21 = vld [vmem:[%s439_s2 + $0x50] sm:$0xff] }
   0xf   :  { %158 = vst.msk [vmem:[%s443_s6] sm:$0xff] %vm157_vm0, %v145_v50  ;;  %v136_v1 = vadd.f32 %v240_v10, %v117_v52  ;;  %v118_v2 = vmul.f32 %v226_v5, %v99_v53  ;;  %v101_v11 = vadd.f32 %v89_v60, %v53_v59  ;;  %v68_v14 = vld [vmem:[%s438_s1 + $0x48] sm:$0xff]  ;;  %v55_v18 = vmul.f32 %v43_v63, %v31_v62  ;;  %v69_v22 = vld [vmem:[%s438_s1 + $0x50] sm:$0xff]  ;;  %v34_v28 = vld [vmem:[%s437_s0 + $0x58] sm:$0xff] }
  0x10   :  { %v80_v15 = vld [vmem:[%s440_s3 + $0x48] sm:$0xff]  ;;  %159 = vst.msk [vmem:[%s443_s6 + $0x8] sm:$0xff] %vm157_vm0, %v146_v0  ;;  %v91_v19 = vmul.f32 %v79_v6, %v67_v4  ;;  %160 = vst.msk [vmem:[%s443_s6 + $0x10] sm:$0xff] %vm157_vm0, %v147_v8  ;;  %v138_v23 = vadd.f32 %v240_v10, %v119_v9  ;;  %v102_v25 = vadd.f32 %v90_v12, %v54_v3  ;;  %v81_v27 = vld [vmem:[%s440_s3 + $0x50] sm:$0xff] }
  0x11   :  { %v148_v16 = vmax.f32 %v136_v1, 0.0  ;;  %v137_v17 = vadd.f32 %v240_v10, %v118_v2  ;;  %v120_v24 = vmul.f32 %v226_v5, %v101_v11  ;;  %v56_v26 = vmul.f32 %v44_v13, %v32_v7  ;;  %v46_v29 = vld [vmem:[%s439_s2 + $0x58] sm:$0xff] }
  0x12   :  { %v103_v31 = vadd.f32 %v91_v19, %v55_v18  ;;  %v92_v32 = vmul.f32 %v80_v15, %v68_v14  ;;  %v57_v33 = vmul.f32 %v45_v21, %v33_v20  ;;  %v70_v34 = vld [vmem:[%s438_s1 + $0x58] sm:$0xff]  ;;  %v150_v36 = vmax.f32 %v138_v23, 0.0 }
  0x13   :  { %161 = vst.msk [vmem:[%s443_s6 + $0x18] sm:$0xff] %vm157_vm0, %v148_v16  ;;  %v149_v30 = vmax.f32 %v137_v17, 0.0  ;;  %v82_v35 = vld [vmem:[%s440_s3 + $0x58] sm:$0xff]  ;;  %v139_v37 = vadd.f32 %v240_v10, %v120_v24  ;;  %v121_v38 = vmul.f32 %v226_v5, %v102_v25  ;;  %v93_v39 = vmul.f32 %v81_v27, %v69_v22 }
  0x14   :  { %v122_v40 = vmul.f32 %v226_v5, %v103_v31  ;;  %v104_v41 = vadd.f32 %v92_v32, %v56_v26  ;;  %v58_v42 = vmul.f32 %v46_v29, %v34_v28  ;;  %v94_v43 = vmul.f32 %v82_v35, %v70_v34  ;;  %163 = vst.msk [vmem:[%s443_s6 + $0x28] sm:$0xff] %vm157_vm0, %v150_v36 }
  0x15   :  { %162 = vst.msk [vmem:[%s443_s6 + $0x20] sm:$0xff] %vm157_vm0, %v149_v30  ;;  %v151_v44 = vmax.f32 %v139_v37, 0.0  ;;  %v140_v45 = vadd.f32 %v240_v10, %v121_v38  ;;  %v105_v46 = vadd.f32 %v93_v39, %v57_v33 }
  0x16   :  { %v141_v47 = vadd.f32 %v240_v10, %v122_v40  ;;  %v123_v48 = vmul.f32 %v226_v5, %v104_v41  ;;  %v106_v49 = vadd.f32 %v94_v43, %v58_v42 }
  0x17   :  { %164 = vst.msk [vmem:[%s443_s6 + $0x30] sm:$0xff] %vm157_vm0, %v151_v44  ;;  %v152_v50 = vmax.f32 %v140_v45, 0.0  ;;  %v124_v51 = vmul.f32 %v226_v5, %v105_v46 }
  0x18   :  { %v153_v52 = vmax.f32 %v141_v47, 0.0  ;;  %v142_v53 = vadd.f32 %v240_v10, %v123_v48  ;;  %v125_v54 = vmul.f32 %v226_v5, %v106_v49 }
  0x19   :  { %165 = vst.msk [vmem:[%s443_s6 + $0x38] sm:$0xff] %vm157_vm0, %v152_v50  ;;  %v143_v55 = vadd.f32 %v240_v10, %v124_v51 }
  0x1a   :  { %166 = vst.msk [vmem:[%s443_s6 + $0x40] sm:$0xff] %vm157_vm0, %v153_v52  ;;  %v154_v56 = vmax.f32 %v142_v53, 0.0  ;;  %v144_v57 = vadd.f32 %v240_v10, %v125_v54 }
  0x1b   :  { %v155_v58 = vmax.f32 %v143_v55, 0.0 }
  0x1c   :  { %167 = vst.msk [vmem:[%s443_s6 + $0x48] sm:$0xff] %vm157_vm0, %v154_v56  ;;  %v156_v5 = vmax.f32 %v144_v57, 0.0 }
  0x1d   :  { %168 = vst.msk [vmem:[%s443_s6 + $0x50] sm:$0xff] %vm157_vm0, %v155_v58 }
  0x1e   :  { %169 = vst.msk [vmem:[%s443_s6 + $0x58] sm:$0xff] %vm157_vm0, %v156_v5 }

// kernel: basicsknet_forward.31
= control target key start
LH: loop header
LB: loop body
LE: loop exit
PB: predicated region body
PF: predicated region fallthrough
CT: control target
= control target key end

     0   :  { %vm76_vm0 = vcmask 261120   ;;  %vm214_vm1 = vcmask 523264   ;;  %s392_s1 = inlined_call_operand.vmem [shape: bf16[32,64], index: 1, kind: input, shape index: {}]   ;;  %s393_s0 = inlined_call_operand.vmem [shape: bf16[96,32], index: 0, kind: input, shape index: {}]   ;;  %s394_s2 = inlined_call_operand.vmem [shape: f32[1,64], index: 2, kind: input, shape index: {}]   ;;  %s395_s3 = inlined_call_operand.vmem [shape: f32[1,64], index: 3, kind: input, shape index: {}]   ;;  %s396_s4 = inlined_call_operand.vmem [shape: f32[96,64], index: 4, kind: output, shape index: {}]  }
   0x1   :  { %v275_v0 = vld [vmem:[%s392_s1] sm:$0xff]   ;;  %v276_v1 = vld [vmem:[%s392_s1 + $0x8] sm:$0xff]   ;;  %v277_v2 = vld [vmem:[%s393_s0 + $0x10] sm:$0xff]  }
   0x2   :  { %271 = vmatprep.subr.bf16.mxu1 %v275_v0  ;;  %255 = vmatprep.subr.bf16.mxu0 %v275_v0  ;;  %v279_v3 = vld [vmem:[%s393_s0] sm:$0xff]   ;;  %v278_v4 = vld [vmem:[%s393_s0 + $0x18] sm:$0xff]   ;;  %v280_v5 = vld [vmem:[%s393_s0 + $0x8] sm:$0xff]  }
   0x3   :  { %273 = vmatpush3.bf16.msra.mxu1 %v275_v0  ;;  %256 = vmatpush3.bf16.msra.mxu0 %v275_v0  ;;  %v281_v6 = vld [vmem:[%s393_s0 + $0x20] sm:$0xff]   ;;  %v282_v7 = vld [vmem:[%s393_s0 + $0x28] sm:$0xff]  }
   0x4   :  { %272 = vmatprep.subr.bf16.mxu1 %v276_v1  ;;  %263 = vmatprep.mubr.msk.bf16.mxu1 %vm76_vm0, %v277_v2  ;;  %v245_v8 = vld [vmem:[%s394_s2] ss:$0 sm:$0xff] }
   0x5   :  { %257 = vmatprep.subr.bf16.mxu0 %v276_v1  ;;  %259 = vmatprep.mubr.msk.bf16.mxu0 %vm76_vm0, %v279_v3  ;;  %v246_v10 = vld [vmem:[%s395_s3] ss:$0 sm:$0xff] }
   0x7   :  { %274 = vmatpush3.bf16.msra.mxu1 %v276_v1  ;;  %258 = vmatpush3.bf16.msra.mxu0 %v276_v1 }
   0xa   :  { %264 = vmatmul.mubr.msk.bf16.vlgmr.msra.gmra.mrb[0].mxu1 %vm76_vm0, %v278_v4  ;;  %260 = vmatmul.mubr.msk.bf16.vlgmr.msra.gmra.mrb[0].mxu0 %vm76_vm0, %v280_v5 }
   0xb   :  { %267 = vmatprep.mubr.msk.bf16.mxu1 %vm76_vm0, %v281_v6 }
  0x12   :  { %268 = vmatmul.mubr.msk.bf16.gmra.mrb[4].mxu1 %vm76_vm0, %v282_v7 }
  0xdd   :  { %v265_v9 = vpop.f32.mrb[0].mxu1  ;;  %v261_v11 = vpop.f32.mrb[0].mxu0 }
  0xde   :  { %v189_v12 = vmul.f32 %v265_v9, %v245_v8  ;;  %v145_v13 = vpop.f32.mrb[1].mxu1  ;;  %v185_v14 = vmul.f32 %v261_v11, %v245_v8  ;;  %v129_v15 = vpop.f32.mrb[1].mxu0 }
  0xdf   :  { %v187_v16 = vmul.f32 %v245_v8, %v145_v13  ;;  %v266_v17 = vpop.f32.mrb[2].mxu1  ;;  %v183_v18 = vmul.f32 %v245_v8, %v129_v15  ;;  %v262_v19 = vpop.f32.mrb[2].mxu0 }
  0xe0   :  { %v208_v20 = vadd.f32 %v246_v10, %v189_v12  ;;  %v190_v21 = vmul.f32 %v266_v17, %v245_v8  ;;  %v148_v22 = vpop.f32.mrb[3].mxu1  ;;  %v204_v23 = vadd.f32 %v246_v10, %v185_v14  ;;  %v186_v24 = vmul.f32 %v262_v19, %v245_v8  ;;  %v132_v25 = vpop.f32.mrb[3].mxu0 }
  0xe1   :  { %v206_v26 = vadd.f32 %v246_v10, %v187_v16  ;;  %v188_v27 = vmul.f32 %v245_v8, %v148_v22  ;;  %v202_v28 = vadd.f32 %v246_v10, %v183_v18  ;;  %v184_v29 = vmul.f32 %v245_v8, %v132_v25 }
  0xe2   :  { %221 = vst.msk [vmem:[%s396_s4 + $0x30] sm:$0xff] %vm214_vm1, %v208_v20  ;;  %v209_v30 = vadd.f32 %v246_v10, %v190_v21  ;;  %217 = vst.msk [vmem:[%s396_s4 + $0x10] sm:$0xff] %vm214_vm1, %v204_v23  ;;  %v205_v31 = vadd.f32 %v246_v10, %v186_v24 }
  0xe3   :  { %219 = vst.msk [vmem:[%s396_s4 + $0x20] sm:$0xff] %vm214_vm1, %v206_v26  ;;  %v207_v32 = vadd.f32 %v246_v10, %v188_v27  ;;  %215 = vst.msk [vmem:[%s396_s4] sm:$0xff] %vm214_vm1, %v202_v28  ;;  %v203_v33 = vadd.f32 %v246_v10, %v184_v29 }
  0xe4   :  { %222 = vst.msk [vmem:[%s396_s4 + $0x38] sm:$0xff] %vm214_vm1, %v209_v30  ;;  %218 = vst.msk [vmem:[%s396_s4 + $0x18] sm:$0xff] %vm214_vm1, %v205_v31 }
  0xe5   :  { %220 = vst.msk [vmem:[%s396_s4 + $0x28] sm:$0xff] %vm214_vm1, %v207_v32  ;;  %216 = vst.msk [vmem:[%s396_s4 + $0x8] sm:$0xff] %vm214_vm1, %v203_v33  ;;  %v269_v34 = vpop.f32.mrb[4].mxu1 }
  0xe6   :  { %v193_v35 = vmul.f32 %v269_v34, %v245_v8  ;;  %v161_v36 = vpop.f32.mrb[5].mxu1 }
  0xe7   :  { %v191_v37 = vmul.f32 %v245_v8, %v161_v36  ;;  %v270_v38 = vpop.f32.mrb[6].mxu1 }
  0xe8   :  { %v212_v39 = vadd.f32 %v246_v10, %v193_v35  ;;  %v194_v40 = vmul.f32 %v270_v38, %v245_v8  ;;  %v164_v41 = vpop.f32.mrb[7].mxu1 }
  0xe9   :  { %v210_v42 = vadd.f32 %v246_v10, %v191_v37  ;;  %v192_v43 = vmul.f32 %v245_v8, %v164_v41 }
  0xea   :  { %225 = vst.msk [vmem:[%s396_s4 + $0x50] sm:$0xff] %vm214_vm1, %v212_v39  ;;  %v213_v44 = vadd.f32 %v246_v10, %v194_v40 }
  0xeb   :  { %223 = vst.msk [vmem:[%s396_s4 + $0x40] sm:$0xff] %vm214_vm1, %v210_v42  ;;  %v211_v45 = vadd.f32 %v246_v10, %v192_v43 }
  0xec   :  { %226 = vst.msk [vmem:[%s396_s4 + $0x58] sm:$0xff] %vm214_vm1, %v213_v44 }
  0xed   :  { %224 = vst.msk [vmem:[%s396_s4 + $0x48] sm:$0xff] %vm214_vm1, %v211_v45 }

// kernel: basicsknet_forward.32
= control target key start
LH: loop header
LB: loop body
LE: loop exit
PB: predicated region body
PF: predicated region fallthrough
CT: control target
= control target key end

     0   :  { %vm79_vm0 = vcmask 261120   ;;  %vm253_vm1 = vcmask 523264   ;;  %s500_s1 = inlined_call_operand.vmem [shape: bf16[32,64], index: 1, kind: input, shape index: {}]   ;;  %s501_s0 = inlined_call_operand.vmem [shape: bf16[96,32], index: 0, kind: input, shape index: {}]   ;;  %s502_s2 = inlined_call_operand.vmem [shape: f32[1,64], index: 2, kind: input, shape index: {}]   ;;  %s503_s3 = inlined_call_operand.vmem [shape: f32[1,64], index: 3, kind: input, shape index: {}]   ;;  %s504_s4 = inlined_call_operand.vmem [shape: f32[96,64], index: 4, kind: input, shape index: {}]   ;;  %s505_s5 = inlined_call_operand.vmem [shape: f32[96,64], index: 5, kind: output, shape index: {}]  }
   0x1   :  { %v314_v0 = vld [vmem:[%s500_s1] sm:$0xff]   ;;  %v315_v1 = vld [vmem:[%s500_s1 + $0x8] sm:$0xff]   ;;  %v316_v2 = vld [vmem:[%s501_s0 + $0x10] sm:$0xff]  }
   0x2   :  { %310 = vmatprep.subr.bf16.mxu1 %v314_v0  ;;  %294 = vmatprep.subr.bf16.mxu0 %v314_v0  ;;  %v318_v3 = vld [vmem:[%s501_s0] sm:$0xff]   ;;  %v317_v4 = vld [vmem:[%s501_s0 + $0x18] sm:$0xff]   ;;  %v319_v5 = vld [vmem:[%s501_s0 + $0x8] sm:$0xff]  }
   0x3   :  { %312 = vmatpush3.bf16.msra.mxu1 %v314_v0  ;;  %295 = vmatpush3.bf16.msra.mxu0 %v314_v0  ;;  %v320_v6 = vld [vmem:[%s501_s0 + $0x20] sm:$0xff]   ;;  %v321_v7 = vld [vmem:[%s501_s0 + $0x28] sm:$0xff]   ;;  %v223_v16 = vld [vmem:[%s504_s4 + $0x30] sm:$0xff] }
   0x4   :  { %311 = vmatprep.subr.bf16.mxu1 %v315_v1  ;;  %302 = vmatprep.mubr.msk.bf16.mxu1 %vm79_vm0, %v316_v2  ;;  %v385_v8 = vld [vmem:[%s502_s2] ss:$0 sm:$0xff]  ;;  %v219_v19 = vld [vmem:[%s504_s4 + $0x10] sm:$0xff]  ;;  %v224_v31 = vld [vmem:[%s504_s4 + $0x38] sm:$0xff] }
   0x5   :  { %296 = vmatprep.subr.bf16.mxu0 %v315_v1  ;;  %298 = vmatprep.mubr.msk.bf16.mxu0 %vm79_vm0, %v318_v3  ;;  %v390_v10 = vld [vmem:[%s503_s3] ss:$0 sm:$0xff]  ;;  %v220_v34 = vld [vmem:[%s504_s4 + $0x18] sm:$0xff]  ;;  %v222_v38 = vld [vmem:[%s504_s4 + $0x28] sm:$0xff] }
   0x6   :  { %v221_v23 = vld [vmem:[%s504_s4 + $0x20] sm:$0xff]  ;;  %v218_v41 = vld [vmem:[%s504_s4 + $0x8] sm:$0xff]  ;;  %v227_v61 = vld [vmem:[%s504_s4 + $0x50] sm:$0xff] }
   0x7   :  { %313 = vmatpush3.bf16.msra.mxu1 %v315_v1  ;;  %297 = vmatpush3.bf16.msra.mxu0 %v315_v1  ;;  %v217_v27 = vld [vmem:[%s504_s4] sm:$0xff] }
   0x8   :  { %v225_v1 = vld [vmem:[%s504_s4 + $0x40] sm:$0xff] }
   0xa   :  { %303 = vmatmul.mubr.msk.bf16.vlgmr.msra.gmra.mrb[0].mxu1 %vm79_vm0, %v317_v4  ;;  %299 = vmatmul.mubr.msk.bf16.vlgmr.msra.gmra.mrb[0].mxu0 %vm79_vm0, %v319_v5  ;;  %v228_v5 = vld [vmem:[%s504_s4 + $0x58] sm:$0xff] }
   0xb   :  { %306 = vmatprep.mubr.msk.bf16.mxu1 %vm79_vm0, %v320_v6 }
  0x12   :  { %307 = vmatmul.mubr.msk.bf16.gmra.mrb[4].mxu1 %vm79_vm0, %v321_v7 }
  0xdd   :  { %v304_v9 = vpop.f32.mrb[0].mxu1  ;;  %v300_v11 = vpop.f32.mrb[0].mxu0 }
  0xde   :  { %v192_v12 = vmul.f32 %v304_v9, %v385_v8  ;;  %v148_v13 = vpop.f32.mrb[1].mxu1  ;;  %v188_v14 = vmul.f32 %v300_v11, %v385_v8  ;;  %v132_v15 = vpop.f32.mrb[1].mxu0  ;;  %v226_v11 = vld [vmem:[%s504_s4 + $0x48] sm:$0xff] }
  0xdf   :  { %v190_v17 = vmul.f32 %v385_v8, %v148_v13  ;;  %v305_v18 = vpop.f32.mrb[2].mxu1  ;;  %v186_v20 = vmul.f32 %v385_v8, %v132_v15  ;;  %v301_v21 = vpop.f32.mrb[2].mxu0 }
  0xe0   :  { %v211_v22 = vadd.f32 %v390_v10, %v192_v12  ;;  %v193_v24 = vmul.f32 %v305_v18, %v385_v8  ;;  %v151_v25 = vpop.f32.mrb[3].mxu1  ;;  %v207_v26 = vadd.f32 %v390_v10, %v188_v14  ;;  %v189_v28 = vmul.f32 %v301_v21, %v385_v8  ;;  %v135_v29 = vpop.f32.mrb[3].mxu0 }
  0xe1   :  { %v209_v30 = vadd.f32 %v390_v10, %v190_v17  ;;  %v191_v32 = vmul.f32 %v385_v8, %v151_v25  ;;  %v205_v33 = vadd.f32 %v390_v10, %v186_v20  ;;  %v187_v35 = vmul.f32 %v385_v8, %v135_v29 }
  0xe2   :  { %v235_v36 = vadd.f32 %v223_v16, %v211_v22  ;;  %v212_v37 = vadd.f32 %v390_v10, %v193_v24  ;;  %v231_v39 = vadd.f32 %v219_v19, %v207_v26  ;;  %v208_v40 = vadd.f32 %v390_v10, %v189_v28 }
  0xe3   :  { %v233_v42 = vadd.f32 %v221_v23, %v209_v30  ;;  %v210_v43 = vadd.f32 %v390_v10, %v191_v32  ;;  %v229_v44 = vadd.f32 %v217_v27, %v205_v33  ;;  %v206_v45 = vadd.f32 %v390_v10, %v187_v35 }
  0xe4   :  { %v247_v46 = vmax.f32 %v235_v36, 0.0  ;;  %v236_v47 = vadd.f32 %v224_v31, %v212_v37  ;;  %v243_v48 = vmax.f32 %v231_v39, 0.0  ;;  %v232_v49 = vadd.f32 %v220_v34, %v208_v40 }
  0xe5   :  { %v245_v50 = vmax.f32 %v233_v42, 0.0  ;;  %v234_v51 = vadd.f32 %v222_v38, %v210_v43  ;;  %v241_v52 = vmax.f32 %v229_v44, 0.0  ;;  %v230_v53 = vadd.f32 %v218_v41, %v206_v45  ;;  %v308_v54 = vpop.f32.mrb[4].mxu1 }
  0xe6   :  { %260 = vst.msk [vmem:[%s505_s5 + $0x30] sm:$0xff] %vm253_vm1, %v247_v46  ;;  %v248_v55 = vmax.f32 %v236_v47, 0.0  ;;  %256 = vst.msk [vmem:[%s505_s5 + $0x10] sm:$0xff] %vm253_vm1, %v243_v48  ;;  %v244_v56 = vmax.f32 %v232_v49, 0.0  ;;  %v196_v57 = vmul.f32 %v308_v54, %v385_v8  ;;  %v164_v58 = vpop.f32.mrb[5].mxu1 }
  0xe7   :  { %258 = vst.msk [vmem:[%s505_s5 + $0x20] sm:$0xff] %vm253_vm1, %v245_v50  ;;  %v246_v59 = vmax.f32 %v234_v51, 0.0  ;;  %254 = vst.msk [vmem:[%s505_s5] sm:$0xff] %vm253_vm1, %v241_v52  ;;  %v242_v60 = vmax.f32 %v230_v53, 0.0  ;;  %v194_v62 = vmul.f32 %v385_v8, %v164_v58  ;;  %v309_v63 = vpop.f32.mrb[6].mxu1 }
  0xe8   :  { %261 = vst.msk [vmem:[%s505_s5 + $0x38] sm:$0xff] %vm253_vm1, %v248_v55  ;;  %257 = vst.msk [vmem:[%s505_s5 + $0x18] sm:$0xff] %vm253_vm1, %v244_v56  ;;  %v215_v0 = vadd.f32 %v390_v10, %v196_v57  ;;  %v197_v2 = vmul.f32 %v309_v63, %v385_v8  ;;  %v167_v3 = vpop.f32.mrb[7].mxu1 }
  0xe9   :  { %259 = vst.msk [vmem:[%s505_s5 + $0x28] sm:$0xff] %vm253_vm1, %v246_v59  ;;  %255 = vst.msk [vmem:[%s505_s5 + $0x8] sm:$0xff] %vm253_vm1, %v242_v60  ;;  %v213_v4 = vadd.f32 %v390_v10, %v194_v62  ;;  %v195_v6 = vmul.f32 %v385_v8, %v167_v3 }
  0xea   :  { %v239_v7 = vadd.f32 %v227_v61, %v215_v0  ;;  %v216_v9 = vadd.f32 %v390_v10, %v197_v2 }
  0xeb   :  { %v237_v12 = vadd.f32 %v225_v1, %v213_v4  ;;  %v214_v13 = vadd.f32 %v390_v10, %v195_v6 }
  0xec   :  { %v251_v14 = vmax.f32 %v239_v7, 0.0  ;;  %v240_v15 = vadd.f32 %v228_v5, %v216_v9 }
  0xed   :  { %v249_v16 = vmax.f32 %v237_v12, 0.0  ;;  %v238_v17 = vadd.f32 %v226_v11, %v214_v13 }
  0xee   :  { %264 = vst.msk [vmem:[%s505_s5 + $0x50] sm:$0xff] %vm253_vm1, %v251_v14  ;;  %v252_v8 = vmax.f32 %v240_v15, 0.0 }
  0xef   :  { %262 = vst.msk [vmem:[%s505_s5 + $0x40] sm:$0xff] %vm253_vm1, %v249_v16  ;;  %v250_v18 = vmax.f32 %v238_v17, 0.0 }
  0xf0   :  { %265 = vst.msk [vmem:[%s505_s5 + $0x58] sm:$0xff] %vm253_vm1, %v252_v8 }
  0xf1   :  { %263 = vst.msk [vmem:[%s505_s5 + $0x48] sm:$0xff] %vm253_vm1, %v250_v18 }

// kernel: basicsknet_forward.33
= control target key start
LH: loop header
LB: loop body
LE: loop exit
PB: predicated region body
PF: predicated region fallthrough
CT: control target
= control target key end

     0   :  { %vm92_vm0 = vcmask 523264   ;;  %vm242_vm1 = vcmask 261120   ;;  %s440_s1 = inlined_call_operand.vmem [shape: bf16[64,32], index: 1, kind: input, shape index: {}]   ;;  %s441_s0 = inlined_call_operand.vmem [shape: bf16[96,64], index: 0, kind: input, shape index: {}]   ;;  %s442_s2 = inlined_call_operand.vmem [shape: f32[1,32], index: 2, kind: input, shape index: {}]   ;;  %s443_s3 = inlined_call_operand.vmem [shape: f32[1,32], index: 3, kind: input, shape index: {}]   ;;  %s444_s4 = inlined_call_operand.vmem [shape: f32[96,32], index: 4, kind: output, shape index: {}]  }
   0x1   :  { %v315_v0 = vld [vmem:[%s440_s1] sm:$0xff]   ;;  %v316_v1 = vld [vmem:[%s440_s1 + $0x8] sm:$0xff]   ;;  %v317_v2 = vld [vmem:[%s440_s1 + $0x10] sm:$0xff]  }
   0x2   :  { %307 = vmatprep.subr.bf16.mxu1 %v315_v0  ;;  %287 = vmatprep.subr.bf16.mxu0 %v315_v0  ;;  %v319_v3 = vld [vmem:[%s441_s0 + $0x10] sm:$0xff]   ;;  %v321_v4 = vld [vmem:[%s441_s0] sm:$0xff]   ;;  %v318_v5 = vld [vmem:[%s440_s1 + $0x18] sm:$0xff]  }
   0x3   :  { %311 = vmatpush3.bf16.msra.mxu1 %v315_v0  ;;  %288 = vmatpush3.bf16.msra.mxu0 %v315_v0  ;;  %v320_v6 = vld [vmem:[%s441_s0 + $0x18] sm:$0xff]   ;;  %v322_v7 = vld [vmem:[%s441_s0 + $0x8] sm:$0xff]   ;;  %v323_v8 = vld [vmem:[%s441_s0 + $0x20] sm:$0xff]  }
   0x4   :  { %308 = vmatprep.subr.bf16.mxu1 %v316_v1  ;;  %289 = vmatprep.subr.bf16.mxu0 %v316_v1  ;;  %v324_v9 = vld [vmem:[%s441_s0 + $0x28] sm:$0xff]   ;;  %v275_v10 = vld [vmem:[%s442_s2] ss:$0 sm:$0xff] }
   0x5   :  { %299 = vmatprep.mubr.msk.bf16.mxu1 %vm92_vm0, %v319_v3  ;;  %295 = vmatprep.mubr.msk.bf16.mxu0 %vm92_vm0, %v321_v4  ;;  %v276_v12 = vld [vmem:[%s443_s3] ss:$0 sm:$0xff] }
   0x7   :  { %312 = vmatpush3.bf16.msra.mxu1 %v316_v1  ;;  %290 = vmatpush3.bf16.msra.mxu0 %v316_v1 }
   0x8   :  { %309 = vmatprep.subr.bf16.mxu1 %v317_v2  ;;  %291 = vmatprep.subr.bf16.mxu0 %v317_v2 }
   0xb   :  { %313 = vmatpush3.bf16.msra.mxu1 %v317_v2  ;;  %292 = vmatpush3.bf16.msra.mxu0 %v317_v2 }
   0xc   :  { %310 = vmatprep.subr.bf16.mxu1 %v318_v5  ;;  %293 = vmatprep.subr.bf16.mxu0 %v318_v5 }
   0xf   :  { %314 = vmatpush3.bf16.msra.mxu1 %v318_v5  ;;  %294 = vmatpush3.bf16.msra.mxu0 %v318_v5 }
  0x12   :  { %300 = vmatmul.mubr.msk.bf16.vlgmr.msra.gmra.mrb[0].mxu1 %vm92_vm0, %v320_v6  ;;  %296 = vmatmul.mubr.msk.bf16.vlgmr.msra.gmra.mrb[0].mxu0 %vm92_vm0, %v322_v7 }
  0x13   :  { %303 = vmatprep.mubr.msk.bf16.mxu1 %vm92_vm0, %v323_v8 }
  0x1a   :  { %304 = vmatmul.mubr.msk.bf16.gmra.mrb[4].mxu1 %vm92_vm0, %v324_v9 }
  0xe5   :  { %v301_v11 = vpop.f32.mrb[0].mxu1  ;;  %v297_v13 = vpop.f32.mrb[0].mxu0 }
  0xe6   :  { %v205_v14 = vmul.f32 %v301_v11, %v275_v10  ;;  %v161_v15 = vpop.f32.mrb[1].mxu1  ;;  %v201_v16 = vmul.f32 %v297_v13, %v275_v10  ;;  %v145_v17 = vpop.f32.mrb[1].mxu0 }
  0xe7   :  { %v203_v18 = vmul.f32 %v275_v10, %v161_v15  ;;  %v302_v19 = vpop.f32.mrb[2].mxu1  ;;  %v199_v20 = vmul.f32 %v275_v10, %v145_v17  ;;  %v298_v21 = vpop.f32.mrb[2].mxu0 }
  0xe8   :  { %v224_v22 = vadd.f32 %v276_v12, %v205_v14  ;;  %v206_v23 = vmul.f32 %v302_v19, %v275_v10  ;;  %v164_v24 = vpop.f32.mrb[3].mxu1  ;;  %v220_v25 = vadd.f32 %v276_v12, %v201_v16  ;;  %v202_v26 = vmul.f32 %v298_v21, %v275_v10  ;;  %v148_v27 = vpop.f32.mrb[3].mxu0 }
  0xe9   :  { %v222_v28 = vadd.f32 %v276_v12, %v203_v18  ;;  %v204_v29 = vmul.f32 %v275_v10, %v164_v24  ;;  %v218_v30 = vadd.f32 %v276_v12, %v199_v20  ;;  %v200_v31 = vmul.f32 %v275_v10, %v148_v27 }
  0xea   :  { %v236_v32 = vmax.f32 %v224_v22, 0.0  ;;  %v225_v33 = vadd.f32 %v276_v12, %v206_v23  ;;  %v232_v34 = vmax.f32 %v220_v25, 0.0  ;;  %v221_v35 = vadd.f32 %v276_v12, %v202_v26 }
  0xeb   :  { %v234_v36 = vmax.f32 %v222_v28, 0.0  ;;  %v223_v37 = vadd.f32 %v276_v12, %v204_v29  ;;  %v230_v38 = vmax.f32 %v218_v30, 0.0  ;;  %v219_v39 = vadd.f32 %v276_v12, %v200_v31 }
  0xec   :  { %249 = vst.msk [vmem:[%s444_s4 + $0x30] sm:$0xff] %vm242_vm1, %v236_v32  ;;  %v237_v40 = vmax.f32 %v225_v33, 0.0  ;;  %245 = vst.msk [vmem:[%s444_s4 + $0x10] sm:$0xff] %vm242_vm1, %v232_v34  ;;  %v233_v41 = vmax.f32 %v221_v35, 0.0 }
  0xed   :  { %247 = vst.msk [vmem:[%s444_s4 + $0x20] sm:$0xff] %vm242_vm1, %v234_v36  ;;  %v235_v42 = vmax.f32 %v223_v37, 0.0  ;;  %243 = vst.msk [vmem:[%s444_s4] sm:$0xff] %vm242_vm1, %v230_v38  ;;  %v231_v43 = vmax.f32 %v219_v39, 0.0  ;;  %v305_v44 = vpop.f32.mrb[4].mxu1 }
  0xee   :  { %250 = vst.msk [vmem:[%s444_s4 + $0x38] sm:$0xff] %vm242_vm1, %v237_v40  ;;  %246 = vst.msk [vmem:[%s444_s4 + $0x18] sm:$0xff] %vm242_vm1, %v233_v41  ;;  %v209_v45 = vmul.f32 %v305_v44, %v275_v10  ;;  %v177_v46 = vpop.f32.mrb[5].mxu1 }
  0xef   :  { %248 = vst.msk [vmem:[%s444_s4 + $0x28] sm:$0xff] %vm242_vm1, %v235_v42  ;;  %244 = vst.msk [vmem:[%s444_s4 + $0x8] sm:$0xff] %vm242_vm1, %v231_v43  ;;  %v207_v47 = vmul.f32 %v275_v10, %v177_v46  ;;  %v306_v48 = vpop.f32.mrb[6].mxu1 }
  0xf0   :  { %v228_v49 = vadd.f32 %v276_v12, %v209_v45  ;;  %v210_v50 = vmul.f32 %v306_v48, %v275_v10  ;;  %v180_v51 = vpop.f32.mrb[7].mxu1 }
  0xf1   :  { %v226_v52 = vadd.f32 %v276_v12, %v207_v47  ;;  %v208_v53 = vmul.f32 %v275_v10, %v180_v51 }
  0xf2   :  { %v240_v54 = vmax.f32 %v228_v49, 0.0  ;;  %v229_v55 = vadd.f32 %v276_v12, %v210_v50 }
  0xf3   :  { %v238_v56 = vmax.f32 %v226_v52, 0.0  ;;  %v227_v57 = vadd.f32 %v276_v12, %v208_v53 }
  0xf4   :  { %253 = vst.msk [vmem:[%s444_s4 + $0x50] sm:$0xff] %vm242_vm1, %v240_v54  ;;  %v241_v58 = vmax.f32 %v229_v55, 0.0 }
  0xf5   :  { %251 = vst.msk [vmem:[%s444_s4 + $0x40] sm:$0xff] %vm242_vm1, %v238_v56  ;;  %v239_v59 = vmax.f32 %v227_v57, 0.0 }
  0xf6   :  { %254 = vst.msk [vmem:[%s444_s4 + $0x58] sm:$0xff] %vm242_vm1, %v241_v58 }
  0xf7   :  { %252 = vst.msk [vmem:[%s444_s4 + $0x48] sm:$0xff] %vm242_vm1, %v239_v59 }

// kernel: basicsknet_forward.37
= control target key start
LH: loop header
LB: loop body
LE: loop exit
PB: predicated region body
PF: predicated region fallthrough
CT: control target
= control target key end

     0   :  { %v224_v0 = vmov 0   ;;  %v225_v4 = vmov 1966171168   ;;  %v61_v6 = vlaneseq  ;;  %vm145_vm0 = vcmask 523264   ;;  %s291_s1 = inlined_call_operand.vmem [shape: bf16[192,1], index: 1, kind: input, shape index: {}]   ;;  %s292_s2 = inlined_call_operand.<no memory space> [shape: f32[1,1], index: 2, kind: input, shape index: {}]   ;;  %s293_s0 = inlined_call_operand.vmem [shape: bf16[2,192], index: 0, kind: input, shape index: {}]   ;;  %s294_s3 = inlined_call_operand.vmem [shape: f32[2,1], index: 3, kind: output, shape index: {}]  }
   0x1   :  { %149 = vmatprep.subr.bf16.mxu0 %v224_v0  ;;  %v212_v1 = vld [vmem:[%s291_s1] sm:$0xff]   ;;  %v8_v2 = vstv %s292_s2  ;;  %v213_v3 = vld [vmem:[%s291_s1 + $0x8] sm:$0xff]   ;;  %v59_v5 = vunpack.c.l.s4 %v225_v4  ;;  %v214_v7 = vld [vmem:[%s291_s1 + $0x10] sm:$0xff]   ;;  %vm189_vm1 = vcmask 1024  }
   0x2   :  { %9 = vst [vmem:[#allocation2] sm:$0x1] %v8_v2  ;;  %150 = vmatpush1.bf16.msra.mxu0 %v212_v1  ;;  %v62_v9 = vshrl.u32 %v61_v6, 7  ;;  %v215_v10 = vld [vmem:[%s291_s1 + $0x18] sm:$0xff]   ;;  %v216_v14 = vld [vmem:[%s291_s1 + $0x20] sm:$0xff]   ;;  %v217_v16 = vld [vmem:[%s291_s1 + $0x28] sm:$0xff]  }
   0x3   :  { %151 = vmatprep.subr.bf16.mxu0 %v224_v0  ;;  %v60_v8 = vunpack.c.0.s8 %v59_v5  ;;  %v196_v12 = vld.sshfl [vmem:[%s293_s0] sm:$0x11 pattern:$0x75316420]  ;;  %v218_v17 = vld [vmem:[%s291_s1 + $0x30] sm:$0xff]   ;;  %v219_v18 = vld [vmem:[%s291_s1 + $0x38] sm:$0xff]  }
   0x4   :  { %v57_v13 = vcombine.high %v196_v12, %v196_v12  ;;  %v220_v19 = vld [vmem:[%s291_s1 + $0x40] sm:$0xff]   ;;  %v221_v20 = vld [vmem:[%s291_s1 + $0x48] sm:$0xff]   ;;  %v222_v21 = vld [vmem:[%s291_s1 + $0x50] sm:$0xff]  }
   0x5   :  { %v63_v11 = vsub.s32 %v60_v8, %v62_v9  ;;  %v223_v22 = vld [vmem:[%s291_s1 + $0x58] sm:$0xff]  }
   0x6   :  { %152 = vmatpush1.bf16.msra.mxu0 %v213_v3 }
   0x7   :  { %153 = vmatprep.subr.bf16.mxu0 %v224_v0  ;;  %v71_v15 = vrot.slane %v57_v13, %v63_v11  ;;  %v64_v23 = vrot.slane %v196_v12, %v63_v11 }
   0x9   :  { %209 = vmatprep.mubr.msk.bf16.mxu0 %vm145_vm0, %v71_v15  ;;  %v195_v24 = vld [vmem:[#allocation2] ss:$0 sm:$0xff] }
   0xa   :  { %154 = vmatpush1.bf16.msra.mxu0 %v214_v7 }
   0xb   :  { %155 = vmatprep.subr.bf16.mxu0 %v224_v0 }
   0xe   :  { %156 = vmatpush1.bf16.msra.mxu0 %v215_v10 }
   0xf   :  { %157 = vmatprep.subr.bf16.mxu0 %v224_v0 }
  0x12   :  { %158 = vmatpush1.bf16.msra.mxu0 %v216_v14 }
  0x13   :  { %159 = vmatprep.subr.bf16.mxu0 %v224_v0 }
  0x16   :  { %160 = vmatpush1.bf16.msra.mxu0 %v217_v16 }
  0x17   :  { %161 = vmatprep.subr.bf16.mxu0 %v224_v0 }
  0x1a   :  { %162 = vmatpush1.bf16.msra.mxu0 %v218_v17 }
  0x1b   :  { %163 = vmatprep.subr.bf16.mxu0 %v224_v0 }
  0x1e   :  { %164 = vmatpush1.bf16.msra.mxu0 %v219_v18 }
  0x1f   :  { %165 = vmatprep.subr.bf16.mxu0 %v224_v0 }
  0x22   :  { %166 = vmatpush1.bf16.msra.mxu0 %v220_v19 }
  0x23   :  { %167 = vmatprep.subr.bf16.mxu0 %v224_v0 }
  0x26   :  { %168 = vmatpush1.bf16.msra.mxu0 %v221_v20 }
  0x27   :  { %169 = vmatprep.subr.bf16.mxu0 %v224_v0 }
  0x2a   :  { %170 = vmatpush1.bf16.msra.mxu0 %v222_v21 }
  0x2b   :  { %171 = vmatprep.subr.bf16.mxu0 %v224_v0 }
  0x2e   :  { %172 = vmatpush1.bf16.msra.mxu0 %v223_v22 }
  0x31   :  { %182 = vmatmul.mubr.bf16.vlgmr.msra.gmra.mrb[0].mxu0 %v64_v23 }
 0x104   :  { %v183_v25 = vpop.f32.mrb[0].mxu0 }
 0x105   :  { %v184_v26 = vadd.f32 %v195_v24, %v183_v25  ;;  %v185_v27 = vpop.f32.mrb[1].mxu0 }
 0x106   :  { %v186_v28 = vpop.f32.mrb[2].mxu0 }
 0x107   :  { %190 = vst.msk [vmem:[%s294_s3] sm:$0x3] %vm189_vm1, %v184_v26  ;;  %v187_v29 = vpop.f32.mrb[3].mxu0 }

</bundles_post_ra>
